<compile_context>
chip_gen: v7x
topology: tpu7x:2x2x1
jax: 0.10.0
libtpu: 0.0.40
codegen_flags: <defaults>
</compile_context>

<pallas_src>
import functools

import jax
import jax.numpy as jnp
from jax.experimental import pallas as pl
from jax.experimental.pallas import tpu as pltpu

NEG_SLOPE = 0.01   # nn.LeakyReLU default
BN_EPS = 1e-5      # nn.BatchNorm2d default


def _leaky(x):
    return jnp.where(x > 0, x, NEG_SLOPE * x)


# --------------------------------------------------------------------------
# In-kernel building blocks (single batch element, traced inside the kernel)
# --------------------------------------------------------------------------
def _similarity(v, e_last, w1, b1, w2, b2, w3r, b3, eye_plus_eps, one_minus_eye):
    """PointSimilarity / DistributionSimilarity ('l2' metric).

    v: (N, C) nodes, e_last: (N, N) edges.
    Returns (new_edge, node_similarity_l2), both (N, N)."""
    n, c = v.shape
    diff = v[:, None, :] - v[None, :, :]                 # (N, N, C)
    d2 = diff * diff
    nsim = -jnp.sum(d2, axis=-1)                         # (N, N)  node_similarity_l2
    d2f = d2.reshape(n * n, c)                           # (N*N, C) -> MXU rows

    h = _leaky(jnp.dot(d2f, w1, preferred_element_type=jnp.float32) + b1)
    h = _leaky(jnp.dot(h, w2, preferred_element_type=jnp.float32) + b2)
    # Final 1x1 conv to one channel: broadcast-multiply + lane reduce (keeps
    # the lane dim of h intact; avoids a (.,1)->(N,N) lane relayout).
    h3 = h.reshape(n, n, h.shape[1])                     # (N, N, H2)
    logit = jnp.sum(h3 * w3r, axis=-1) + b3              # (N, N); b3 is (1,1)
    sig = jax.nn.sigmoid(logit)

    e_m = e_last * one_minus_eye
    e_sum = jnp.sum(e_m, axis=-1, keepdims=True)
    x = sig * e_m
    # F.normalize(..., p=1, dim=-1); abs kept for exact parity (input edges
    # are not guaranteed non-negative on entry).
    x = x / jnp.maximum(jnp.sum(jnp.abs(x), axis=-1, keepdims=True), 1e-12)
    x = x * e_sum
    x = x + eye_plus_eps
    x = x / jnp.sum(x, axis=-1, keepdims=True)
    return x, nsim


def _p2d(pe, dn, wa, wb, b):
    """P2DAgg: LeakyReLU(cat([point_edge[:, :S], dist_node], -1) @ W + b).
    Split-K form (pe[:, :S] @ Wa + dn @ Wb) is identical, no lane concat."""
    s = dn.shape[1]
    out = (jnp.dot(pe[:, :s], wa, preferred_element_type=jnp.float32)
           + jnp.dot(dn, wb, preferred_element_type=jnp.float32) + b)
    return _leaky(out)


def _d2p(de, pn, w1a, w1b, b1, w2, b2, one_minus_eye):
    """D2PAgg: masked L1-normalized aggregation + 2-layer 1x1-conv MLP."""
    e = de * one_minus_eye
    e = e / jnp.maximum(jnp.sum(jnp.abs(e), axis=-1, keepdims=True), 1e-12)
    aggr = jnp.dot(e, pn, preferred_element_type=jnp.float32)        # (N, C)
    # cat([pn, aggr], -1) @ W1  ==  pn @ W1a + aggr @ W1b
    h = _leaky(jnp.dot(pn, w1a, preferred_element_type=jnp.float32)
               + jnp.dot(aggr, w1b, preferred_element_type=jnp.float32) + b1)
    return _leaky(jnp.dot(h, w2, preferred_element_type=jnp.float32) + b2)


# --------------------------------------------------------------------------
# The fused kernel: one batch element per grid step, all generations inside.
# --------------------------------------------------------------------------
def _dual_graph_kernel(
        # per-batch state (squeezed batch dim), VMEM
        mid_ref, pn_ref, dn_ref, de_ref, pe_ref,
        # PointSimilarity stack (index 0 == initial_edge), VMEM
        ps_w1_ref, ps_b1_ref, ps_w2_ref, ps_b2_ref, ps_w3r_ref, ps_b3_ref,
        # P2DAgg stack, VMEM
        p2d_wa_ref, p2d_wb_ref, p2d_b_ref,
        # DistributionSimilarity stack, VMEM
        ds_w1_ref, ds_b1_ref, ds_w2_ref, ds_b2_ref, ds_w3r_ref, ds_b3_ref,
        # D2PAgg stack, VMEM
        d2p_w1a_ref, d2p_w1b_ref, d2p_b1_ref, d2p_w2_ref, d2p_b2_ref,
        # packed per-generation outputs: (G, N, 3N + C + S)
        out_ref):
    n = pe_ref.shape[0]
    c = pn_ref.shape[1]
    s = dn_ref.shape[1]
    gens = p2d_wa_ref.shape[0]

    # Hoisted diagonal-mask constants (built once, reused by every call).
    rows = jax.lax.broadcasted_iota(jnp.int32, (n, n), 0)
    cols = jax.lax.broadcasted_iota(jnp.int32, (n, n), 1)
    eye = (rows == cols).astype(jnp.float32)
    one_minus_eye = 1.0 - eye
    eye_plus_eps = eye + 1e-6

    pn = pn_ref[...]
    dn = dn_ref[...]
    de = de_ref[...]
    pe = pe_ref[...]

    # initial_edge: PointSimilarity on middle_node (node similarity discarded)
    pe, _ = _similarity(mid_ref[...], pe,
                        ps_w1_ref[0], ps_b1_ref[0], ps_w2_ref[0], ps_b2_ref[0],
                        ps_w3r_ref[0], ps_b3_ref[0], eye_plus_eps, one_minus_eye)

    # TODO(synk): for large num_generations move this trace-time unroll onto a
    # grid=(G,) "arbitrary" axis (per-generation weight/output blocks, state in
    # VMEM scratch) to bound VMEM residency and vreg pressure; at G=2 the
    # unrolled form is neutral and keeps all weights resident.
    for l in range(gens):
        pe, nsim = _similarity(pn, pe,
                               ps_w1_ref[l + 1], ps_b1_ref[l + 1],
                               ps_w2_ref[l + 1], ps_b2_ref[l + 1],
                               ps_w3r_ref[l + 1], ps_b3_ref[l + 1],
                               eye_plus_eps, one_minus_eye)
        dn = _p2d(pe, dn, p2d_wa_ref[l], p2d_wb_ref[l], p2d_b_ref[l])
        de, _ = _similarity(dn, de,
                            ds_w1_ref[l], ds_b1_ref[l], ds_w2_ref[l],
                            ds_b2_ref[l], ds_w3r_ref[l], ds_b3_ref[l],
                            eye_plus_eps, one_minus_eye)
        pn = _d2p(de, pn, d2p_w1a_ref[l], d2p_w1b_ref[l], d2p_b1_ref[l],
                  d2p_w2_ref[l], d2p_b2_ref[l], one_minus_eye)

        # Packed output slab: contiguous column ranges [pe|nsim|de|pn|dn].
        out_ref[l, :, 0:n] = pe
        out_ref[l, :, n:2 * n] = nsim
        out_ref[l, :, 2 * n:3 * n] = de
        out_ref[l, :, 3 * n:3 * n + c] = pn
        out_ref[l, :, 3 * n + c:3 * n + c + s] = dn


# --------------------------------------------------------------------------
# DualGraph forward (single pallas_call, grid over batch)
# --------------------------------------------------------------------------
def dual_graph_forward(params, middle_node, point_node, distribution_node,
                       distribution_edge, point_edge, *, num_generations):
    B, N, C = point_node.shape
    S = distribution_node.shape[2]
    G = num_generations
    W = 3 * N + C + S   # packed output width

    def state_spec(arr):
        nd = arr.ndim

        def idx(b, _nd=nd):
            return (b,) + (0,) * (_nd - 1)

        return pl.BlockSpec((None,) + arr.shape[1:], idx)   # squeeze batch dim

    def weight_spec(arr):
        nd = arr.ndim

        def idx(b, _nd=nd):
            return (0,) * _nd                                # resident across grid

        return pl.BlockSpec(arr.shape, idx)

    state_inputs = (middle_node, point_node, distribution_node,
                    distribution_edge, point_edge)
    weight_inputs = (
        params["psim_W1"], params["psim_b1"], params["psim_W2"],
        params["psim_b2"], params["psim_w3r"], params["psim_b3"],
        params["p2d_Wa"], params["p2d_Wb"], params["p2d_b"],
        params["dsim_W1"], params["dsim_b1"], params["dsim_W2"],
        params["dsim_b2"], params["dsim_w3r"], params["dsim_b3"],
        params["d2p_W1a"], params["d2p_W1b"], params["d2p_b1"],
        params["d2p_W2"], params["d2p_b2"],
    )

    in_specs = ([state_spec(x) for x in state_inputs]
                + [weight_spec(w) for w in weight_inputs])
    out_spec = pl.BlockSpec((None, G, N, W), lambda b: (b, 0, 0, 0))

    packed = pl.pallas_call(
        _dual_graph_kernel,
        grid=(B,),
        out_shape=jax.ShapeDtypeStruct((B, G, N, W), jnp.float32),
        in_specs=in_specs,
        out_specs=out_spec,
        compiler_params=pltpu.CompilerParams(
            dimension_semantics=("parallel",),        # v7x: batch -> 2 TCs
            vmem_limit_bytes=64 * 1024 * 1024),
    )(*state_inputs, *weight_inputs)

    # Split the packed slab back into the five per-generation output lists.
    pe_s = packed[:, :, :, 0:N]
    nsim_s = packed[:, :, :, N:2 * N]
    de_s = packed[:, :, :, 2 * N:3 * N]
    pn_s = packed[:, :, :, 3 * N:3 * N + C]
    dn_s = packed[:, :, :, 3 * N + C:3 * N + C + S]

    point_similarities = [pe_s[:, l] for l in range(G)]
    node_similarities_l2 = [nsim_s[:, l] for l in range(G)]
    distribution_similarities = [de_s[:, l] for l in range(G)]
    point_nodes = [pn_s[:, l] for l in range(G)]
    distribution_nodes = [dn_s[:, l] for l in range(G)]
    return (point_similarities, node_similarities_l2,
            distribution_similarities, point_nodes, distribution_nodes)


# --------------------------------------------------------------------------
# Deterministic parameter init (eval-mode BatchNorm folded into conv weights)
# --------------------------------------------------------------------------
def _fold_bn(W, gamma, beta, mean, var, eps=BN_EPS):
    scale = gamma / jnp.sqrt(var + eps)
    return W * scale[None, :], beta - mean * scale


def _init_sim(key, in_c, base_c):
    ks = jax.random.split(key, 4)
    W1 = jax.random.normal(ks[0], (in_c, base_c * 2), jnp.float32) / jnp.sqrt(float(in_c))
    W2 = jax.random.normal(ks[1], (base_c * 2, base_c), jnp.float32) / jnp.sqrt(float(base_c * 2))
    W3 = jax.random.normal(ks[2], (base_c, 1), jnp.float32) / jnp.sqrt(float(base_c))
    b3 = jax.random.normal(ks[3], (), jnp.float32) * 0.01
    c1, c2 = base_c * 2, base_c
    W1f, b1f = _fold_bn(W1, jnp.ones(c1), jnp.zeros(c1), jnp.zeros(c1), jnp.ones(c1))
    W2f, b2f = _fold_bn(W2, jnp.ones(c2), jnp.zeros(c2), jnp.zeros(c2), jnp.ones(c2))
    return {"W1": W1f, "b1": b1f[None, :], "W2": W2f, "b2": b2f[None, :],
            "w3r": W3.T, "b3": b3.reshape(1, 1)}


def _init_p2d(key, s):
    ks = jax.random.split(key, 2)
    W = jax.random.normal(ks[0], (2 * s, s), jnp.float32) / jnp.sqrt(float(2 * s))
    b = jax.random.normal(ks[1], (s,), jnp.float32) * 0.01
    return {"Wa": W[:s], "Wb": W[s:], "b": b[None, :]}


def _init_d2p(key, emb):
    in_c, base_c = 2 * emb, emb
    ks = jax.random.split(key, 2)
    W1 = jax.random.normal(ks[0], (in_c, base_c * 2), jnp.float32) / jnp.sqrt(float(in_c))
    W2 = jax.random.normal(ks[1], (base_c * 2, base_c), jnp.float32) / jnp.sqrt(float(base_c * 2))
    c1, c2 = base_c * 2, base_c
    W1f, b1f = _fold_bn(W1, jnp.ones(c1), jnp.zeros(c1), jnp.zeros(c1), jnp.ones(c1))
    W2f, b2f = _fold_bn(W2, jnp.ones(c2), jnp.zeros(c2), jnp.zeros(c2), jnp.ones(c2))
    return {"W1a": W1f[:emb], "W1b": W1f[emb:], "b1": b1f[None, :],
            "W2": W2f, "b2": b2f[None, :]}


def init_dual_graph_params(key, emb, s, gens):
    keys = jax.random.split(key, 1 + 4 * gens)
    psim = [_init_sim(keys[0], emb, emb)]      # index 0 == initial_edge
    p2d, dsim, d2p = [], [], []
    for l in range(gens):
        k = keys[1 + 4 * l: 1 + 4 * (l + 1)]
        psim.append(_init_sim(k[0], emb, emb))
        p2d.append(_init_p2d(k[1], s))
        dsim.append(_init_sim(k[2], s, s))
        d2p.append(_init_d2p(k[3], emb))

    def stack(dicts, name):
        return jnp.stack([d[name] for d in dicts], axis=0)

    return {
        "psim_W1": stack(psim, "W1"), "psim_b1": stack(psim, "b1"),
        "psim_W2": stack(psim, "W2"), "psim_b2": stack(psim, "b2"),
        "psim_w3r": stack(psim, "w3r"), "psim_b3": stack(psim, "b3"),
        "p2d_Wa": stack(p2d, "Wa"), "p2d_Wb": stack(p2d, "Wb"),
        "p2d_b": stack(p2d, "b"),
        "dsim_W1": stack(dsim, "W1"), "dsim_b1": stack(dsim, "b1"),
        "dsim_W2": stack(dsim, "W2"), "dsim_b2": stack(dsim, "b2"),
        "dsim_w3r": stack(dsim, "w3r"), "dsim_b3": stack(dsim, "b3"),
        "d2p_W1a": stack(d2p, "W1a"), "d2p_W1b": stack(d2p, "W1b"),
        "d2p_b1": stack(d2p, "b1"),
        "d2p_W2": stack(d2p, "W2"), "d2p_b2": stack(d2p, "b2"),
    }


if __name__ == "__main__":
    B, N, S, EMB, GENS = 2, 8, 4, 32, 2   # batch, num_sample, num_support_sample, emb_size, generations

    key = jax.random.PRNGKey(0)
    kp, kin = jax.random.split(key)
    params = init_dual_graph_params(kp, EMB, S, GENS)

    k1, k2, k3, k4, k5 = jax.random.split(kin, 5)
    middle_node = jax.random.normal(k1, (B, N, EMB), jnp.float32)
    point_node = jax.random.normal(k2, (B, N, EMB), jnp.float32)
    distribution_node = jax.random.normal(k3, (B, N, S), jnp.float32)
    distribution_edge = jax.random.uniform(k4, (B, N, N), jnp.float32)
    point_edge = jax.random.uniform(k5, (B, N, N), jnp.float32)

    fwd = jax.jit(functools.partial(dual_graph_forward, num_generations=GENS))
    outs = fwd(params, middle_node, point_node, distribution_node,
               distribution_edge, point_edge)
    jax.block_until_ready(outs)
    print("KERNEL_OK")
</pallas_src>

<mosaic_0001>
module attributes {stable_mosaic.version = 11 : i64} {
  func.func @_dual_graph_kernel(%arg0: i32, %arg1: memref<1x8x32xf32, #tpu.memory_space<vmem>>, %arg2: memref<1x8x32xf32, #tpu.memory_space<vmem>>, %arg3: memref<1x8x4xf32, #tpu.memory_space<vmem>>, %arg4: memref<1x8x8xf32, #tpu.memory_space<vmem>>, %arg5: memref<1x8x8xf32, #tpu.memory_space<vmem>>, %arg6: memref<3x32x64xf32, #tpu.memory_space<vmem>>, %arg7: memref<3x1x64xf32, #tpu.memory_space<vmem>>, %arg8: memref<3x64x32xf32, #tpu.memory_space<vmem>>, %arg9: memref<3x1x32xf32, #tpu.memory_space<vmem>>, %arg10: memref<3x1x32xf32, #tpu.memory_space<vmem>>, %arg11: memref<3x1x1xf32, #tpu.memory_space<vmem>>, %arg12: memref<2x4x4xf32, #tpu.memory_space<vmem>>, %arg13: memref<2x4x4xf32, #tpu.memory_space<vmem>>, %arg14: memref<2x1x4xf32, #tpu.memory_space<vmem>>, %arg15: memref<2x4x8xf32, #tpu.memory_space<vmem>>, %arg16: memref<2x1x8xf32, #tpu.memory_space<vmem>>, %arg17: memref<2x8x4xf32, #tpu.memory_space<vmem>>, %arg18: memref<2x1x4xf32, #tpu.memory_space<vmem>>, %arg19: memref<2x1x4xf32, #tpu.memory_space<vmem>>, %arg20: memref<2x1x1xf32, #tpu.memory_space<vmem>>, %arg21: memref<2x32x64xf32, #tpu.memory_space<vmem>>, %arg22: memref<2x32x64xf32, #tpu.memory_space<vmem>>, %arg23: memref<2x1x64xf32, #tpu.memory_space<vmem>>, %arg24: memref<2x64x32xf32, #tpu.memory_space<vmem>>, %arg25: memref<2x1x32xf32, #tpu.memory_space<vmem>>, %arg26: memref<1x2x8x60xf32, #tpu.memory_space<vmem>>) attributes {dimension_semantics = [#tpu.dimension_semantics<parallel>], iteration_bounds = array<i64: 2>, scalar_prefetch = 0 : i64, scratch_operands = 0 : i64, tpu.core_type = #tpu.core_type<tc>, window_params = [{transform_indices = @transform_0, window_bounds = array<i64: 1, 8, 32>}, {transform_indices = @transform_1, window_bounds = array<i64: 1, 8, 32>}, {transform_indices = @transform_2, window_bounds = array<i64: 1, 8, 4>}, {transform_indices = @transform_3, window_bounds = array<i64: 1, 8, 8>}, {transform_indices = @transform_4, window_bounds = array<i64: 1, 8, 8>}, {pipeline_mode = #tpu.pipeline_mode<synchronous>, transform_indices = @transform_5, window_bounds = array<i64: 3, 32, 64>}, {pipeline_mode = #tpu.pipeline_mode<synchronous>, transform_indices = @transform_6, window_bounds = array<i64: 3, 1, 64>}, {pipeline_mode = #tpu.pipeline_mode<synchronous>, transform_indices = @transform_7, window_bounds = array<i64: 3, 64, 32>}, {pipeline_mode = #tpu.pipeline_mode<synchronous>, transform_indices = @transform_8, window_bounds = array<i64: 3, 1, 32>}, {pipeline_mode = #tpu.pipeline_mode<synchronous>, transform_indices = @transform_9, window_bounds = array<i64: 3, 1, 32>}, {pipeline_mode = #tpu.pipeline_mode<synchronous>, transform_indices = @transform_10, window_bounds = array<i64: 3, 1, 1>}, {pipeline_mode = #tpu.pipeline_mode<synchronous>, transform_indices = @transform_11, window_bounds = array<i64: 2, 4, 4>}, {pipeline_mode = #tpu.pipeline_mode<synchronous>, transform_indices = @transform_12, window_bounds = array<i64: 2, 4, 4>}, {pipeline_mode = #tpu.pipeline_mode<synchronous>, transform_indices = @transform_13, window_bounds = array<i64: 2, 1, 4>}, {pipeline_mode = #tpu.pipeline_mode<synchronous>, transform_indices = @transform_14, window_bounds = array<i64: 2, 4, 8>}, {pipeline_mode = #tpu.pipeline_mode<synchronous>, transform_indices = @transform_15, window_bounds = array<i64: 2, 1, 8>}, {pipeline_mode = #tpu.pipeline_mode<synchronous>, transform_indices = @transform_16, window_bounds = array<i64: 2, 8, 4>}, {pipeline_mode = #tpu.pipeline_mode<synchronous>, transform_indices = @transform_17, window_bounds = array<i64: 2, 1, 4>}, {pipeline_mode = #tpu.pipeline_mode<synchronous>, transform_indices = @transform_18, window_bounds = array<i64: 2, 1, 4>}, {pipeline_mode = #tpu.pipeline_mode<synchronous>, transform_indices = @transform_19, window_bounds = array<i64: 2, 1, 1>}, {pipeline_mode = #tpu.pipeline_mode<synchronous>, transform_indices = @transform_20, window_bounds = array<i64: 2, 32, 64>}, {pipeline_mode = #tpu.pipeline_mode<synchronous>, transform_indices = @transform_21, window_bounds = array<i64: 2, 32, 64>}, {pipeline_mode = #tpu.pipeline_mode<synchronous>, transform_indices = @transform_22, window_bounds = array<i64: 2, 1, 64>}, {pipeline_mode = #tpu.pipeline_mode<synchronous>, transform_indices = @transform_23, window_bounds = array<i64: 2, 64, 32>}, {pipeline_mode = #tpu.pipeline_mode<synchronous>, transform_indices = @transform_24, window_bounds = array<i64: 2, 1, 32>}, {transform_indices = @transform_25, window_bounds = array<i64: 1, 2, 8, 60>}]} {
    %0 = tpu.iota {dimensions = array<i32: 0>} : vector<8x8xi32>
    %1 = tpu.iota {dimensions = array<i32: 1>} : vector<8x8xi32>
    %2 = arith.cmpi eq, %0, %1 : vector<8x8xi32>
    %3 = arith.extui %2 : vector<8x8xi1> to vector<8x8xi32>
    %4 = arith.sitofp %3 : vector<8x8xi32> to vector<8x8xf32>
    %cst = arith.constant 1.000000e+00 : f32
    %5 = vector.broadcast %cst : f32 to vector<8x8xf32>
    %6 = arith.subf %5, %4 : vector<8x8xf32>
    %cst_0 = arith.constant 9.99999997E-7 : f32
    %7 = vector.broadcast %cst_0 : f32 to vector<8x8xf32>
    %8 = arith.addf %4, %7 : vector<8x8xf32>
    %c0 = arith.constant 0 : index
    %c0_1 = arith.constant 0 : index
    %c0_2 = arith.constant 0 : index
    %9 = vector.load %arg2[%c0, %c0_1, %c0_2] : memref<1x8x32xf32, #tpu.memory_space<vmem>>, vector<1x8x32xf32>
    %10 = vector.shape_cast %9 : vector<1x8x32xf32> to vector<8x32xf32>
    %c0_3 = arith.constant 0 : index
    %c0_4 = arith.constant 0 : index
    %c0_5 = arith.constant 0 : index
    %11 = vector.load %arg3[%c0_3, %c0_4, %c0_5] : memref<1x8x4xf32, #tpu.memory_space<vmem>>, vector<1x8x4xf32>
    %12 = vector.shape_cast %11 : vector<1x8x4xf32> to vector<8x4xf32>
    %c0_6 = arith.constant 0 : index
    %c0_7 = arith.constant 0 : index
    %c0_8 = arith.constant 0 : index
    %13 = vector.load %arg4[%c0_6, %c0_7, %c0_8] : memref<1x8x8xf32, #tpu.memory_space<vmem>>, vector<1x8x8xf32>
    %14 = vector.shape_cast %13 : vector<1x8x8xf32> to vector<8x8xf32>
    %c0_9 = arith.constant 0 : index
    %c0_10 = arith.constant 0 : index
    %c0_11 = arith.constant 0 : index
    %15 = vector.load %arg5[%c0_9, %c0_10, %c0_11] : memref<1x8x8xf32, #tpu.memory_space<vmem>>, vector<1x8x8xf32>
    %16 = vector.shape_cast %15 : vector<1x8x8xf32> to vector<8x8xf32>
    %c0_12 = arith.constant 0 : index
    %c0_13 = arith.constant 0 : index
    %c0_14 = arith.constant 0 : index
    %17 = vector.load %arg1[%c0_12, %c0_13, %c0_14] : memref<1x8x32xf32, #tpu.memory_space<vmem>>, vector<1x8x32xf32>
    %18 = vector.shape_cast %17 : vector<1x8x32xf32> to vector<8x32xf32>
    %c0_15 = arith.constant 0 : index
    %c0_16 = arith.constant 0 : index
    %c0_17 = arith.constant 0 : index
    %19 = vector.load %arg6[%c0_15, %c0_16, %c0_17] : memref<3x32x64xf32, #tpu.memory_space<vmem>>, vector<1x32x64xf32>
    %20 = vector.shape_cast %19 : vector<1x32x64xf32> to vector<32x64xf32>
    %c0_18 = arith.constant 0 : index
    %c0_19 = arith.constant 0 : index
    %c0_20 = arith.constant 0 : index
    %21 = vector.load %arg7[%c0_18, %c0_19, %c0_20] : memref<3x1x64xf32, #tpu.memory_space<vmem>>, vector<1x1x64xf32>
    %22 = vector.shape_cast %21 : vector<1x1x64xf32> to vector<1x64xf32>
    %c0_21 = arith.constant 0 : index
    %c0_22 = arith.constant 0 : index
    %c0_23 = arith.constant 0 : index
    %23 = vector.load %arg8[%c0_21, %c0_22, %c0_23] : memref<3x64x32xf32, #tpu.memory_space<vmem>>, vector<1x64x32xf32>
    %24 = vector.shape_cast %23 : vector<1x64x32xf32> to vector<64x32xf32>
    %c0_24 = arith.constant 0 : index
    %c0_25 = arith.constant 0 : index
    %c0_26 = arith.constant 0 : index
    %25 = vector.load %arg9[%c0_24, %c0_25, %c0_26] : memref<3x1x32xf32, #tpu.memory_space<vmem>>, vector<1x1x32xf32>
    %26 = vector.shape_cast %25 : vector<1x1x32xf32> to vector<1x32xf32>
    %c0_27 = arith.constant 0 : index
    %c0_28 = arith.constant 0 : index
    %c0_29 = arith.constant 0 : index
    %27 = vector.load %arg10[%c0_27, %c0_28, %c0_29] : memref<3x1x32xf32, #tpu.memory_space<vmem>>, vector<1x1x32xf32>
    %28 = vector.shape_cast %27 : vector<1x1x32xf32> to vector<1x32xf32>
    %c0_30 = arith.constant 0 : index
    %c0_31 = arith.constant 0 : index
    %c0_32 = arith.constant 0 : index
    %29 = vector.load %arg11[%c0_30, %c0_31, %c0_32] : memref<3x1x1xf32, #tpu.memory_space<vmem>>, vector<1x1x1xf32>
    %30 = vector.shape_cast %29 : vector<1x1x1xf32> to vector<1x1xf32>
    %31 = vector.shape_cast %18 : vector<8x32xf32> to vector<8x1x32xf32>
    %32 = vector.shape_cast %18 : vector<8x32xf32> to vector<1x8x32xf32>
    %33 = vector.broadcast %31 : vector<8x1x32xf32> to vector<8x8x32xf32>
    %34 = vector.broadcast %32 : vector<1x8x32xf32> to vector<8x8x32xf32>
    %35 = arith.subf %33, %34 : vector<8x8x32xf32>
    %36 = arith.mulf %35, %35 : vector<8x8x32xf32>
    %37 = vector.shape_cast %36 : vector<8x8x32xf32> to vector<64x32xf32>
    %cst_33 = arith.constant dense<0.000000e+00> : vector<64x64xf32>
    %38 = tpu.matmul %37, %20, %cst_33 {dimension_numbers = #tpu.dot_dimension_numbers<[1], [0], [0], [1], [0, 0, 1, 1], [], []>} : vector<64x32xf32>, vector<32x64xf32>, vector<64x64xf32> -> vector<64x64xf32>
    %39 = vector.broadcast %22 : vector<1x64xf32> to vector<64x64xf32>
    %40 = arith.addf %38, %39 : vector<64x64xf32>
    %cst_34 = arith.constant 0.000000e+00 : f32
    %41 = vector.broadcast %cst_34 : f32 to vector<64x64xf32>
    %42 = arith.cmpf ogt, %40, %41 : vector<64x64xf32>
    %cst_35 = arith.constant 0.00999999977 : f32
    %43 = vector.broadcast %cst_35 : f32 to vector<64x64xf32>
    %44 = arith.mulf %43, %40 : vector<64x64xf32>
    %45 = arith.select %42, %40, %44 : vector<64x64xi1>, vector<64x64xf32>
    %cst_36 = arith.constant dense<0.000000e+00> : vector<64x32xf32>
    %46 = tpu.matmul %45, %24, %cst_36 {dimension_numbers = #tpu.dot_dimension_numbers<[1], [0], [0], [1], [0, 0, 1, 1], [], []>} : vector<64x64xf32>, vector<64x32xf32>, vector<64x32xf32> -> vector<64x32xf32>
    %47 = vector.broadcast %26 : vector<1x32xf32> to vector<64x32xf32>
    %48 = arith.addf %46, %47 : vector<64x32xf32>
    %cst_37 = arith.constant 0.000000e+00 : f32
    %49 = vector.broadcast %cst_37 : f32 to vector<64x32xf32>
    %50 = arith.cmpf ogt, %48, %49 : vector<64x32xf32>
    %cst_38 = arith.constant 0.00999999977 : f32
    %51 = vector.broadcast %cst_38 : f32 to vector<64x32xf32>
    %52 = arith.mulf %51, %48 : vector<64x32xf32>
    %53 = arith.select %50, %48, %52 : vector<64x32xi1>, vector<64x32xf32>
    %54 = vector.shape_cast %53 : vector<64x32xf32> to vector<8x8x32xf32>
    %55 = vector.shape_cast %28 : vector<1x32xf32> to vector<1x1x32xf32>
    %56 = vector.broadcast %55 : vector<1x1x32xf32> to vector<8x8x32xf32>
    %57 = arith.mulf %54, %56 : vector<8x8x32xf32>
    %cst_39 = arith.constant dense<0.000000e+00> : vector<8x8xf32>
    %58 = vector.multi_reduction <add>, %57, %cst_39 [2] : vector<8x8x32xf32> to vector<8x8xf32>
    %59 = vector.broadcast %30 : vector<1x1xf32> to vector<8x8xf32>
    %60 = arith.addf %58, %59 : vector<8x8xf32>
    %61 = arith.negf %60 : vector<8x8xf32>
    %62 = math.exp %61 : vector<8x8xf32>
    %cst_40 = arith.constant 1.000000e+00 : f32
    %63 = vector.broadcast %cst_40 : f32 to vector<8x8xf32>
    %64 = arith.addf %63, %62 : vector<8x8xf32>
    %65 = arith.divf %63, %64 : vector<8x8xf32>
    %66 = arith.mulf %16, %6 : vector<8x8xf32>
    %cst_41 = arith.constant dense<0.000000e+00> : vector<8xf32>
    %67 = vector.multi_reduction <add>, %66, %cst_41 [1] : vector<8x8xf32> to vector<8xf32>
    %68 = vector.shape_cast %67 : vector<8xf32> to vector<8x1xf32>
    %69 = arith.mulf %65, %66 : vector<8x8xf32>
    %70 = math.absf %69 : vector<8x8xf32>
    %cst_42 = arith.constant dense<0.000000e+00> : vector<8xf32>
    %71 = vector.multi_reduction <add>, %70, %cst_42 [1] : vector<8x8xf32> to vector<8xf32>
    %72 = vector.shape_cast %71 : vector<8xf32> to vector<8x1xf32>
    %cst_43 = arith.constant 9.99999996E-13 : f32
    %73 = vector.broadcast %cst_43 : f32 to vector<8x1xf32>
    %74 = arith.maximumf %72, %73 : vector<8x1xf32>
    %75 = vector.broadcast %74 : vector<8x1xf32> to vector<8x8xf32>
    %76 = arith.divf %69, %75 : vector<8x8xf32>
    %77 = vector.broadcast %68 : vector<8x1xf32> to vector<8x8xf32>
    %78 = arith.mulf %76, %77 : vector<8x8xf32>
    %79 = arith.addf %78, %8 : vector<8x8xf32>
    %cst_44 = arith.constant dense<0.000000e+00> : vector<8xf32>
    %80 = vector.multi_reduction <add>, %79, %cst_44 [1] : vector<8x8xf32> to vector<8xf32>
    %81 = vector.shape_cast %80 : vector<8xf32> to vector<8x1xf32>
    %82 = vector.broadcast %81 : vector<8x1xf32> to vector<8x8xf32>
    %83 = arith.divf %79, %82 : vector<8x8xf32>
    %c1 = arith.constant 1 : index
    %c0_45 = arith.constant 0 : index
    %c0_46 = arith.constant 0 : index
    %84 = vector.load %arg6[%c1, %c0_45, %c0_46] : memref<3x32x64xf32, #tpu.memory_space<vmem>>, vector<1x32x64xf32>
    %85 = vector.shape_cast %84 : vector<1x32x64xf32> to vector<32x64xf32>
    %c1_47 = arith.constant 1 : index
    %c0_48 = arith.constant 0 : index
    %c0_49 = arith.constant 0 : index
    %86 = vector.load %arg7[%c1_47, %c0_48, %c0_49] : memref<3x1x64xf32, #tpu.memory_space<vmem>>, vector<1x1x64xf32>
    %87 = vector.shape_cast %86 : vector<1x1x64xf32> to vector<1x64xf32>
    %c1_50 = arith.constant 1 : index
    %c0_51 = arith.constant 0 : index
    %c0_52 = arith.constant 0 : index
    %88 = vector.load %arg8[%c1_50, %c0_51, %c0_52] : memref<3x64x32xf32, #tpu.memory_space<vmem>>, vector<1x64x32xf32>
    %89 = vector.shape_cast %88 : vector<1x64x32xf32> to vector<64x32xf32>
    %c1_53 = arith.constant 1 : index
    %c0_54 = arith.constant 0 : index
    %c0_55 = arith.constant 0 : index
    %90 = vector.load %arg9[%c1_53, %c0_54, %c0_55] : memref<3x1x32xf32, #tpu.memory_space<vmem>>, vector<1x1x32xf32>
    %91 = vector.shape_cast %90 : vector<1x1x32xf32> to vector<1x32xf32>
    %c1_56 = arith.constant 1 : index
    %c0_57 = arith.constant 0 : index
    %c0_58 = arith.constant 0 : index
    %92 = vector.load %arg10[%c1_56, %c0_57, %c0_58] : memref<3x1x32xf32, #tpu.memory_space<vmem>>, vector<1x1x32xf32>
    %93 = vector.shape_cast %92 : vector<1x1x32xf32> to vector<1x32xf32>
    %c1_59 = arith.constant 1 : index
    %c0_60 = arith.constant 0 : index
    %c0_61 = arith.constant 0 : index
    %94 = vector.load %arg11[%c1_59, %c0_60, %c0_61] : memref<3x1x1xf32, #tpu.memory_space<vmem>>, vector<1x1x1xf32>
    %95 = vector.shape_cast %94 : vector<1x1x1xf32> to vector<1x1xf32>
    %96 = vector.shape_cast %10 : vector<8x32xf32> to vector<8x1x32xf32>
    %97 = vector.shape_cast %10 : vector<8x32xf32> to vector<1x8x32xf32>
    %98 = vector.broadcast %96 : vector<8x1x32xf32> to vector<8x8x32xf32>
    %99 = vector.broadcast %97 : vector<1x8x32xf32> to vector<8x8x32xf32>
    %100 = arith.subf %98, %99 : vector<8x8x32xf32>
    %101 = arith.mulf %100, %100 : vector<8x8x32xf32>
    %cst_62 = arith.constant dense<0.000000e+00> : vector<8x8xf32>
    %102 = vector.multi_reduction <add>, %101, %cst_62 [2] : vector<8x8x32xf32> to vector<8x8xf32>
    %cst_63 = arith.constant 0.000000e+00 : f32
    %103 = vector.broadcast %cst_63 : f32 to vector<8x8xf32>
    %104 = arith.subf %103, %102 : vector<8x8xf32>
    %105 = vector.shape_cast %101 : vector<8x8x32xf32> to vector<64x32xf32>
    %cst_64 = arith.constant dense<0.000000e+00> : vector<64x64xf32>
    %106 = tpu.matmul %105, %85, %cst_64 {dimension_numbers = #tpu.dot_dimension_numbers<[1], [0], [0], [1], [0, 0, 1, 1], [], []>} : vector<64x32xf32>, vector<32x64xf32>, vector<64x64xf32> -> vector<64x64xf32>
    %107 = vector.broadcast %87 : vector<1x64xf32> to vector<64x64xf32>
    %108 = arith.addf %106, %107 : vector<64x64xf32>
    %cst_65 = arith.constant 0.000000e+00 : f32
    %109 = vector.broadcast %cst_65 : f32 to vector<64x64xf32>
    %110 = arith.cmpf ogt, %108, %109 : vector<64x64xf32>
    %cst_66 = arith.constant 0.00999999977 : f32
    %111 = vector.broadcast %cst_66 : f32 to vector<64x64xf32>
    %112 = arith.mulf %111, %108 : vector<64x64xf32>
    %113 = arith.select %110, %108, %112 : vector<64x64xi1>, vector<64x64xf32>
    %cst_67 = arith.constant dense<0.000000e+00> : vector<64x32xf32>
    %114 = tpu.matmul %113, %89, %cst_67 {dimension_numbers = #tpu.dot_dimension_numbers<[1], [0], [0], [1], [0, 0, 1, 1], [], []>} : vector<64x64xf32>, vector<64x32xf32>, vector<64x32xf32> -> vector<64x32xf32>
    %115 = vector.broadcast %91 : vector<1x32xf32> to vector<64x32xf32>
    %116 = arith.addf %114, %115 : vector<64x32xf32>
    %cst_68 = arith.constant 0.000000e+00 : f32
    %117 = vector.broadcast %cst_68 : f32 to vector<64x32xf32>
    %118 = arith.cmpf ogt, %116, %117 : vector<64x32xf32>
    %cst_69 = arith.constant 0.00999999977 : f32
    %119 = vector.broadcast %cst_69 : f32 to vector<64x32xf32>
    %120 = arith.mulf %119, %116 : vector<64x32xf32>
    %121 = arith.select %118, %116, %120 : vector<64x32xi1>, vector<64x32xf32>
    %122 = vector.shape_cast %121 : vector<64x32xf32> to vector<8x8x32xf32>
    %123 = vector.shape_cast %93 : vector<1x32xf32> to vector<1x1x32xf32>
    %124 = vector.broadcast %123 : vector<1x1x32xf32> to vector<8x8x32xf32>
    %125 = arith.mulf %122, %124 : vector<8x8x32xf32>
    %cst_70 = arith.constant dense<0.000000e+00> : vector<8x8xf32>
    %126 = vector.multi_reduction <add>, %125, %cst_70 [2] : vector<8x8x32xf32> to vector<8x8xf32>
    %127 = vector.broadcast %95 : vector<1x1xf32> to vector<8x8xf32>
    %128 = arith.addf %126, %127 : vector<8x8xf32>
    %129 = arith.negf %128 : vector<8x8xf32>
    %130 = math.exp %129 : vector<8x8xf32>
    %cst_71 = arith.constant 1.000000e+00 : f32
    %131 = vector.broadcast %cst_71 : f32 to vector<8x8xf32>
    %132 = arith.addf %131, %130 : vector<8x8xf32>
    %133 = arith.divf %131, %132 : vector<8x8xf32>
    %134 = arith.mulf %83, %6 : vector<8x8xf32>
    %cst_72 = arith.constant dense<0.000000e+00> : vector<8xf32>
    %135 = vector.multi_reduction <add>, %134, %cst_72 [1] : vector<8x8xf32> to vector<8xf32>
    %136 = vector.shape_cast %135 : vector<8xf32> to vector<8x1xf32>
    %137 = arith.mulf %133, %134 : vector<8x8xf32>
    %138 = math.absf %137 : vector<8x8xf32>
    %cst_73 = arith.constant dense<0.000000e+00> : vector<8xf32>
    %139 = vector.multi_reduction <add>, %138, %cst_73 [1] : vector<8x8xf32> to vector<8xf32>
    %140 = vector.shape_cast %139 : vector<8xf32> to vector<8x1xf32>
    %cst_74 = arith.constant 9.99999996E-13 : f32
    %141 = vector.broadcast %cst_74 : f32 to vector<8x1xf32>
    %142 = arith.maximumf %140, %141 : vector<8x1xf32>
    %143 = vector.broadcast %142 : vector<8x1xf32> to vector<8x8xf32>
    %144 = arith.divf %137, %143 : vector<8x8xf32>
    %145 = vector.broadcast %136 : vector<8x1xf32> to vector<8x8xf32>
    %146 = arith.mulf %144, %145 : vector<8x8xf32>
    %147 = arith.addf %146, %8 : vector<8x8xf32>
    %cst_75 = arith.constant dense<0.000000e+00> : vector<8xf32>
    %148 = vector.multi_reduction <add>, %147, %cst_75 [1] : vector<8x8xf32> to vector<8xf32>
    %149 = vector.shape_cast %148 : vector<8xf32> to vector<8x1xf32>
    %150 = vector.broadcast %149 : vector<8x1xf32> to vector<8x8xf32>
    %151 = arith.divf %147, %150 : vector<8x8xf32>
    %c0_76 = arith.constant 0 : index
    %c0_77 = arith.constant 0 : index
    %c0_78 = arith.constant 0 : index
    %152 = vector.load %arg12[%c0_76, %c0_77, %c0_78] : memref<2x4x4xf32, #tpu.memory_space<vmem>>, vector<1x4x4xf32>
    %153 = vector.shape_cast %152 : vector<1x4x4xf32> to vector<4x4xf32>
    %c0_79 = arith.constant 0 : index
    %c0_80 = arith.constant 0 : index
    %c0_81 = arith.constant 0 : index
    %154 = vector.load %arg13[%c0_79, %c0_80, %c0_81] : memref<2x4x4xf32, #tpu.memory_space<vmem>>, vector<1x4x4xf32>
    %155 = vector.shape_cast %154 : vector<1x4x4xf32> to vector<4x4xf32>
    %c0_82 = arith.constant 0 : index
    %c0_83 = arith.constant 0 : index
    %c0_84 = arith.constant 0 : index
    %156 = vector.load %arg14[%c0_82, %c0_83, %c0_84] : memref<2x1x4xf32, #tpu.memory_space<vmem>>, vector<1x1x4xf32>
    %157 = vector.shape_cast %156 : vector<1x1x4xf32> to vector<1x4xf32>
    %158 = vector.extract_strided_slice %151 {offsets = [0, 0], sizes = [8, 4], strides = [1, 1]} : vector<8x8xf32> to vector<8x4xf32>
    %cst_85 = arith.constant dense<0.000000e+00> : vector<8x4xf32>
    %159 = tpu.matmul %158, %153, %cst_85 {dimension_numbers = #tpu.dot_dimension_numbers<[1], [0], [0], [1], [0, 0, 1, 1], [], []>} : vector<8x4xf32>, vector<4x4xf32>, vector<8x4xf32> -> vector<8x4xf32>
    %cst_86 = arith.constant dense<0.000000e+00> : vector<8x4xf32>
    %160 = tpu.matmul %12, %155, %cst_86 {dimension_numbers = #tpu.dot_dimension_numbers<[1], [0], [0], [1], [0, 0, 1, 1], [], []>} : vector<8x4xf32>, vector<4x4xf32>, vector<8x4xf32> -> vector<8x4xf32>
    %161 = arith.addf %159, %160 : vector<8x4xf32>
    %162 = vector.broadcast %157 : vector<1x4xf32> to vector<8x4xf32>
    %163 = arith.addf %161, %162 : vector<8x4xf32>
    %cst_87 = arith.constant 0.000000e+00 : f32
    %164 = vector.broadcast %cst_87 : f32 to vector<8x4xf32>
    %165 = arith.cmpf ogt, %163, %164 : vector<8x4xf32>
    %cst_88 = arith.constant 0.00999999977 : f32
    %166 = vector.broadcast %cst_88 : f32 to vector<8x4xf32>
    %167 = arith.mulf %166, %163 : vector<8x4xf32>
    %168 = arith.select %165, %163, %167 : vector<8x4xi1>, vector<8x4xf32>
    %c0_89 = arith.constant 0 : index
    %c0_90 = arith.constant 0 : index
    %c0_91 = arith.constant 0 : index
    %169 = vector.load %arg15[%c0_89, %c0_90, %c0_91] : memref<2x4x8xf32, #tpu.memory_space<vmem>>, vector<1x4x8xf32>
    %170 = vector.shape_cast %169 : vector<1x4x8xf32> to vector<4x8xf32>
    %c0_92 = arith.constant 0 : index
    %c0_93 = arith.constant 0 : index
    %c0_94 = arith.constant 0 : index
    %171 = vector.load %arg16[%c0_92, %c0_93, %c0_94] : memref<2x1x8xf32, #tpu.memory_space<vmem>>, vector<1x1x8xf32>
    %172 = vector.shape_cast %171 : vector<1x1x8xf32> to vector<1x8xf32>
    %c0_95 = arith.constant 0 : index
    %c0_96 = arith.constant 0 : index
    %c0_97 = arith.constant 0 : index
    %173 = vector.load %arg17[%c0_95, %c0_96, %c0_97] : memref<2x8x4xf32, #tpu.memory_space<vmem>>, vector<1x8x4xf32>
    %174 = vector.shape_cast %173 : vector<1x8x4xf32> to vector<8x4xf32>
    %c0_98 = arith.constant 0 : index
    %c0_99 = arith.constant 0 : index
    %c0_100 = arith.constant 0 : index
    %175 = vector.load %arg18[%c0_98, %c0_99, %c0_100] : memref<2x1x4xf32, #tpu.memory_space<vmem>>, vector<1x1x4xf32>
    %176 = vector.shape_cast %175 : vector<1x1x4xf32> to vector<1x4xf32>
    %c0_101 = arith.constant 0 : index
    %c0_102 = arith.constant 0 : index
    %c0_103 = arith.constant 0 : index
    %177 = vector.load %arg19[%c0_101, %c0_102, %c0_103] : memref<2x1x4xf32, #tpu.memory_space<vmem>>, vector<1x1x4xf32>
    %178 = vector.shape_cast %177 : vector<1x1x4xf32> to vector<1x4xf32>
    %c0_104 = arith.constant 0 : index
    %c0_105 = arith.constant 0 : index
    %c0_106 = arith.constant 0 : index
    %179 = vector.load %arg20[%c0_104, %c0_105, %c0_106] : memref<2x1x1xf32, #tpu.memory_space<vmem>>, vector<1x1x1xf32>
    %180 = vector.shape_cast %179 : vector<1x1x1xf32> to vector<1x1xf32>
    %181 = vector.shape_cast %168 : vector<8x4xf32> to vector<8x1x4xf32>
    %182 = vector.shape_cast %168 : vector<8x4xf32> to vector<1x8x4xf32>
    %183 = vector.broadcast %181 : vector<8x1x4xf32> to vector<8x8x4xf32>
    %184 = vector.broadcast %182 : vector<1x8x4xf32> to vector<8x8x4xf32>
    %185 = arith.subf %183, %184 : vector<8x8x4xf32>
    %186 = arith.mulf %185, %185 : vector<8x8x4xf32>
    %187 = vector.shape_cast %186 : vector<8x8x4xf32> to vector<64x4xf32>
    %cst_107 = arith.constant dense<0.000000e+00> : vector<64x8xf32>
    %188 = tpu.matmul %187, %170, %cst_107 {dimension_numbers = #tpu.dot_dimension_numbers<[1], [0], [0], [1], [0, 0, 1, 1], [], []>} : vector<64x4xf32>, vector<4x8xf32>, vector<64x8xf32> -> vector<64x8xf32>
    %189 = vector.broadcast %172 : vector<1x8xf32> to vector<64x8xf32>
    %190 = arith.addf %188, %189 : vector<64x8xf32>
    %cst_108 = arith.constant 0.000000e+00 : f32
    %191 = vector.broadcast %cst_108 : f32 to vector<64x8xf32>
    %192 = arith.cmpf ogt, %190, %191 : vector<64x8xf32>
    %cst_109 = arith.constant 0.00999999977 : f32
    %193 = vector.broadcast %cst_109 : f32 to vector<64x8xf32>
    %194 = arith.mulf %193, %190 : vector<64x8xf32>
    %195 = arith.select %192, %190, %194 : vector<64x8xi1>, vector<64x8xf32>
    %cst_110 = arith.constant dense<0.000000e+00> : vector<64x4xf32>
    %196 = tpu.matmul %195, %174, %cst_110 {dimension_numbers = #tpu.dot_dimension_numbers<[1], [0], [0], [1], [0, 0, 1, 1], [], []>} : vector<64x8xf32>, vector<8x4xf32>, vector<64x4xf32> -> vector<64x4xf32>
    %197 = vector.broadcast %176 : vector<1x4xf32> to vector<64x4xf32>
    %198 = arith.addf %196, %197 : vector<64x4xf32>
    %cst_111 = arith.constant 0.000000e+00 : f32
    %199 = vector.broadcast %cst_111 : f32 to vector<64x4xf32>
    %200 = arith.cmpf ogt, %198, %199 : vector<64x4xf32>
    %cst_112 = arith.constant 0.00999999977 : f32
    %201 = vector.broadcast %cst_112 : f32 to vector<64x4xf32>
    %202 = arith.mulf %201, %198 : vector<64x4xf32>
    %203 = arith.select %200, %198, %202 : vector<64x4xi1>, vector<64x4xf32>
    %204 = vector.shape_cast %203 : vector<64x4xf32> to vector<8x8x4xf32>
    %205 = vector.shape_cast %178 : vector<1x4xf32> to vector<1x1x4xf32>
    %206 = vector.broadcast %205 : vector<1x1x4xf32> to vector<8x8x4xf32>
    %207 = arith.mulf %204, %206 : vector<8x8x4xf32>
    %cst_113 = arith.constant dense<0.000000e+00> : vector<8x8xf32>
    %208 = vector.multi_reduction <add>, %207, %cst_113 [2] : vector<8x8x4xf32> to vector<8x8xf32>
    %209 = vector.broadcast %180 : vector<1x1xf32> to vector<8x8xf32>
    %210 = arith.addf %208, %209 : vector<8x8xf32>
    %211 = arith.negf %210 : vector<8x8xf32>
    %212 = math.exp %211 : vector<8x8xf32>
    %cst_114 = arith.constant 1.000000e+00 : f32
    %213 = vector.broadcast %cst_114 : f32 to vector<8x8xf32>
    %214 = arith.addf %213, %212 : vector<8x8xf32>
    %215 = arith.divf %213, %214 : vector<8x8xf32>
    %216 = arith.mulf %14, %6 : vector<8x8xf32>
    %cst_115 = arith.constant dense<0.000000e+00> : vector<8xf32>
    %217 = vector.multi_reduction <add>, %216, %cst_115 [1] : vector<8x8xf32> to vector<8xf32>
    %218 = vector.shape_cast %217 : vector<8xf32> to vector<8x1xf32>
    %219 = arith.mulf %215, %216 : vector<8x8xf32>
    %220 = math.absf %219 : vector<8x8xf32>
    %cst_116 = arith.constant dense<0.000000e+00> : vector<8xf32>
    %221 = vector.multi_reduction <add>, %220, %cst_116 [1] : vector<8x8xf32> to vector<8xf32>
    %222 = vector.shape_cast %221 : vector<8xf32> to vector<8x1xf32>
    %cst_117 = arith.constant 9.99999996E-13 : f32
    %223 = vector.broadcast %cst_117 : f32 to vector<8x1xf32>
    %224 = arith.maximumf %222, %223 : vector<8x1xf32>
    %225 = vector.broadcast %224 : vector<8x1xf32> to vector<8x8xf32>
    %226 = arith.divf %219, %225 : vector<8x8xf32>
    %227 = vector.broadcast %218 : vector<8x1xf32> to vector<8x8xf32>
    %228 = arith.mulf %226, %227 : vector<8x8xf32>
    %229 = arith.addf %228, %8 : vector<8x8xf32>
    %cst_118 = arith.constant dense<0.000000e+00> : vector<8xf32>
    %230 = vector.multi_reduction <add>, %229, %cst_118 [1] : vector<8x8xf32> to vector<8xf32>
    %231 = vector.shape_cast %230 : vector<8xf32> to vector<8x1xf32>
    %232 = vector.broadcast %231 : vector<8x1xf32> to vector<8x8xf32>
    %233 = arith.divf %229, %232 : vector<8x8xf32>
    %c0_119 = arith.constant 0 : index
    %c0_120 = arith.constant 0 : index
    %c0_121 = arith.constant 0 : index
    %234 = vector.load %arg21[%c0_119, %c0_120, %c0_121] : memref<2x32x64xf32, #tpu.memory_space<vmem>>, vector<1x32x64xf32>
    %235 = vector.shape_cast %234 : vector<1x32x64xf32> to vector<32x64xf32>
    %c0_122 = arith.constant 0 : index
    %c0_123 = arith.constant 0 : index
    %c0_124 = arith.constant 0 : index
    %236 = vector.load %arg22[%c0_122, %c0_123, %c0_124] : memref<2x32x64xf32, #tpu.memory_space<vmem>>, vector<1x32x64xf32>
    %237 = vector.shape_cast %236 : vector<1x32x64xf32> to vector<32x64xf32>
    %c0_125 = arith.constant 0 : index
    %c0_126 = arith.constant 0 : index
    %c0_127 = arith.constant 0 : index
    %238 = vector.load %arg23[%c0_125, %c0_126, %c0_127] : memref<2x1x64xf32, #tpu.memory_space<vmem>>, vector<1x1x64xf32>
    %239 = vector.shape_cast %238 : vector<1x1x64xf32> to vector<1x64xf32>
    %c0_128 = arith.constant 0 : index
    %c0_129 = arith.constant 0 : index
    %c0_130 = arith.constant 0 : index
    %240 = vector.load %arg24[%c0_128, %c0_129, %c0_130] : memref<2x64x32xf32, #tpu.memory_space<vmem>>, vector<1x64x32xf32>
    %241 = vector.shape_cast %240 : vector<1x64x32xf32> to vector<64x32xf32>
    %c0_131 = arith.constant 0 : index
    %c0_132 = arith.constant 0 : index
    %c0_133 = arith.constant 0 : index
    %242 = vector.load %arg25[%c0_131, %c0_132, %c0_133] : memref<2x1x32xf32, #tpu.memory_space<vmem>>, vector<1x1x32xf32>
    %243 = vector.shape_cast %242 : vector<1x1x32xf32> to vector<1x32xf32>
    %244 = arith.mulf %233, %6 : vector<8x8xf32>
    %245 = math.absf %244 : vector<8x8xf32>
    %cst_134 = arith.constant dense<0.000000e+00> : vector<8xf32>
    %246 = vector.multi_reduction <add>, %245, %cst_134 [1] : vector<8x8xf32> to vector<8xf32>
    %247 = vector.shape_cast %246 : vector<8xf32> to vector<8x1xf32>
    %cst_135 = arith.constant 9.99999996E-13 : f32
    %248 = vector.broadcast %cst_135 : f32 to vector<8x1xf32>
    %249 = arith.maximumf %247, %248 : vector<8x1xf32>
    %250 = vector.broadcast %249 : vector<8x1xf32> to vector<8x8xf32>
    %251 = arith.divf %244, %250 : vector<8x8xf32>
    %cst_136 = arith.constant dense<0.000000e+00> : vector<8x32xf32>
    %252 = tpu.matmul %251, %10, %cst_136 {dimension_numbers = #tpu.dot_dimension_numbers<[1], [0], [0], [1], [0, 0, 1, 1], [], []>} : vector<8x8xf32>, vector<8x32xf32>, vector<8x32xf32> -> vector<8x32xf32>
    %cst_137 = arith.constant dense<0.000000e+00> : vector<8x64xf32>
    %253 = tpu.matmul %10, %235, %cst_137 {dimension_numbers = #tpu.dot_dimension_numbers<[1], [0], [0], [1], [0, 0, 1, 1], [], []>} : vector<8x32xf32>, vector<32x64xf32>, vector<8x64xf32> -> vector<8x64xf32>
    %cst_138 = arith.constant dense<0.000000e+00> : vector<8x64xf32>
    %254 = tpu.matmul %252, %237, %cst_138 {dimension_numbers = #tpu.dot_dimension_numbers<[1], [0], [0], [1], [0, 0, 1, 1], [], []>} : vector<8x32xf32>, vector<32x64xf32>, vector<8x64xf32> -> vector<8x64xf32>
    %255 = arith.addf %253, %254 : vector<8x64xf32>
    %256 = vector.broadcast %239 : vector<1x64xf32> to vector<8x64xf32>
    %257 = arith.addf %255, %256 : vector<8x64xf32>
    %cst_139 = arith.constant 0.000000e+00 : f32
    %258 = vector.broadcast %cst_139 : f32 to vector<8x64xf32>
    %259 = arith.cmpf ogt, %257, %258 : vector<8x64xf32>
    %cst_140 = arith.constant 0.00999999977 : f32
    %260 = vector.broadcast %cst_140 : f32 to vector<8x64xf32>
    %261 = arith.mulf %260, %257 : vector<8x64xf32>
    %262 = arith.select %259, %257, %261 : vector<8x64xi1>, vector<8x64xf32>
    %cst_141 = arith.constant dense<0.000000e+00> : vector<8x32xf32>
    %263 = tpu.matmul %262, %241, %cst_141 {dimension_numbers = #tpu.dot_dimension_numbers<[1], [0], [0], [1], [0, 0, 1, 1], [], []>} : vector<8x64xf32>, vector<64x32xf32>, vector<8x32xf32> -> vector<8x32xf32>
    %264 = vector.broadcast %243 : vector<1x32xf32> to vector<8x32xf32>
    %265 = arith.addf %263, %264 : vector<8x32xf32>
    %cst_142 = arith.constant 0.000000e+00 : f32
    %266 = vector.broadcast %cst_142 : f32 to vector<8x32xf32>
    %267 = arith.cmpf ogt, %265, %266 : vector<8x32xf32>
    %cst_143 = arith.constant 0.00999999977 : f32
    %268 = vector.broadcast %cst_143 : f32 to vector<8x32xf32>
    %269 = arith.mulf %268, %265 : vector<8x32xf32>
    %270 = arith.select %267, %265, %269 : vector<8x32xi1>, vector<8x32xf32>
    %c0_144 = arith.constant 0 : index
    %c0_145 = arith.constant 0 : index
    %c0_146 = arith.constant 0 : index
    %c0_147 = arith.constant 0 : index
    %271 = vector.load %arg26[%c0_144, %c0_145, %c0_146, %c0_147] : memref<1x2x8x60xf32, #tpu.memory_space<vmem>>, vector<1x1x8x8xf32>
    %272 = vector.shape_cast %271 : vector<1x1x8x8xf32> to vector<8x8xf32>
    %273 = vector.shape_cast %151 : vector<8x8xf32> to vector<1x1x8x8xf32>
    tpu.vector_store %arg26[%c0_144, %c0_145, %c0_146, %c0_147], %273 {strides = array<i32>} : memref<1x2x8x60xf32, #tpu.memory_space<vmem>>, vector<1x1x8x8xf32>,
    %c0_148 = arith.constant 0 : index
    %c0_149 = arith.constant 0 : index
    %c0_150 = arith.constant 0 : index
    %c8 = arith.constant 8 : index
    %274 = vector.load %arg26[%c0_148, %c0_149, %c0_150, %c8] : memref<1x2x8x60xf32, #tpu.memory_space<vmem>>, vector<1x1x8x8xf32>
    %275 = vector.shape_cast %274 : vector<1x1x8x8xf32> to vector<8x8xf32>
    %276 = vector.shape_cast %104 : vector<8x8xf32> to vector<1x1x8x8xf32>
    tpu.vector_store %arg26[%c0_148, %c0_149, %c0_150, %c8], %276 {strides = array<i32>} : memref<1x2x8x60xf32, #tpu.memory_space<vmem>>, vector<1x1x8x8xf32>,
    %c0_151 = arith.constant 0 : index
    %c0_152 = arith.constant 0 : index
    %c0_153 = arith.constant 0 : index
    %c16 = arith.constant 16 : index
    %277 = vector.load %arg26[%c0_151, %c0_152, %c0_153, %c16] : memref<1x2x8x60xf32, #tpu.memory_space<vmem>>, vector<1x1x8x8xf32>
    %278 = vector.shape_cast %277 : vector<1x1x8x8xf32> to vector<8x8xf32>
    %279 = vector.shape_cast %233 : vector<8x8xf32> to vector<1x1x8x8xf32>
    tpu.vector_store %arg26[%c0_151, %c0_152, %c0_153, %c16], %279 {strides = array<i32>} : memref<1x2x8x60xf32, #tpu.memory_space<vmem>>, vector<1x1x8x8xf32>,
    %c0_154 = arith.constant 0 : index
    %c0_155 = arith.constant 0 : index
    %c0_156 = arith.constant 0 : index
    %c24 = arith.constant 24 : index
    %280 = vector.load %arg26[%c0_154, %c0_155, %c0_156, %c24] : memref<1x2x8x60xf32, #tpu.memory_space<vmem>>, vector<1x1x8x32xf32>
    %281 = vector.shape_cast %280 : vector<1x1x8x32xf32> to vector<8x32xf32>
    %282 = vector.shape_cast %270 : vector<8x32xf32> to vector<1x1x8x32xf32>
    tpu.vector_store %arg26[%c0_154, %c0_155, %c0_156, %c24], %282 {strides = array<i32>} : memref<1x2x8x60xf32, #tpu.memory_space<vmem>>, vector<1x1x8x32xf32>,
    %c0_157 = arith.constant 0 : index
    %c0_158 = arith.constant 0 : index
    %c0_159 = arith.constant 0 : index
    %c56 = arith.constant 56 : index
    %283 = vector.load %arg26[%c0_157, %c0_158, %c0_159, %c56] : memref<1x2x8x60xf32, #tpu.memory_space<vmem>>, vector<1x1x8x4xf32>
    %284 = vector.shape_cast %283 : vector<1x1x8x4xf32> to vector<8x4xf32>
    %285 = vector.shape_cast %168 : vector<8x4xf32> to vector<1x1x8x4xf32>
    tpu.vector_store %arg26[%c0_157, %c0_158, %c0_159, %c56], %285 {strides = array<i32>} : memref<1x2x8x60xf32, #tpu.memory_space<vmem>>, vector<1x1x8x4xf32>,
    %c2 = arith.constant 2 : index
    %c0_160 = arith.constant 0 : index
    %c0_161 = arith.constant 0 : index
    %286 = vector.load %arg6[%c2, %c0_160, %c0_161] : memref<3x32x64xf32, #tpu.memory_space<vmem>>, vector<1x32x64xf32>
    %287 = vector.shape_cast %286 : vector<1x32x64xf32> to vector<32x64xf32>
    %c2_162 = arith.constant 2 : index
    %c0_163 = arith.constant 0 : index
    %c0_164 = arith.constant 0 : index
    %288 = vector.load %arg7[%c2_162, %c0_163, %c0_164] : memref<3x1x64xf32, #tpu.memory_space<vmem>>, vector<1x1x64xf32>
    %289 = vector.shape_cast %288 : vector<1x1x64xf32> to vector<1x64xf32>
    %c2_165 = arith.constant 2 : index
    %c0_166 = arith.constant 0 : index
    %c0_167 = arith.constant 0 : index
    %290 = vector.load %arg8[%c2_165, %c0_166, %c0_167] : memref<3x64x32xf32, #tpu.memory_space<vmem>>, vector<1x64x32xf32>
    %291 = vector.shape_cast %290 : vector<1x64x32xf32> to vector<64x32xf32>
    %c2_168 = arith.constant 2 : index
    %c0_169 = arith.constant 0 : index
    %c0_170 = arith.constant 0 : index
    %292 = vector.load %arg9[%c2_168, %c0_169, %c0_170] : memref<3x1x32xf32, #tpu.memory_space<vmem>>, vector<1x1x32xf32>
    %293 = vector.shape_cast %292 : vector<1x1x32xf32> to vector<1x32xf32>
    %c2_171 = arith.constant 2 : index
    %c0_172 = arith.constant 0 : index
    %c0_173 = arith.constant 0 : index
    %294 = vector.load %arg10[%c2_171, %c0_172, %c0_173] : memref<3x1x32xf32, #tpu.memory_space<vmem>>, vector<1x1x32xf32>
    %295 = vector.shape_cast %294 : vector<1x1x32xf32> to vector<1x32xf32>
    %c2_174 = arith.constant 2 : index
    %c0_175 = arith.constant 0 : index
    %c0_176 = arith.constant 0 : index
    %296 = vector.load %arg11[%c2_174, %c0_175, %c0_176] : memref<3x1x1xf32, #tpu.memory_space<vmem>>, vector<1x1x1xf32>
    %297 = vector.shape_cast %296 : vector<1x1x1xf32> to vector<1x1xf32>
    %298 = vector.shape_cast %270 : vector<8x32xf32> to vector<8x1x32xf32>
    %299 = vector.shape_cast %270 : vector<8x32xf32> to vector<1x8x32xf32>
    %300 = vector.broadcast %298 : vector<8x1x32xf32> to vector<8x8x32xf32>
    %301 = vector.broadcast %299 : vector<1x8x32xf32> to vector<8x8x32xf32>
    %302 = arith.subf %300, %301 : vector<8x8x32xf32>
    %303 = arith.mulf %302, %302 : vector<8x8x32xf32>
    %cst_177 = arith.constant dense<0.000000e+00> : vector<8x8xf32>
    %304 = vector.multi_reduction <add>, %303, %cst_177 [2] : vector<8x8x32xf32> to vector<8x8xf32>
    %cst_178 = arith.constant 0.000000e+00 : f32
    %305 = vector.broadcast %cst_178 : f32 to vector<8x8xf32>
    %306 = arith.subf %305, %304 : vector<8x8xf32>
    %307 = vector.shape_cast %303 : vector<8x8x32xf32> to vector<64x32xf32>
    %cst_179 = arith.constant dense<0.000000e+00> : vector<64x64xf32>
    %308 = tpu.matmul %307, %287, %cst_179 {dimension_numbers = #tpu.dot_dimension_numbers<[1], [0], [0], [1], [0, 0, 1, 1], [], []>} : vector<64x32xf32>, vector<32x64xf32>, vector<64x64xf32> -> vector<64x64xf32>
    %309 = vector.broadcast %289 : vector<1x64xf32> to vector<64x64xf32>
    %310 = arith.addf %308, %309 : vector<64x64xf32>
    %cst_180 = arith.constant 0.000000e+00 : f32
    %311 = vector.broadcast %cst_180 : f32 to vector<64x64xf32>
    %312 = arith.cmpf ogt, %310, %311 : vector<64x64xf32>
    %cst_181 = arith.constant 0.00999999977 : f32
    %313 = vector.broadcast %cst_181 : f32 to vector<64x64xf32>
    %314 = arith.mulf %313, %310 : vector<64x64xf32>
    %315 = arith.select %312, %310, %314 : vector<64x64xi1>, vector<64x64xf32>
    %cst_182 = arith.constant dense<0.000000e+00> : vector<64x32xf32>
    %316 = tpu.matmul %315, %291, %cst_182 {dimension_numbers = #tpu.dot_dimension_numbers<[1], [0], [0], [1], [0, 0, 1, 1], [], []>} : vector<64x64xf32>, vector<64x32xf32>, vector<64x32xf32> -> vector<64x32xf32>
    %317 = vector.broadcast %293 : vector<1x32xf32> to vector<64x32xf32>
    %318 = arith.addf %316, %317 : vector<64x32xf32>
    %cst_183 = arith.constant 0.000000e+00 : f32
    %319 = vector.broadcast %cst_183 : f32 to vector<64x32xf32>
    %320 = arith.cmpf ogt, %318, %319 : vector<64x32xf32>
    %cst_184 = arith.constant 0.00999999977 : f32
    %321 = vector.broadcast %cst_184 : f32 to vector<64x32xf32>
    %322 = arith.mulf %321, %318 : vector<64x32xf32>
    %323 = arith.select %320, %318, %322 : vector<64x32xi1>, vector<64x32xf32>
    %324 = vector.shape_cast %323 : vector<64x32xf32> to vector<8x8x32xf32>
    %325 = vector.shape_cast %295 : vector<1x32xf32> to vector<1x1x32xf32>
    %326 = vector.broadcast %325 : vector<1x1x32xf32> to vector<8x8x32xf32>
    %327 = arith.mulf %324, %326 : vector<8x8x32xf32>
    %cst_185 = arith.constant dense<0.000000e+00> : vector<8x8xf32>
    %328 = vector.multi_reduction <add>, %327, %cst_185 [2] : vector<8x8x32xf32> to vector<8x8xf32>
    %329 = vector.broadcast %297 : vector<1x1xf32> to vector<8x8xf32>
    %330 = arith.addf %328, %329 : vector<8x8xf32>
    %331 = arith.negf %330 : vector<8x8xf32>
    %332 = math.exp %331 : vector<8x8xf32>
    %cst_186 = arith.constant 1.000000e+00 : f32
    %333 = vector.broadcast %cst_186 : f32 to vector<8x8xf32>
    %334 = arith.addf %333, %332 : vector<8x8xf32>
    %335 = arith.divf %333, %334 : vector<8x8xf32>
    %336 = arith.mulf %151, %6 : vector<8x8xf32>
    %cst_187 = arith.constant dense<0.000000e+00> : vector<8xf32>
    %337 = vector.multi_reduction <add>, %336, %cst_187 [1] : vector<8x8xf32> to vector<8xf32>
    %338 = vector.shape_cast %337 : vector<8xf32> to vector<8x1xf32>
    %339 = arith.mulf %335, %336 : vector<8x8xf32>
    %340 = math.absf %339 : vector<8x8xf32>
    %cst_188 = arith.constant dense<0.000000e+00> : vector<8xf32>
    %341 = vector.multi_reduction <add>, %340, %cst_188 [1] : vector<8x8xf32> to vector<8xf32>
    %342 = vector.shape_cast %341 : vector<8xf32> to vector<8x1xf32>
    %cst_189 = arith.constant 9.99999996E-13 : f32
    %343 = vector.broadcast %cst_189 : f32 to vector<8x1xf32>
    %344 = arith.maximumf %342, %343 : vector<8x1xf32>
    %345 = vector.broadcast %344 : vector<8x1xf32> to vector<8x8xf32>
    %346 = arith.divf %339, %345 : vector<8x8xf32>
    %347 = vector.broadcast %338 : vector<8x1xf32> to vector<8x8xf32>
    %348 = arith.mulf %346, %347 : vector<8x8xf32>
    %349 = arith.addf %348, %8 : vector<8x8xf32>
    %cst_190 = arith.constant dense<0.000000e+00> : vector<8xf32>
    %350 = vector.multi_reduction <add>, %349, %cst_190 [1] : vector<8x8xf32> to vector<8xf32>
    %351 = vector.shape_cast %350 : vector<8xf32> to vector<8x1xf32>
    %352 = vector.broadcast %351 : vector<8x1xf32> to vector<8x8xf32>
    %353 = arith.divf %349, %352 : vector<8x8xf32>
    %c1_191 = arith.constant 1 : index
    %c0_192 = arith.constant 0 : index
    %c0_193 = arith.constant 0 : index
    %354 = vector.load %arg12[%c1_191, %c0_192, %c0_193] : memref<2x4x4xf32, #tpu.memory_space<vmem>>, vector<1x4x4xf32>
    %355 = vector.shape_cast %354 : vector<1x4x4xf32> to vector<4x4xf32>
    %c1_194 = arith.constant 1 : index
    %c0_195 = arith.constant 0 : index
    %c0_196 = arith.constant 0 : index
    %356 = vector.load %arg13[%c1_194, %c0_195, %c0_196] : memref<2x4x4xf32, #tpu.memory_space<vmem>>, vector<1x4x4xf32>
    %357 = vector.shape_cast %356 : vector<1x4x4xf32> to vector<4x4xf32>
    %c1_197 = arith.constant 1 : index
    %c0_198 = arith.constant 0 : index
    %c0_199 = arith.constant 0 : index
    %358 = vector.load %arg14[%c1_197, %c0_198, %c0_199] : memref<2x1x4xf32, #tpu.memory_space<vmem>>, vector<1x1x4xf32>
    %359 = vector.shape_cast %358 : vector<1x1x4xf32> to vector<1x4xf32>
    %360 = vector.extract_strided_slice %353 {offsets = [0, 0], sizes = [8, 4], strides = [1, 1]} : vector<8x8xf32> to vector<8x4xf32>
    %cst_200 = arith.constant dense<0.000000e+00> : vector<8x4xf32>
    %361 = tpu.matmul %360, %355, %cst_200 {dimension_numbers = #tpu.dot_dimension_numbers<[1], [0], [0], [1], [0, 0, 1, 1], [], []>} : vector<8x4xf32>, vector<4x4xf32>, vector<8x4xf32> -> vector<8x4xf32>
    %cst_201 = arith.constant dense<0.000000e+00> : vector<8x4xf32>
    %362 = tpu.matmul %168, %357, %cst_201 {dimension_numbers = #tpu.dot_dimension_numbers<[1], [0], [0], [1], [0, 0, 1, 1], [], []>} : vector<8x4xf32>, vector<4x4xf32>, vector<8x4xf32> -> vector<8x4xf32>
    %363 = arith.addf %361, %362 : vector<8x4xf32>
    %364 = vector.broadcast %359 : vector<1x4xf32> to vector<8x4xf32>
    %365 = arith.addf %363, %364 : vector<8x4xf32>
    %cst_202 = arith.constant 0.000000e+00 : f32
    %366 = vector.broadcast %cst_202 : f32 to vector<8x4xf32>
    %367 = arith.cmpf ogt, %365, %366 : vector<8x4xf32>
    %cst_203 = arith.constant 0.00999999977 : f32
    %368 = vector.broadcast %cst_203 : f32 to vector<8x4xf32>
    %369 = arith.mulf %368, %365 : vector<8x4xf32>
    %370 = arith.select %367, %365, %369 : vector<8x4xi1>, vector<8x4xf32>
    %c1_204 = arith.constant 1 : index
    %c0_205 = arith.constant 0 : index
    %c0_206 = arith.constant 0 : index
    %371 = vector.load %arg15[%c1_204, %c0_205, %c0_206] : memref<2x4x8xf32, #tpu.memory_space<vmem>>, vector<1x4x8xf32>
    %372 = vector.shape_cast %371 : vector<1x4x8xf32> to vector<4x8xf32>
    %c1_207 = arith.constant 1 : index
    %c0_208 = arith.constant 0 : index
    %c0_209 = arith.constant 0 : index
    %373 = vector.load %arg16[%c1_207, %c0_208, %c0_209] : memref<2x1x8xf32, #tpu.memory_space<vmem>>, vector<1x1x8xf32>
    %374 = vector.shape_cast %373 : vector<1x1x8xf32> to vector<1x8xf32>
    %c1_210 = arith.constant 1 : index
    %c0_211 = arith.constant 0 : index
    %c0_212 = arith.constant 0 : index
    %375 = vector.load %arg17[%c1_210, %c0_211, %c0_212] : memref<2x8x4xf32, #tpu.memory_space<vmem>>, vector<1x8x4xf32>
    %376 = vector.shape_cast %375 : vector<1x8x4xf32> to vector<8x4xf32>
    %c1_213 = arith.constant 1 : index
    %c0_214 = arith.constant 0 : index
    %c0_215 = arith.constant 0 : index
    %377 = vector.load %arg18[%c1_213, %c0_214, %c0_215] : memref<2x1x4xf32, #tpu.memory_space<vmem>>, vector<1x1x4xf32>
    %378 = vector.shape_cast %377 : vector<1x1x4xf32> to vector<1x4xf32>
    %c1_216 = arith.constant 1 : index
    %c0_217 = arith.constant 0 : index
    %c0_218 = arith.constant 0 : index
    %379 = vector.load %arg19[%c1_216, %c0_217, %c0_218] : memref<2x1x4xf32, #tpu.memory_space<vmem>>, vector<1x1x4xf32>
    %380 = vector.shape_cast %379 : vector<1x1x4xf32> to vector<1x4xf32>
    %c1_219 = arith.constant 1 : index
    %c0_220 = arith.constant 0 : index
    %c0_221 = arith.constant 0 : index
    %381 = vector.load %arg20[%c1_219, %c0_220, %c0_221] : memref<2x1x1xf32, #tpu.memory_space<vmem>>, vector<1x1x1xf32>
    %382 = vector.shape_cast %381 : vector<1x1x1xf32> to vector<1x1xf32>
    %383 = vector.shape_cast %370 : vector<8x4xf32> to vector<8x1x4xf32>
    %384 = vector.shape_cast %370 : vector<8x4xf32> to vector<1x8x4xf32>
    %385 = vector.broadcast %383 : vector<8x1x4xf32> to vector<8x8x4xf32>
    %386 = vector.broadcast %384 : vector<1x8x4xf32> to vector<8x8x4xf32>
    %387 = arith.subf %385, %386 : vector<8x8x4xf32>
    %388 = arith.mulf %387, %387 : vector<8x8x4xf32>
    %389 = vector.shape_cast %388 : vector<8x8x4xf32> to vector<64x4xf32>
    %cst_222 = arith.constant dense<0.000000e+00> : vector<64x8xf32>
    %390 = tpu.matmul %389, %372, %cst_222 {dimension_numbers = #tpu.dot_dimension_numbers<[1], [0], [0], [1], [0, 0, 1, 1], [], []>} : vector<64x4xf32>, vector<4x8xf32>, vector<64x8xf32> -> vector<64x8xf32>
    %391 = vector.broadcast %374 : vector<1x8xf32> to vector<64x8xf32>
    %392 = arith.addf %390, %391 : vector<64x8xf32>
    %cst_223 = arith.constant 0.000000e+00 : f32
    %393 = vector.broadcast %cst_223 : f32 to vector<64x8xf32>
    %394 = arith.cmpf ogt, %392, %393 : vector<64x8xf32>
    %cst_224 = arith.constant 0.00999999977 : f32
    %395 = vector.broadcast %cst_224 : f32 to vector<64x8xf32>
    %396 = arith.mulf %395, %392 : vector<64x8xf32>
    %397 = arith.select %394, %392, %396 : vector<64x8xi1>, vector<64x8xf32>
    %cst_225 = arith.constant dense<0.000000e+00> : vector<64x4xf32>
    %398 = tpu.matmul %397, %376, %cst_225 {dimension_numbers = #tpu.dot_dimension_numbers<[1], [0], [0], [1], [0, 0, 1, 1], [], []>} : vector<64x8xf32>, vector<8x4xf32>, vector<64x4xf32> -> vector<64x4xf32>
    %399 = vector.broadcast %378 : vector<1x4xf32> to vector<64x4xf32>
    %400 = arith.addf %398, %399 : vector<64x4xf32>
    %cst_226 = arith.constant 0.000000e+00 : f32
    %401 = vector.broadcast %cst_226 : f32 to vector<64x4xf32>
    %402 = arith.cmpf ogt, %400, %401 : vector<64x4xf32>
    %cst_227 = arith.constant 0.00999999977 : f32
    %403 = vector.broadcast %cst_227 : f32 to vector<64x4xf32>
    %404 = arith.mulf %403, %400 : vector<64x4xf32>
    %405 = arith.select %402, %400, %404 : vector<64x4xi1>, vector<64x4xf32>
    %406 = vector.shape_cast %405 : vector<64x4xf32> to vector<8x8x4xf32>
    %407 = vector.shape_cast %380 : vector<1x4xf32> to vector<1x1x4xf32>
    %408 = vector.broadcast %407 : vector<1x1x4xf32> to vector<8x8x4xf32>
    %409 = arith.mulf %406, %408 : vector<8x8x4xf32>
    %cst_228 = arith.constant dense<0.000000e+00> : vector<8x8xf32>
    %410 = vector.multi_reduction <add>, %409, %cst_228 [2] : vector<8x8x4xf32> to vector<8x8xf32>
    %411 = vector.broadcast %382 : vector<1x1xf32> to vector<8x8xf32>
    %412 = arith.addf %410, %411 : vector<8x8xf32>
    %413 = arith.negf %412 : vector<8x8xf32>
    %414 = math.exp %413 : vector<8x8xf32>
    %cst_229 = arith.constant 1.000000e+00 : f32
    %415 = vector.broadcast %cst_229 : f32 to vector<8x8xf32>
    %416 = arith.addf %415, %414 : vector<8x8xf32>
    %417 = arith.divf %415, %416 : vector<8x8xf32>
    %418 = arith.mulf %233, %6 : vector<8x8xf32>
    %cst_230 = arith.constant dense<0.000000e+00> : vector<8xf32>
    %419 = vector.multi_reduction <add>, %418, %cst_230 [1] : vector<8x8xf32> to vector<8xf32>
    %420 = vector.shape_cast %419 : vector<8xf32> to vector<8x1xf32>
    %421 = arith.mulf %417, %418 : vector<8x8xf32>
    %422 = math.absf %421 : vector<8x8xf32>
    %cst_231 = arith.constant dense<0.000000e+00> : vector<8xf32>
    %423 = vector.multi_reduction <add>, %422, %cst_231 [1] : vector<8x8xf32> to vector<8xf32>
    %424 = vector.shape_cast %423 : vector<8xf32> to vector<8x1xf32>
    %cst_232 = arith.constant 9.99999996E-13 : f32
    %425 = vector.broadcast %cst_232 : f32 to vector<8x1xf32>
    %426 = arith.maximumf %424, %425 : vector<8x1xf32>
    %427 = vector.broadcast %426 : vector<8x1xf32> to vector<8x8xf32>
    %428 = arith.divf %421, %427 : vector<8x8xf32>
    %429 = vector.broadcast %420 : vector<8x1xf32> to vector<8x8xf32>
    %430 = arith.mulf %428, %429 : vector<8x8xf32>
    %431 = arith.addf %430, %8 : vector<8x8xf32>
    %cst_233 = arith.constant dense<0.000000e+00> : vector<8xf32>
    %432 = vector.multi_reduction <add>, %431, %cst_233 [1] : vector<8x8xf32> to vector<8xf32>
    %433 = vector.shape_cast %432 : vector<8xf32> to vector<8x1xf32>
    %434 = vector.broadcast %433 : vector<8x1xf32> to vector<8x8xf32>
    %435 = arith.divf %431, %434 : vector<8x8xf32>
    %c1_234 = arith.constant 1 : index
    %c0_235 = arith.constant 0 : index
    %c0_236 = arith.constant 0 : index
    %436 = vector.load %arg21[%c1_234, %c0_235, %c0_236] : memref<2x32x64xf32, #tpu.memory_space<vmem>>, vector<1x32x64xf32>
    %437 = vector.shape_cast %436 : vector<1x32x64xf32> to vector<32x64xf32>
    %c1_237 = arith.constant 1 : index
    %c0_238 = arith.constant 0 : index
    %c0_239 = arith.constant 0 : index
    %438 = vector.load %arg22[%c1_237, %c0_238, %c0_239] : memref<2x32x64xf32, #tpu.memory_space<vmem>>, vector<1x32x64xf32>
    %439 = vector.shape_cast %438 : vector<1x32x64xf32> to vector<32x64xf32>
    %c1_240 = arith.constant 1 : index
    %c0_241 = arith.constant 0 : index
    %c0_242 = arith.constant 0 : index
    %440 = vector.load %arg23[%c1_240, %c0_241, %c0_242] : memref<2x1x64xf32, #tpu.memory_space<vmem>>, vector<1x1x64xf32>
    %441 = vector.shape_cast %440 : vector<1x1x64xf32> to vector<1x64xf32>
    %c1_243 = arith.constant 1 : index
    %c0_244 = arith.constant 0 : index
    %c0_245 = arith.constant 0 : index
    %442 = vector.load %arg24[%c1_243, %c0_244, %c0_245] : memref<2x64x32xf32, #tpu.memory_space<vmem>>, vector<1x64x32xf32>
    %443 = vector.shape_cast %442 : vector<1x64x32xf32> to vector<64x32xf32>
    %c1_246 = arith.constant 1 : index
    %c0_247 = arith.constant 0 : index
    %c0_248 = arith.constant 0 : index
    %444 = vector.load %arg25[%c1_246, %c0_247, %c0_248] : memref<2x1x32xf32, #tpu.memory_space<vmem>>, vector<1x1x32xf32>
    %445 = vector.shape_cast %444 : vector<1x1x32xf32> to vector<1x32xf32>
    %446 = arith.mulf %435, %6 : vector<8x8xf32>
    %447 = math.absf %446 : vector<8x8xf32>
    %cst_249 = arith.constant dense<0.000000e+00> : vector<8xf32>
    %448 = vector.multi_reduction <add>, %447, %cst_249 [1] : vector<8x8xf32> to vector<8xf32>
    %449 = vector.shape_cast %448 : vector<8xf32> to vector<8x1xf32>
    %cst_250 = arith.constant 9.99999996E-13 : f32
    %450 = vector.broadcast %cst_250 : f32 to vector<8x1xf32>
    %451 = arith.maximumf %449, %450 : vector<8x1xf32>
    %452 = vector.broadcast %451 : vector<8x1xf32> to vector<8x8xf32>
    %453 = arith.divf %446, %452 : vector<8x8xf32>
    %cst_251 = arith.constant dense<0.000000e+00> : vector<8x32xf32>
    %454 = tpu.matmul %453, %270, %cst_251 {dimension_numbers = #tpu.dot_dimension_numbers<[1], [0], [0], [1], [0, 0, 1, 1], [], []>} : vector<8x8xf32>, vector<8x32xf32>, vector<8x32xf32> -> vector<8x32xf32>
    %cst_252 = arith.constant dense<0.000000e+00> : vector<8x64xf32>
    %455 = tpu.matmul %270, %437, %cst_252 {dimension_numbers = #tpu.dot_dimension_numbers<[1], [0], [0], [1], [0, 0, 1, 1], [], []>} : vector<8x32xf32>, vector<32x64xf32>, vector<8x64xf32> -> vector<8x64xf32>
    %cst_253 = arith.constant dense<0.000000e+00> : vector<8x64xf32>
    %456 = tpu.matmul %454, %439, %cst_253 {dimension_numbers = #tpu.dot_dimension_numbers<[1], [0], [0], [1], [0, 0, 1, 1], [], []>} : vector<8x32xf32>, vector<32x64xf32>, vector<8x64xf32> -> vector<8x64xf32>
    %457 = arith.addf %455, %456 : vector<8x64xf32>
    %458 = vector.broadcast %441 : vector<1x64xf32> to vector<8x64xf32>
    %459 = arith.addf %457, %458 : vector<8x64xf32>
    %cst_254 = arith.constant 0.000000e+00 : f32
    %460 = vector.broadcast %cst_254 : f32 to vector<8x64xf32>
    %461 = arith.cmpf ogt, %459, %460 : vector<8x64xf32>
    %cst_255 = arith.constant 0.00999999977 : f32
    %462 = vector.broadcast %cst_255 : f32 to vector<8x64xf32>
    %463 = arith.mulf %462, %459 : vector<8x64xf32>
    %464 = arith.select %461, %459, %463 : vector<8x64xi1>, vector<8x64xf32>
    %cst_256 = arith.constant dense<0.000000e+00> : vector<8x32xf32>
    %465 = tpu.matmul %464, %443, %cst_256 {dimension_numbers = #tpu.dot_dimension_numbers<[1], [0], [0], [1], [0, 0, 1, 1], [], []>} : vector<8x64xf32>, vector<64x32xf32>, vector<8x32xf32> -> vector<8x32xf32>
    %466 = vector.broadcast %445 : vector<1x32xf32> to vector<8x32xf32>
    %467 = arith.addf %465, %466 : vector<8x32xf32>
    %cst_257 = arith.constant 0.000000e+00 : f32
    %468 = vector.broadcast %cst_257 : f32 to vector<8x32xf32>
    %469 = arith.cmpf ogt, %467, %468 : vector<8x32xf32>
    %cst_258 = arith.constant 0.00999999977 : f32
    %470 = vector.broadcast %cst_258 : f32 to vector<8x32xf32>
    %471 = arith.mulf %470, %467 : vector<8x32xf32>
    %472 = arith.select %469, %467, %471 : vector<8x32xi1>, vector<8x32xf32>
    %c0_259 = arith.constant 0 : index
    %c1_260 = arith.constant 1 : index
    %c0_261 = arith.constant 0 : index
    %c0_262 = arith.constant 0 : index
    %473 = vector.load %arg26[%c0_259, %c1_260, %c0_261, %c0_262] : memref<1x2x8x60xf32, #tpu.memory_space<vmem>>, vector<1x1x8x8xf32>
    %474 = vector.shape_cast %473 : vector<1x1x8x8xf32> to vector<8x8xf32>
    %475 = vector.shape_cast %353 : vector<8x8xf32> to vector<1x1x8x8xf32>
    tpu.vector_store %arg26[%c0_259, %c1_260, %c0_261, %c0_262], %475 {strides = array<i32>} : memref<1x2x8x60xf32, #tpu.memory_space<vmem>>, vector<1x1x8x8xf32>,
    %c0_263 = arith.constant 0 : index
    %c1_264 = arith.constant 1 : index
    %c0_265 = arith.constant 0 : index
    %c8_266 = arith.constant 8 : index
    %476 = vector.load %arg26[%c0_263, %c1_264, %c0_265, %c8_266] : memref<1x2x8x60xf32, #tpu.memory_space<vmem>>, vector<1x1x8x8xf32>
    %477 = vector.shape_cast %476 : vector<1x1x8x8xf32> to vector<8x8xf32>
    %478 = vector.shape_cast %306 : vector<8x8xf32> to vector<1x1x8x8xf32>
    tpu.vector_store %arg26[%c0_263, %c1_264, %c0_265, %c8_266], %478 {strides = array<i32>} : memref<1x2x8x60xf32, #tpu.memory_space<vmem>>, vector<1x1x8x8xf32>,
    %c0_267 = arith.constant 0 : index
    %c1_268 = arith.constant 1 : index
    %c0_269 = arith.constant 0 : index
    %c16_270 = arith.constant 16 : index
    %479 = vector.load %arg26[%c0_267, %c1_268, %c0_269, %c16_270] : memref<1x2x8x60xf32, #tpu.memory_space<vmem>>, vector<1x1x8x8xf32>
    %480 = vector.shape_cast %479 : vector<1x1x8x8xf32> to vector<8x8xf32>
    %481 = vector.shape_cast %435 : vector<8x8xf32> to vector<1x1x8x8xf32>
    tpu.vector_store %arg26[%c0_267, %c1_268, %c0_269, %c16_270], %481 {strides = array<i32>} : memref<1x2x8x60xf32, #tpu.memory_space<vmem>>, vector<1x1x8x8xf32>,
    %c0_271 = arith.constant 0 : index
    %c1_272 = arith.constant 1 : index
    %c0_273 = arith.constant 0 : index
    %c24_274 = arith.constant 24 : index
    %482 = vector.load %arg26[%c0_271, %c1_272, %c0_273, %c24_274] : memref<1x2x8x60xf32, #tpu.memory_space<vmem>>, vector<1x1x8x32xf32>
    %483 = vector.shape_cast %482 : vector<1x1x8x32xf32> to vector<8x32xf32>
    %484 = vector.shape_cast %472 : vector<8x32xf32> to vector<1x1x8x32xf32>
    tpu.vector_store %arg26[%c0_271, %c1_272, %c0_273, %c24_274], %484 {strides = array<i32>} : memref<1x2x8x60xf32, #tpu.memory_space<vmem>>, vector<1x1x8x32xf32>,
    %c0_275 = arith.constant 0 : index
    %c1_276 = arith.constant 1 : index
    %c0_277 = arith.constant 0 : index
    %c56_278 = arith.constant 56 : index
    %485 = vector.load %arg26[%c0_275, %c1_276, %c0_277, %c56_278] : memref<1x2x8x60xf32, #tpu.memory_space<vmem>>, vector<1x1x8x4xf32>
    %486 = vector.shape_cast %485 : vector<1x1x8x4xf32> to vector<8x4xf32>
    %487 = vector.shape_cast %370 : vector<8x4xf32> to vector<1x1x8x4xf32>
    tpu.vector_store %arg26[%c0_275, %c1_276, %c0_277, %c56_278], %487 {strides = array<i32>} : memref<1x2x8x60xf32, #tpu.memory_space<vmem>>, vector<1x1x8x4xf32>,
    return
  }
  func.func @transform_0(%arg0: i32) -> (i32, i32, i32) {
    %c0_i32 = arith.constant 0 : i32
    %c0_i32_0 = arith.constant 0 : i32
    %c0_i32_1 = arith.constant 0 : i32
    return %arg0, %c0_i32, %c0_i32_0 : i32, i32, i32
  }
  func.func @transform_1(%arg0: i32) -> (i32, i32, i32) {
    %c0_i32 = arith.constant 0 : i32
    %c0_i32_0 = arith.constant 0 : i32
    %c0_i32_1 = arith.constant 0 : i32
    return %arg0, %c0_i32, %c0_i32_0 : i32, i32, i32
  }
  func.func @transform_2(%arg0: i32) -> (i32, i32, i32) {
    %c0_i32 = arith.constant 0 : i32
    %c0_i32_0 = arith.constant 0 : i32
    %c0_i32_1 = arith.constant 0 : i32
    return %arg0, %c0_i32, %c0_i32_0 : i32, i32, i32
  }
  func.func @transform_3(%arg0: i32) -> (i32, i32, i32) {
    %c0_i32 = arith.constant 0 : i32
    %c0_i32_0 = arith.constant 0 : i32
    %c0_i32_1 = arith.constant 0 : i32
    return %arg0, %c0_i32, %c0_i32_0 : i32, i32, i32
  }
  func.func @transform_4(%arg0: i32) -> (i32, i32, i32) {
    %c0_i32 = arith.constant 0 : i32
    %c0_i32_0 = arith.constant 0 : i32
    %c0_i32_1 = arith.constant 0 : i32
    return %arg0, %c0_i32, %c0_i32_0 : i32, i32, i32
  }
  func.func @transform_5(%arg0: i32) -> (i32, i32, i32) {
    %c0_i32 = arith.constant 0 : i32
    %c0_i32_0 = arith.constant 0 : i32
    %c0_i32_1 = arith.constant 0 : i32
    %c0_i32_2 = arith.constant 0 : i32
    return %c0_i32, %c0_i32_0, %c0_i32_1 : i32, i32, i32
  }
  func.func @transform_6(%arg0: i32) -> (i32, i32, i32) {
    %c0_i32 = arith.constant 0 : i32
    %c0_i32_0 = arith.constant 0 : i32
    %c0_i32_1 = arith.constant 0 : i32
    %c0_i32_2 = arith.constant 0 : i32
    return %c0_i32, %c0_i32_0, %c0_i32_1 : i32, i32, i32
  }
  func.func @transform_7(%arg0: i32) -> (i32, i32, i32) {
    %c0_i32 = arith.constant 0 : i32
    %c0_i32_0 = arith.constant 0 : i32
    %c0_i32_1 = arith.constant 0 : i32
    %c0_i32_2 = arith.constant 0 : i32
    return %c0_i32, %c0_i32_0, %c0_i32_1 : i32, i32, i32
  }
  func.func @transform_8(%arg0: i32) -> (i32, i32, i32) {
    %c0_i32 = arith.constant 0 : i32
    %c0_i32_0 = arith.constant 0 : i32
    %c0_i32_1 = arith.constant 0 : i32
    %c0_i32_2 = arith.constant 0 : i32
    return %c0_i32, %c0_i32_0, %c0_i32_1 : i32, i32, i32
  }
  func.func @transform_9(%arg0: i32) -> (i32, i32, i32) {
    %c0_i32 = arith.constant 0 : i32
    %c0_i32_0 = arith.constant 0 : i32
    %c0_i32_1 = arith.constant 0 : i32
    %c0_i32_2 = arith.constant 0 : i32
    return %c0_i32, %c0_i32_0, %c0_i32_1 : i32, i32, i32
  }
  func.func @transform_10(%arg0: i32) -> (i32, i32, i32) {
    %c0_i32 = arith.constant 0 : i32
    %c0_i32_0 = arith.constant 0 : i32
    %c0_i32_1 = arith.constant 0 : i32
    %c0_i32_2 = arith.constant 0 : i32
    return %c0_i32, %c0_i32_0, %c0_i32_1 : i32, i32, i32
  }
  func.func @transform_11(%arg0: i32) -> (i32, i32, i32) {
    %c0_i32 = arith.constant 0 : i32
    %c0_i32_0 = arith.constant 0 : i32
    %c0_i32_1 = arith.constant 0 : i32
    %c0_i32_2 = arith.constant 0 : i32
    return %c0_i32, %c0_i32_0, %c0_i32_1 : i32, i32, i32
  }
  func.func @transform_12(%arg0: i32) -> (i32, i32, i32) {
    %c0_i32 = arith.constant 0 : i32
    %c0_i32_0 = arith.constant 0 : i32
    %c0_i32_1 = arith.constant 0 : i32
    %c0_i32_2 = arith.constant 0 : i32
    return %c0_i32, %c0_i32_0, %c0_i32_1 : i32, i32, i32
  }
  func.func @transform_13(%arg0: i32) -> (i32, i32, i32) {
    %c0_i32 = arith.constant 0 : i32
    %c0_i32_0 = arith.constant 0 : i32
    %c0_i32_1 = arith.constant 0 : i32
    %c0_i32_2 = arith.constant 0 : i32
    return %c0_i32, %c0_i32_0, %c0_i32_1 : i32, i32, i32
  }
  func.func @transform_14(%arg0: i32) -> (i32, i32, i32) {
    %c0_i32 = arith.constant 0 : i32
    %c0_i32_0 = arith.constant 0 : i32
    %c0_i32_1 = arith.constant 0 : i32
    %c0_i32_2 = arith.constant 0 : i32
    return %c0_i32, %c0_i32_0, %c0_i32_1 : i32, i32, i32
  }
  func.func @transform_15(%arg0: i32) -> (i32, i32, i32) {
    %c0_i32 = arith.constant 0 : i32
    %c0_i32_0 = arith.constant 0 : i32
    %c0_i32_1 = arith.constant 0 : i32
    %c0_i32_2 = arith.constant 0 : i32
    return %c0_i32, %c0_i32_0, %c0_i32_1 : i32, i32, i32
  }
  func.func @transform_16(%arg0: i32) -> (i32, i32, i32) {
    %c0_i32 = arith.constant 0 : i32
    %c0_i32_0 = arith.constant 0 : i32
    %c0_i32_1 = arith.constant 0 : i32
    %c0_i32_2 = arith.constant 0 : i32
    return %c0_i32, %c0_i32_0, %c0_i32_1 : i32, i32, i32
  }
  func.func @transform_17(%arg0: i32) -> (i32, i32, i32) {
    %c0_i32 = arith.constant 0 : i32
    %c0_i32_0 = arith.constant 0 : i32
    %c0_i32_1 = arith.constant 0 : i32
    %c0_i32_2 = arith.constant 0 : i32
    return %c0_i32, %c0_i32_0, %c0_i32_1 : i32, i32, i32
  }
  func.func @transform_18(%arg0: i32) -> (i32, i32, i32) {
    %c0_i32 = arith.constant 0 : i32
    %c0_i32_0 = arith.constant 0 : i32
    %c0_i32_1 = arith.constant 0 : i32
    %c0_i32_2 = arith.constant 0 : i32
    return %c0_i32, %c0_i32_0, %c0_i32_1 : i32, i32, i32
  }
  func.func @transform_19(%arg0: i32) -> (i32, i32, i32) {
    %c0_i32 = arith.constant 0 : i32
    %c0_i32_0 = arith.constant 0 : i32
    %c0_i32_1 = arith.constant 0 : i32
    %c0_i32_2 = arith.constant 0 : i32
    return %c0_i32, %c0_i32_0, %c0_i32_1 : i32, i32, i32
  }
  func.func @transform_20(%arg0: i32) -> (i32, i32, i32) {
    %c0_i32 = arith.constant 0 : i32
    %c0_i32_0 = arith.constant 0 : i32
    %c0_i32_1 = arith.constant 0 : i32
    %c0_i32_2 = arith.constant 0 : i32
    return %c0_i32, %c0_i32_0, %c0_i32_1 : i32, i32, i32
  }
  func.func @transform_21(%arg0: i32) -> (i32, i32, i32) {
    %c0_i32 = arith.constant 0 : i32
    %c0_i32_0 = arith.constant 0 : i32
    %c0_i32_1 = arith.constant 0 : i32
    %c0_i32_2 = arith.constant 0 : i32
    return %c0_i32, %c0_i32_0, %c0_i32_1 : i32, i32, i32
  }
  func.func @transform_22(%arg0: i32) -> (i32, i32, i32) {
    %c0_i32 = arith.constant 0 : i32
    %c0_i32_0 = arith.constant 0 : i32
    %c0_i32_1 = arith.constant 0 : i32
    %c0_i32_2 = arith.constant 0 : i32
    return %c0_i32, %c0_i32_0, %c0_i32_1 : i32, i32, i32
  }
  func.func @transform_23(%arg0: i32) -> (i32, i32, i32) {
    %c0_i32 = arith.constant 0 : i32
    %c0_i32_0 = arith.constant 0 : i32
    %c0_i32_1 = arith.constant 0 : i32
    %c0_i32_2 = arith.constant 0 : i32
    return %c0_i32, %c0_i32_0, %c0_i32_1 : i32, i32, i32
  }
  func.func @transform_24(%arg0: i32) -> (i32, i32, i32) {
    %c0_i32 = arith.constant 0 : i32
    %c0_i32_0 = arith.constant 0 : i32
    %c0_i32_1 = arith.constant 0 : i32
    %c0_i32_2 = arith.constant 0 : i32
    return %c0_i32, %c0_i32_0, %c0_i32_1 : i32, i32, i32
  }
  func.func @transform_25(%arg0: i32) -> (i32, i32, i32, i32) {
    %c0_i32 = arith.constant 0 : i32
    %c0_i32_0 = arith.constant 0 : i32
    %c0_i32_1 = arith.constant 0 : i32
    %c0_i32_2 = arith.constant 0 : i32
    return %arg0, %c0_i32, %c0_i32_0, %c0_i32_1 : i32, i32, i32, i32
  }
}

</mosaic_0001>

<bundles_post_ra>
// kernel: dual_graph_forward.1
= control target key start
LH: loop header
LB: loop body
LE: loop exit
PB: predicated region body
PF: predicated region fallthrough
CT: control target
= control target key end

     0   :  { %s13377_s0 = inlined_call_operand.hbm [shape: f32[2,8,32], index: 0, kind: input, shape index: {}]   ;;  %s13378_s1 = inlined_call_operand.hbm [shape: f32[2,8,32], index: 1, kind: input, shape index: {}]   ;;  %s13379_s2 = inlined_call_operand.hbm [shape: f32[2,8,4], index: 2, kind: input, shape index: {}]   ;;  %s13380_s3 = inlined_call_operand.hbm [shape: f32[2,8,8], index: 3, kind: input, shape index: {}]   ;;  %s13381_s4 = inlined_call_operand.hbm [shape: f32[2,8,8], index: 4, kind: input, shape index: {}]   ;;  %s13382_s5 = inlined_call_operand.hbm [shape: f32[3,32,64], index: 5, kind: input, shape index: {}]   ;;  %s13383_s6 = inlined_call_operand.hbm [shape: f32[3,1,64], index: 6, kind: input, shape index: {}]   ;;  %s13384_s7 = inlined_call_operand.hbm [shape: f32[3,64,32], index: 7, kind: input, shape index: {}]   ;;  %s13385_s8 = inlined_call_operand.hbm [shape: f32[3,1,32], index: 8, kind: input, shape index: {}]   ;;  %s13386_s9 = inlined_call_operand.hbm [shape: f32[3,1,32], index: 9, kind: input, shape index: {}]   ;;  %s13387_s10 = inlined_call_operand.hbm [shape: f32[3,1,1], index: 10, kind: input, shape index: {}]   ;;  %s13388_s11 = inlined_call_operand.hbm [shape: f32[2,4,4], index: 11, kind: input, shape index: {}]   ;;  %s13389_s12 = inlined_call_operand.hbm [shape: f32[2,4,4], index: 12, kind: input, shape index: {}]   ;;  %s13390_s13 = inlined_call_operand.hbm [shape: f32[2,1,4], index: 13, kind: input, shape index: {}]   ;;  %s13391_s14 = inlined_call_operand.hbm [shape: f32[2,4,8], index: 14, kind: input, shape index: {}]   ;;  %s13392_s15 = inlined_call_operand.hbm [shape: f32[2,1,8], index: 15, kind: input, shape index: {}]   ;;  %s13393_s16 = inlined_call_operand.hbm [shape: f32[2,8,4], index: 16, kind: input, shape index: {}]   ;;  %s13394_s17 = inlined_call_operand.hbm [shape: f32[2,1,4], index: 17, kind: input, shape index: {}]   ;;  %s13395_s18 = inlined_call_operand.hbm [shape: f32[2,1,4], index: 18, kind: input, shape index: {}]   ;;  %s13396_s19 = inlined_call_operand.hbm [shape: f32[2,1,1], index: 19, kind: input, shape index: {}]   ;;  %s13397_s20 = inlined_call_operand.hbm [shape: f32[2,32,64], index: 20, kind: input, shape index: {}]   ;;  %s13398_s21 = inlined_call_operand.hbm [shape: f32[2,32,64], index: 21, kind: input, shape index: {}]   ;;  %s13399_s22 = inlined_call_operand.hbm [shape: f32[2,1,64], index: 22, kind: input, shape index: {}]   ;;  %s13400_s23 = inlined_call_operand.hbm [shape: f32[2,64,32], index: 23, kind: input, shape index: {}]   ;;  %s13401_s24 = inlined_call_operand.hbm [shape: f32[2,1,32], index: 24, kind: input, shape index: {}]   ;;  %s13402_s25 = inlined_call_operand.hbm [shape: f32[2,2,8,60], index: 25, kind: output, shape index: {}]  }
   0x1   :  { %13520 = sst [smem:[#allocation98_spill]] %s13377_s0 }
   0x2   :  { %13521 = sst [smem:[#allocation99_spill]] %s13378_s1 }
   0x3   :  { %13522 = sst [smem:[#allocation100_spill]] %s13379_s2 }
   0x4   :  { %13523 = sst [smem:[#allocation101_spill]] %s13380_s3 }
   0x5   :  { %13524 = sst [smem:[#allocation102_spill]] %s13381_s4 }
   0x6   :  { %13525 = sst [smem:[#allocation103_spill]] %s13382_s5 }
   0x7   :  { %13526 = sst [smem:[#allocation104_spill]] %s13383_s6 }
   0x8   :  { %13527 = sst [smem:[#allocation105_spill]] %s13384_s7 }
   0x9   :  { %13528 = sst [smem:[#allocation106_spill]] %s13385_s8 }
   0xa   :  { %13529 = sst [smem:[#allocation107_spill]] %s13386_s9 }
   0xb   :  { %13530 = sst [smem:[#allocation108_spill]] %s13387_s10 }
   0xc   :  { %13531 = sst [smem:[#allocation109_spill]] %s13388_s11 }
   0xd   :  { %13532 = sst [smem:[#allocation110_spill]] %s13389_s12 }
   0xe   :  { %13533 = sst [smem:[#allocation111_spill]] %s13390_s13 }
   0xf   :  { %13534 = sst [smem:[#allocation112_spill]] %s13391_s14 }
  0x10   :  { %13535 = sst [smem:[#allocation113_spill]] %s13392_s15 }
  0x11   :  { %13536 = sst [smem:[#allocation114_spill]] %s13393_s16 }
  0x12   :  { %13537 = sst [smem:[#allocation115_spill]] %s13394_s17 }
  0x13   :  { %13538 = sst [smem:[#allocation116_spill]] %s13395_s18 }
  0x14   :  { %13539 = sst [smem:[#allocation117_spill]] %s13396_s19 }
  0x15   :  { %13540 = sst [smem:[#allocation118_spill]] %s13397_s20 }
  0x16   :  { %13541 = sst [smem:[#allocation119_spill]] %s13398_s21 }
  0x17   :  { %13542 = sst [smem:[#allocation120_spill]] %s13399_s22 }
  0x18   :  { %13543 = sst [smem:[#allocation121_spill]] %s13400_s23 }
  0x19   :  { %13544 = sst [smem:[#allocation122_spill]] %s13401_s24 }
  0x1a   :  { %13545 = sst [smem:[#allocation123_spill]] %s13402_s25 }
  0x1b   :  { %30 = vsyncpa [#allocation3], 0 }
  0x1c   :  { %32 = vsyncpa [#allocation3 + $0x1], 0 }
  0x1d   :  { %33 = vsyncpa [#allocation6], 0 }
  0x1e   :  { %35 = vsyncpa [#allocation6 + $0x1], 0 }
  0x1f   :  { %36 = vsyncpa [#allocation9], 0 }
  0x20   :  { %38 = vsyncpa [#allocation9 + $0x1], 0 }
  0x21   :  { %39 = vsyncpa [#allocation12], 0 }
  0x22   :  { %40 = vsyncpa [#allocation15], 0 }
  0x23   :  { %41 = vsyncpa [#allocation18], 0 }
  0x24   :  { %42 = vsyncpa [#allocation21], 0 }
  0x25   :  { %43 = vsyncpa [#allocation24], 0 }
  0x26   :  { %44 = vsyncpa [#allocation27], 0 }
  0x27   :  { %45 = vsyncpa [#allocation30], 0 }
  0x28   :  { %46 = vsyncpa [#allocation33], 0 }
  0x29   :  { %47 = vsyncpa [#allocation36], 0 }
  0x2a   :  { %48 = vsyncpa [#allocation39], 0 }
  0x2b   :  { %49 = vsyncpa [#allocation4], 0 }
  0x2c   :  { %51 = vsyncpa [#allocation4 + $0x1], 0  ;;  %s10909_s29 = smov 0   ;;  %s10911_s2 = smov 0  }
  0x2d   :  { %s10913_s6 = smov 0   ;;  %s10915_s30 = smov 0  }
  0x2e LB: > { %13546 = sst [smem:[#allocation56_spill]] %s10724_s29  ;;  %s10738_s7 = smov [#allocation11]   ;;  %s10736_s30 = sphi %s10915_s30, %s13776_s30   ;;  %s10732_s6 = sphi %s10913_s6, %s13780_s6   ;;  %s10728_s2 = sphi %s10911_s2, %s13779_s2   ;;  %s10724_s29 = sphi %s10909_s29, %s13778_s29  }
  0x2f   : > { %13547 = sst [smem:[#allocation57_spill]] %s10736_s30  ;;  %s650_s3 = sshll.u32 %s10738_s7, 4  ;;  %s10935_s3 = int_to_ptr.vmem [resolvable:$true] %s650_s3 }
  0x30   : > { %s10930_s26 = sadd.s32 4294967295, %s10736_s30   ;;  %p8427_p0 = scmp.ge.s32.totalorder %s10736_s30, 1 }
  0x31   : > { %13548 = sst [smem:[#allocation58_spill]] %s10930_s26  ;;  %p13422_p1 = scmp.eq.s32.totalorder %s10930_s26, 0 }
  0x32   : > { %p638_p2 = scmp.lt.s32.totalorder %s10736_s30, 3  ;;  %s10739_s8 = smov [#allocation14]  }
  0x33   : > { %s676_s27 = sshll.u32 %s10739_s8, 4  ;;  %s10740_s28 = smov [#allocation17]   ;;  %s10950_s27 = int_to_ptr.vmem [resolvable:$true] %s676_s27 }
  0x34   : > { %p10937_p3 = pnand %p8427_p0, %p638_p2  ;;  %s10952_s9 = sshll.u32 %s10740_s28, 4  ;;  %s703_s9 = int_to_ptr.vmem [resolvable:$true] %s10952_s9 }
  0x35   : > { %s13552_s7 = sld [smem:[#allocation103_spill]] }
  0x36   : > { %s13549_s1 = scalar_select %p10937_p3, 1, 0 }
  0x37   : > { %p9364_p5 = pneg %p10937_p3 }
  0x38   : > { %13550 = sst [smem:[#allocation59_spill]] %s13549_s1 }
  0x39   : > { %p10946_p6 = pnand %p9364_p5, %p13422_p1 }
  0x3b   : > { %s13551_s4 = scalar_select %p10946_p6, 1, 0 }
  0x3c   : > { %s9912_s25 = scalar_lea.hbm %s13552_s7, 1536  ;;  %p10962_p8 = pneg %p10946_p6 }
  0x3d   : > { %p9913_p7 = scmp.ne.s32.totalorder %s13552_s7, %s9912_s25  ;;  %p9919_p11 = scmp.lt.u32.totalorder %s9912_s25, %s13552_s7 }
  0x3e   : > { %s13553_s8 = scalar_select %p10962_p8, 1, 0 }
  0x3f   : > { %p9915_p9 = pnand %p10962_p8, %p9913_p7 }
  0x41   : > { %p9916_p10 = pneg %p9915_p9 }
  0x43   : > { %p9921_p12 = pnand %p9919_p11, %p9916_p10 }
  0x45   : > { %9924 = shalt.err (!%p9921_p12)
}
  0x46   : > { %s9925_s24 = scalar_lea.vmem %s10935_s3, 1536  ;;  %p9933_p5 = scmp.lt.s32.totalorder %s10935_s3, %s10935_s3 }
  0x47   : > { %p9926_p13 = scmp.ne.s32.totalorder %s10935_s3, %s9925_s24  ;;  %p9934_p4 = scmp.lt.s32.totalorder %s9925_s24, %s9925_s24 }
  0x49   : > { %p9928_p0 = pnand %p9926_p13, %p10962_p8  ;;  %p9935_p7 = por %p9934_p4, %p9933_p5 }
  0x4b   : > { %p9929_p2 = pneg %p9928_p0 }
  0x4d   : > { %p9936_p9 = pnand %p9935_p7, %p9929_p2 }
  0x4f   : > { %9939 = shalt.err (!%p9936_p9)
}
  0x50   : > { %s13424_s1 = smov 128   ;;  %s13426_s22 = smov 8  }
  0x51   : > { %9367 = dma.hbm_to_vmem [thread:$0]  (!%p10946_p6), %s13552_s7, 1536, %s10935_s3, [#allocation12], %s13424_s1, %s13424_s1, %s13426_s22  }
  0x52   : > { %s13554_s20 = sld [smem:[#allocation105_spill]] }
  0x58   : > { %s9940_s24 = scalar_lea.hbm %s13554_s20, 3072 }
  0x59   : > { %p9941_p4 = scmp.ne.s32.totalorder %s13554_s20, %s9940_s24  ;;  %p9947_p12 = scmp.lt.u32.totalorder %s9940_s24, %s13554_s20 }
  0x5b   : > { %p9943_p10 = pnand %p9941_p4, %p10962_p8 }
  0x5d   : > { %p9944_p11 = pneg %p9943_p10 }
  0x5f   : > { %p9949_p13 = pnand %p9947_p12, %p9944_p11 }
  0x61   : > { %9952 = shalt.err (!%p9949_p13)
}
  0x62   : > { %s9953_s3 = scalar_lea.vmem %s10950_s27, 3072  ;;  %p9961_p7 = scmp.lt.s32.totalorder %s10950_s27, %s10950_s27 }
  0x63   : > { %p9954_p0 = scmp.ne.s32.totalorder %s10950_s27, %s9953_s3  ;;  %p9962_p9 = scmp.lt.s32.totalorder %s9953_s3, %s9953_s3 }
  0x65   : > { %p9956_p2 = pnand %p9954_p0, %p10962_p8  ;;  %p9963_p4 = por %p9962_p9, %p9961_p7 }
  0x67   : > { %p9957_p5 = pneg %p9956_p2 }
  0x69   : > { %p9964_p10 = pnand %p9963_p4, %p9957_p5 }
  0x6b   : > { %9967 = shalt.err (!%p9964_p10)
}
  0x6c   : > { %9373 = dma.hbm_to_vmem [thread:$0]  (!%p10946_p6), %s13554_s20, 3072, %s10950_s27, [#allocation15], %s13424_s1, %s13424_s1, %s13426_s22  }
  0x6d   : > { %s13555_s25 = sld [smem:[#allocation107_spill]] }
  0x73   : > { %s9968_s5 = scalar_lea.hbm %s13555_s25, 48 }
  0x74   : > { %p9969_p11 = scmp.ne.s32.totalorder %s13555_s25, %s9968_s5  ;;  %p9975_p0 = scmp.lt.u32.totalorder %s9968_s5, %s13555_s25 }
  0x76   : > { %p9971_p12 = pnand %p9969_p11, %p10962_p8 }
  0x78   : > { %p9972_p13 = pneg %p9971_p12 }
  0x7a   : > { %p9977_p2 = pnand %p9975_p0, %p9972_p13 }
  0x7c   : > { %9980 = shalt.err (!%p9977_p2)
}
  0x7d   : > { %s9981_s12 = scalar_lea.vmem %s703_s9, 48  ;;  %s9988_s27 = scalar_lea.vmem %s703_s9, 64 }
  0x7e   : > { %p9982_p5 = scmp.ne.s32.totalorder %s703_s9, %s9981_s12  ;;  %p9989_p4 = scmp.lt.s32.totalorder %s703_s9, %s703_s9 }
  0x7f   : > { %p9990_p10 = scmp.lt.s32.totalorder %s9988_s27, %s9981_s12 }
  0x80   : > { %p9984_p7 = pnand %p9982_p5, %p10962_p8 }
  0x81   : > { %p9991_p1 = por %p9990_p10, %p9989_p4 }
  0x82   : > { %p9985_p9 = pneg %p9984_p7 }
  0x84   : > { %p9992_p3 = pnand %p9991_p1, %p9985_p9 }
  0x86   : > { %9995 = shalt.err (!%p9992_p3)
}
  0x87   : > { %s13429_s14 = smov 16   ;;  %s13431_s16 = smov 1  }
  0x88   : > { %9379 = dma.hbm_to_vmem [thread:$0]  (!%p10946_p6), %s13555_s25, 48, %s703_s9, [#allocation18], %s13429_s14, %s13429_s14, %s13431_s16  }
  0x89   : > { %s10745_s0 = smov [#allocation20]   ;;  %s13556_s11 = sld [smem:[#allocation109_spill]] }
  0x8a   : > { %s728_s28 = sshll.u32 %s10745_s0, 4  ;;  %s729_s28 = int_to_ptr.vmem [resolvable:$true] %s728_s28 }
  0x8f   : > { %s9996_s12 = scalar_lea.hbm %s13556_s11, 128 }
  0x90   : > { %p9997_p1 = scmp.ne.s32.totalorder %s13556_s11, %s9996_s12  ;;  %p10003_p12 = scmp.lt.u32.totalorder %s9996_s12, %s13556_s11 }
  0x92   : > { %p9999_p3 = pnand %p9997_p1, %p10962_p8 }
  0x94   : > { %p10000_p11 = pneg %p9999_p3 }
  0x96   : > { %p10005_p13 = pnand %p10003_p12, %p10000_p11 }
  0x98   : > { %10008 = shalt.err (!%p10005_p13)
}
  0x99   : > { %s10009_s9 = scalar_lea.vmem %s729_s28, 128  ;;  %p10017_p7 = scmp.lt.s32.totalorder %s729_s28, %s729_s28 }
  0x9a   : > { %p10010_p0 = scmp.ne.s32.totalorder %s729_s28, %s10009_s9  ;;  %p10018_p9 = scmp.lt.s32.totalorder %s10009_s9, %s10009_s9 }
  0x9c   : > { %p10012_p2 = pnand %p10010_p0, %p10962_p8  ;;  %p10019_p4 = por %p10018_p9, %p10017_p7 }
  0x9e   : > { %p10013_p5 = pneg %p10012_p2 }
  0xa0   : > { %p10020_p10 = pnand %p10019_p4, %p10013_p5 }
  0xa2   : > { %10023 = shalt.err (!%p10020_p10)
}
  0xa3   : > { %s13433_s1 = smov 64   ;;  %s13435_s18 = smov 4  }
  0xa4   : > { %9385 = dma.hbm_to_vmem [thread:$0]  (!%p10946_p6), %s13556_s11, 128, %s729_s28, [#allocation21], %s13433_s1, %s13433_s1, %s13435_s18  }
  0xa5   : > { %s10748_s5 = smov [#allocation23]   ;;  %s10749_s24 = smov [#allocation26]  }
  0xa6   : > { %s754_s0 = sshll.u32 %s10748_s5, 4  ;;  %s780_s3 = sshll.u32 %s10749_s24, 4  ;;  %s755_s0 = int_to_ptr.vmem [resolvable:$true] %s754_s0  ;;  %s11055_s3 = int_to_ptr.vmem [resolvable:$true] %s780_s3 }
  0xa7   : > { %s13557_s13 = sld [smem:[#allocation111_spill]] }
  0xad   : > { %s10024_s9 = scalar_lea.hbm %s13557_s13, 32 }
  0xae   : > { %p10025_p1 = scmp.ne.s32.totalorder %s13557_s13, %s10024_s9  ;;  %p10031_p12 = scmp.lt.u32.totalorder %s10024_s9, %s13557_s13 }
  0xb0   : > { %p10027_p3 = pnand %p10025_p1, %p10962_p8 }
  0xb2   : > { %p10028_p11 = pneg %p10027_p3 }
  0xb4   : > { %p10033_p13 = pnand %p10031_p12, %p10028_p11 }
  0xb6   : > { %10036 = shalt.err (!%p10033_p13)
}
  0xb7   : > { %s10037_s22 = scalar_lea.vmem %s755_s0, 32  ;;  %p10045_p7 = scmp.lt.s32.totalorder %s755_s0, %s755_s0 }
  0xb8   : > { %p10038_p0 = scmp.ne.s32.totalorder %s755_s0, %s10037_s22  ;;  %p10046_p9 = scmp.lt.s32.totalorder %s10037_s22, %s10037_s22 }
  0xba   : > { %p10040_p2 = pnand %p10038_p0, %p10962_p8  ;;  %p10047_p4 = por %p10046_p9, %p10045_p7 }
  0xbc   : > { %p10041_p5 = pneg %p10040_p2 }
  0xbe   : > { %p10048_p10 = pnand %p10047_p4, %p10041_p5 }
  0xc0   : > { %10051 = shalt.err (!%p10048_p10)
}
  0xc1   : > { %s13558_s14 = smov 1   ;;  %s13559_s16 = smov 16  }
  0xc2   : > { %9391 = dma.hbm_to_vmem [thread:$0]  (!%p10946_p6), %s13557_s13, 32, %s755_s0, [#allocation24], %s13559_s16, %s13559_s16, %s13558_s14  }
  0xc3   : > { %s13560_s15 = sld [smem:[#allocation113_spill]] }
  0xc9   : > { %s10052_s9 = scalar_lea.hbm %s13560_s15, 32 }
  0xca   : > { %p10053_p1 = scmp.ne.s32.totalorder %s13560_s15, %s10052_s9  ;;  %p10059_p12 = scmp.lt.u32.totalorder %s10052_s9, %s13560_s15 }
  0xcc   : > { %p10055_p3 = pnand %p10053_p1, %p10962_p8 }
  0xce   : > { %p10056_p11 = pneg %p10055_p3 }
  0xd0   : > { %p10061_p13 = pnand %p10059_p12, %p10056_p11 }
  0xd2   : > { %10064 = shalt.err (!%p10061_p13)
}
  0xd3   : > { %s10065_s0 = scalar_lea.vmem %s11055_s3, 32  ;;  %p10073_p7 = scmp.lt.s32.totalorder %s11055_s3, %s11055_s3 }
  0xd4   : > { %p10066_p0 = scmp.ne.s32.totalorder %s11055_s3, %s10065_s0  ;;  %p10074_p9 = scmp.lt.s32.totalorder %s10065_s0, %s10065_s0 }
  0xd6   : > { %p10068_p2 = pnand %p10066_p0, %p10962_p8  ;;  %p10075_p4 = por %p10074_p9, %p10073_p7 }
  0xd8   : > { %p10069_p5 = pneg %p10068_p2 }
  0xda   : > { %p10076_p10 = pnand %p10075_p4, %p10069_p5 }
  0xdc   : > { %10079 = shalt.err (!%p10076_p10)
}
  0xdd   : > { %9397 = dma.hbm_to_vmem [thread:$0]  (!%p10946_p6), %s13560_s15, 32, %s11055_s3, [#allocation27], %s13559_s16, %s13559_s16, %s13558_s14  }
  0xde   : > { %s10750_s24 = smov [#allocation29]   ;;  %s10751_s27 = smov [#allocation32]  }
  0xdf   : > { %s806_s12 = sshll.u32 %s10750_s24, 4  ;;  %s832_s9 = sshll.u32 %s10751_s27, 4  ;;  %s807_s12 = int_to_ptr.vmem [resolvable:$true] %s806_s12  ;;  %s11104_s9 = int_to_ptr.vmem [resolvable:$true] %s832_s9 }
  0xe0   : > { %s13561_s17 = sld [smem:[#allocation115_spill]] }
  0xe6   : > { %s10080_s22 = scalar_lea.hbm %s13561_s17, 32 }
  0xe7   : > { %p10081_p1 = scmp.ne.s32.totalorder %s13561_s17, %s10080_s22  ;;  %p10087_p12 = scmp.lt.u32.totalorder %s10080_s22, %s13561_s17 }
  0xe9   : > { %p10083_p3 = pnand %p10081_p1, %p10962_p8 }
  0xeb   : > { %p10084_p11 = pneg %p10083_p3 }
  0xed   : > { %p10089_p13 = pnand %p10087_p12, %p10084_p11 }
  0xef   : > { %10092 = shalt.err (!%p10089_p13)
}
  0xf0   : > { %s10093_s5 = scalar_lea.vmem %s807_s12, 32  ;;  %p10101_p7 = scmp.lt.s32.totalorder %s807_s12, %s807_s12 }
  0xf1   : > { %p10094_p0 = scmp.ne.s32.totalorder %s807_s12, %s10093_s5  ;;  %p10102_p9 = scmp.lt.s32.totalorder %s10093_s5, %s10093_s5 }
  0xf3   : > { %p10096_p2 = pnand %p10094_p0, %p10962_p8  ;;  %p10103_p4 = por %p10102_p9, %p10101_p7 }
  0xf5   : > { %p10097_p5 = pneg %p10096_p2 }
  0xf7   : > { %p10104_p10 = pnand %p10103_p4, %p10097_p5 }
  0xf9   : > { %10107 = shalt.err (!%p10104_p10)
}
  0xfa   : > { %9403 = dma.hbm_to_vmem [thread:$0]  (!%p10946_p6), %s13561_s17, 32, %s807_s12, [#allocation30], %s13559_s16, %s13559_s16, %s13558_s14  }
  0xfb   : > { %s13562_s19 = sld [smem:[#allocation117_spill]] }
 0x101   : > { %s10108_s28 = scalar_lea.hbm %s13562_s19, 32 }
 0x102   : > { %p10109_p1 = scmp.ne.s32.totalorder %s13562_s19, %s10108_s28  ;;  %p10115_p12 = scmp.lt.u32.totalorder %s10108_s28, %s13562_s19 }
 0x104   : > { %p10111_p3 = pnand %p10109_p1, %p10962_p8 }
 0x106   : > { %p10112_p11 = pneg %p10111_p3 }
 0x108   : > { %p10117_p13 = pnand %p10115_p12, %p10112_p11 }
 0x10a   : > { %10120 = shalt.err (!%p10117_p13)
}
 0x10b   : > { %s10121_s12 = scalar_lea.vmem %s11104_s9, 32  ;;  %p10129_p7 = scmp.lt.s32.totalorder %s11104_s9, %s11104_s9 }
 0x10c   : > { %p10122_p0 = scmp.ne.s32.totalorder %s11104_s9, %s10121_s12  ;;  %p10130_p9 = scmp.lt.s32.totalorder %s10121_s12, %s10121_s12 }
 0x10e   : > { %p10124_p2 = pnand %p10122_p0, %p10962_p8  ;;  %p10131_p4 = por %p10130_p9, %p10129_p7 }
 0x110   : > { %p10125_p5 = pneg %p10124_p2 }
 0x112   : > { %p10132_p10 = pnand %p10131_p4, %p10125_p5 }
 0x114   : > { %10135 = shalt.err (!%p10132_p10)
}
 0x115   : > { %9409 = dma.hbm_to_vmem [thread:$0]  (!%p10946_p6), %s13562_s19, 32, %s11104_s9, [#allocation33], %s13559_s16, %s13559_s16, %s13558_s14  }
 0x116   : > { %s10752_s24 = smov [#allocation35]   ;;  %s10753_s7 = smov [#allocation38]  }
 0x117   : > { %s858_s27 = sshll.u32 %s10752_s24, 4  ;;  %s884_s28 = sshll.u32 %s10753_s7, 4  ;;  %s859_s27 = int_to_ptr.vmem [resolvable:$true] %s858_s27  ;;  %s11153_s28 = int_to_ptr.vmem [resolvable:$true] %s884_s28 }
 0x118   : > { %s13563_s21 = sld [smem:[#allocation119_spill]] }
 0x11e   : > { %s10136_s1 = scalar_lea.hbm %s13563_s21, 1024 }
 0x11f   : > { %p10137_p1 = scmp.ne.s32.totalorder %s13563_s21, %s10136_s1  ;;  %p10143_p12 = scmp.lt.u32.totalorder %s10136_s1, %s13563_s21 }
 0x121   : > { %p10139_p3 = pnand %p10137_p1, %p10962_p8 }
 0x123   : > { %p10140_p11 = pneg %p10139_p3 }
 0x125   : > { %p10145_p13 = pnand %p10143_p12, %p10140_p11 }
 0x127   : > { %10148 = shalt.err (!%p10145_p13)
}
 0x128   : > { %s10149_s18 = scalar_lea.vmem %s859_s27, 1024  ;;  %p10157_p7 = scmp.lt.s32.totalorder %s859_s27, %s859_s27 }
 0x129   : > { %p10150_p0 = scmp.ne.s32.totalorder %s859_s27, %s10149_s18  ;;  %p10158_p9 = scmp.lt.s32.totalorder %s10149_s18, %s10149_s18 }
 0x12b   : > { %p10152_p2 = pnand %p10150_p0, %p10962_p8  ;;  %p10159_p4 = por %p10158_p9, %p10157_p7 }
 0x12d   : > { %p10153_p5 = pneg %p10152_p2 }
 0x12f   : > { %p10160_p10 = pnand %p10159_p4, %p10153_p5 }
 0x131   : > { %10163 = shalt.err (!%p10160_p10)
}
 0x132   : > { %s13564_s24 = smov 8   ;;  %s13565_s7 = smov 128  }
 0x133   : > { %9415 = dma.hbm_to_vmem [thread:$0]  (!%p10946_p6), %s13563_s21, 1024, %s859_s27, [#allocation36], %s13565_s7, %s13565_s7, %s13564_s24  }
 0x134   : > { %s13566_s23 = sld [smem:[#allocation121_spill]] }
 0x13a   : > { %s10164_s12 = scalar_lea.hbm %s13566_s23, 2048 }
 0x13b   : > { %p10165_p1 = scmp.ne.s32.totalorder %s13566_s23, %s10164_s12  ;;  %p10171_p12 = scmp.lt.u32.totalorder %s10164_s12, %s13566_s23 }
 0x13d   : > { %p10167_p3 = pnand %p10165_p1, %p10962_p8 }
 0x13f   : > { %p10168_p11 = pneg %p10167_p3 }
 0x141   : > { %p10173_p13 = pnand %p10171_p12, %p10168_p11 }
 0x143   : > { %10176 = shalt.err (!%p10173_p13)
}
 0x144   : > { %s10177_s27 = scalar_lea.vmem %s11153_s28, 2048  ;;  %p10185_p7 = scmp.lt.s32.totalorder %s11153_s28, %s11153_s28 }
 0x145   : > { %p10178_p0 = scmp.ne.s32.totalorder %s11153_s28, %s10177_s27  ;;  %p10186_p9 = scmp.lt.s32.totalorder %s10177_s27, %s10177_s27 }
 0x147   : > { %p10180_p2 = pnand %p10178_p0, %p10962_p8  ;;  %p10187_p4 = por %p10186_p9, %p10185_p7 }
 0x149   : > { %p10181_p5 = pneg %p10180_p2 }
 0x14b   : > { %p10188_p10 = pnand %p10187_p4, %p10181_p5 }
 0x14d   : > { %10191 = shalt.err (!%p10188_p10)
}
 0x14e   : > { %9421 = dma.hbm_to_vmem [thread:$0]  (!%p10946_p6), %s13566_s23, 2048, %s11153_s28, [#allocation39], %s13565_s7, %s13565_s7, %s13564_s24  }
 0x14f   : > { %s8426_s0 = sadd.s32 4294967294, %s10736_s30   ;;  %s11204_s1 = sadd.s32 1, %s10736_s30  }
 0x150   : > { %13567 = sst [smem:[#allocation60_spill]] %s11204_s1  ;;  %s61_s3 = ssub.s32 %s10736_s30, %s11204_s1 }
 0x151   : > { %s64_s12 = sadd.s32 1, %s10732_s6  ;;  %p62_p1 = scmp.eq.s32.totalorder %s61_s3, 0 }
 0x152   : > { %p71_p3 = scmp.ne.s32.totalorder %s10732_s6, %s10728_s2  ;;  %p72_p11 = scmp.eq.s32.totalorder %s10736_s30, 0 }
 0x153   : > { %p77_p12 = scmp.ne.s32.totalorder %s10728_s2, %s10724_s29  ;;  %p13569_p0 = scmp.eq.s32.totalorder %s10930_s26, 0 }
 0x154   : > { %s11215_s5 = scalar_select %p62_p1, %s10732_s6, %s64_s12  }
 0x155   : > { %p73_p13 = por %p72_p11, %p71_p3  ;;  %p11219_p2 = por %p13569_p0, %p77_p12 }
 0x156   : > { %13568 = sst [smem:[#allocation61_spill]] %s11215_s5  ;;  %p625_p5 = scmp.eq.s32.totalorder %s10930_s26, 1 }
 0x157   : > { %s13570_s28 = scalar_select %p11219_p2, 1, 0 }
 0x158   : > { %p631_p7 = scmp.eq.s32.totalorder %s8426_s0, 1  ;;  %p9465_p9 = scmp.lt.s32.totalorder %s10736_s30, 2 }
 0x159   : > { %13571 = sst [smem:[#allocation62_spill]] %s13570_s28  ;;  %s13437_s9 = sand.u32 1, %s10732_s6  }
 0x15a   : > { %p11226_p4 = por %p625_p5, %p71_p3  ;;  %p11230_p10 = por %p631_p7, %p77_p12 }
 0x15b   : > { %s11236_s11 = sshll.u32 %s13437_s9, 3  ;;  %s11239_s22 = sshll.u32 %s10736_s30, 7 }
 0x15c   : > { %s13572_s18 = scalar_select %p11226_p4, 1, 0 }
 0x15d   : > { %s13574_s27 = scalar_select %p11230_p10, 1, 0 }
 0x15e   : > { %13573 = sst [smem:[#allocation63_spill]] %s13572_s18  ;;  %p11241_p1 = pnand %p9465_p9, %p73_p13 }
 0x15f   : > { %13575 = sst [smem:[#allocation64_spill]] %s13574_s27  ;;  %s13441_s0 = sand.u32 1, %s10736_s30  }
 0x160   : > { %s13576_s3 = scalar_select %p11241_p1, 1, 0 }
 0x161   : > { %s13577_s15 = sld [smem:[#allocation99_spill]]  ;;  %s933_s9 = scalar_lea.vmem [#allocation5], %s11236_s11 }
 0x162   : > { %s940_s19 = sshll.u32 %s933_s9, 4  ;;  %s11257_s20 = scalar_lea.sflag [#allocation6], %s13441_s0  ;;  %s11253_s19 = int_to_ptr.vmem [resolvable:$true] %s940_s19 }
 0x163   : > { %p11263_p11 = pneg %p11241_p1 }
 0x165   : > { %s13578_s23 = scalar_select %p11263_p11, 1, 0 }
 0x167   : > { %s11250_s17 = scalar_lea.hbm %s13577_s15, %s11239_s22  ;;  %s10197_s9 = scalar_lea.hbm %s13577_s15, 256 }
 0x168   : > { %s10192_s21 = scalar_lea.hbm %s11250_s17, 128  ;;  %p10198_p0 = scmp.lt.u32.totalorder %s11250_s17, %s13577_s15 }
 0x169   : > { %p10193_p3 = scmp.ne.s32.totalorder %s11250_s17, %s10192_s21  ;;  %p10199_p5 = scmp.lt.u32.totalorder %s10197_s9, %s10192_s21 }
 0x16a   : > { %p10201_p9 = scmp.lt.u32.totalorder %s10192_s21, %s11250_s17 }
 0x16b   : > { %p10195_p12 = pnand %p11263_p11, %p10193_p3  ;;  %p10200_p7 = por %p10199_p5, %p10198_p0 }
 0x16d   : > { %p10196_p13 = pneg %p10195_p12  ;;  %p10202_p10 = por %p10201_p9, %p10200_p7 }
 0x16f   : > { %p10203_p4 = pnand %p10202_p10, %p10196_p13 }
 0x171   : > { %10206 = shalt.err (!%p10203_p4)
}
 0x172   : > { %s10207_s0 = scalar_lea.vmem %s11253_s19, 128  ;;  %s10754_s13 = smov [#allocation5]  }
 0x173   : > { %p10208_p3 = scmp.ne.s32.totalorder %s11253_s19, %s10207_s0  ;;  %s10212_s12 = sshll.u32 %s10754_s13, 4  ;;  %s10213_s12 = int_to_ptr.vmem [resolvable:$false] %s10212_s12 }
 0x174   : > { %s10214_s25 = scalar_lea.vmem %s10213_s12, 256  ;;  %p10215_p6 = scmp.lt.s32.totalorder %s11253_s19, %s10213_s12 }
 0x175   : > { %p10210_p12 = pnand %p10208_p3, %p11263_p11  ;;  %p10216_p8 = scmp.lt.s32.totalorder %s10214_s25, %s10207_s0 }
 0x177   : > { %p10211_p2 = pneg %p10210_p12  ;;  %p10217_p0 = por %p10216_p8, %p10215_p6 }
 0x179   : > { %p10218_p5 = pnand %p10217_p0, %p10211_p2 }
 0x17b   : > { %10221 = shalt.err (!%p10218_p5)
}
 0x17c   : > { %9431 = dma.hbm_to_vmem [thread:$0]  (!%p11241_p1), %s11250_s17, 128, %s11253_s19, %s11257_s20  }
 0x17d   : > { %s13579_s9 = sld [smem:[#allocation101_spill]]  ;;  %s969_s0 = scalar_lea.vmem [#allocation8], %s11236_s11 }
 0x17e   : > { %s976_s12 = sshll.u32 %s969_s0, 4  ;;  %s13580_s25 = sand.u32 1, %s10736_s30   ;;  %s977_s12 = int_to_ptr.vmem [resolvable:$true] %s976_s12 }
 0x17f   : > { %s11296_s15 = scalar_lea.sflag [#allocation9], %s13580_s25 }
 0x183   : > { %s11291_s13 = scalar_lea.hbm %s13579_s9, %s11239_s22  ;;  %s10227_s21 = scalar_lea.hbm %s13579_s9, 256 }
 0x184   : > { %s10222_s1 = scalar_lea.hbm %s11291_s13, 128  ;;  %p10228_p4 = scmp.lt.u32.totalorder %s11291_s13, %s13579_s9 }
 0x185   : > { %p10223_p6 = scmp.ne.s32.totalorder %s11291_s13, %s10222_s1  ;;  %p10229_p10 = scmp.lt.u32.totalorder %s10227_s21, %s10222_s1 }
 0x186   : > { %p10231_p7 = scmp.lt.u32.totalorder %s10222_s1, %s11291_s13 }
 0x187   : > { %p10225_p8 = pnand %p10223_p6, %p11263_p11  ;;  %p10230_p13 = por %p10229_p10, %p10228_p4 }
 0x189   : > { %p10226_p2 = pneg %p10225_p8  ;;  %p10232_p9 = por %p10231_p7, %p10230_p13 }
 0x18b   : > { %p10233_p3 = pnand %p10232_p9, %p10226_p2 }
 0x18d   : > { %10236 = shalt.err (!%p10233_p3)
}
 0x18e   : > { %s10237_s0 = scalar_lea.vmem %s977_s12, 128  ;;  %s10755_s25 = smov [#allocation8]  }
 0x18f   : > { %p10238_p12 = scmp.ne.s32.totalorder %s977_s12, %s10237_s0  ;;  %s10242_s30 = sshll.u32 %s10755_s25, 4  ;;  %s10243_s30 = int_to_ptr.vmem [resolvable:$false] %s10242_s30 }
 0x190   : > { %s10244_s17 = scalar_lea.vmem %s10243_s30, 256  ;;  %p10245_p6 = scmp.lt.s32.totalorder %s977_s12, %s10243_s30 }
 0x191   : > { %p10240_p0 = pnand %p10238_p12, %p11263_p11  ;;  %p10246_p8 = scmp.lt.s32.totalorder %s10244_s17, %s10237_s0 }
 0x193   : > { %p10241_p5 = pneg %p10240_p0  ;;  %p10247_p1 = por %p10246_p8, %p10245_p6 }
 0x195   : > { %p10248_p4 = pnand %p10247_p1, %p10241_p5 }
 0x197   : > { %10251 = shalt.err (!%p10248_p4)
}
 0x198   : > { %p13581_p10 = scmp.ne.s32.totalorder %s13576_s3, 0  ;;  %s10756_s1 = smov [#allocation13]  }
 0x199   : > { %s663_s27 = sshll.u32 %s10756_s1, 4  ;;  %s10757_s19 = smov [#allocation16]   ;;  %s664_s27 = int_to_ptr.vmem [resolvable:$true] %s663_s27 }
 0x19a   : > { %9437 = dma.hbm_to_vmem [thread:$0]  (!%p13581_p10), %s11291_s13, 128, %s977_s12, %s11296_s15  }
 0x19b   : > { %s689_s21 = sshll.u32 %s10757_s19, 4  ;;  %s13582_s9 = sld [smem:[#allocation104_spill]]  ;;  %s690_s21 = int_to_ptr.vmem [resolvable:$true] %s689_s21 }
 0x19c   : > { %p13583_p2 = scmp.ne.s32.totalorder %s13553_s8, 0 }
 0x1a1   : > { %s10252_s29 = scalar_lea.hbm %s13582_s9, 48 }
 0x1a2   : > { %p10253_p1 = scmp.ne.s32.totalorder %s13582_s9, %s10252_s29  ;;  %p10259_p9 = scmp.lt.u32.totalorder %s10252_s29, %s13582_s9 }
 0x1a4   : > { %p10255_p13 = pnand %p10253_p1, %p13583_p2 }
 0x1a6   : > { %p10256_p7 = pneg %p10255_p13 }
 0x1a8   : > { %p10261_p3 = pnand %p10259_p9, %p10256_p7 }
 0x1aa   : > { %10264 = shalt.err (!%p10261_p3)
}
 0x1ab   : > { %s10265_s13 = scalar_lea.vmem %s664_s27, 48  ;;  %s10272_s12 = scalar_lea.vmem %s664_s27, 64 }
 0x1ac   : > { %p10266_p12 = scmp.ne.s32.totalorder %s664_s27, %s10265_s13  ;;  %p10273_p6 = scmp.lt.s32.totalorder %s664_s27, %s664_s27 }
 0x1ad   : > { %p10274_p8 = scmp.lt.s32.totalorder %s10272_s12, %s10265_s13 }
 0x1ae   : > { %p10268_p0 = pnand %p10266_p12, %p13583_p2 }
 0x1af   : > { %p10275_p4 = por %p10274_p8, %p10273_p6 }
 0x1b0   : > { %p10269_p5 = pneg %p10268_p0 }
 0x1b2   : > { %p10276_p10 = pnand %p10275_p4, %p10269_p5 }
 0x1b4   : > { %10279 = shalt.err (!%p10276_p10)
}
 0x1b5   : > { %p13584_p1 = scmp.ne.s32.totalorder %s13551_s4, 0  ;;  %s13585_s5 = sld [smem:[#allocation106_spill]] }
 0x1b7   : > { %9370 = dma.hbm_to_vmem [thread:$0]  (!%p13584_p1), %s13582_s9, 48, %s664_s27, [#allocation12], %s13559_s16, %s13559_s16, %s13558_s14  }
 0x1bb   : > { %s10280_s25 = scalar_lea.hbm %s13585_s5, 48 }
 0x1bc   : > { %p10281_p13 = scmp.ne.s32.totalorder %s13585_s5, %s10280_s25  ;;  %p10287_p9 = scmp.lt.u32.totalorder %s10280_s25, %s13585_s5 }
 0x1be   : > { %p10283_p10 = pnand %p10281_p13, %p13583_p2 }
 0x1c0   : > { %p10284_p7 = pneg %p10283_p10 }
 0x1c2   : > { %p10289_p3 = pnand %p10287_p9, %p10284_p7 }
 0x1c4   : > { %10292 = shalt.err (!%p10289_p3)
}
 0x1c5   : > { %s10293_s12 = scalar_lea.vmem %s690_s21, 48  ;;  %s10300_s27 = scalar_lea.vmem %s690_s21, 64 }
 0x1c6   : > { %p10294_p12 = scmp.ne.s32.totalorder %s690_s21, %s10293_s12  ;;  %p10301_p6 = scmp.lt.s32.totalorder %s690_s21, %s690_s21 }
 0x1c7   : > { %p10302_p8 = scmp.lt.s32.totalorder %s10300_s27, %s10293_s12 }
 0x1c8   : > { %p10296_p0 = pnand %p10294_p12, %p13583_p2 }
 0x1c9   : > { %p10303_p4 = por %p10302_p8, %p10301_p6 }
 0x1ca   : > { %p10297_p5 = pneg %p10296_p0 }
 0x1cc   : > { %p10304_p11 = pnand %p10303_p4, %p10297_p5 }
 0x1ce   : > { %10307 = shalt.err (!%p10304_p11)
}
 0x1cf   : > { %9376 = dma.hbm_to_vmem [thread:$0]  (!%p13584_p1), %s13585_s5, 48, %s690_s21, [#allocation15], %s13559_s16, %s13559_s16, %s13558_s14  }
 0x1d0   : > { %s10758_s1 = smov [#allocation19]   ;;  %s10759_s25 = smov [#allocation22]  }
 0x1d1   : > { %s715_s19 = sshll.u32 %s10758_s1, 4  ;;  %s741_s30 = sshll.u32 %s10759_s25, 4  ;;  %s716_s19 = int_to_ptr.vmem [resolvable:$true] %s715_s19  ;;  %s742_s30 = int_to_ptr.vmem [resolvable:$true] %s741_s30 }
 0x1d2   : > { %s13586_s10 = sld [smem:[#allocation108_spill]] }
 0x1d8   : > { %s10308_s13 = scalar_lea.hbm %s13586_s10, 48 }
 0x1d9   : > { %p10309_p11 = scmp.ne.s32.totalorder %s13586_s10, %s10308_s13  ;;  %p10315_p7 = scmp.lt.u32.totalorder %s10308_s13, %s13586_s10 }
 0x1db   : > { %p10311_p13 = pnand %p10309_p11, %p13583_p2 }
 0x1dd   : > { %p10312_p10 = pneg %p10311_p13 }
 0x1df   : > { %p10317_p9 = pnand %p10315_p7, %p10312_p10 }
 0x1e1   : > { %10320 = shalt.err (!%p10317_p9)
}
 0x1e2   : > { %s10321_s21 = scalar_lea.vmem %s716_s19, 48  ;;  %s10328_s18 = scalar_lea.vmem %s716_s19, 64 }
 0x1e3   : > { %p10322_p3 = scmp.ne.s32.totalorder %s716_s19, %s10321_s21  ;;  %p10329_p5 = scmp.lt.s32.totalorder %s716_s19, %s716_s19 }
 0x1e4   : > { %p10330_p6 = scmp.lt.s32.totalorder %s10328_s18, %s10321_s21 }
 0x1e5   : > { %p10324_p12 = pnand %p10322_p3, %p13583_p2 }
 0x1e6   : > { %p10331_p8 = por %p10330_p6, %p10329_p5 }
 0x1e7   : > { %p10325_p0 = pneg %p10324_p12 }
 0x1e9   : > { %p10332_p4 = pnand %p10331_p8, %p10325_p0 }
 0x1eb   : > { %10335 = shalt.err (!%p10332_p4)
}
 0x1ec   : > { %9382 = dma.hbm_to_vmem [thread:$0]  (!%p13584_p1), %s13586_s10, 48, %s716_s19, [#allocation18], %s13559_s16, %s13559_s16, %s13558_s14  }
 0x1ed   : > { %s13587_s17 = sld [smem:[#allocation110_spill]] }
 0x1f3   : > { %s10336_s13 = scalar_lea.hbm %s13587_s17, 128 }
 0x1f4   : > { %p10337_p11 = scmp.ne.s32.totalorder %s13587_s17, %s10336_s13  ;;  %p10343_p7 = scmp.lt.u32.totalorder %s10336_s13, %s13587_s17 }
 0x1f6   : > { %p10339_p13 = pnand %p10337_p11, %p13583_p2 }
 0x1f8   : > { %p10340_p10 = pneg %p10339_p13 }
 0x1fa   : > { %p10345_p9 = pnand %p10343_p7, %p10340_p10 }
 0x1fc   : > { %10348 = shalt.err (!%p10345_p9)
}
 0x1fd   : > { %s10349_s18 = scalar_lea.vmem %s742_s30, 128  ;;  %p10357_p5 = scmp.lt.s32.totalorder %s742_s30, %s742_s30 }
 0x1fe   : > { %p10350_p3 = scmp.ne.s32.totalorder %s742_s30, %s10349_s18  ;;  %p10358_p6 = scmp.lt.s32.totalorder %s10349_s18, %s10349_s18 }
 0x200   : > { %p10352_p12 = pnand %p10350_p3, %p13583_p2  ;;  %p10359_p8 = por %p10358_p6, %p10357_p5 }
 0x202   : > { %p10353_p0 = pneg %p10352_p12 }
 0x204   : > { %p10360_p4 = pnand %p10359_p8, %p10353_p0 }
 0x206   : > { %10363 = shalt.err (!%p10360_p4)
}
 0x207   : > { %s13588_s19 = smov 4   ;;  %s13589_s9 = smov 64  }
 0x208   : > { %9388 = dma.hbm_to_vmem [thread:$0]  (!%p13584_p1), %s13587_s17, 128, %s742_s30, [#allocation21], %s13589_s9, %s13589_s9, %s13588_s19  }
 0x209   : > { %s10760_s0 = smov [#allocation25]   ;;  %s10761_s12 = smov [#allocation28]  }
 0x20a   : > { %s767_s13 = sshll.u32 %s10760_s0, 4  ;;  %s793_s27 = sshll.u32 %s10761_s12, 4  ;;  %s768_s13 = int_to_ptr.vmem [resolvable:$true] %s767_s13  ;;  %s794_s27 = int_to_ptr.vmem [resolvable:$true] %s793_s27 }
 0x20b   : > { %s13590_s18 = sld [smem:[#allocation112_spill]] }
 0x211   : > { %s10364_s5 = scalar_lea.hbm %s13590_s18, 128 }
 0x212   : > { %p10365_p11 = scmp.ne.s32.totalorder %s13590_s18, %s10364_s5  ;;  %p10371_p7 = scmp.lt.u32.totalorder %s10364_s5, %s13590_s18 }
 0x214   : > { %p10367_p13 = pnand %p10365_p11, %p13583_p2 }
 0x216   : > { %p10368_p10 = pneg %p10367_p13 }
 0x218   : > { %p10373_p9 = pnand %p10371_p7, %p10368_p10 }
 0x21a   : > { %10376 = shalt.err (!%p10373_p9)
}
 0x21b   : > { %s10377_s30 = scalar_lea.vmem %s768_s13, 128  ;;  %p10385_p5 = scmp.lt.s32.totalorder %s768_s13, %s768_s13 }
 0x21c   : > { %p10378_p3 = scmp.ne.s32.totalorder %s768_s13, %s10377_s30  ;;  %p10386_p6 = scmp.lt.s32.totalorder %s10377_s30, %s10377_s30 }
 0x21e   : > { %p10380_p12 = pnand %p10378_p3, %p13583_p2  ;;  %p10387_p8 = por %p10386_p6, %p10385_p5 }
 0x220   : > { %p10381_p0 = pneg %p10380_p12 }
 0x222   : > { %p10388_p4 = pnand %p10387_p8, %p10381_p0 }
 0x224   : > { %10391 = shalt.err (!%p10388_p4)
}
 0x225   : > { %9394 = dma.hbm_to_vmem [thread:$0]  (!%p13584_p1), %s13590_s18, 128, %s768_s13, [#allocation24], %s13589_s9, %s13589_s9, %s13588_s19  }
 0x226   : > { %s13591_s25 = sld [smem:[#allocation114_spill]] }
 0x22c   : > { %s10392_s0 = scalar_lea.hbm %s13591_s25, 256 }
 0x22d   : > { %p10393_p11 = scmp.ne.s32.totalorder %s13591_s25, %s10392_s0  ;;  %p10399_p7 = scmp.lt.u32.totalorder %s10392_s0, %s13591_s25 }
 0x22f   : > { %p10395_p13 = pnand %p10393_p11, %p13583_p2 }
 0x231   : > { %p10396_p10 = pneg %p10395_p13 }
 0x233   : > { %p10401_p9 = pnand %p10399_p7, %p10396_p10 }
 0x235   : > { %10404 = shalt.err (!%p10401_p9)
}
 0x236   : > { %s10405_s30 = scalar_lea.vmem %s794_s27, 256  ;;  %p10413_p5 = scmp.lt.s32.totalorder %s794_s27, %s794_s27 }
 0x237   : > { %p10406_p3 = scmp.ne.s32.totalorder %s794_s27, %s10405_s30  ;;  %p10414_p6 = scmp.lt.s32.totalorder %s10405_s30, %s10405_s30 }
 0x239   : > { %p10408_p12 = pnand %p10406_p3, %p13583_p2  ;;  %p10415_p8 = por %p10414_p6, %p10413_p5 }
 0x23b   : > { %p10409_p0 = pneg %p10408_p12 }
 0x23d   : > { %p10416_p4 = pnand %p10415_p8, %p10409_p0 }
 0x23f   : > { %10419 = shalt.err (!%p10416_p4)
}
 0x240   : > { %9400 = dma.hbm_to_vmem [thread:$0]  (!%p13584_p1), %s13591_s25, 256, %s794_s27, [#allocation27], %s13565_s7, %s13565_s7, %s13564_s24  }
 0x241   : > { %s10762_s13 = smov [#allocation31]   ;;  %s10763_s26 = smov [#allocation34]  }
 0x242   : > { %s819_s10 = sshll.u32 %s10762_s13, 4  ;;  %s845_s28 = sshll.u32 %s10763_s26, 4  ;;  %s820_s10 = int_to_ptr.vmem [resolvable:$true] %s819_s10  ;;  %s846_s28 = int_to_ptr.vmem [resolvable:$true] %s845_s28 }
 0x243   : > { %s13592_s12 = sld [smem:[#allocation116_spill]] }
 0x249   : > { %s10420_s29 = scalar_lea.hbm %s13592_s12, 32 }
 0x24a   : > { %p10421_p11 = scmp.ne.s32.totalorder %s13592_s12, %s10420_s29  ;;  %p10427_p7 = scmp.lt.u32.totalorder %s10420_s29, %s13592_s12 }
 0x24c   : > { %p10423_p13 = pnand %p10421_p11, %p13583_p2 }
 0x24e   : > { %p10424_p10 = pneg %p10423_p13 }
 0x250   : > { %p10429_p9 = pnand %p10427_p7, %p10424_p10 }
 0x252   : > { %10432 = shalt.err (!%p10429_p9)
}
 0x253   : > { %s10433_s27 = scalar_lea.vmem %s820_s10, 32  ;;  %p10441_p5 = scmp.lt.s32.totalorder %s820_s10, %s820_s10 }
 0x254   : > { %p10434_p3 = scmp.ne.s32.totalorder %s820_s10, %s10433_s27  ;;  %p10442_p6 = scmp.lt.s32.totalorder %s10433_s27, %s10433_s27 }
 0x256   : > { %p10436_p12 = pnand %p10434_p3, %p13583_p2  ;;  %p10443_p8 = por %p10442_p6, %p10441_p5 }
 0x258   : > { %p10437_p0 = pneg %p10436_p12 }
 0x25a   : > { %p10444_p4 = pnand %p10443_p8, %p10437_p0 }
 0x25c   : > { %10447 = shalt.err (!%p10444_p4)
}
 0x25d   : > { %9406 = dma.hbm_to_vmem [thread:$0]  (!%p13584_p1), %s13592_s12, 32, %s820_s10, [#allocation30], %s13559_s16, %s13559_s16, %s13558_s14  }
 0x25e   : > { %s13593_s0 = sld [smem:[#allocation118_spill]] }
 0x264   : > { %s10448_s29 = scalar_lea.hbm %s13593_s0, 1024 }
 0x265   : > { %p10449_p11 = scmp.ne.s32.totalorder %s13593_s0, %s10448_s29  ;;  %p10455_p7 = scmp.lt.u32.totalorder %s10448_s29, %s13593_s0 }
 0x267   : > { %p10451_p13 = pnand %p10449_p11, %p13583_p2 }
 0x269   : > { %p10452_p10 = pneg %p10451_p13 }
 0x26b   : > { %p10457_p9 = pnand %p10455_p7, %p10452_p10 }
 0x26d   : > { %10460 = shalt.err (!%p10457_p9)
}
 0x26e   : > { %s10461_s27 = scalar_lea.vmem %s846_s28, 1024  ;;  %p10469_p5 = scmp.lt.s32.totalorder %s846_s28, %s846_s28 }
 0x26f   : > { %p10462_p3 = scmp.ne.s32.totalorder %s846_s28, %s10461_s27  ;;  %p10470_p6 = scmp.lt.s32.totalorder %s10461_s27, %s10461_s27 }
 0x271   : > { %p10464_p12 = pnand %p10462_p3, %p13583_p2  ;;  %p10471_p8 = por %p10470_p6, %p10469_p5 }
 0x273   : > { %p10465_p0 = pneg %p10464_p12 }
 0x275   : > { %p10472_p4 = pnand %p10471_p8, %p10465_p0 }
 0x277   : > { %10475 = shalt.err (!%p10472_p4)
}
 0x278   : > { %9412 = dma.hbm_to_vmem [thread:$0]  (!%p13584_p1), %s13593_s0, 1024, %s846_s28, [#allocation33], %s13565_s7, %s13565_s7, %s13564_s24  }
 0x279   : > { %s10764_s13 = smov [#allocation37]   ;;  %s10765_s5 = smov [#allocation40]  }
 0x27a   : > { %s871_s26 = sshll.u32 %s10764_s13, 4  ;;  %s897_s29 = sshll.u32 %s10765_s5, 4  ;;  %s872_s26 = int_to_ptr.vmem [resolvable:$true] %s871_s26  ;;  %s898_s29 = int_to_ptr.vmem [resolvable:$true] %s897_s29 }
 0x27b   : > { %s13594_s30 = sld [smem:[#allocation120_spill]] }
 0x281   : > { %s13595_s19 = smov %s13594_s30  ;;  %s10476_s27 = scalar_lea.hbm %s13594_s30, 32 }
 0x282   : > { %p10477_p11 = scmp.ne.s32.totalorder %s13595_s19, %s10476_s27  ;;  %p10483_p7 = scmp.lt.u32.totalorder %s10476_s27, %s13595_s19 }
 0x284   : > { %p10479_p13 = pnand %p10477_p11, %p13583_p2 }
 0x286   : > { %p10480_p10 = pneg %p10479_p13 }
 0x288   : > { %p10485_p9 = pnand %p10483_p7, %p10480_p10 }
 0x28a   : > { %10488 = shalt.err (!%p10485_p9)
}
 0x28b   : > { %s10489_s24 = scalar_lea.vmem %s872_s26, 32  ;;  %p10497_p5 = scmp.lt.s32.totalorder %s872_s26, %s872_s26 }
 0x28c   : > { %p10490_p3 = scmp.ne.s32.totalorder %s872_s26, %s10489_s24  ;;  %p10498_p6 = scmp.lt.s32.totalorder %s10489_s24, %s10489_s24 }
 0x28e   : > { %p10492_p12 = pnand %p10490_p3, %p13583_p2  ;;  %p10499_p8 = por %p10498_p6, %p10497_p5 }
 0x290   : > { %p10493_p0 = pneg %p10492_p12 }
 0x292   : > { %p10500_p4 = pnand %p10499_p8, %p10493_p0 }
 0x294   : > { %10503 = shalt.err (!%p10500_p4)
}
 0x295   : > { %9418 = dma.hbm_to_vmem [thread:$0]  (!%p13584_p1), %s13595_s19, 32, %s872_s26, [#allocation36], %s13559_s16, %s13559_s16, %s13558_s14  }
 0x296   : > { %s13596_s12 = sld [smem:[#allocation122_spill]] }
 0x29c   : > { %s10504_s9 = scalar_lea.hbm %s13596_s12, 32 }
 0x29d   : > { %p10505_p11 = scmp.ne.s32.totalorder %s13596_s12, %s10504_s9  ;;  %p10511_p7 = scmp.lt.u32.totalorder %s10504_s9, %s13596_s12 }
 0x29f   : > { %p10507_p13 = pnand %p10505_p11, %p13583_p2 }
 0x2a1   : > { %p10508_p10 = pneg %p10507_p13 }
 0x2a3   : > { %p10513_p9 = pnand %p10511_p7, %p10508_p10 }
 0x2a5   : > { %10516 = shalt.err (!%p10513_p9)
}
 0x2a6   : > { %s10517_s30 = scalar_lea.vmem %s898_s29, 32  ;;  %p10525_p5 = scmp.lt.s32.totalorder %s898_s29, %s898_s29 }
 0x2a7   : > { %p10518_p3 = scmp.ne.s32.totalorder %s898_s29, %s10517_s30  ;;  %p10526_p6 = scmp.lt.s32.totalorder %s10517_s30, %s10517_s30 }
 0x2a9   : > { %p10520_p12 = pnand %p10518_p3, %p13583_p2  ;;  %p10527_p8 = por %p10526_p6, %p10525_p5 }
 0x2ab   : > { %p10521_p0 = pneg %p10520_p12 }
 0x2ad   : > { %p10528_p4 = pnand %p10527_p8, %p10521_p0 }
 0x2af   : > { %10531 = shalt.err (!%p10528_p4)
}
 0x2b0   : > { %9424 = dma.hbm_to_vmem [thread:$0]  (!%p13584_p1), %s13596_s12, 32, %s898_s29, [#allocation39], %s13559_s16, %s13559_s16, %s13558_s14  }
 0x2b1   : > { %s13597_s24 = sld [smem:[#allocation98_spill]]  ;;  %s915_s4 = scalar_lea.vmem [#allocation2], %s11236_s11 }
 0x2b2   : > { %s922_s17 = sshll.u32 %s915_s4, 4  ;;  %s13598_s9 = sld [smem:[#allocation100_spill]]  ;;  %s11533_s17 = int_to_ptr.vmem [resolvable:$true] %s922_s17 }
 0x2b3   : > { %s13599_s5 = sand.u32 1, %s10732_s6   ;;  %p13600_p1 = scmp.ne.s32.totalorder %s13578_s23, 0 }
 0x2b4   : > { %s912_s14 = scalar_lea.sflag [#allocation3], %s13599_s5 }
 0x2b7   : > { %s11530_s7 = scalar_lea.hbm %s13597_s24, %s11239_s22  ;;  %s10537_s1 = scalar_lea.hbm %s13597_s24, 256 }
 0x2b8   : > { %s11539_s13 = scalar_lea.hbm %s13598_s9, %s11239_s22  ;;  %s10532_s16 = scalar_lea.hbm %s11530_s7, 128 }
 0x2b9   : > { %p10533_p2 = scmp.ne.s32.totalorder %s11530_s7, %s10532_s16  ;;  %p10538_p10 = scmp.lt.u32.totalorder %s11530_s7, %s13597_s24 }
 0x2ba   : > { %p10539_p7 = scmp.lt.u32.totalorder %s10537_s1, %s10532_s16  ;;  %p10541_p3 = scmp.lt.u32.totalorder %s10532_s16, %s11530_s7 }
 0x2bb   : > { %p10535_p11 = pnand %p10533_p2, %p13600_p1 }
 0x2bc   : > { %p10540_p9 = por %p10539_p7, %p10538_p10 }
 0x2bd   : > { %p10536_p13 = pneg %p10535_p11 }
 0x2be   : > { %p10542_p12 = por %p10541_p3, %p10540_p9 }
 0x2c0   : > { %p10543_p0 = pnand %p10542_p12, %p10536_p13 }
 0x2c2   : > { %10546 = shalt.err (!%p10543_p0)
}
 0x2c3   : > { %s10547_s27 = scalar_lea.vmem %s11533_s17, 128  ;;  %s10766_s8 = smov [#allocation2]  }
 0x2c4   : > { %p10548_p5 = scmp.ne.s32.totalorder %s11533_s17, %s10547_s27  ;;  %s10552_s10 = sshll.u32 %s10766_s8, 4  ;;  %s10553_s10 = int_to_ptr.vmem [resolvable:$false] %s10552_s10 }
 0x2c5   : > { %s10554_s4 = scalar_lea.vmem %s10553_s10, 256  ;;  %p10555_p4 = scmp.lt.s32.totalorder %s11533_s17, %s10553_s10 }
 0x2c6   : > { %p10550_p6 = pnand %p10548_p5, %p13600_p1  ;;  %p10556_p2 = scmp.lt.s32.totalorder %s10554_s4, %s10547_s27 }
 0x2c8   : > { %p10551_p8 = pneg %p10550_p6  ;;  %p10557_p11 = por %p10556_p2, %p10555_p4 }
 0x2ca   : > { %p10558_p10 = pnand %p10557_p11, %p10551_p8 }
 0x2cc   : > { %10561 = shalt.err (!%p10558_p10)
}
 0x2cd   : > { %p13601_p13 = scmp.ne.s32.totalorder %s13576_s3, 0  ;;  %s951_s18 = scalar_lea.vmem [#allocation7], %s11236_s11 }
 0x2ce   : > { %s958_s28 = sshll.u32 %s951_s18, 4  ;;  %s13602_s29 = sld [smem:[#allocation102_spill]]  ;;  %s959_s28 = int_to_ptr.vmem [resolvable:$true] %s958_s28 }
 0x2cf   : > { %9428 = dma.hbm_to_vmem [thread:$0]  (!%p13601_p13), %s11530_s7, 128, %s11533_s17, %s912_s14  }
 0x2d0   : > { %s10562_s30 = scalar_lea.hbm %s11539_s13, 128  ;;  %s10567_s8 = scalar_lea.hbm %s13598_s9, 256 }
 0x2d1   : > { %p10563_p7 = scmp.ne.s32.totalorder %s11539_s13, %s10562_s30  ;;  %p10568_p12 = scmp.lt.u32.totalorder %s11539_s13, %s13598_s9 }
 0x2d2   : > { %p10569_p0 = scmp.lt.u32.totalorder %s10567_s8, %s10562_s30  ;;  %p10571_p6 = scmp.lt.u32.totalorder %s10562_s30, %s11539_s13 }
 0x2d3   : > { %p10565_p9 = pnand %p10563_p7, %p13600_p1 }
 0x2d4   : > { %s13603_s21 = smov %s13602_s29  ;;  %s11569_s1 = scalar_lea.hbm %s13602_s29, %s11239_s22 }
 0x2d5   : > { %p10566_p3 = pneg %p10565_p9  ;;  %p10570_p5 = por %p10569_p0, %p10568_p12 }
 0x2d7   : > { %p10572_p8 = por %p10571_p6, %p10570_p5 }
 0x2d9   : > { %p10573_p4 = pnand %p10572_p8, %p10566_p3 }
 0x2db   : > { %10576 = shalt.err (!%p10573_p4)
}
 0x2dc   : > { %s10577_s22 = scalar_lea.vmem %s959_s28, 128  ;;  %s10767_s7 = smov [#allocation7]  }
 0x2dd   : > { %p10578_p2 = scmp.ne.s32.totalorder %s959_s28, %s10577_s22  ;;  %s10582_s17 = sshll.u32 %s10767_s7, 4  ;;  %s10583_s17 = int_to_ptr.vmem [resolvable:$false] %s10582_s17 }
 0x2de   : > { %s10584_s14 = scalar_lea.vmem %s10583_s17, 256  ;;  %p10585_p7 = scmp.lt.s32.totalorder %s959_s28, %s10583_s17 }
 0x2df   : > { %p10580_p11 = pnand %p10578_p2, %p13600_p1  ;;  %p10586_p9 = scmp.lt.s32.totalorder %s10584_s14, %s10577_s22 }
 0x2e1   : > { %p10581_p10 = pneg %p10580_p11  ;;  %p10587_p13 = por %p10586_p9, %p10585_p7 }
 0x2e3   : > { %p10588_p0 = pnand %p10587_p13, %p10581_p10 }
 0x2e5   : > { %10591 = shalt.err (!%p10588_p0)
}
 0x2e6   : > { %p13604_p12 = scmp.ne.s32.totalorder %s13576_s3, 0  ;;  %s987_s18 = scalar_lea.vmem [#allocation10], %s11236_s11 }
 0x2e7   : > { %s994_s5 = sshll.u32 %s987_s18, 4  ;;  %s10592_s16 = scalar_lea.hbm %s11569_s1, 128  ;;  %s995_s5 = int_to_ptr.vmem [resolvable:$true] %s994_s5 }
 0x2e8   : > { %9434 = dma.hbm_to_vmem [thread:$0]  (!%p13604_p12), %s11539_s13, 128, %s959_s28, %s11257_s20  }
 0x2e9   : > { %p10593_p3 = scmp.ne.s32.totalorder %s11569_s1, %s10592_s16  ;;  %s10597_s26 = scalar_lea.hbm %s13603_s21, 256 }
 0x2ea   : > { %p10598_p6 = scmp.lt.u32.totalorder %s11569_s1, %s13603_s21  ;;  %p10599_p8 = scmp.lt.u32.totalorder %s10597_s26, %s10592_s16 }
 0x2eb   : > { %p10595_p5 = pnand %p10593_p3, %p13600_p1  ;;  %p10601_p2 = scmp.lt.u32.totalorder %s10592_s16, %s11569_s1 }
 0x2ec   : > { %p10600_p4 = por %p10599_p8, %p10598_p6 }
 0x2ed   : > { %p10596_p13 = pneg %p10595_p5 }
 0x2ee   : > { %p10602_p11 = por %p10601_p2, %p10600_p4 }
 0x2f0   : > { %p10603_p10 = pnand %p10602_p11, %p10596_p13 }
 0x2f2   : > { %10606 = shalt.err (!%p10603_p10)
}
 0x2f3   : > { %s10607_s20 = scalar_lea.vmem %s995_s5, 128  ;;  %s10768_s11 = smov [#allocation10]  }
 0x2f4   : > { %p10608_p7 = scmp.ne.s32.totalorder %s995_s5, %s10607_s20  ;;  %s10612_s13 = sshll.u32 %s10768_s11, 4  ;;  %s10613_s13 = int_to_ptr.vmem [resolvable:$false] %s10612_s13 }
 0x2f5   : > { %s10614_s28 = scalar_lea.vmem %s10613_s13, 256  ;;  %p10615_p3 = scmp.lt.s32.totalorder %s995_s5, %s10613_s13 }
 0x2f6   : > { %p10610_p9 = pnand %p10608_p7, %p13600_p1  ;;  %p10616_p5 = scmp.lt.s32.totalorder %s10614_s28, %s10607_s20 }
 0x2f8   : > { %p10611_p0 = pneg %p10610_p9  ;;  %p10617_p12 = por %p10616_p5, %p10615_p3 }
 0x2fa   : > { %p10618_p6 = pnand %p10617_p12, %p10611_p0 }
 0x2fc   : > { %10621 = shalt.err (!%p10618_p6)
}
 0x2fd   : > { %p13605_p8 = scmp.ne.s32.totalorder %s13576_s3, 0  ;;  %s13606_s10 = sld [smem:[#allocation59_spill]] }
 0x2ff   : > { %9440 = dma.hbm_to_vmem [thread:$0]  (!%p13605_p8), %s11569_s1, 128, %s995_s5, %s11296_s15  }
 0x303   : > { %p13607_p13 = scmp.ne.s32.totalorder %s13606_s10, 0 }
 0x305   : > { %1003 = sbr.rel (%p13607_p13) target bundleno = 9631 (0x259f), region = 120 }
 0x30c   : > { %s13608_s23 = sld [smem:[#allocation62_spill]]  ;;  %s11611_s4 = sand.u32 1, %s10728_s2  }
 0x30d   : > { %s11614_s22 = sshll.u32 %s11611_s4, 3  ;;  %s1006_s7 = scalar_lea.sflag [#allocation3], %s11611_s4 }
 0x30e   : > { %s1009_s17 = scalar_lea.vmem [#allocation2], %s11614_s22 }
 0x312   : > { %p13609_p1 = scmp.ne.s32.totalorder %s13608_s23, 0 }
 0x314   : > { %10667 = dma.done.wait (%p13609_p1), %s1006_s7, 128  }
 0x315   : > { %10669 = vsyncadd (%p13609_p1), %s1006_s7, 4294967168  ;;  %s13610_s15 = sld [smem:[#allocation58_spill]]  ;;  %s11624_s14 = scalar_lea.vmem [#allocation5], %s11614_s22 }
 0x31b   : > { %s1014_s3 = sand.u32 1, %s13610_s15  }
 0x31c   : > { %s1015_s1 = scalar_lea.sflag [#allocation6], %s1014_s3 }
 0x31d   : > { %10671 = dma.done.wait (%p13609_p1), %s1015_s1, 256  }
 0x31e   : > { %10673 = vsyncadd (%p13609_p1), %s1015_s1, 4294967040  ;;  %s1027_s18 = scalar_lea.vmem [#allocation7], %s11614_s22  ;;  %s1033_s5 = scalar_lea.sflag [#allocation9], %s1014_s3 }
 0x31f   : > { %s1036_s16 = scalar_lea.vmem [#allocation8], %s11614_s22 }
 0x320   : > { %10675 = dma.done.wait (%p13609_p1), %s1033_s5, 256  }
 0x321   : > { %10677 = vsyncadd (%p13609_p1), %s1033_s5, 4294967040  ;;  %s1045_s29 = scalar_lea.vmem [#allocation10], %s11614_s22  ;;  %p13611_p12 = scmp.eq.s32.totalorder %s13610_s15, 0 }
 0x323   : > { %10679 = dma.done.wait (%p13611_p12), [#allocation12], 1584   ;;  %p13612_p4 = pmov %p13611_p12 }
 0x325   : > { %10681 = vsyncadd (%p13612_p4), [#allocation12], 4294965712  ;;  %p13613_p2 = pmov %p13612_p4 }
 0x327   : > { %10683 = dma.done.wait (%p13613_p2), [#allocation15], 3120   ;;  %p13614_p11 = pmov %p13613_p2 }
 0x328   : > { %p13615_p10 = pmov %p13613_p2 }
 0x329   : > { %10685 = vsyncadd (%p13614_p11), [#allocation15], 4294964176 }
 0x32a   : > { %10687 = dma.done.wait (%p13615_p10), [#allocation18], 96   ;;  %p13616_p7 = pmov %p13613_p2 }
 0x32b   : > { %p13617_p9 = pmov %p13613_p2 }
 0x32c   : > { %10689 = vsyncadd (%p13616_p7), [#allocation18], 4294967200 }
 0x32d   : > { %10691 = dma.done.wait (%p13617_p9), [#allocation21], 256   ;;  %p13618_p0 = pmov %p13613_p2 }
 0x32f   : > { %10693 = vsyncadd (%p13618_p0), [#allocation21], 4294967040  ;;  %p13619_p3 = pmov %p13618_p0 }
 0x330   : > { %p13620_p5 = pmov %p13618_p0 }
 0x331   : > { %10695 = dma.done.wait (%p13619_p3), [#allocation24], 160  }
 0x332   : > { %10697 = vsyncadd (%p13620_p5), [#allocation24], 4294967136  ;;  %p13621_p6 = pmov %p13618_p0 }
 0x333   : > { %p13622_p8 = pmov %p13618_p0 }
 0x334   : > { %10699 = dma.done.wait (%p13621_p6), [#allocation27], 288  }
 0x335   : > { %10701 = vsyncadd (%p13622_p8), [#allocation27], 4294967008  ;;  %p13623_p13 = pmov %p13618_p0 }
 0x336   : > { %p13624_p1 = pmov %p13618_p0 }
 0x337   : > { %10703 = dma.done.wait (%p13623_p13), [#allocation30], 64  }
 0x338   : > { %10705 = vsyncadd (%p13624_p1), [#allocation30], 4294967232  ;;  %p13625_p12 = pmov %p13618_p0 }
 0x339   : > { %p13626_p4 = pmov %p13618_p0 }
 0x33a   : > { %10707 = dma.done.wait (%p13625_p12), [#allocation33], 1056  }
 0x33b   : > { %10709 = vsyncadd (%p13626_p4), [#allocation33], 4294966240  ;;  %p13627_p2 = pmov %p13618_p0 }
 0x33c   : > { %p13628_p11 = pmov %p13618_p0 }
 0x33d   : > { %10711 = dma.done.wait (%p13627_p2), [#allocation36], 1056  }
 0x33e   : > { %10713 = vsyncadd (%p13628_p11), [#allocation36], 4294966240  ;;  %p13629_p10 = pmov %p13618_p0 }
 0x33f   : > { %p13630_p7 = pmov %p13618_p0 }
 0x340   : > { %10715 = dma.done.wait (%p13629_p10), [#allocation39], 2080  }
 0x341   : > { %10717 = vsyncadd (%p13630_p7), [#allocation39], 4294965216  ;;  %v1212_v0 = vlaneseq  ;;  %v10769_v1 = vmov 1966171168   ;;  %v1226_v6 = vld [vmem:[#allocation11] sm:$0xff]  ;;  %v1227_v7 = vld [vmem:[#allocation11 + $0x8] sm:$0xff] }
 0x342   : > { %v1245_v2 = vunpack.c.l.s4 %v10769_v1  ;;  %v1228_v8 = vld [vmem:[#allocation11 + $0x10] sm:$0xff]  ;;  %v9144_v9 = vpack.c.bf16 %v1227_v7, %v1226_v6  ;;  %v1229_v10 = vld [vmem:[#allocation11 + $0x18] sm:$0xff]  ;;  %v1231_v16 = vld [vmem:[#allocation14] sm:$0xff]  ;;  %vm1354_vm0 = vcmask 261120   ;;  %vm13476_vm3 = vcmask 523264   ;;  %s8485_s30 = sshll.u32 %s11611_s4, 4 }
 0x343   : > { %v11678_v3 = vshrl.u32 %v1212_v0, 7  ;;  %v1225_v11 = vld [vmem:[%s1009_s17] sm:$0xff]  ;;  %v9148_v12 = vpack.c.bf16 %v1229_v10, %v1228_v8  ;;  %v1235_v48 = vld [vmem:[#allocation14 + $0x20] sm:$0xff]  ;;  %v8487_v63 = vld [vmem:[#allocation13] ss:$0 sm:$0xff]  ;;  %s12286_s26 = scalar_lea.vmem [#allocation41], %s8485_s30 }
 0x344   : > { %v1246_v4 = vunpack.c.0.s8 %v1245_v2  ;;  %v1243_v15 = vcombine.high %v1225_v11, %v1225_v11  ;;  %v1232_v17 = vld [vmem:[#allocation14 + $0x8] sm:$0xff]  ;;  %9145 = vmatprep.subr.bf16.mxu1 %v9144_v9  ;;  %v1233_v34 = vld [vmem:[#allocation14 + $0x10] sm:$0xff]  ;;  %v1234_v35 = vld [vmem:[#allocation14 + $0x18] sm:$0xff]  ;;  %s10774_s27 = smov 24   ;;  %s10775_s8 = smov 56  }
 0x345   : > { %13631 = vst [vmem:[#allocation65_spill] sm:$0xff] %v11678_v3  ;;  %v11687_v14 = vsub.s32 0, %v11678_v3  ;;  %9147 = vmatpush3.bf16.msra.mxu1 %v9144_v9  ;;  %v9152_v21 = vpack.c.bf16 %v1232_v17, %v1231_v16  ;;  %v9156_v47 = vpack.c.bf16 %v1234_v35, %v1233_v34  ;;  %v1236_v49 = vld [vmem:[#allocation14 + $0x28] sm:$0xff]  ;;  %v1237_v60 = vld [vmem:[#allocation14 + $0x30] sm:$0xff]  ;;  %v1238_v61 = vld [vmem:[#allocation14 + $0x38] sm:$0xff]  ;;  %s13768_s20 = sld [smem:[#allocation63_spill]] }
 0x346   : > { %v11681_v5 = vsub.s32 %v1246_v4, %v11678_v3  ;;  %9149 = vmatprep.subr.bf16.mxu1 %v9148_v12  ;;  %v9160_v55 = vpack.c.bf16 %v1236_v49, %v1235_v48  ;;  %v9164_v62 = vpack.c.bf16 %v1238_v61, %v1237_v60  ;;  %s8661_s11 = sshll.u32 %s13610_s15, 8  ;;  %s8077_s13 = sshll.u32 %s12286_s26, 4  ;;  %s13329_s13 = int_to_ptr.vmem [resolvable:$true] %s8077_s13 }
 0x347   : > { %s13769_s23 = sld [smem:[#allocation123_spill]]  ;;  %s8064_s7 = scalar_lea.sflag [#allocation4], %s11611_s4 }
 0x348   : > { %v1250_v13 = vrot.slane %v1225_v11, %v11681_v5  ;;  %v1257_v20 = vrot.slane %v1243_v15, %v11681_v5  ;;  %s10622_s17 = scalar_lea.vmem %s13329_s13, 256  ;;  %s10776_s15 = smov [#allocation41]  }
 0x349   : > { %9151 = vmatpush3.bf16.msra.mxu1 %v9148_v12  ;;  %p10623_p9 = scmp.ne.s32.totalorder %s13329_s13, %s10622_s17  ;;  %s10626_s3 = sshll.u32 %s10776_s15, 4  ;;  %s10627_s3 = int_to_ptr.vmem [resolvable:$false] %s10626_s3 }
 0x34a   : > { %v1258_v18 = vcombine.high %v1250_v13, %v1250_v13  ;;  %v1266_v19 = vrot.slane %v1250_v13, %v11681_v5  ;;  %v1273_v25 = vrot.slane %v1257_v20, %v11681_v5  ;;  %v1259_v26 = vcombine.high %v1257_v20, %v1257_v20  ;;  %9153 = vmatprep.subr.bf16.mxu1 %v9152_v21  ;;  %s10628_s1 = scalar_lea.vmem %s10627_s3, 512  ;;  %p10629_p6 = scmp.lt.s32.totalorder %s13329_s13, %s10627_s3 }
 0x34b   : > { %p13770_p0 = scmp.ne.s32.totalorder %s13768_s20, 0  ;;  %p10630_p8 = scmp.lt.s32.totalorder %s10628_s1, %s10622_s17 }
 0x34c   : > { %v1288_v22 = vcombine.high %v1266_v19, %v1266_v19  ;;  %v1295_v23 = vrot.slane %v1266_v19, %v11687_v14  ;;  %v1280_v24 = vrot.slane %v1258_v18, %v11681_v5  ;;  %v1311_v31 = vrot.slane %v1273_v25, %v11687_v14 }
 0x34d   : > { %v1287_v32 = vrot.slane %v1259_v26, %v11681_v5  ;;  %v1289_v33 = vcombine.high %v1273_v25, %v1273_v25  ;;  %s13327_s22 = scalar_lea.hbm %s13769_s23, %s8661_s11  ;;  %p10624_p3 = pnand %p10623_p9, %p13770_p0 }
 0x34e   : > { %v1332_v27 = vsub.f32 %v1295_v23, %v1225_v11  ;;  %v1299_v28 = vrot.slane %v1280_v24, %v11687_v14  ;;  %v1303_v29 = vrot.slane %v1288_v22, %v11687_v14  ;;  %v1290_v30 = vcombine.high %v1280_v24, %v1280_v24  ;;  %p10631_p13 = por %p10630_p8, %p10629_p6 }
 0x34f   : > { %v1336_v40 = vsub.f32 %v1311_v31, %v1225_v11  ;;  %v1315_v41 = vrot.slane %v1287_v32, %v11687_v14  ;;  %v1319_v42 = vrot.slane %v1289_v33, %v11687_v14  ;;  %v1291_v43 = vcombine.high %v1287_v32, %v1287_v32  ;;  %p10625_p5 = pneg %p10624_p3 }
 0x350   : > { %v1340_v36 = vmul.f32 %v1332_v27, %v1332_v27  ;;  %v1333_v37 = vsub.f32 %v1299_v28, %v1225_v11  ;;  %v1334_v38 = vsub.f32 %v1303_v29, %v1225_v11  ;;  %v1307_v39 = vrot.slane %v1290_v30, %v11687_v14 }
 0x351   : > { %v1337_v51 = vsub.f32 %v1315_v41, %v1225_v11  ;;  %v1323_v52 = vrot.slane %v1291_v43, %v11687_v14  ;;  %v1344_v53 = vmul.f32 %v1336_v40, %v1336_v40  ;;  %v1338_v54 = vsub.f32 %v1319_v42, %v1225_v11  ;;  %v2255_v41 = vld [vmem:[#allocation11 + $0x38] sm:$0xff]  ;;  %v1221_v42 = vld [vmem:[%s11624_s14] sm:$0xff]  ;;  %p10632_p1 = pnand %p10631_p13, %p10625_p5 }
 0x352   : > { %8840 = vmatprep.mubr.msk.f32.mxu1 %vm1354_vm0, %v1340_v36  ;;  %v1341_v44 = vmul.f32 %v1333_v37, %v1333_v37  ;;  %v1342_v45 = vmul.f32 %v1334_v38, %v1334_v38  ;;  %v1335_v46 = vsub.f32 %v1307_v39, %v1225_v11  ;;  %v10770_v36 = vmov 0   ;;  %v2252_v37 = vld [vmem:[#allocation11 + $0x20] sm:$0xff]  ;;  %v2253_v38 = vld [vmem:[#allocation11 + $0x28] sm:$0xff]  ;;  %v2254_v39 = vld [vmem:[#allocation11 + $0x30] sm:$0xff] }
 0x353   : > { %v1345_v56 = vmul.f32 %v1337_v51, %v1337_v51  ;;  %v1339_v57 = vsub.f32 %v1323_v52, %v1225_v11  ;;  %v1346_v58 = vmul.f32 %v1338_v54, %v1338_v54  ;;  %9554 = vset.pattern.permute.xlu0 %v10770_v36  ;;  %9555 = vset.pattern.permute.xlu1 %v10770_v36 }
 0x354   : > { %8841 = vmatmul.mubr.msk.f32.vlgmr.msra.gmra.mrb[0].mxu1 %vm1354_vm0, %v1341_v44  ;;  %v1343_v50 = vmul.f32 %v1335_v46, %v1335_v46  ;;  %v9168_v40 = vpack.c.bf16 %v2253_v38, %v2252_v37  ;;  %v9172_v43 = vpack.c.bf16 %v2255_v41, %v2254_v39  ;;  %v2281_v44 = vrot.slane %v1221_v42, %v11681_v5 }
 0x355   : > { %8843 = vmatprep.mubr.msk.f32.mxu1 %vm1354_vm0, %v1342_v45  ;;  %9155 = vmatpush3.bf16.msra.mxu1 %v9152_v21  ;;  %v1347_v59 = vmul.f32 %v1339_v57, %v1339_v57  ;;  %v2274_v45 = vcombine.high %v1221_v42, %v1221_v42 }
 0x356   : > { %9157 = vmatprep.subr.bf16.mxu1 %v9156_v47  ;;  %9169 = vmatprep.subr.bf16.mxu0 %v9168_v40  ;;  %v2289_v46 = vcombine.high %v2281_v44, %v2281_v44 }
 0x357   : > { %9171 = vmatpush3.bf16.msra.mxu0 %v9168_v40  ;;  %v2288_v48 = vrot.slane %v2274_v45, %v11681_v5 }
 0x358   : > { %8844 = vmatmul.mubr.msk.f32.gmra.mrb[2].mxu1 %vm1354_vm0, %v1343_v50  ;;  %9173 = vmatprep.subr.bf16.mxu0 %v9172_v43  ;;  %v2311_v51 = vrot.slane %v2289_v46, %v11681_v5 }
 0x359   : > { %8846 = vmatprep.mubr.msk.f32.mxu1 %vm1354_vm0, %v1344_v53  ;;  %9159 = vmatpush3.bf16.msra.mxu1 %v9156_v47  ;;  %v2297_v47 = vrot.slane %v2281_v44, %v11681_v5  ;;  %v2304_v52 = vrot.slane %v2288_v48, %v11681_v5  ;;  %v2290_v53 = vcombine.high %v2288_v48, %v2288_v48 }
 0x35a   : > { %9161 = vmatprep.subr.bf16.mxu1 %v9160_v55  ;;  %v2321_v57 = vcombine.high %v2311_v51, %v2311_v51 }
 0x35b   : > { %v2319_v49 = vcombine.high %v2297_v47, %v2297_v47  ;;  %v2326_v50 = vrot.slane %v2297_v47, %v11687_v14  ;;  %9175 = vmatpush3.bf16.msra.mxu0 %v9172_v43  ;;  %v2320_v60 = vcombine.high %v2304_v52, %v2304_v52 }
 0x35c   : > { %8847 = vmatmul.mubr.msk.f32.gmra.mrb[4].mxu1 %vm1354_vm0, %v1345_v56 }
 0x35d   : > { %8849 = vmatprep.mubr.msk.f32.mxu1 %vm1354_vm0, %v1346_v58  ;;  %9163 = vmatpush3.bf16.msra.mxu1 %v9160_v55  ;;  %v2363_v54 = vsub.f32 %v2326_v50, %v1221_v42  ;;  %v2330_v55 = vrot.slane %v2311_v51, %v11687_v14  ;;  %v2334_v56 = vrot.slane %v2319_v49, %v11687_v14 }
 0x35e   : > { %9165 = vmatprep.subr.bf16.mxu1 %v9164_v62  ;;  %v2342_v58 = vrot.slane %v2304_v52, %v11687_v14 }
 0x35f   : > { %v11729_v61 = vmul.f32 %v2363_v54, %v2363_v54 }
 0x360   : > { %8850 = vmatmul.mubr.msk.f32.gmra.mrb[6].mxu1 %vm1354_vm0, %v1347_v59  ;;  %v2318_v59 = vrot.slane %v2290_v53, %v11681_v5 }
 0x361   : > { %9167 = vmatpush3.bf16.msra.mxu1 %v9164_v62  ;;  %13632 = vst [vmem:[#allocation66_spill] sm:$0xff] %v11729_v61  ;;  %v2364_v62 = vsub.f32 %v2330_v55, %v1221_v42  ;;  %8888 = vmatprep.mubr.msk.f32.mxu0 %vm1354_vm0, %v11729_v61 }
 0x427   : > { %v8842_v1 = vpop.f32.mrb[0].mxu1 }
 0x428   : > { %v1451_v2 = vadd.f32 %v8842_v1, %v8487_v63  ;;  %v1445_v4 = vpop.f32.mrb[1].mxu1  ;;  %v2338_v1 = vrot.slane %v2321_v57, %v11687_v14 }
 0x429   : > { %v1446_v6 = vadd.f32 %v8487_v63, %v1445_v4  ;;  %v2346_v4 = vrot.slane %v2318_v59, %v11687_v14 }
 0x42a   : > { %v1493_v7 = vmul.f32 0.01, %v1451_v2  ;;  %vm1485_vm1 = vcmp.gt.f32.partialorder %v1451_v2, 0.0 }
 0x42b   : > { %vm1484_vm2 = vcmp.gt.f32.partialorder %v1446_v6, 0.0  ;;  %v1492_v8 = vmul.f32 0.01, %v1446_v6  ;;  %v8845_v9 = vpop.f32.mrb[2].mxu1 }
 0x42c   : > { %v1461_v10 = vadd.f32 %v8845_v9, %v8487_v63  ;;  %v1455_v11 = vpop.f32.mrb[3].mxu1  ;;  %v1501_v15 = vsel %vm1485_vm1, %v1451_v2, %v1493_v7  ;;  %v2367_v2 = vsub.f32 %v2342_v58, %v1221_v42  ;;  %v2322_v7 = vcombine.high %v2318_v59, %v2318_v59 }
 0x42d   : > { %v1456_v12 = vadd.f32 %v8487_v63, %v1455_v11  ;;  %v1500_v13 = vsel %vm1484_vm2, %v1446_v6, %v1492_v8  ;;  %v2350_v6 = vrot.slane %v2320_v60, %v11687_v14  ;;  %v11736_v8 = vmul.f32 %v2364_v62, %v2364_v62 }
 0x42e   : > { %v1495_v16 = vmul.f32 0.01, %v1461_v10  ;;  %8868 = vmatprep.mubr.msk.f32.mxu1 %vm13476_vm3, %v1500_v13  ;;  %vm1487_vm4 = vcmp.gt.f32.partialorder %v1461_v10, 0.0  ;;  %v2354_v13 = vrot.slane %v2322_v7, %v11687_v14 }
 0x42f   : > { %vm1486_vm5 = vcmp.gt.f32.partialorder %v1456_v12, 0.0  ;;  %v1494_v17 = vmul.f32 0.01, %v1456_v12  ;;  %v8848_v18 = vpop.f32.mrb[4].mxu1  ;;  %8869 = vmatmul.mubr.msk.f32.vlgmr.msra.gmra.mrb[8].mxu1 %vm13476_vm3, %v1501_v15  ;;  %13633 = vst [vmem:[#allocation67_spill] sm:$0xff] %v11736_v8  ;;  %8889 = vmatmul.mubr.msk.f32.vlgmr.msra.gmra.mrb[0].mxu0 %vm1354_vm0, %v11736_v8  ;;  %v11747_v15 = vmul.f32 %v2367_v2, %v2367_v2 }
 0x430   : > { %v1471_v19 = vadd.f32 %v8848_v18, %v8487_v63  ;;  %v1465_v20 = vpop.f32.mrb[5].mxu1  ;;  %v1503_v24 = vsel %vm1487_vm4, %v1461_v10, %v1495_v16  ;;  %v2366_v10 = vsub.f32 %v2338_v1, %v1221_v42  ;;  %v2369_v16 = vsub.f32 %v2350_v6, %v1221_v42 }
 0x431   : > { %v1466_v21 = vadd.f32 %v8487_v63, %v1465_v20  ;;  %v1502_v22 = vsel %vm1486_vm5, %v1456_v12, %v1494_v17  ;;  %v2368_v12 = vsub.f32 %v2346_v4, %v1221_v42  ;;  %13636 = vst [vmem:[#allocation70_spill] sm:$0xff] %v11747_v15  ;;  %v2370_v18 = vsub.f32 %v2354_v13, %v1221_v42 }
 0x432   : > { %v1497_v23 = vmul.f32 0.01, %v1471_v19  ;;  %8871 = vmatprep.mubr.msk.f32.mxu1 %vm13476_vm3, %v1502_v22  ;;  %vm1489_vm6 = vcmp.gt.f32.partialorder %v1471_v19, 0.0  ;;  %v11742_v11 = vmul.f32 %v2366_v10, %v2366_v10 }
 0x433   : > { %vm1488_vm7 = vcmp.gt.f32.partialorder %v1466_v21, 0.0  ;;  %v1496_v25 = vmul.f32 0.01, %v1466_v21  ;;  %v8851_v26 = vpop.f32.mrb[6].mxu1  ;;  %8872 = vmatmul.mubr.msk.f32.gmra.mrb[10].mxu1 %vm13476_vm3, %v1503_v24  ;;  %v11751_v17 = vmul.f32 %v2368_v12, %v2368_v12  ;;  %v11759_v20 = vmul.f32 %v2370_v18, %v2370_v18 }
 0x434   : > { %v1481_v27 = vadd.f32 %v8851_v26, %v8487_v63  ;;  %v1475_v28 = vpop.f32.mrb[7].mxu1  ;;  %v1505_v32 = vsel %vm1489_vm6, %v1471_v19, %v1497_v23  ;;  %13635 = vst [vmem:[#allocation69_spill] sm:$0xff] %v11742_v11  ;;  %v11755_v19 = vmul.f32 %v2369_v16, %v2369_v16  ;;  %v11772_v12 = vand.u32 127, %v1212_v0  ;;  %v1224_v0 = vld [vmem:[%s1045_s29] sm:$0xff] }
 0x435   : > { %v1476_v29 = vadd.f32 %v8487_v63, %v1475_v28  ;;  %v1504_v30 = vsel %vm1488_vm7, %v1466_v21, %v1496_v25  ;;  %v2365_v63 = vsub.f32 %v2334_v56, %v1221_v42  ;;  %13637 = vst [vmem:[#allocation71_spill] sm:$0xff] %v11751_v17  ;;  %13639 = vst [vmem:[#allocation73_spill] sm:$0xff] %v11759_v20  ;;  %v8496_v21 = vld [vmem:[#allocation16] ss:$0 sm:$0xff]  ;;  %v13469_v18 = vmov 0.0  }
 0x436   : > { %v1499_v31 = vmul.f32 0.01, %v1481_v27  ;;  %8874 = vmatprep.mubr.msk.f32.mxu1 %vm13476_vm3, %v1504_v30  ;;  %vm1491_vm8 = vcmp.gt.f32.partialorder %v1481_v27, 0.0  ;;  %13638 = vst [vmem:[#allocation72_spill] sm:$0xff] %v11755_v19  ;;  %13640 = vst [vmem:[#allocation74_spill] sm:$0xff] %v11772_v12  ;;  %vm1216_vm4 = vcmp.eq.s32.totalorder %v11678_v3, %v11772_v12 }
 0x437   : > { %vm1490_vm9 = vcmp.gt.f32.partialorder %v1476_v29, 0.0  ;;  %v1498_v33 = vmul.f32 0.01, %v1476_v29  ;;  %8875 = vmatmul.mubr.msk.f32.gmra.mrb[12].mxu1 %vm13476_vm3, %v1505_v32  ;;  %v11738_v9 = vmul.f32 %v2365_v63, %v2365_v63 }
 0x438   : > { %v1507_v35 = vsel %vm1491_vm8, %v1481_v27, %v1499_v31  ;;  %v8505_v27 = vld [vmem:[#allocation17] ss:$0 sm:$0xff] }
 0x439   : > { %v1506_v34 = vsel %vm1490_vm9, %v1476_v29, %v1498_v33  ;;  %13634 = vst [vmem:[#allocation68_spill] sm:$0xff] %v11738_v9  ;;  %8891 = vmatprep.mubr.msk.f32.mxu0 %vm1354_vm0, %v11738_v9 }
 0x43a   : > { %8877 = vmatprep.mubr.msk.f32.mxu1 %vm13476_vm3, %v1506_v34  ;;  %8892 = vmatmul.mubr.msk.f32.gmra.mrb[2].mxu0 %vm1354_vm0, %v11742_v11 }
 0x43b   : > { %8878 = vmatmul.mubr.msk.f32.gmra.mrb[14].mxu1 %vm13476_vm3, %v1507_v35  ;;  %8894 = vmatprep.mubr.msk.f32.mxu0 %vm1354_vm0, %v11747_v15 }
 0x43e   : > { %8895 = vmatmul.mubr.msk.f32.gmra.mrb[4].mxu0 %vm1354_vm0, %v11751_v17 }
 0x43f   : > { %8897 = vmatprep.mubr.msk.f32.mxu0 %vm1354_vm0, %v11755_v19 }
 0x442   : > { %8898 = vmatmul.mubr.msk.f32.gmra.mrb[6].mxu0 %vm1354_vm0, %v11759_v20 }
 0x502   : > { %v8870_v22 = vpop.f32.mrb[8].mxu1 }
 0x503   : > { %v1611_v23 = vadd.f32 %v8870_v22, %v8496_v21  ;;  %v1605_v24 = vpop.f32.mrb[9].mxu1 }
 0x504   : > { %v1606_v25 = vadd.f32 %v8496_v21, %v1605_v24 }
 0x505   : > { %v1653_v26 = vmul.f32 0.01, %v1611_v23  ;;  %vm1645_vm10 = vcmp.gt.f32.partialorder %v1611_v23, 0.0 }
 0x506   : > { %vm1644_vm11 = vcmp.gt.f32.partialorder %v1606_v25, 0.0  ;;  %v1652_v28 = vmul.f32 0.01, %v1606_v25  ;;  %v8873_v29 = vpop.f32.mrb[10].mxu1 }
 0x507   : > { %v1621_v30 = vadd.f32 %v8873_v29, %v8496_v21  ;;  %v1615_v31 = vpop.f32.mrb[11].mxu1  ;;  %v1661_v32 = vsel %vm1645_vm10, %v1611_v23, %v1653_v26  ;;  %v8506_v26 = vld [vmem:[#allocation19] ss:$0 sm:$0xff] }
 0x508   : > { %v1616_v33 = vadd.f32 %v8496_v21, %v1615_v31  ;;  %v1675_v34 = vmul.f32 %v8505_v27, %v1661_v32  ;;  %v1660_v35 = vsel %vm1644_vm11, %v1606_v25, %v1652_v28  ;;  %v11792_v25 = vsub.s32 1, %v11678_v3 }
 0x509   : > { %v1655_v36 = vmul.f32 0.01, %v1621_v30  ;;  %vm1647_vm12 = vcmp.gt.f32.partialorder %v1621_v30, 0.0  ;;  %v1674_v37 = vmul.f32 %v8505_v27, %v1660_v35  ;;  %v11797_v28 = vsub.s32 2, %v11678_v3 }
 0x50a   : > { %vm1646_vm13 = vcmp.gt.f32.partialorder %v1616_v33, 0.0  ;;  %v1654_v38 = vmul.f32 0.01, %v1616_v33  ;;  %v8876_v39 = vpop.f32.mrb[12].mxu1  ;;  %v1685_v40 = vsel %vm1354_vm0, %v1675_v34, 0.0  ;;  %v11807_v32 = vsub.s32 4, %v11678_v3 }
 0x50b   : > { %v1631_v41 = vadd.f32 %v8876_v39, %v8496_v21  ;;  %1686 = vadd.xlane.f32.xlu0 %v1685_v40  ;;  %v1625_v42 = vpop.f32.mrb[13].mxu1  ;;  %v1663_v43 = vsel %vm1647_vm12, %v1621_v30, %v1655_v36  ;;  %v1682_v48 = vsel %vm1354_vm0, %v1674_v37, 0.0  ;;  %v11802_v30 = vsub.s32 3, %v11678_v3  ;;  %v2259_v40 = vld [vmem:[#allocation14 + $0x40] sm:$0xff] }
 0x50c   : > { %v1626_v44 = vadd.f32 %v8496_v21, %v1625_v42  ;;  %v1677_v45 = vmul.f32 %v8505_v27, %v1663_v43  ;;  %v1662_v46 = vsel %vm1646_vm13, %v1616_v33, %v1654_v38  ;;  %v11812_v34 = vsub.s32 5, %v11678_v3  ;;  %v2261_v42 = vld [vmem:[#allocation14 + $0x50] sm:$0xff] }
 0x50d   : > { %vm1649_vm14 = vcmp.gt.f32.partialorder %v1631_v41, 0.0  ;;  %v1657_v47 = vmul.f32 0.01, %v1631_v41  ;;  %v1676_v52 = vmul.f32 %v8505_v27, %v1662_v46  ;;  %v11817_v36 = vsub.s32 6, %v11678_v3  ;;  %v2263_v46 = vld [vmem:[#allocation14 + $0x60] sm:$0xff] }
 0x50e   : > { %vm1648_vm15 = vcmp.gt.f32.partialorder %v1626_v44, 0.0  ;;  %v1656_v49 = vmul.f32 0.01, %v1626_v44  ;;  %v8879_v50 = vpop.f32.mrb[14].mxu1  ;;  %v1691_v51 = vsel %vm1354_vm0, %v1677_v45, 0.0  ;;  %v11822_v38 = vsub.s32 7, %v11678_v3 }
 0x50f   : > { %v1641_v53 = vadd.f32 %v8879_v50, %v8496_v21  ;;  %1692 = vadd.xlane.f32.xlu1 %v1691_v51  ;;  %1683 = vadd.xlane.f32.xlu0 %v1682_v48  ;;  %v1635_v54 = vpop.f32.mrb[15].mxu1  ;;  %v1665_v55 = vsel %vm1649_vm14, %v1631_v41, %v1657_v47  ;;  %v1688_v62 = vsel %vm1354_vm0, %v1676_v52, 0.0  ;;  %v2260_v41 = vld [vmem:[#allocation14 + $0x48] sm:$0xff]  ;;  %vm13508_vm13 = vcmask 64512  }
 0x510   : > { %v1636_v56 = vadd.f32 %v8496_v21, %v1635_v54  ;;  %v1664_v57 = vsel %vm1648_vm15, %v1626_v44, %v1656_v49  ;;  %v1679_v63 = vmul.f32 %v8505_v27, %v1665_v55  ;;  %v11779_v21 = vsel %vm1216_vm4, 1.0, %v13469_v18  ;;  %v2262_v44 = vld [vmem:[#allocation14 + $0x58] sm:$0xff]  ;;  %v2264_v47 = vld [vmem:[#allocation14 + $0x68] sm:$0xff] }
 0x511   : > { %vm1651_vm1 = vcmp.gt.f32.partialorder %v1641_v53, 0.0  ;;  %v1659_v58 = vmul.f32 0.01, %v1641_v53  ;;  %v1678_v59 = vmul.f32 %v8505_v27, %v1664_v57  ;;  %v11782_v22 = vsub.f32 1.0, %v11779_v21  ;;  %v11826_v57 = vpop.f32.mrb[0].mxu0 }
 0x512   : > { %vm1650_vm2 = vcmp.gt.f32.partialorder %v1636_v56, 0.0  ;;  %v1658_v60 = vmul.f32 0.01, %v1636_v56  ;;  %v1697_v7 = vsel %vm1354_vm0, %v1679_v63, 0.0  ;;  %v9176_v43 = vpack.c.bf16 %v2260_v41, %v2259_v40 }
 0x513   : > { %1689 = vadd.xlane.f32.xlu1 %v1688_v62  ;;  %v1694_v1 = vsel %vm1354_vm0, %v1678_v59, 0.0  ;;  %v1667_v2 = vsel %vm1651_vm1, %v1641_v53, %v1659_v58  ;;  %v11787_v23 = vmul.f32 %v1224_v0, %v11782_v22  ;;  %v9180_v45 = vpack.c.bf16 %v2262_v44, %v2261_v42  ;;  %v2507_v58 = vpop.f32.mrb[1].mxu0 }
 0x514   : > { %1695 = vadd.xlane.f32.xlu0 %v1694_v1  ;;  %v1666_v4 = vsel %vm1650_vm2, %v1636_v56, %v1658_v60  ;;  %v1681_v10 = vmul.f32 %v8505_v27, %v1667_v2  ;;  %9177 = vmatprep.subr.bf16.mxu0 %v9176_v43  ;;  %v9184_v48 = vpack.c.bf16 %v2264_v47, %v2263_v46  ;;  %vm1921_vm14 = vcmask 1041409  }
 0x515   : > { %v1680_v6 = vmul.f32 %v8505_v27, %v1666_v4  ;;  %v1780_v24 = vrot.slane %v11787_v23, %v11687_v14  ;;  %v1787_v27 = vrot.slane %v11787_v23, %v11792_v25  ;;  %v1794_v29 = vrot.slane %v11787_v23, %v11797_v28  ;;  %9264 = vmatprep.subr.bf16.mxu1 %v9176_v43 }
 0x516   : > { %v1703_v16 = vsel %vm1354_vm0, %v1681_v10, 0.0  ;;  %v1801_v31 = vrot.slane %v11787_v23, %v11802_v30  ;;  %v1808_v33 = vrot.slane %v11787_v23, %v11807_v32  ;;  %v1815_v35 = vrot.slane %v11787_v23, %v11812_v34  ;;  %9179 = vmatpush3.bf16.msra.mxu0 %v9176_v43  ;;  %9268 = vmatpush3.bf16.msra.mxu1 %v9176_v43 }
 0x517   : > { %1698 = vadd.xlane.f32.xlu1 %v1697_v7  ;;  %v1700_v13 = vsel %vm1354_vm0, %v1680_v6, 0.0  ;;  %v1822_v37 = vrot.slane %v11787_v23, %v11817_v36  ;;  %v1829_v39 = vrot.slane %v11787_v23, %v11822_v38  ;;  %9181 = vmatprep.subr.bf16.mxu0 %v9180_v45  ;;  %vm1923_vm15 = vcmask 1042434  }
 0x518   : > { %1701 = vadd.xlane.f32.xlu0 %v1700_v13  ;;  %9265 = vmatprep.subr.bf16.mxu1 %v9180_v45  ;;  %vm1925_vm1 = vcmask 1043459   ;;  %vm1927_vm2 = vcmask 1044484   ;;  %vm1929_vm4 = vcmask 1045509  }
 0x51a   : > { %9183 = vmatpush3.bf16.msra.mxu0 %v9180_v45  ;;  %9269 = vmatpush3.bf16.msra.mxu1 %v9180_v45 }
 0x51b   : > { %1704 = vadd.xlane.f32.xlu1 %v1703_v16  ;;  %9185 = vmatprep.subr.bf16.mxu0 %v9184_v48 }
 0x51c   : > { %9266 = vmatprep.subr.bf16.mxu1 %v9184_v48 }
 0x51e   : > { %9187 = vmatpush3.bf16.msra.mxu0 %v9184_v48  ;;  %9270 = vmatpush3.bf16.msra.mxu1 %v9184_v48 }
 0x52c   : > { %1782 = vbcast.lane.b32.xlu1 %v1780_v24, 256 }
 0x52e   : > { %1712 = vperm.xlu0 %9554, %v8506_v26  }
 0x530   : > { %1789 = vbcast.lane.b32.xlu1 %v1787_v27, 256 }
 0x534   : > { %1796 = vbcast.lane.b32.xlu1 %v1794_v29, 256 }
 0x538   : > { %1803 = vbcast.lane.b32.xlu1 %v1801_v31, 256 }
 0x53c   : > { %1810 = vbcast.lane.b32.xlu1 %v1808_v33, 256 }
 0x540   : > { %1817 = vbcast.lane.b32.xlu1 %v1815_v35, 256 }
 0x544   : > { %1824 = vbcast.lane.b32.xlu1 %v1822_v37, 256 }
 0x548   : > { %1831 = vbcast.lane.b32.xlu1 %v1829_v39, 256 }
 0x598   : > { %v1687_v49 = vpop.xlane.xlu0 %1686 }
 0x59c   : > { %v1693_v50 = vpop.xlane.xlu1 %1692  ;;  %v1684_v51 = vpop.xlane.xlu0 %1683 }
 0x5a0   : > { %v1690_v52 = vpop.xlane.xlu1 %1689 }
 0x5a1   : > { %v1696_v53 = vpop.xlane.xlu0 %1695 }
 0x5a4   : > { %v1699_v54 = vpop.xlane.xlu1 %1698 }
 0x5a5   : > { %v1702_v56 = vpop.xlane.xlu0 %1701 }
 0x5a8   : > { %v1705_v55 = vpop.xlane.xlu1 %1704 }
 0x5ac   : > { %v1783_v59 = vpop.permute.xlu1 %1782 }
 0x5ad   : > { %v1713_v60 = vpop.permute.xlu0 %1712 }
 0x5ae   : > { %v1715_v62 = vadd.f32 %v1713_v60, %v1684_v51  ;;  %v1716_v63 = vadd.f32 %v1713_v60, %v1687_v49  ;;  %v1717_v1 = vadd.f32 %v1713_v60, %v1690_v52  ;;  %v1718_v2 = vadd.f32 %v1713_v60, %v1693_v50 }
 0x5af   : > { %v1719_v4 = vadd.f32 %v1713_v60, %v1696_v53  ;;  %v1720_v6 = vadd.f32 %v1713_v60, %v1699_v54  ;;  %v1721_v0 = vadd.f32 %v1713_v60, %v1702_v56  ;;  %v1722_v26 = vadd.f32 %v1713_v60, %v1705_v55  ;;  %v11828_v60 = vld [vmem:[#allocation13 + $0x1] ss:$0 sm:$0xff] }
 0x5b0   : > { %v8507_v7 = vmul.f32 -1.442695, %v1715_v62  ;;  %v8508_v10 = vmul.f32 -1.442695, %v1716_v63  ;;  %v1790_v13 = vpop.permute.xlu1 %1789  ;;  %v8509_v16 = vmul.f32 -1.442695, %v1717_v1  ;;  %v2508_v63 = vadd.f32 %v11828_v60, %v2507_v58 }
 0x5b1   : > { %v8510_v24 = vmul.f32 -1.442695, %v1718_v2  ;;  %v8511_v27 = vmul.f32 -1.442695, %v1719_v4  ;;  %v8512_v29 = vmul.f32 -1.442695, %v1720_v6 }
 0x5b2   : > { %9558 = vpow2.f32 %v8507_v7  ;;  %v8513_v33 = vmul.f32 -1.442695, %v1721_v0  ;;  %v8514_v35 = vmul.f32 -1.442695, %v1722_v26  ;;  %v2513_v7 = vadd.f32 %v11826_v57, %v11828_v60 }
 0x5b3   : > { %9560 = vpow2.f32 %v8508_v10  ;;  %v2554_v58 = vmul.f32 0.01, %v2508_v63  ;;  %vm2546_vm5 = vcmp.gt.f32.partialorder %v2508_v63, 0.0 }
 0x5b4   : > { %9562 = vpow2.f32 %v8509_v16  ;;  %v1797_v31 = vpop.permute.xlu1 %1796  ;;  %vm2547_vm6 = vcmp.gt.f32.partialorder %v2513_v7, 0.0 }
 0x5b5   : > { %9564 = vpow2.f32 %v8510_v24 }
 0x5b6   : > { %9566 = vpow2.f32 %v8511_v27 }
 0x5b7   : > { %9568 = vpow2.f32 %v8512_v29 }
 0x5b8   : > { %9570 = vpow2.f32 %v8513_v33  ;;  %v1804_v37 = vpop.permute.xlu1 %1803 }
 0x5b9   : > { %9572 = vpow2.f32 %v8514_v35 }
 0x5bc   : > { %v9559_v39 = vpop.eup %9558  ;;  %v1811_v48 = vpop.permute.xlu1 %1810 }
 0x5bd   : > { %v9561_v40 = vpop.eup %9560  ;;  %v1747_v41 = vadd.f32 1.0, %v9559_v39 }
 0x5be   : > { %v9563_v42 = vpop.eup %9562  ;;  %v1748_v43 = vadd.f32 1.0, %v9561_v40  ;;  %v8893_v40 = vpop.f32.mrb[2].mxu0 }
 0x5bf   : > { %v9565_v44 = vpop.eup %9564  ;;  %9574 = vrcp.f32 %v1747_v41  ;;  %v1749_v45 = vadd.f32 1.0, %v9563_v42  ;;  %v2265_v41 = vld [vmem:[#allocation14 + $0x70] sm:$0xff]  ;;  %v2562_v42 = vsel %vm2546_vm5, %v2508_v63, %v2554_v58  ;;  %vm13510_vm5 = vcmask 1046534  }
 0x5c0   : > { %v9567_v46 = vpop.eup %9566  ;;  %9576 = vrcp.f32 %v1748_v43  ;;  %v1750_v47 = vadd.f32 1.0, %v9565_v44  ;;  %v1818_v56 = vpop.permute.xlu1 %1817  ;;  %8916 = vmatprep.mubr.msk.f32.mxu0 %vm13476_vm3, %v2562_v42 }
 0x5c1   : > { %v9569_v49 = vpop.eup %9568  ;;  %9578 = vrcp.f32 %v1749_v45  ;;  %v1751_v50 = vadd.f32 1.0, %v9567_v46  ;;  %v2523_v45 = vadd.f32 %v8893_v40, %v11828_v60 }
 0x5c2   : > { %v9571_v51 = vpop.eup %9570  ;;  %9580 = vrcp.f32 %v1750_v47  ;;  %v1752_v52 = vadd.f32 1.0, %v9569_v49  ;;  %v2517_v47 = vpop.f32.mrb[3].mxu0 }
 0x5c3   : > { %v9573_v53 = vpop.eup %9572  ;;  %9582 = vrcp.f32 %v1751_v50  ;;  %v1753_v54 = vadd.f32 1.0, %v9571_v51  ;;  %v2518_v49 = vadd.f32 %v11828_v60, %v2517_v47  ;;  %vm2549_vm7 = vcmp.gt.f32.partialorder %v2523_v45, 0.0 }
 0x5c4   : > { %9584 = vrcp.f32 %v1752_v52  ;;  %v1754_v55 = vadd.f32 1.0, %v9573_v53  ;;  %v1825_v24 = vpop.permute.xlu1 %1824  ;;  %v2557_v52 = vmul.f32 0.01, %v2523_v45 }
 0x5c5   : > { %9586 = vrcp.f32 %v1753_v54  ;;  %vm2548_vm8 = vcmp.gt.f32.partialorder %v2518_v49, 0.0 }
 0x5c6   : > { %9588 = vrcp.f32 %v1754_v55  ;;  %v2556_v55 = vmul.f32 0.01, %v2518_v49  ;;  %v2565_v63 = vsel %vm2549_vm7, %v2523_v45, %v2557_v52 }
 0x5c8   : > { %v1832_v44 = vpop.permute.xlu1 %1831 }
 0x5c9   : > { %v9575_v62 = vpop.eup %9574 }
 0x5ca   : > { %v9577_v1 = vpop.eup %9576  ;;  %v11831_v2 = vmul.f32 %v9575_v62, %v1783_v59  ;;  %v11860_v62 = vadd.f32 1e-06, %v11779_v21 }
 0x5cb   : > { %v9579_v4 = vpop.eup %9578  ;;  %v11833_v6 = vmul.f32 %v9577_v1, %v1790_v13  ;;  %v2555_v13 = vmul.f32 0.01, %v2513_v7 }
 0x5cc   : > { %v9581_v10 = vpop.eup %9580  ;;  %v1849_v16 = vand.u32 2147483647, %v11831_v2  ;;  %v11838_v0 = vmul.f32 %v9579_v4, %v1797_v31  ;;  %v2085_v45 = vrot.slane %v11860_v62, %v11812_v34 }
 0x5cd   : > { %v9583_v26 = vpop.eup %9582  ;;  %v1850_v27 = vand.u32 2147483647, %v11833_v6  ;;  %v11841_v29 = vmul.f32 %v9581_v10, %v1804_v37  ;;  %v2266_v37 = vld [vmem:[#allocation14 + $0x78] sm:$0xff]  ;;  %v2564_v10 = vsel %vm2548_vm8, %v2518_v49, %v2556_v55 }
 0x5ce   : > { %v9585_v59 = vpop.eup %9584  ;;  %1866 = vperm.xlu0 %9554, %v1849_v16   ;;  %v1851_v33 = vand.u32 2147483647, %v11838_v0  ;;  %v11844_v57 = vmul.f32 %v9583_v26, %v1811_v48  ;;  %v9188_v46 = vpack.c.bf16 %v2266_v37, %v2265_v41  ;;  %v2563_v48 = vsel %vm2547_vm6, %v2513_v7, %v2555_v13  ;;  %8919 = vmatprep.mubr.msk.f32.mxu1 %vm13476_vm3, %v2564_v10 }
 0x5cf   : > { %1869 = vperm.xlu1 %9555, %v1850_v27   ;;  %v9587_v35 = vpop.eup %9586  ;;  %v1852_v31 = vand.u32 2147483647, %v11841_v29  ;;  %v11847_v39 = vmul.f32 %v9585_v59, %v1818_v56  ;;  %v8896_v56 = vpop.f32.mrb[4].mxu0  ;;  %v2050_v13 = vrot.slane %v11860_v62, %v11687_v14  ;;  %vm13509_vm6 = vcmask 1047559  }
 0x5d0   : > { %v9589_v43 = vpop.eup %9588  ;;  %v1853_v50 = vand.u32 2147483647, %v11844_v57  ;;  %v11854_v51 = vmul.f32 %v9587_v35, %v1825_v24  ;;  %9189 = vmatprep.subr.bf16.mxu0 %v9188_v46  ;;  %9267 = vmatprep.subr.bf16.mxu1 %v9188_v46  ;;  %v2533_v1 = vadd.f32 %v8896_v56, %v11828_v60  ;;  %v2527_v4 = vpop.f32.mrb[5].mxu0 }
 0x5d1   : > { %v1854_v53 = vand.u32 2147483647, %v11847_v39  ;;  %v11857_v54 = vmul.f32 %v9589_v43, %v1832_v44  ;;  %9191 = vmatpush3.bf16.msra.mxu0 %v9188_v46  ;;  %9271 = vmatpush3.bf16.msra.mxu1 %v9188_v46  ;;  %v2528_v7 = vadd.f32 %v11828_v60, %v2527_v4  ;;  %v8899_v21 = vpop.f32.mrb[6].mxu0  ;;  %v2057_v43 = vrot.slane %v11860_v62, %v11792_v25 }
 0x5d2   : > { %1872 = vperm.xlu0 %9554, %v1851_v33   ;;  %8928 = vmatprep.subr.mxu0 %v13469_v18  ;;  %v1855_v16 = vand.u32 2147483647, %v11854_v51  ;;  %vm2551_vm9 = vcmp.gt.f32.partialorder %v2533_v1, 0.0  ;;  %v2559_v24 = vmul.f32 0.01, %v2533_v1  ;;  %v2543_v58 = vadd.f32 %v8899_v21, %v11828_v60  ;;  %v2537_v59 = vpop.f32.mrb[7].mxu0 }
 0x5d3   : > { %1875 = vperm.xlu1 %9555, %v1852_v31   ;;  %v1856_v26 = vand.u32 2147483647, %v11857_v54  ;;  %vm2550_vm10 = vcmp.gt.f32.partialorder %v2528_v7, 0.0  ;;  %v2558_v27 = vmul.f32 0.01, %v2528_v7  ;;  %v2538_v33 = vadd.f32 %v11828_v60, %v2537_v59 }
 0x5d4   : > { %8917 = vmatmul.mubr.msk.f32.vlgmr.msra.gmra.mrb[8].mxu0 %vm13476_vm3, %v2563_v48  ;;  %8920 = vmatmul.mubr.msk.f32.vlgmr.msra.gmra.mrb[16].mxu1 %vm13476_vm3, %v2565_v63  ;;  %vm2553_vm11 = vcmp.gt.f32.partialorder %v2543_v58, 0.0  ;;  %v2561_v35 = vmul.f32 0.01, %v2543_v58  ;;  %v2567_v40 = vsel %vm2551_vm9, %v2533_v1, %v2559_v24  ;;  %v1773_v60 = vsel %vm13508_vm13, %v11787_v23, 0.0 }
 0x5d5   : > { %v2566_v31 = vsel %vm2550_vm10, %v2528_v7, %v2558_v27  ;;  %vm2552_vm12 = vcmp.gt.f32.partialorder %v2538_v33, 0.0  ;;  %v2560_v41 = vmul.f32 0.01, %v2538_v33  ;;  %v2071_v44 = vrot.slane %v11860_v62, %v11802_v30 }
 0x5d6   : > { %1878 = vperm.xlu0 %9554, %v1853_v50   ;;  %8922 = vmatprep.mubr.msk.f32.mxu1 %vm13476_vm3, %v2566_v31  ;;  %v2569_v42 = vsel %vm2553_vm11, %v2543_v58, %v2561_v35  ;;  %v2099_v46 = vrot.slane %v11860_v62, %v11822_v38  ;;  %v11891_v23 = vsub.s32 %v11772_v12, %v11678_v3 }
 0x5d7   : > { %1881 = vperm.xlu1 %9555, %v1854_v53   ;;  %v2568_v37 = vsel %vm2552_vm12, %v2538_v33, %v2560_v41  ;;  %v2078_v41 = vrot.slane %v11860_v62, %v11807_v32 }
 0x5d8   : > { %8923 = vmatmul.mubr.msk.f32.gmra.mrb[18].mxu1 %vm13476_vm3, %v2567_v40  ;;  %v2064_v40 = vrot.slane %v11860_v62, %v11797_v28 }
 0x5d9   : > { %8925 = vmatprep.mubr.msk.f32.mxu1 %vm13476_vm3, %v2568_v37  ;;  %v2092_v37 = vrot.slane %v11860_v62, %v11817_v36 }
 0x5da   : > { %1884 = vperm.xlu0 %9554, %v1855_v16  }
 0x5db   : > { %1887 = vperm.xlu1 %9555, %v1856_v26  }
 0x5dc   : > { %8926 = vmatmul.mubr.msk.f32.gmra.mrb[20].mxu1 %vm13476_vm3, %v2569_v42 }
 0x5de   : > { %2052 = vbcast.lane.b32.xlu0 %v2050_v13, 256 }
 0x5ff   : > { %1774 = vadd.xlane.f32.xlu1 %v1773_v60 }
 0x610   : > { %2059 = vbcast.lane.b32.xlu1 %v2057_v43, 256 }
 0x614   : > { %2073 = vbcast.lane.b32.xlu1 %v2071_v44, 256 }
 0x618   : > { %2087 = vbcast.lane.b32.xlu1 %v2085_v45, 256 }
 0x61c   : > { %2101 = vbcast.lane.b32.xlu1 %v2099_v46, 256 }
 0x64d   : > { %v1867_v47 = vpop.permute.xlu0 %1866 }
 0x64e   : > { %v1870_v48 = vpop.permute.xlu1 %1869  ;;  %v1892_v49 = vrot.slane %v1867_v47, %v11891_v23 }
 0x64f   : > { %v1896_v50 = vrot.slane %v1870_v48, %v11891_v23 }
 0x651   : > { %v1873_v52 = vpop.permute.xlu0 %1872  ;;  %v1922_v56 = vsel %vm1921_vm14, %v1896_v50, %v1892_v49 }
 0x652   : > { %v1900_v53 = vrot.slane %v1873_v52, %v11891_v23  ;;  %v1876_v55 = vpop.permute.xlu1 %1875 }
 0x653   : > { %v1904_v63 = vrot.slane %v1876_v55, %v11891_v23 }
 0x654   : > { %v1924_v1 = vsel %vm1923_vm15, %v1900_v53, %v1922_v56 }
 0x655   : > { %v1879_v4 = vpop.permute.xlu0 %1878  ;;  %v1926_v16 = vsel %vm1925_vm1, %v1904_v63, %v1924_v1 }
 0x656   : > { %v1908_v7 = vrot.slane %v1879_v4, %v11891_v23  ;;  %v1882_v10 = vpop.permute.xlu1 %1881 }
 0x657   : > { %v1912_v24 = vrot.slane %v1882_v10, %v11891_v23 }
 0x658   : > { %v1928_v21 = vsel %vm1927_vm2, %v1908_v7, %v1926_v16 }
 0x659   : > { %v1885_v26 = vpop.permute.xlu0 %1884  ;;  %v1930_v13 = vsel %vm1929_vm4, %v1912_v24, %v1928_v21 }
 0x65a   : > { %v1916_v27 = vrot.slane %v1885_v26, %v11891_v23  ;;  %v1888_v58 = vpop.permute.xlu1 %1887 }
 0x65b   : > { %v1920_v59 = vrot.slane %v1888_v58, %v11891_v23 }
 0x65c   : > { %v1932_v33 = vsel %vm13510_vm5, %v1916_v27, %v1930_v13 }
 0x65d   : > { %v1934_v35 = vsel %vm13509_vm6, %v1920_v59, %v1932_v33  ;;  %v11931_v49 = vpop.permute.xlu0 %2052 }
 0x65e   : > { %v1936_v31 = vsel %vm13508_vm13, %v1934_v35, 0.0 }
 0x65f   : > { %1937 = vadd.xlane.f32.xlu0 %v1936_v31 }
 0x675   : > { %2066 = vbcast.lane.b32.xlu0 %v2064_v40, 256 }
 0x679   : > { %2080 = vbcast.lane.b32.xlu0 %v2078_v41, 256 }
 0x67d   : > { %2094 = vbcast.lane.b32.xlu0 %v2092_v37, 256 }
 0x68c   : > { %v1775_v1 = vpop.xlane.xlu1 %1774 }
 0x68d   : > { %v2001_v24 = vrot.slane %v1775_v1, %v11687_v14  ;;  %v2005_v26 = vrot.slane %v1775_v1, %v11792_v25  ;;  %v2009_v59 = vrot.slane %v1775_v1, %v11797_v28  ;;  %v2013_v31 = vrot.slane %v1775_v1, %v11802_v30 }
 0x690   : > { %v11941_v16 = vpop.permute.xlu1 %2059 }
 0x694   : > { %v11951_v41 = vpop.permute.xlu1 %2073 }
 0x6a7   : > { %v11915_v42 = vpop.f32.mrb[8].mxu0  ;;  %v11919_v43 = vpop.f32.mrb[16].mxu1 }
 0x6a8   : > { %v11917_v60 = vpop.f32.mrb[9].mxu0  ;;  %v11921_v44 = vpop.f32.mrb[17].mxu1 }
 0x6ab   : > { %v11923_v45 = vpop.f32.mrb[18].mxu1 }
 0x6ac   : > { %v11925_v46 = vpop.f32.mrb[19].mxu1 }
 0x6af   : > { %v11927_v47 = vpop.f32.mrb[20].mxu1 }
 0x6b0   : > { %v11929_v48 = vpop.f32.mrb[21].mxu1 }
 0x6ec   : > { %v1938_v62 = vpop.xlane.xlu0 %1937 }
 0x6ed   : > { %v1939_v50 = vmax.f32 %v1938_v62, 1e-12 }
 0x6ef   : > { %v1944_v52 = vrot.slane %v1939_v50, %v11687_v14  ;;  %v1948_v53 = vrot.slane %v1939_v50, %v11792_v25  ;;  %v1952_v55 = vrot.slane %v1939_v50, %v11797_v28  ;;  %v1956_v56 = vrot.slane %v1939_v50, %v11802_v30 }
 0x6f0   : > { %v1960_v63 = vrot.slane %v1939_v50, %v11807_v32  ;;  %v1964_v4 = vrot.slane %v1939_v50, %v11812_v34  ;;  %v1968_v7 = vrot.slane %v1939_v50, %v11817_v36  ;;  %v1972_v10 = vrot.slane %v1939_v50, %v11822_v38  ;;  %v11947_v33 = vpop.permute.xlu0 %2066 }
 0x6f1   : > { %9590 = vrcp.f32 %v1944_v52 }
 0x6f2   : > { %9592 = vrcp.f32 %v1948_v53 }
 0x6f3   : > { %9594 = vrcp.f32 %v1952_v55 }
 0x6f4   : > { %9596 = vrcp.f32 %v1956_v56 }
 0x6f5   : > { %9598 = vrcp.f32 %v1960_v63 }
 0x6f6   : > { %9600 = vrcp.f32 %v1964_v4 }
 0x6f7   : > { %9602 = vrcp.f32 %v1968_v7 }
 0x6f8   : > { %9604 = vrcp.f32 %v1972_v10 }
 0x6fb   : > { %v9591_v21 = vpop.eup %9590 }
 0x6fc   : > { %v9593_v27 = vpop.eup %9592  ;;  %v1982_v58 = vmul.f32 %v9591_v21, %v11831_v2 }
 0x6fd   : > { %v9595_v13 = vpop.eup %9594  ;;  %v1984_v35 = vmul.f32 %v9593_v27, %v11833_v6  ;;  %v2017_v6 = vrot.slane %v1775_v1, %v11807_v32 }
 0x6fe   : > { %v9597_v40 = vpop.eup %9596  ;;  %v2038_v37 = vmul.f32 %v2001_v24, %v1982_v58  ;;  %v1986_v62 = vmul.f32 %v9595_v13, %v11838_v0  ;;  %v2021_v24 = vrot.slane %v1775_v1, %v11812_v34 }
 0x6ff   : > { %v9599_v50 = vpop.eup %9598  ;;  %v2039_v52 = vmul.f32 %v2005_v26, %v1984_v35  ;;  %v1988_v53 = vmul.f32 %v9597_v40, %v11841_v29  ;;  %v11966_v29 = vpop.permute.xlu0 %2080 }
 0x700   : > { %v9601_v2 = vpop.eup %9600  ;;  %v11956_v55 = vadd.f32 %v11931_v49, %v2038_v37  ;;  %v2040_v56 = vmul.f32 %v2009_v59, %v1986_v62  ;;  %v1990_v63 = vmul.f32 %v9599_v50, %v11844_v57  ;;  %v11969_v26 = vpop.permute.xlu1 %2087  ;;  %v2025_v59 = vrot.slane %v1775_v1, %v11817_v36 }
 0x701   : > { %v9603_v4 = vpop.eup %9602  ;;  %v11961_v7 = vadd.f32 %v11941_v16, %v2039_v52  ;;  %v2041_v10 = vmul.f32 %v2013_v31, %v1988_v53  ;;  %v1992_v0 = vmul.f32 %v9601_v2, %v11847_v39  ;;  %v2029_v31 = vrot.slane %v1775_v1, %v11822_v38  ;;  %v8524_v53 = vld [vmem:[#allocation16 + $0x1] ss:$0 sm:$0xff] }
 0x702   : > { %v9605_v21 = vpop.eup %9604  ;;  %2128 = vperm.xlu0 %9554, %v11956_v55   ;;  %v11972_v57 = vadd.f32 %v11947_v33, %v2040_v56  ;;  %v2042_v27 = vmul.f32 %v2017_v6, %v1990_v63  ;;  %v1994_v58 = vmul.f32 %v9603_v4, %v11854_v51  ;;  %v2667_v2 = vadd.f32 %v8524_v53, %v11917_v60 }
 0x703   : > { %2131 = vperm.xlu1 %9555, %v11961_v7   ;;  %v11977_v39 = vadd.f32 %v11951_v41, %v2041_v10  ;;  %v2043_v13 = vmul.f32 %v2021_v24, %v1992_v0  ;;  %v1996_v35 = vmul.f32 %v9605_v21, %v11857_v54  ;;  %v11986_v62 = vpop.permute.xlu0 %2094  ;;  %v2677_v63 = vadd.f32 %v8524_v53, %v11921_v44  ;;  %v8533_v0 = vld [vmem:[#allocation17 + $0x1] ss:$0 sm:$0xff] }
 0x704   : > { %v11984_v40 = vadd.f32 %v11966_v29, %v2042_v27  ;;  %v2044_v37 = vmul.f32 %v2025_v59, %v1994_v58  ;;  %v11991_v52 = vpop.permute.xlu1 %2101  ;;  %v2713_v56 = vmul.f32 0.01, %v2667_v2  ;;  %vm2705_vm7 = vcmp.gt.f32.partialorder %v2667_v2, 0.0 }
 0x705   : > { %v11989_v51 = vadd.f32 %v11969_v26, %v2043_v13  ;;  %v2045_v50 = vmul.f32 %v2029_v31, %v1996_v35  ;;  %v2672_v6 = vadd.f32 %v11915_v42, %v8524_v53  ;;  %v2682_v4 = vadd.f32 %v11919_v43, %v8524_v53 }
 0x706   : > { %2134 = vperm.xlu0 %9554, %v11972_v57   ;;  %v11996_v54 = vadd.f32 %v11986_v62, %v2044_v37  ;;  %v2715_v10 = vmul.f32 0.01, %v2677_v63  ;;  %v2721_v24 = vsel %vm2705_vm7, %v2667_v2, %v2713_v56  ;;  %vm2707_vm8 = vcmp.gt.f32.partialorder %v2677_v63, 0.0 }
 0x707   : > { %2137 = vperm.xlu1 %9555, %v11977_v39   ;;  %v11999_v1 = vadd.f32 %v11991_v52, %v2045_v50  ;;  %v2714_v21 = vmul.f32 0.01, %v2672_v6  ;;  %v2687_v27 = vadd.f32 %v8524_v53, %v11925_v46  ;;  %vm2706_vm9 = vcmp.gt.f32.partialorder %v2672_v6, 0.0 }
 0x708   : > { %v2735_v58 = vmul.f32 %v8533_v0, %v2721_v24  ;;  %v2716_v59 = vmul.f32 0.01, %v2682_v4  ;;  %v2692_v60 = vadd.f32 %v11923_v45, %v8524_v53  ;;  %v2723_v13 = vsel %vm2707_vm8, %v2677_v63, %v2715_v10 }
 0x709   : > { %vm2708_vm10 = vcmp.gt.f32.partialorder %v2682_v4, 0.0  ;;  %v2717_v44 = vmul.f32 0.01, %v2687_v27  ;;  %v2697_v35 = vadd.f32 %v8524_v53, %v11929_v48  ;;  %v2722_v42 = vsel %vm2706_vm9, %v2672_v6, %v2714_v21 }
 0x70a   : > { %2140 = vperm.xlu0 %9554, %v11984_v40   ;;  %vm2709_vm11 = vcmp.gt.f32.partialorder %v2687_v27, 0.0  ;;  %v2743_v43 = vsel %vm1354_vm0, %v2735_v58, 0.0  ;;  %v2737_v31 = vmul.f32 %v8533_v0, %v2723_v13  ;;  %v2718_v37 = vmul.f32 0.01, %v2692_v60 }
 0x70b   : > { %2143 = vperm.xlu1 %9555, %v11989_v51   ;;  %v2702_v50 = vadd.f32 %v11927_v47, %v8524_v53  ;;  %v2724_v2 = vsel %vm2708_vm10, %v2682_v4, %v2716_v59  ;;  %vm2710_vm12 = vcmp.gt.f32.partialorder %v2692_v60, 0.0  ;;  %v2736_v46 = vmul.f32 %v8533_v0, %v2722_v42 }
 0x70c   : > { %v2719_v56 = vmul.f32 0.01, %v2697_v35  ;;  %v2725_v24 = vsel %vm2709_vm11, %v2687_v27, %v2717_v44  ;;  %vm2711_vm7 = vcmp.gt.f32.partialorder %v2697_v35, 0.0  ;;  %v2749_v45 = vsel %vm1354_vm0, %v2737_v31, 0.0 }
 0x70d   : > { %v2738_v63 = vmul.f32 %v8533_v0, %v2724_v2  ;;  %v2720_v10 = vmul.f32 0.01, %v2702_v50  ;;  %v2726_v48 = vsel %vm2710_vm12, %v2692_v60, %v2718_v37  ;;  %vm2712_vm8 = vcmp.gt.f32.partialorder %v2702_v50, 0.0 }
 0x70e   : > { %2146 = vperm.xlu0 %9554, %v11996_v54   ;;  %v2746_v6 = vsel %vm1354_vm0, %v2736_v46, 0.0  ;;  %v2739_v21 = vmul.f32 %v8533_v0, %v2725_v24  ;;  %v2727_v58 = vsel %vm2711_vm7, %v2697_v35, %v2719_v56  ;;  %v2740_v53 = vmul.f32 %v8533_v0, %v2726_v48  ;;  %v8534_v35 = vld [vmem:[#allocation19 + $0x1] ss:$0 sm:$0xff] }
 0x70f   : > { %2149 = vperm.xlu1 %9555, %v11999_v1   ;;  %v2752_v47 = vsel %vm1354_vm0, %v2738_v63, 0.0  ;;  %v2728_v4 = vsel %vm2712_vm8, %v2702_v50, %v2720_v10  ;;  %v2741_v27 = vmul.f32 %v8533_v0, %v2727_v58  ;;  %v2836_v31 = vrot.slane %v11782_v22, %v11687_v14 }
 0x710   : > { %v2755_v59 = vsel %vm1354_vm0, %v2739_v21, 0.0  ;;  %v2758_v13 = vsel %vm1354_vm0, %v2740_v53, 0.0  ;;  %v2742_v44 = vmul.f32 %v8533_v0, %v2728_v4  ;;  %v2850_v0 = vrot.slane %v11782_v22, %v11797_v28 }
 0x711   : > { %v2761_v60 = vsel %vm1354_vm0, %v2741_v27, 0.0  ;;  %v2857_v37 = vrot.slane %v11782_v22, %v11802_v30  ;;  %v2871_v50 = vrot.slane %v11782_v22, %v11812_v34  ;;  %v2885_v2 = vrot.slane %v11782_v22, %v11822_v38 }
 0x712   : > { %v2764_v42 = vsel %vm1354_vm0, %v2742_v44, 0.0  ;;  %vm13473_vm9 = vcmask 1043456   ;;  %vm13505_vm10 = vcmask 31744   ;;  %vm10772_vm11 = vmmov 0  }
 0x72d   : > { %2744 = vadd.xlane.f32.xlu0 %v2743_v43  ;;  %v2843_v43 = vrot.slane %v11782_v22, %v11792_v25 }
 0x731   : > { %2750 = vadd.xlane.f32.xlu0 %v2749_v45 }
 0x733   : > { %2747 = vadd.xlane.f32.xlu1 %v2746_v6 }
 0x735   : > { %2753 = vadd.xlane.f32.xlu0 %v2752_v47 }
 0x737   : > { %2756 = vadd.xlane.f32.xlu1 %v2755_v59 }
 0x739   : > { %2759 = vadd.xlane.f32.xlu0 %v2758_v13 }
 0x73b   : > { %2762 = vadd.xlane.f32.xlu1 %v2761_v60 }
 0x73d   : > { %2765 = vadd.xlane.f32.xlu0 %v2764_v42 }
 0x74c   : > { %2773 = vperm.xlu1 %9555, %v8534_v35  }
 0x750   : > { %2845 = vbcast.lane.b32.xlu1 %v2843_v43, 256 }
 0x753   : > { %2838 = vbcast.lane.b32.xlu0 %v2836_v31, 256 }
 0x754   : > { %2852 = vbcast.lane.b32.xlu1 %v2850_v0, 256 }
 0x758   : > { %2859 = vbcast.lane.b32.xlu1 %v2857_v37, 256 }
 0x75c   : > { %2873 = vbcast.lane.b32.xlu1 %v2871_v50, 256  ;;  %v2864_v50 = vrot.slane %v11782_v22, %v11807_v32 }
 0x760   : > { %2887 = vbcast.lane.b32.xlu1 %v2885_v2, 256  ;;  %v2878_v2 = vrot.slane %v11782_v22, %v11817_v36 }
 0x781   : > { %v2129_v46 = vpop.permute.xlu0 %2128 }
 0x782   : > { %v2132_v56 = vpop.permute.xlu1 %2131  ;;  %v2154_v24 = vrot.slane %v2129_v46, %v11891_v23 }
 0x783   : > { %v2158_v45 = vrot.slane %v2132_v56, %v11891_v23 }
 0x785   : > { %v2135_v63 = vpop.permute.xlu0 %2134  ;;  %v2183_v6 = vsel %vm1921_vm14, %v2158_v45, %v2154_v24 }
 0x786   : > { %v2162_v10 = vrot.slane %v2135_v63, %v11891_v23  ;;  %v2138_v48 = vpop.permute.xlu1 %2137 }
 0x787   : > { %v2166_v21 = vrot.slane %v2138_v48, %v11891_v23 }
 0x788   : > { %v2184_v58 = vsel %vm1923_vm15, %v2162_v10, %v2183_v6 }
 0x789   : > { %v2141_v47 = vpop.permute.xlu0 %2140  ;;  %v2185_v59 = vsel %vm1925_vm1, %v2166_v21, %v2184_v58 }
 0x78a   : > { %v2170_v53 = vrot.slane %v2141_v47, %v11891_v23  ;;  %v2144_v4 = vpop.permute.xlu1 %2143 }
 0x78b   : > { %v2174_v27 = vrot.slane %v2144_v4, %v11891_v23 }
 0x78c   : > { %v2186_v13 = vsel %vm1927_vm2, %v2170_v53, %v2185_v59 }
 0x78d   : > { %v2147_v44 = vpop.permute.xlu0 %2146  ;;  %v2187_v43 = vsel %vm1929_vm4, %v2174_v27, %v2186_v13 }
 0x78e   : > { %v2178_v60 = vrot.slane %v2147_v44, %v11891_v23  ;;  %v2150_v42 = vpop.permute.xlu1 %2149 }
 0x78f   : > { %v2182_v35 = vrot.slane %v2150_v42, %v11891_v23 }
 0x790   : > { %v2188_v31 = vsel %vm13510_vm5, %v2178_v60, %v2187_v43 }
 0x791   : > { %v2189_v0 = vsel %vm13509_vm6, %v2182_v35, %v2188_v31 }
 0x792   : > { %v2191_v37 = vsel %vm13508_vm13, %v2189_v0, 0.0 }
 0x793   : > { %2192 = vadd.xlane.f32.xlu0 %v2191_v37 }
 0x7a9   : > { %2866 = vbcast.lane.b32.xlu0 %v2864_v50, 256 }
 0x7ad   : > { %2880 = vbcast.lane.b32.xlu0 %v2878_v2, 256 }
 0x7ba   : > { %v2745_v24 = vpop.xlane.xlu0 %2744 }
 0x7be   : > { %v2751_v63 = vpop.xlane.xlu0 %2750 }
 0x7c0   : > { %v2748_v46 = vpop.xlane.xlu1 %2747 }
 0x7c2   : > { %v2754_v6 = vpop.xlane.xlu0 %2753 }
 0x7c4   : > { %v2757_v56 = vpop.xlane.xlu1 %2756 }
 0x7c6   : > { %v2760_v27 = vpop.xlane.xlu0 %2759 }
 0x7c8   : > { %v2763_v45 = vpop.xlane.xlu1 %2762 }
 0x7ca   : > { %v2766_v44 = vpop.xlane.xlu0 %2765 }
 0x7cc   : > { %v2774_v10 = vpop.permute.xlu1 %2773 }
 0x7cd   : > { %v2776_v48 = vadd.f32 %v2774_v10, %v2745_v24  ;;  %v2777_v21 = vadd.f32 %v2774_v10, %v2748_v46  ;;  %v2778_v58 = vadd.f32 %v2774_v10, %v2751_v63  ;;  %v2779_v47 = vadd.f32 %v2774_v10, %v2754_v6 }
 0x7ce   : > { %v2780_v60 = vadd.f32 %v2774_v10, %v2757_v56  ;;  %v2781_v42 = vadd.f32 %v2774_v10, %v2760_v27  ;;  %v2782_v35 = vadd.f32 %v2774_v10, %v2763_v45  ;;  %v2783_v43 = vadd.f32 %v2774_v10, %v2766_v44  ;;  %v12051_v6 = vpop.permute.xlu0 %2838 }
 0x7cf   : > { %v8535_v53 = vmul.f32 -1.442695, %v2776_v48  ;;  %v8536_v4 = vmul.f32 -1.442695, %v2777_v21  ;;  %v8537_v59 = vmul.f32 -1.442695, %v2778_v58 }
 0x7d0   : > { %v8538_v13 = vmul.f32 -1.442695, %v2779_v47  ;;  %v8539_v31 = vmul.f32 -1.442695, %v2780_v60  ;;  %v8540_v37 = vmul.f32 -1.442695, %v2781_v42  ;;  %v12053_v56 = vpop.permute.xlu1 %2845 }
 0x7d1   : > { %9606 = vpow2.f32 %v8535_v53  ;;  %v8541_v2 = vmul.f32 -1.442695, %v2782_v35  ;;  %v8542_v24 = vmul.f32 -1.442695, %v2783_v43 }
 0x7d2   : > { %9608 = vpow2.f32 %v8536_v4 }
 0x7d3   : > { %9610 = vpow2.f32 %v8537_v59 }
 0x7d4   : > { %9612 = vpow2.f32 %v8538_v13  ;;  %v12060_v13 = vpop.permute.xlu1 %2852 }
 0x7d5   : > { %9614 = vpow2.f32 %v8539_v31 }
 0x7d6   : > { %9616 = vpow2.f32 %v8540_v37 }
 0x7d7   : > { %9618 = vpow2.f32 %v8541_v2 }
 0x7d8   : > { %9620 = vpow2.f32 %v8542_v24 }
 0x7db   : > { %v9607_v0 = vpop.eup %9606 }
 0x7dc   : > { %v9609_v50 = vpop.eup %9608  ;;  %v2808_v48 = vadd.f32 1.0, %v9607_v0 }
 0x7dd   : > { %v9611_v46 = vpop.eup %9610  ;;  %v2809_v21 = vadd.f32 1.0, %v9609_v50 }
 0x7de   : > { %v9613_v63 = vpop.eup %9612  ;;  %v2810_v58 = vadd.f32 1.0, %v9611_v46  ;;  %9622 = vrcp.f32 %v2808_v48  ;;  %v12065_v46 = vpop.permute.xlu1 %2859 }
 0x7df   : > { %v2811_v45 = vadd.f32 1.0, %v9613_v63  ;;  %9624 = vrcp.f32 %v2809_v21  ;;  %v9615_v60 = vpop.eup %9614 }
 0x7e0   : > { %9626 = vrcp.f32 %v2810_v58  ;;  %v9617_v35 = vpop.eup %9616  ;;  %v2812_v50 = vadd.f32 1.0, %v9615_v60 }
 0x7e1   : > { %9628 = vrcp.f32 %v2811_v45  ;;  %v9619_v31 = vpop.eup %9618  ;;  %v2813_v24 = vadd.f32 1.0, %v9617_v35 }
 0x7e2   : > { %v9621_v0 = vpop.eup %9620  ;;  %v2814_v58 = vadd.f32 1.0, %v9619_v31 }
 0x7e8   : > { %v9623_v37 = vpop.eup %9622 }
 0x7e9   : > { %v9625_v2 = vpop.eup %9624 }
 0x7ea   : > { %v9627_v63 = vpop.eup %9626 }
 0x7eb   : > { %v9629_v48 = vpop.eup %9628 }
 0x820   : > { %v2193_v10 = vpop.xlane.xlu0 %2192 }
 0x821   : > { %v2198_v47 = vrot.slane %v2193_v10, %v11687_v14  ;;  %v2202_v53 = vrot.slane %v2193_v10, %v11792_v25  ;;  %v2206_v4 = vrot.slane %v2193_v10, %v11797_v28  ;;  %v2210_v59 = vrot.slane %v2193_v10, %v11802_v30 }
 0x822   : > { %v2214_v27 = vrot.slane %v2193_v10, %v11807_v32  ;;  %v2218_v44 = vrot.slane %v2193_v10, %v11812_v34  ;;  %v2222_v42 = vrot.slane %v2193_v10, %v11817_v36  ;;  %v2226_v43 = vrot.slane %v2193_v10, %v11822_v38 }
 0x823   : > { %9630 = vrcp.f32 %v2198_v47  ;;  %v2815_v47 = vadd.f32 1.0, %v9621_v0 }
 0x824   : > { %9632 = vrcp.f32 %v2202_v53 }
 0x825   : > { %9634 = vrcp.f32 %v2206_v4  ;;  %v12068_v4 = vpop.permute.xlu0 %2866 }
 0x826   : > { %9636 = vrcp.f32 %v2210_v59 }
 0x827   : > { %9638 = vrcp.f32 %v2214_v27 }
 0x828   : > { %9640 = vrcp.f32 %v2218_v44  ;;  %v12071_v44 = vpop.permute.xlu1 %2873 }
 0x829   : > { %9642 = vrcp.f32 %v2222_v42 }
 0x82a   : > { %9644 = vrcp.f32 %v2226_v43 }
 0x82b   : > { %9646 = vrcp.f32 %v2812_v50 }
 0x82c   : > { %9648 = vrcp.f32 %v2813_v24 }
 0x82d   : > { %v9631_v21 = vpop.eup %9630  ;;  %9650 = vrcp.f32 %v2814_v58 }
 0x82e   : > { %v9633_v45 = vpop.eup %9632  ;;  %v2236_v10 = vmul.f32 %v9631_v21, %v11956_v55  ;;  %9652 = vrcp.f32 %v2815_v47 }
 0x82f   : > { %v9635_v53 = vpop.eup %9634  ;;  %v2238_v59 = vmul.f32 %v9633_v45, %v11961_v7 }
 0x830   : > { %v9637_v27 = vpop.eup %9636  ;;  %v2897_v60 = vmul.f32 %v12051_v6, %v2236_v10  ;;  %v2240_v42 = vmul.f32 %v9635_v53, %v11972_v57 }
 0x831   : > { %v9639_v35 = vpop.eup %9638  ;;  %v2898_v43 = vmul.f32 %v12053_v56, %v2238_v59  ;;  %v2242_v31 = vmul.f32 %v9637_v27, %v11977_v39  ;;  %v12090_v59 = vpop.permute.xlu0 %2880 }
 0x832   : > { %v9641_v55 = vpop.eup %9640  ;;  %v12077_v0 = vmul.f32 %v9623_v37, %v2897_v60  ;;  %v2899_v50 = vmul.f32 %v12060_v13, %v2240_v42  ;;  %v2244_v7 = vmul.f32 %v9639_v35, %v11984_v40 }
 0x833   : > { %v9643_v24 = vpop.eup %9642  ;;  %v12081_v21 = vmul.f32 %v9625_v2, %v2898_v43  ;;  %v2900_v45 = vmul.f32 %v12065_v46, %v2242_v31  ;;  %v2246_v57 = vmul.f32 %v9641_v55, %v11989_v51  ;;  %v12097_v51 = vpop.permute.xlu1 %2887 }
 0x834   : > { %v9645_v10 = vpop.eup %9644  ;;  %v2988_v53 = vand.u32 2147483647, %v12077_v0  ;;  %v12086_v39 = vmul.f32 %v9627_v63, %v2899_v50  ;;  %v2901_v37 = vmul.f32 %v12068_v4, %v2244_v7  ;;  %v2248_v58 = vmul.f32 %v9643_v24, %v11996_v54 }
 0x835   : > { %v2989_v40 = vand.u32 2147483647, %v12081_v21  ;;  %v12093_v47 = vmul.f32 %v9629_v48, %v2900_v45  ;;  %v2902_v2 = vmul.f32 %v12071_v44, %v2246_v57  ;;  %v2250_v27 = vmul.f32 %v9645_v10, %v11999_v1  ;;  %v9647_v42 = vpop.eup %9646 }
 0x836   : > { %3005 = vperm.xlu0 %9554, %v2988_v53   ;;  %v9649_v63 = vpop.eup %9648  ;;  %v2990_v35 = vand.u32 2147483647, %v12086_v39  ;;  %v12100_v31 = vmul.f32 %v9647_v42, %v2901_v37  ;;  %v2903_v54 = vmul.f32 %v12090_v59, %v2248_v58 }
 0x837   : > { %3008 = vperm.xlu1 %9555, %v2989_v40   ;;  %v2991_v55 = vand.u32 2147483647, %v12093_v47  ;;  %v12104_v48 = vmul.f32 %v9649_v63, %v2902_v2  ;;  %v2904_v7 = vmul.f32 %v12097_v51, %v2250_v27  ;;  %v9651_v1 = vpop.eup %9650 }
 0x838   : > { %v9653_v24 = vpop.eup %9652  ;;  %v2992_v57 = vand.u32 2147483647, %v12100_v31  ;;  %v12108_v10 = vmul.f32 %v9651_v1, %v2903_v54 }
 0x839   : > { %v2993_v53 = vand.u32 2147483647, %v12104_v48  ;;  %v12111_v40 = vmul.f32 %v9653_v24, %v2904_v7 }
 0x83a   : > { %3011 = vperm.xlu0 %9554, %v2990_v35   ;;  %v2994_v58 = vand.u32 2147483647, %v12108_v10 }
 0x83b   : > { %3014 = vperm.xlu1 %9555, %v2991_v55   ;;  %v2995_v42 = vand.u32 2147483647, %v12111_v40 }
 0x83e   : > { %3017 = vperm.xlu0 %9554, %v2992_v57  }
 0x83f   : > { %3020 = vperm.xlu1 %9555, %v2993_v53  }
 0x842   : > { %3023 = vperm.xlu0 %9554, %v2994_v58  }
 0x843   : > { %3026 = vperm.xlu1 %9555, %v2995_v42  }
 0x846   : > { %2914 = vperm.xlu0 %9554, %v2897_v60  }
 0x847   : > { %2917 = vperm.xlu1 %9555, %v2898_v43  }
 0x84a   : > { %2920 = vperm.xlu0 %9554, %v2899_v50  }
 0x84b   : > { %2923 = vperm.xlu1 %9555, %v2900_v45  }
 0x84e   : > { %2926 = vperm.xlu0 %9554, %v2901_v37  }
 0x84f   : > { %2929 = vperm.xlu1 %9555, %v2902_v2  }
 0x852   : > { %2932 = vperm.xlu0 %9554, %v2903_v54  }
 0x853   : > { %2935 = vperm.xlu1 %9555, %v2904_v7  }
 0x8b5   : > { %v3006_v27 = vpop.permute.xlu0 %3005 }
 0x8b6   : > { %v3009_v63 = vpop.permute.xlu1 %3008  ;;  %v3031_v35 = vrot.slane %v3006_v27, %v11891_v23 }
 0x8b7   : > { %v3035_v55 = vrot.slane %v3009_v63, %v11891_v23 }
 0x8b9   : > { %v3012_v1 = vpop.permute.xlu0 %3011  ;;  %v3060_v53 = vsel %vm1921_vm14, %v3035_v55, %v3031_v35 }
 0x8ba   : > { %v3039_v24 = vrot.slane %v3012_v1, %v11891_v23  ;;  %v3015_v57 = vpop.permute.xlu1 %3014 }
 0x8bb   : > { %v3043_v60 = vrot.slane %v3015_v57, %v11891_v23 }
 0x8bc   : > { %v3061_v43 = vsel %vm1923_vm15, %v3039_v24, %v3060_v53 }
 0x8bd   : > { %v3018_v50 = vpop.permute.xlu0 %3017  ;;  %v3062_v2 = vsel %vm1925_vm1, %v3043_v60, %v3061_v43 }
 0x8be   : > { %v3047_v45 = vrot.slane %v3018_v50, %v11891_v23  ;;  %v3021_v37 = vpop.permute.xlu1 %3020 }
 0x8bf   : > { %v3051_v54 = vrot.slane %v3021_v37, %v11891_v23 }
 0x8c0   : > { %v3063_v7 = vsel %vm1927_vm2, %v3047_v45, %v3062_v2 }
 0x8c1   : > { %v3024_v58 = vpop.permute.xlu0 %3023  ;;  %v3064_v35 = vsel %vm1929_vm4, %v3051_v54, %v3063_v7 }
 0x8c2   : > { %v3055_v42 = vrot.slane %v3024_v58, %v11891_v23  ;;  %v3027_v27 = vpop.permute.xlu1 %3026 }
 0x8c3   : > { %v3059_v63 = vrot.slane %v3027_v27, %v11891_v23 }
 0x8c4   : > { %v3065_v55 = vsel %vm13510_vm5, %v3055_v42, %v3064_v35 }
 0x8c5   : > { %v2915_v1 = vpop.permute.xlu0 %2914  ;;  %v3066_v24 = vsel %vm13509_vm6, %v3059_v63, %v3065_v55 }
 0x8c6   : > { %v2918_v57 = vpop.permute.xlu1 %2917  ;;  %v3068_v53 = vsel %vm13508_vm13, %v3066_v24, 0.0  ;;  %v2940_v60 = vrot.slane %v2915_v1, %v11891_v23 }
 0x8c7   : > { %v2944_v43 = vrot.slane %v2918_v57, %v11891_v23  ;;  %3069 = vadd.xlane.f32.xlu0 %v3068_v53 }
 0x8c9   : > { %v2921_v50 = vpop.permute.xlu0 %2920  ;;  %v2969_v2 = vsel %vm1921_vm14, %v2944_v43, %v2940_v60 }
 0x8ca   : > { %v2948_v45 = vrot.slane %v2921_v50, %v11891_v23  ;;  %v2924_v37 = vpop.permute.xlu1 %2923 }
 0x8cb   : > { %v2952_v54 = vrot.slane %v2924_v37, %v11891_v23 }
 0x8cc   : > { %v2970_v7 = vsel %vm1923_vm15, %v2948_v45, %v2969_v2 }
 0x8cd   : > { %v2927_v58 = vpop.permute.xlu0 %2926  ;;  %v2971_v63 = vsel %vm1925_vm1, %v2952_v54, %v2970_v7 }
 0x8ce   : > { %v2956_v42 = vrot.slane %v2927_v58, %v11891_v23  ;;  %v2930_v27 = vpop.permute.xlu1 %2929 }
 0x8cf   : > { %v2960_v35 = vrot.slane %v2930_v27, %v11891_v23 }
 0x8d0   : > { %v2972_v55 = vsel %vm1927_vm2, %v2956_v42, %v2971_v63 }
 0x8d1   : > { %v2933_v1 = vpop.permute.xlu0 %2932  ;;  %v2973_v60 = vsel %vm1929_vm4, %v2960_v35, %v2972_v55 }
 0x8d2   : > { %v2964_v24 = vrot.slane %v2933_v1, %v11891_v23  ;;  %v2936_v57 = vpop.permute.xlu1 %2935 }
 0x8d3   : > { %v2968_v53 = vrot.slane %v2936_v57, %v11891_v23 }
 0x8d4   : > { %v2974_v43 = vsel %vm13510_vm5, %v2964_v24, %v2973_v60 }
 0x8d5   : > { %v2975_v50 = vsel %vm13509_vm6, %v2968_v53, %v2974_v43 }
 0x8d6   : > { %v2977_v45 = vsel %vm13508_vm13, %v2975_v50, 0.0 }
 0x8d7   : > { %2978 = vadd.xlane.f32.xlu1 %v2977_v45 }
 0x954   : > { %v3070_v37 = vpop.xlane.xlu0 %3069 }
 0x955   : > { %v3071_v2 = vmax.f32 %v3070_v37, 1e-12 }
 0x957   : > { %v3080_v54 = vrot.slane %v3071_v2, %v11792_v25  ;;  %v3076_v7 = vrot.slane %v3071_v2, %v11687_v14  ;;  %v3088_v58 = vrot.slane %v3071_v2, %v11802_v30  ;;  %v3084_v42 = vrot.slane %v3071_v2, %v11797_v28 }
 0x958   : > { %v3096_v27 = vrot.slane %v3071_v2, %v11812_v34  ;;  %v3092_v63 = vrot.slane %v3071_v2, %v11807_v32  ;;  %v3104_v35 = vrot.slane %v3071_v2, %v11822_v38  ;;  %v3100_v55 = vrot.slane %v3071_v2, %v11817_v36 }
 0x959   : > { %9654 = vrcp.f32 %v3080_v54 }
 0x95a   : > { %9656 = vrcp.f32 %v3076_v7 }
 0x95b   : > { %9658 = vrcp.f32 %v3088_v58 }
 0x95c   : > { %9660 = vrcp.f32 %v3084_v42 }
 0x95d   : > { %9662 = vrcp.f32 %v3096_v27 }
 0x95e   : > { %9664 = vrcp.f32 %v3092_v63 }
 0x95f   : > { %9666 = vrcp.f32 %v3104_v35 }
 0x960   : > { %9668 = vrcp.f32 %v3100_v55 }
 0x963   : > { %v9655_v1 = vpop.eup %9654 }
 0x964   : > { %v9657_v24 = vpop.eup %9656  ;;  %v2979_v57 = vpop.xlane.xlu1 %2978  ;;  %v3116_v53 = vmul.f32 %v9655_v1, %v12081_v21 }
 0x965   : > { %v9659_v60 = vpop.eup %9658  ;;  %v3137_v43 = vrot.slane %v2979_v57, %v11792_v25  ;;  %v3114_v50 = vmul.f32 %v9657_v24, %v12077_v0  ;;  %v3133_v45 = vrot.slane %v2979_v57, %v11687_v14  ;;  %v3145_v37 = vrot.slane %v2979_v57, %v11802_v30 }
 0x966   : > { %v9661_v54 = vpop.eup %9660  ;;  %v3120_v2 = vmul.f32 %v9659_v60, %v12093_v47  ;;  %v3141_v7 = vrot.slane %v2979_v57, %v11797_v28  ;;  %v3153_v0 = vrot.slane %v2979_v57, %v11812_v34  ;;  %v3149_v1 = vrot.slane %v2979_v57, %v11807_v32 }
 0x967   : > { %v9663_v58 = vpop.eup %9662  ;;  %v3171_v42 = vmul.f32 %v3137_v43, %v3116_v53  ;;  %v3170_v27 = vmul.f32 %v3133_v45, %v3114_v50  ;;  %v3118_v63 = vmul.f32 %v9661_v54, %v12086_v39  ;;  %v3161_v50 = vrot.slane %v2979_v57, %v11822_v38 }
 0x968   : > { %v9665_v21 = vpop.eup %9664  ;;  %v3173_v35 = vmul.f32 %v3145_v37, %v3120_v2  ;;  %v3124_v55 = vmul.f32 %v9663_v58, %v12104_v48  ;;  %v3157_v45 = vrot.slane %v2979_v57, %v11817_v36 }
 0x969   : > { %v9667_v24 = vpop.eup %9666  ;;  %v12167_v18 = vadd.f32 %v3171_v42, %v11941_v16  ;;  %v12170_v47 = vadd.f32 %v3170_v27, %v11931_v49  ;;  %v3172_v60 = vmul.f32 %v3141_v7, %v3118_v63  ;;  %v3122_v53 = vmul.f32 %v9665_v21, %v12100_v31 }
 0x96a   : > { %v9669_v43 = vpop.eup %9668  ;;  %v12176_v39 = vadd.f32 %v3173_v35, %v11951_v41  ;;  %v3175_v48 = vmul.f32 %v3153_v0, %v3124_v55  ;;  %v3128_v2 = vmul.f32 %v9667_v24, %v12111_v40 }
 0x96b   : > { %3198 = vperm.xlu1 %9555, %v12167_v18   ;;  %3195 = vperm.xlu0 %9554, %v12170_v47   ;;  %v12181_v37 = vadd.f32 %v3172_v60, %v11947_v33  ;;  %v3174_v54 = vmul.f32 %v3149_v1, %v3122_v53  ;;  %v3126_v31 = vmul.f32 %v9669_v43, %v12108_v10 }
 0x96c   : > { %v12188_v7 = vadd.f32 %v3175_v48, %v11969_v26  ;;  %v3177_v42 = vmul.f32 %v3161_v50, %v3128_v2 }
 0x96d   : > { %v12191_v58 = vadd.f32 %v3174_v54, %v11966_v29  ;;  %v3176_v57 = vmul.f32 %v3157_v45, %v3126_v31 }
 0x96e   : > { %v12196_v40 = vadd.f32 %v3177_v42, %v11991_v52 }
 0x96f   : > { %3204 = vperm.xlu1 %9555, %v12176_v39   ;;  %3201 = vperm.xlu0 %9554, %v12181_v37   ;;  %v12199_v10 = vadd.f32 %v3176_v57, %v11986_v62 }
 0x973   : > { %3210 = vperm.xlu1 %9555, %v12188_v7   ;;  %3207 = vperm.xlu0 %9554, %v12191_v58  }
 0x977   : > { %3216 = vperm.xlu1 %9555, %v12196_v40   ;;  %3213 = vperm.xlu0 %9554, %v12199_v10  }
 0x9ea   : > { %v3199_v27 = vpop.permute.xlu1 %3198  ;;  %v3196_v63 = vpop.permute.xlu0 %3195 }
 0x9eb   : > { %v3225_v21 = vrot.slane %v3199_v27, %v11891_v23  ;;  %v3221_v35 = vrot.slane %v3196_v63, %v11891_v23 }
 0x9ed   : > { %v3250_v24 = vsel %vm1921_vm14, %v3225_v21, %v3221_v35 }
 0x9ee   : > { %v3205_v55 = vpop.permute.xlu1 %3204  ;;  %v3202_v0 = vpop.permute.xlu0 %3201 }
 0x9ef   : > { %v3229_v1 = vrot.slane %v3202_v0, %v11891_v23  ;;  %v3233_v60 = vrot.slane %v3205_v55, %v11891_v23  ;;  %v8568_v0 = vld [vmem:[#allocation32] ss:$0 sm:$0xff] }
 0x9f1   : > { %v3251_v53 = vsel %vm1923_vm15, %v3229_v1, %v3250_v24 }
 0x9f2   : > { %v3211_v43 = vpop.permute.xlu1 %3210  ;;  %v3208_v48 = vpop.permute.xlu0 %3207  ;;  %v3252_v54 = vsel %vm1925_vm1, %v3233_v60, %v3251_v53 }
 0x9f3   : > { %v3237_v50 = vrot.slane %v3208_v48, %v11891_v23  ;;  %v3241_v45 = vrot.slane %v3211_v43, %v11891_v23 }
 0x9f5   : > { %v3253_v2 = vsel %vm1927_vm2, %v3237_v50, %v3252_v54 }
 0x9f6   : > { %v3217_v31 = vpop.permute.xlu1 %3216  ;;  %v3214_v42 = vpop.permute.xlu0 %3213  ;;  %v3254_v63 = vsel %vm1929_vm4, %v3241_v45, %v3253_v2 }
 0x9f7   : > { %v3249_v57 = vrot.slane %v3217_v31, %v11891_v23  ;;  %v3245_v27 = vrot.slane %v3214_v42, %v11891_v23 }
 0x9f9   : > { %v3255_v21 = vsel %vm13510_vm5, %v3245_v27, %v3254_v63 }
 0x9fa   : > { %v3256_v35 = vsel %vm13509_vm6, %v3249_v57, %v3255_v21 }
 0x9fb   : > { %v3258_v55 = vsel %vm13508_vm13, %v3256_v35, 0.0 }
 0x9fc   : > { %3259 = vadd.xlane.f32.xlu0 %v3258_v55 }
 0xa12   : > { %4032 = vperm.xlu0 %9554, %v8568_v0  }
 0xa89   : > { %v3260_v1 = vpop.xlane.xlu0 %3259 }
 0xa8a   : > { %v3265_v24 = vrot.slane %v3260_v1, %v11687_v14  ;;  %v3269_v60 = vrot.slane %v3260_v1, %v11792_v25  ;;  %v3273_v53 = vrot.slane %v3260_v1, %v11797_v28  ;;  %v3277_v43 = vrot.slane %v3260_v1, %v11802_v30 }
 0xa8b   : > { %v3281_v50 = vrot.slane %v3260_v1, %v11807_v32  ;;  %v3285_v2 = vrot.slane %v3260_v1, %v11812_v34  ;;  %v3289_v57 = vrot.slane %v3260_v1, %v11817_v36  ;;  %v3293_v63 = vrot.slane %v3260_v1, %v11822_v38  ;;  %v3319_v1 = vld [vmem:[#allocation22] sm:$0xf] }
 0xa8c   : > { %9670 = vrcp.f32 %v3265_v24  ;;  %8929 = vmatpush3.msk.msra.mxu0 %vm13473_vm9, %v3319_v1 }
 0xa8d   : > { %9672 = vrcp.f32 %v3269_v60 }
 0xa8e   : > { %9674 = vrcp.f32 %v3273_v53  ;;  %v3318_v53 = vld [vmem:[#allocation20] sm:$0xf] }
 0xa8f   : > { %9676 = vrcp.f32 %v3277_v43 }
 0xa90   : > { %9678 = vrcp.f32 %v3281_v50 }
 0xa91   : > { %9680 = vrcp.f32 %v3285_v2 }
 0xa92   : > { %9682 = vrcp.f32 %v3289_v57 }
 0xa93   : > { %9684 = vrcp.f32 %v3293_v63 }
 0xa96   : > { %v9671_v48 = vpop.eup %9670 }
 0xa97   : > { %v12225_v45 = vmul.f32 %v9671_v48, %v12170_v47  ;;  %v9673_v54 = vpop.eup %9672 }
 0xa98   : > { %v12230_v31 = vmul.f32 %v9673_v54, %v12167_v18  ;;  %v9675_v42 = vpop.eup %9674 }
 0xa99   : > { %3408 = vperm.xlu1 %9555, %v12225_v45   ;;  %v12235_v27 = vmul.f32 %v9675_v42, %v12181_v37  ;;  %v9677_v47 = vpop.eup %9676 }
 0xa9a   : > { %v12240_v21 = vmul.f32 %v9677_v47, %v12176_v39  ;;  %v9679_v18 = vpop.eup %9678 }
 0xa9b   : > { %v12244_v35 = vmul.f32 %v9679_v18, %v12191_v58  ;;  %v9681_v55 = vpop.eup %9680  ;;  %v13641_v58 = vmov 0.0  }
 0xa9c   : > { %v12248_v37 = vmul.f32 %v9681_v55, %v12188_v7  ;;  %v9683_v0 = vpop.eup %9682  ;;  %8933 = vmatprep.subr.mxu0 %v13641_v58  ;;  %v1222_v7 = vld [vmem:[%s1027_s18] sm:$0xff]  ;;  %8930 = vmatprep.mubr.msk.f32.mxu0 %vm10772_vm11, %v13641_v58 }
 0xa9d   : > { %3411 = vperm.xlu1 %9555, %v12230_v31   ;;  %v12252_v39 = vmul.f32 %v9683_v0, %v12199_v10  ;;  %v9685_v24 = vpop.eup %9684  ;;  %8931 = vmatmul.mubr.msk.f32.vlgmr.msra.gmra.mrb[10].mxu0 %vm13505_vm10, %v1222_v7 }
 0xa9e   : > { %v12258_v60 = vmul.f32 %v9685_v24, %v12196_v40  ;;  %8934 = vmatpush3.msk.msra.mxu0 %vm13473_vm9, %v3318_v53  ;;  %8935 = vmatprep.mubr.msk.f32.mxu0 %vm10772_vm11, %v13641_v58 }
 0xaa1   : > { %3414 = vperm.xlu1 %9555, %v12235_v27  }
 0xaa5   : > { %3417 = vperm.xlu1 %9555, %v12240_v21  }
 0xaa9   : > { %3420 = vperm.xlu1 %9555, %v12244_v35  }
 0xaad   : > { %3423 = vperm.xlu1 %9555, %v12248_v37  }
 0xab1   : > { %3426 = vperm.xlu1 %9555, %v12252_v39  }
 0xab5   : > { %3429 = vperm.xlu1 %9555, %v12258_v60  }
 0xb18   : > { %v3409_v10 = vpop.permute.xlu1 %3408 }
 0xb19   : > { %v3434_v57 = vrot.slane %v3409_v10, %v11891_v23 }
 0xb1c   : > { %v3412_v40 = vpop.permute.xlu1 %3411 }
 0xb1d   : > { %v3438_v2 = vrot.slane %v3412_v40, %v11891_v23 }
 0xb1f   : > { %v3463_v55 = vsel %vm1921_vm14, %v3438_v2, %v3434_v57  ;;  %v3557_v57 = vld [vmem:[#allocation28] sm:$0xff] }
 0xb20   : > { %v3415_v43 = vpop.permute.xlu1 %3414  ;;  %8952 = vmatprep.subr.mxu1 %v3557_v57 }
 0xb21   : > { %v3442_v42 = vrot.slane %v3415_v43, %v11891_v23  ;;  %8953 = vmatpush3.msra.mxu1 %v3557_v57 }
 0xb23   : > { %v3464_v1 = vsel %vm1923_vm15, %v3442_v42, %v3463_v55  ;;  %v3555_v42 = vld [vmem:[#allocation25] sm:$0xf] }
 0xb24   : > { %v3418_v48 = vpop.permute.xlu1 %3417  ;;  %8938 = vmatprep.subr.msk.mxu0 %vm13473_vm9, %v3555_v42 }
 0xb25   : > { %v3446_v47 = vrot.slane %v3418_v48, %v11891_v23 }
 0xb27   : > { %v3465_v7 = vsel %vm1925_vm1, %v3446_v47, %v3464_v1  ;;  %v8547_v47 = vld [vmem:[#allocation23] ss:$0 sm:$0xff] }
 0xb28   : > { %v3421_v50 = vpop.permute.xlu1 %3420 }
 0xb29   : > { %v3450_v63 = vrot.slane %v3421_v50, %v11891_v23 }
 0xb2b   : > { %v3466_v53 = vsel %vm1927_vm2, %v3450_v63, %v3465_v7 }
 0xb2c   : > { %v3424_v54 = vpop.permute.xlu1 %3423 }
 0xb2d   : > { %v3454_v0 = vrot.slane %v3424_v54, %v11891_v23 }
 0xb2f   : > { %v3467_v10 = vsel %vm1929_vm4, %v3454_v0, %v3466_v53 }
 0xb30   : > { %v3427_v18 = vpop.permute.xlu1 %3426 }
 0xb31   : > { %v3458_v24 = vrot.slane %v3427_v18, %v11891_v23 }
 0xb33   : > { %v3468_v48 = vsel %vm13510_vm5, %v3458_v24, %v3467_v10 }
 0xb34   : > { %v3430_v40 = vpop.permute.xlu1 %3429 }
 0xb35   : > { %v3462_v43 = vrot.slane %v3430_v40, %v11891_v23 }
 0xb37   : > { %v3469_v50 = vsel %vm13509_vm6, %v3462_v43, %v3468_v48 }
 0xb38   : > { %8936 = vmatmul.mubr.msk.f32.vlgmr.msra.gmra.mrb[12].mxu0 %vm13505_vm10, %v3469_v50  ;;  %5046 = vst.msk [vmem:[%s12286_s26] sm:$0xff] %vm13508_vm13, %v3469_v50 }
 0xb39   : > { %8939 = vmatpush3.msk.msra.mxu0 %vm13473_vm9, %v3555_v42 }
 0xb3a   : > { %8966 = vmatprep.subr.mxu0 %v13641_v58 }
 0xb70   : > { %v3395_v54 = vpop.f32.mrb[10].mxu0 }
 0xb71   : > { %v8932_v2 = vpop.f32.mrb[11].mxu0 }
 0xc0b   : > { %v3541_v63 = vpop.f32.mrb[12].mxu0 }
 0xc0c   : > { %v3542_v18 = vadd.f32 %v3541_v63, %v3395_v54  ;;  %v8937_v55 = vpop.f32.mrb[13].mxu0 }
 0xc0e   : > { %v3551_v0 = vadd.f32 %v8547_v47, %v3542_v18 }
 0xc10   : > { %vm3552_vm12 = vcmp.gt.f32.partialorder %v3551_v0, 0.0  ;;  %v3553_v1 = vmul.f32 0.01, %v3551_v0 }
 0xc12   : > { %v12293_v24 = vsel %vm3552_vm12, %v3551_v0, %v3553_v1 }
 0xc13   : > { %13642 = vst [vmem:[#allocation75_spill] sm:$0xff] %v12293_v24  ;;  %v3569_v7 = vrot.slane %v12293_v24, %v11681_v5  ;;  %v3562_v53 = vcombine.high %v12293_v24, %v12293_v24 }
 0xc15   : > { %v3577_v40 = vcombine.high %v3569_v7, %v3569_v7  ;;  %v3585_v10 = vrot.slane %v3569_v7, %v11681_v5  ;;  %v3576_v43 = vrot.slane %v3562_v53, %v11681_v5 }
 0xc17   : > { %v3614_v48 = vrot.slane %v3585_v10, %v11687_v14  ;;  %v3599_v50 = vrot.slane %v3577_v40, %v11681_v5  ;;  %v3607_v54 = vcombine.high %v3585_v10, %v3585_v10  ;;  %v3592_v2 = vrot.slane %v3576_v43, %v11681_v5 }
 0xc18   : > { %v3578_v42 = vcombine.high %v3576_v43, %v3576_v43 }
 0xc19   : > { %v3651_v57 = vsub.f32 %v3614_v48, %v12293_v24  ;;  %v3618_v47 = vrot.slane %v3599_v50, %v11687_v14  ;;  %v3622_v63 = vrot.slane %v3607_v54, %v11687_v14  ;;  %v3609_v18 = vcombine.high %v3599_v50, %v3599_v50 }
 0xc1a   : > { %v3630_v55 = vrot.slane %v3592_v2, %v11687_v14  ;;  %v3606_v0 = vrot.slane %v3578_v42, %v11681_v5  ;;  %v3608_v1 = vcombine.high %v3592_v2, %v3592_v2 }
 0xc1b   : > { %v3659_v7 = vmul.f32 %v3651_v57, %v3651_v57  ;;  %v3652_v53 = vsub.f32 %v3618_v47, %v12293_v24  ;;  %v3653_v40 = vsub.f32 %v3622_v63, %v12293_v24  ;;  %v3626_v10 = vrot.slane %v3609_v18, %v11687_v14  ;;  %v9910_v57 = vld [vmem:[%s11624_s14] sm:$0xff] }
 0xc1c   : > { %v3634_v43 = vrot.slane %v3606_v0, %v11687_v14  ;;  %v3610_v3 = vcombine.high %v3606_v0, %v3606_v0  ;;  %v3655_v42 = vsub.f32 %v3630_v55, %v12293_v24  ;;  %v3638_v2 = vrot.slane %v3608_v1, %v11687_v14 }
 0xc1d   : > { %8940 = vmatprep.mubr.msk.f32.mxu0 %vm13505_vm10, %v3659_v7  ;;  %v3660_v48 = vmul.f32 %v3652_v53, %v3652_v53  ;;  %v3661_v54 = vmul.f32 %v3653_v40, %v3653_v40  ;;  %v3654_v50 = vsub.f32 %v3626_v10, %v12293_v24 }
 0xc1e   : > { %v3656_v63 = vsub.f32 %v3634_v43, %v12293_v24  ;;  %v3642_v18 = vrot.slane %v3610_v3, %v11687_v14  ;;  %v3663_v7 = vmul.f32 %v3655_v42, %v3655_v42  ;;  %v3657_v53 = vsub.f32 %v3638_v2, %v12293_v24  ;;  %v8548_v3 = vld [vmem:[#allocation26] ss:$0 sm:$0xff] }
 0xc1f   : > { %8941 = vmatmul.mubr.msk.f32.vlgmr.msra.gmra.mrb[14].mxu0 %vm13505_vm10, %v3660_v48  ;;  %v3662_v47 = vmul.f32 %v3654_v50, %v3654_v50 }
 0xc20   : > { %8943 = vmatprep.mubr.msk.f32.mxu0 %vm13505_vm10, %v3661_v54  ;;  %8967 = vmatpush3.msra.mxu0 %v9910_v57  ;;  %v3664_v55 = vmul.f32 %v3656_v63, %v3656_v63  ;;  %v3658_v0 = vsub.f32 %v3642_v18, %v12293_v24  ;;  %v3665_v1 = vmul.f32 %v3657_v53, %v3657_v53 }
 0xc22   : > { %v3666_v40 = vmul.f32 %v3658_v0, %v3658_v0 }
 0xc23   : > { %8944 = vmatmul.mubr.msk.f32.gmra.mrb[16].mxu0 %vm13505_vm10, %v3662_v47 }
 0xc24   : > { %8946 = vmatprep.mubr.msk.f32.mxu0 %vm13505_vm10, %v3663_v7 }
 0xc27   : > { %8947 = vmatmul.mubr.msk.f32.gmra.mrb[18].mxu0 %vm13505_vm10, %v3664_v55 }
 0xc28   : > { %8949 = vmatprep.mubr.msk.f32.mxu0 %vm13505_vm10, %v3665_v1 }
 0xc2b   : > { %8950 = vmatmul.mubr.msk.f32.gmra.mrb[20].mxu0 %vm13505_vm10, %v3666_v40 }
 0xc2c   : > { %8968 = vmatprep.mubr.msk.f32.mxu0 %vm10772_vm11, %v13641_v58 }
 0xcf2   : > { %v8942_v10 = vpop.f32.mrb[14].mxu0 }
 0xcf3   : > { %v3772_v43 = vadd.f32 %v8942_v10, %v8548_v3  ;;  %v3766_v48 = vpop.f32.mrb[15].mxu0 }
 0xcf4   : > { %v3767_v54 = vadd.f32 %v8548_v3, %v3766_v48 }
 0xcf5   : > { %v3814_v50 = vmul.f32 0.01, %v3772_v43  ;;  %vm3806_vm7 = vcmp.gt.f32.partialorder %v3772_v43, 0.0 }
 0xcf6   : > { %vm3805_vm8 = vcmp.gt.f32.partialorder %v3767_v54, 0.0  ;;  %v3813_v42 = vmul.f32 0.01, %v3767_v54  ;;  %v8945_v2 = vpop.f32.mrb[16].mxu0 }
 0xcf7   : > { %v3782_v57 = vadd.f32 %v8945_v2, %v8548_v3  ;;  %v3776_v47 = vpop.f32.mrb[17].mxu0  ;;  %v3822_v7 = vsel %vm3806_vm7, %v3772_v43, %v3814_v50 }
 0xcf8   : > { %v3777_v63 = vadd.f32 %v8548_v3, %v3776_v47  ;;  %v3821_v18 = vsel %vm3805_vm8, %v3767_v54, %v3813_v42 }
 0xcf9   : > { %v3816_v53 = vmul.f32 0.01, %v3782_v57  ;;  %8954 = vmatprep.mubr.msk.f32.mxu1 %vm13508_vm13, %v3821_v18  ;;  %vm3808_vm12 = vcmp.gt.f32.partialorder %v3782_v57, 0.0 }
 0xcfa   : > { %vm3807_vm9 = vcmp.gt.f32.partialorder %v3777_v63, 0.0  ;;  %v3815_v55 = vmul.f32 0.01, %v3777_v63  ;;  %v8948_v0 = vpop.f32.mrb[18].mxu0  ;;  %8955 = vmatmul.mubr.msk.f32.vlgmr.msra.gmra.mrb[22].mxu1 %vm13508_vm13, %v3822_v7 }
 0xcfb   : > { %v3792_v1 = vadd.f32 %v8948_v0, %v8548_v3  ;;  %v3786_v40 = vpop.f32.mrb[19].mxu0  ;;  %v3824_v2 = vsel %vm3808_vm12, %v3782_v57, %v3816_v53 }
 0xcfc   : > { %v3787_v10 = vadd.f32 %v8548_v3, %v3786_v40  ;;  %v3823_v48 = vsel %vm3807_vm9, %v3777_v63, %v3815_v55 }
 0xcfd   : > { %v3818_v12 = vmul.f32 0.01, %v3792_v1  ;;  %8957 = vmatprep.mubr.msk.f32.mxu1 %vm13508_vm13, %v3823_v48  ;;  %vm3810_vm3 = vcmp.gt.f32.partialorder %v3792_v1, 0.0 }
 0xcfe   : > { %vm3809_vm8 = vcmp.gt.f32.partialorder %v3787_v10, 0.0  ;;  %v3817_v43 = vmul.f32 0.01, %v3787_v10  ;;  %v8951_v54 = vpop.f32.mrb[20].mxu0  ;;  %8958 = vmatmul.mubr.msk.f32.gmra.mrb[24].mxu1 %vm13508_vm13, %v3824_v2 }
 0xcff   : > { %v3802_v50 = vadd.f32 %v8951_v54, %v8548_v3  ;;  %v3796_v42 = vpop.f32.mrb[21].mxu0  ;;  %v3826_v7 = vsel %vm3810_vm3, %v3792_v1, %v3818_v12  ;;  %v8567_v1 = vld [vmem:[#allocation31] ss:$0 sm:$0xff] }
 0xd00   : > { %v3797_v47 = vadd.f32 %v8548_v3, %v3796_v42  ;;  %v3825_v18 = vsel %vm3809_vm8, %v3787_v10, %v3817_v43  ;;  %v8558_v3 = vld [vmem:[#allocation29] ss:$0 sm:$0xff] }
 0xd01   : > { %v3820_v20 = vmul.f32 0.01, %v3802_v50  ;;  %8960 = vmatprep.mubr.msk.f32.mxu1 %vm13508_vm13, %v3825_v18  ;;  %vm3812_vm7 = vcmp.gt.f32.partialorder %v3802_v50, 0.0 }
 0xd02   : > { %vm3811_vm9 = vcmp.gt.f32.partialorder %v3797_v47, 0.0  ;;  %v3819_v63 = vmul.f32 0.01, %v3797_v47  ;;  %8961 = vmatmul.mubr.msk.f32.gmra.mrb[26].mxu1 %vm13508_vm13, %v3826_v7 }
 0xd03   : > { %v3828_v53 = vsel %vm3812_vm7, %v3802_v50, %v3820_v20 }
 0xd04   : > { %v3827_v57 = vsel %vm3811_vm9, %v3797_v47, %v3819_v63 }
 0xd05   : > { %8963 = vmatprep.mubr.msk.f32.mxu1 %vm13508_vm13, %v3827_v57 }
 0xd06   : > { %8964 = vmatmul.mubr.msk.f32.gmra.mrb[28].mxu1 %vm13508_vm13, %v3828_v53 }
 0xd07   : > { %8979 = vmatprep.mubr.msk.f32.mxu1 %vm10772_vm11, %v13641_v58 }
 0xdcd   : > { %v8956_v55 = vpop.f32.mrb[22].mxu1 }
 0xdce   : > { %v3931_v0 = vadd.f32 %v8956_v55, %v8558_v3  ;;  %v3925_v40 = vpop.f32.mrb[23].mxu1 }
 0xdcf   : > { %v3926_v10 = vadd.f32 %v8558_v3, %v3925_v40 }
 0xdd0   : > { %vm3965_vm3 = vcmp.gt.f32.partialorder %v3931_v0, 0.0  ;;  %v3973_v12 = vmul.f32 0.01, %v3931_v0 }
 0xdd1   : > { %vm3964_vm12 = vcmp.gt.f32.partialorder %v3926_v10, 0.0  ;;  %v3972_v48 = vmul.f32 0.01, %v3926_v10  ;;  %v8959_v2 = vpop.f32.mrb[24].mxu1 }
 0xdd2   : > { %v3941_v43 = vadd.f32 %v8959_v2, %v8558_v3  ;;  %v3935_v54 = vpop.f32.mrb[25].mxu1  ;;  %v3981_v42 = vsel %vm3965_vm3, %v3931_v0, %v3973_v12 }
 0xdd3   : > { %v3936_v20 = vadd.f32 %v8558_v3, %v3935_v54  ;;  %v3995_v50 = vmul.f32 %v8567_v1, %v3981_v42  ;;  %v3980_v47 = vsel %vm3964_vm12, %v3926_v10, %v3972_v48 }
 0xdd4   : > { %vm3967_vm8 = vcmp.gt.f32.partialorder %v3941_v43, 0.0  ;;  %v3975_v18 = vmul.f32 0.01, %v3941_v43  ;;  %v3994_v7 = vmul.f32 %v8567_v1, %v3980_v47 }
 0xdd5   : > { %vm3966_vm7 = vcmp.gt.f32.partialorder %v3936_v20, 0.0  ;;  %v3974_v63 = vmul.f32 0.01, %v3936_v20  ;;  %v8962_v57 = vpop.f32.mrb[26].mxu1  ;;  %v4005_v53 = vsel %vm13505_vm10, %v3995_v50, 0.0 }
 0xdd6   : > { %v3951_v55 = vadd.f32 %v8962_v57, %v8558_v3  ;;  %4006 = vadd.xlane.f32.xlu1 %v4005_v53  ;;  %v3945_v40 = vpop.f32.mrb[27].mxu1  ;;  %v4002_v17 = vsel %vm13505_vm10, %v3994_v7, 0.0  ;;  %v3983_v8 = vsel %vm3967_vm8, %v3941_v43, %v3975_v18  ;;  %v1223_v7 = vld [vmem:[%s1036_s16] sm:$0xff] }
 0xdd7   : > { %v3946_v2 = vadd.f32 %v8558_v3, %v3945_v40  ;;  %4003 = vadd.xlane.f32.xlu0 %v4002_v17  ;;  %v3997_v0 = vmul.f32 %v8567_v1, %v3983_v8  ;;  %v3982_v12 = vsel %vm3966_vm7, %v3936_v20, %v3974_v63  ;;  %v12348_v63 = vmul.f32 %v1223_v7, %v11782_v22 }
 0xdd8   : > { %vm3969_vm9 = vcmp.gt.f32.partialorder %v3951_v55, 0.0  ;;  %v3977_v10 = vmul.f32 0.01, %v3951_v55  ;;  %v3996_v47 = vmul.f32 %v8567_v1, %v3982_v12 }
 0xdd9   : > { %v8965_v48 = vpop.f32.mrb[28].mxu1  ;;  %v4011_v54 = vsel %vm13505_vm10, %v3997_v0, 0.0  ;;  %v3976_v19 = vmul.f32 0.01, %v3946_v2  ;;  %vm3968_vm3 = vcmp.gt.f32.partialorder %v3946_v2, 0.0  ;;  %v4099_v12 = vrot.slane %v12348_v63, %v11687_v14 }
 0xdda   : > { %v3955_v42 = vpop.f32.mrb[29].mxu1  ;;  %v3961_v50 = vadd.f32 %v8965_v48, %v8558_v3  ;;  %v3985_v57 = vsel %vm3969_vm9, %v3951_v55, %v3977_v10  ;;  %v4008_v43 = vsel %vm13505_vm10, %v3996_v47, 0.0  ;;  %v4148_v47 = vrot.slane %v12348_v63, %v11822_v38 }
 0xddb   : > { %4012 = vadd.xlane.f32.xlu0 %v4011_v54  ;;  %v3999_v18 = vmul.f32 %v8567_v1, %v3985_v57  ;;  %v3956_v8 = vadd.f32 %v8558_v3, %v3955_v42  ;;  %v3984_v20 = vsel %vm3968_vm3, %v3946_v2, %v3976_v19  ;;  %v4120_v19 = vrot.slane %v12348_v63, %v11802_v30 }
 0xddc   : > { %v3979_v17 = vmul.f32 0.01, %v3961_v50  ;;  %vm3971_vm12 = vcmp.gt.f32.partialorder %v3961_v50, 0.0  ;;  %v3998_v40 = vmul.f32 %v8567_v1, %v3984_v20  ;;  %v4134_v54 = vrot.slane %v12348_v63, %v11812_v34 }
 0xddd   : > { %v4017_v53 = vsel %vm13505_vm10, %v3999_v18, 0.0  ;;  %v3978_v0 = vmul.f32 0.01, %v3956_v8  ;;  %vm3970_vm8 = vcmp.gt.f32.partialorder %v3956_v8, 0.0  ;;  %v4127_v57 = vrot.slane %v12348_v63, %v11807_v32 }
 0xdde   : > { %v3987_v55 = vsel %vm3971_vm12, %v3961_v50, %v3979_v17  ;;  %v4014_v10 = vsel %vm13505_vm10, %v3998_v40, 0.0  ;;  %v4106_v50 = vrot.slane %v12348_v63, %v11792_v25  ;;  %v4141_v7 = vrot.slane %v12348_v63, %v11817_v36 }
 0xddf   : > { %4009 = vadd.xlane.f32.xlu0 %v4008_v43  ;;  %v4001_v48 = vmul.f32 %v8567_v1, %v3987_v55  ;;  %v3986_v3 = vsel %vm3970_vm8, %v3956_v8, %v3978_v0  ;;  %v4033_v43 = vpop.permute.xlu0 %4032  ;;  %vm13658_vm9 = vcmask 523264   ;;  %vm13659_vm3 = vcmask 1043456  }
 0xde0   : > { %v4000_v2 = vmul.f32 %v8567_v1, %v3986_v3  ;;  %v4113_v1 = vrot.slane %v12348_v63, %v11797_v28 }
 0xde1   : > { %v4023_v22 = vsel %vm13505_vm10, %v4001_v48, 0.0 }
 0xde2   : > { %v4020_v42 = vsel %vm13505_vm10, %v4000_v2, 0.0 }
 0xde3   : > { %4018 = vadd.xlane.f32.xlu0 %v4017_v53 }
 0xde7   : > { %4015 = vadd.xlane.f32.xlu0 %v4014_v10  ;;  %4101 = vbcast.lane.b32.xlu1 %v4099_v12, 256 }
 0xdeb   : > { %4024 = vadd.xlane.f32.xlu0 %v4023_v22  ;;  %4122 = vbcast.lane.b32.xlu1 %v4120_v19, 256 }
 0xdef   : > { %4021 = vadd.xlane.f32.xlu0 %v4020_v42  ;;  %4136 = vbcast.lane.b32.xlu1 %v4134_v54, 256 }
 0xdf3   : > { %4150 = vbcast.lane.b32.xlu1 %v4148_v47, 256 }
 0xe05   : > { %4108 = vbcast.lane.b32.xlu0 %v4106_v50, 256 }
 0xe09   : > { %4115 = vbcast.lane.b32.xlu0 %v4113_v1, 256 }
 0xe0d   : > { %4129 = vbcast.lane.b32.xlu0 %v4127_v57, 256 }
 0xe11   : > { %4143 = vbcast.lane.b32.xlu0 %v4141_v7, 256 }
 0xe63   : > { %v4007_v18 = vpop.xlane.xlu1 %4006 }
 0xe64   : > { %v4036_v17 = vadd.f32 %v4033_v43, %v4007_v18  ;;  %v4004_v8 = vpop.xlane.xlu0 %4003 }
 0xe65   : > { %v4035_v20 = vadd.f32 %v4033_v43, %v4004_v8 }
 0xe66   : > { %v8570_v53 = vmul.f32 -1.442695, %v4036_v17 }
 0xe67   : > { %v8569_v40 = vmul.f32 -1.442695, %v4035_v20 }
 0xe68   : > { %9686 = vpow2.f32 %v8570_v53  ;;  %v4013_v0 = vpop.xlane.xlu0 %4012 }
 0xe69   : > { %9688 = vpow2.f32 %v8569_v40  ;;  %v4038_v55 = vadd.f32 %v4033_v43, %v4013_v0 }
 0xe6b   : > { %v8572_v12 = vmul.f32 -1.442695, %v4038_v55 }
 0xe6c   : > { %v4010_v10 = vpop.xlane.xlu0 %4009 }
 0xe6d   : > { %9690 = vpow2.f32 %v8572_v12  ;;  %v4037_v48 = vadd.f32 %v4033_v43, %v4010_v10  ;;  %v4102_v12 = vpop.permute.xlu1 %4101 }
 0xe6f   : > { %v8571_v3 = vmul.f32 -1.442695, %v4037_v48 }
 0xe70   : > { %v4019_v19 = vpop.xlane.xlu0 %4018 }
 0xe71   : > { %9692 = vpow2.f32 %v8571_v3  ;;  %v4040_v22 = vadd.f32 %v4033_v43, %v4019_v19 }
 0xe72   : > { %v9687_v2 = vpop.eup %9686 }
 0xe73   : > { %v9689_v54 = vpop.eup %9688  ;;  %v4068_v42 = vadd.f32 1.0, %v9687_v2  ;;  %v8574_v47 = vmul.f32 -1.442695, %v4040_v22 }
 0xe74   : > { %v4067_v50 = vadd.f32 1.0, %v9689_v54  ;;  %v4016_v1 = vpop.xlane.xlu0 %4015 }
 0xe75   : > { %9694 = vrcp.f32 %v4068_v42  ;;  %v4039_v57 = vadd.f32 %v4033_v43, %v4016_v1 }
 0xe76   : > { %9696 = vrcp.f32 %v4067_v50  ;;  %v4123_v50 = vpop.permute.xlu1 %4122 }
 0xe77   : > { %v9691_v7 = vpop.eup %9690  ;;  %9698 = vpow2.f32 %v8574_v47  ;;  %v8573_v18 = vmul.f32 -1.442695, %v4039_v57 }
 0xe78   : > { %v4070_v17 = vadd.f32 1.0, %v9691_v7  ;;  %v4025_v8 = vpop.xlane.xlu0 %4024 }
 0xe79   : > { %9700 = vpow2.f32 %v8573_v18  ;;  %v4042_v20 = vadd.f32 %v4033_v43, %v4025_v8 }
 0xe7a   : > { %9702 = vrcp.f32 %v4070_v17 }
 0xe7b   : > { %v9693_v53 = vpop.eup %9692  ;;  %v8576_v40 = vmul.f32 -1.442695, %v4042_v20 }
 0xe7c   : > { %v4069_v0 = vadd.f32 1.0, %v9693_v53  ;;  %v4022_v55 = vpop.xlane.xlu0 %4021 }
 0xe7d   : > { %9704 = vpow2.f32 %v8576_v40  ;;  %v4041_v10 = vadd.f32 %v4033_v43, %v4022_v55 }
 0xe7e   : > { %9706 = vrcp.f32 %v4069_v0 }
 0xe7f   : > { %v9695_v48 = vpop.eup %9694  ;;  %v8575_v3 = vmul.f32 -1.442695, %v4041_v10 }
 0xe80   : > { %v9697_v19 = vpop.eup %9696  ;;  %v4109_v22 = vpop.permute.xlu0 %4108 }
 0xe81   : > { %v9699_v2 = vpop.eup %9698  ;;  %9708 = vpow2.f32 %v8575_v3  ;;  %v12370_v54 = vmul.f32 %v9697_v19, %v4102_v12  ;;  %v12372_v42 = vmul.f32 %v9695_v48, %v4109_v22  ;;  %v4137_v3 = vpop.permute.xlu1 %4136 }
 0xe82   : > { %v4072_v47 = vadd.f32 1.0, %v9699_v2 }
 0xe83   : > { %v9701_v1 = vpop.eup %9700  ;;  %v4168_v57 = vand.u32 2147483647, %v12370_v54  ;;  %v4169_v7 = vand.u32 2147483647, %v12372_v42 }
 0xe84   : > { %v9703_v18 = vpop.eup %9702  ;;  %9710 = vrcp.f32 %v4072_v47  ;;  %v4071_v43 = vadd.f32 1.0, %v9701_v1  ;;  %v4116_v8 = vpop.permute.xlu0 %4115 }
 0xe85   : > { %v12376_v17 = vmul.f32 %v9703_v18, %v4123_v50  ;;  %4185 = vperm.xlu0 %9554, %v4168_v57   ;;  %4188 = vperm.xlu1 %9555, %v4169_v7   ;;  %v4151_v57 = vpop.permute.xlu1 %4150 }
 0xe86   : > { %9712 = vrcp.f32 %v4071_v43 }
 0xe87   : > { %v9705_v20 = vpop.eup %9704  ;;  %v4171_v53 = vand.u32 2147483647, %v12376_v17 }
 0xe88   : > { %v9707_v40 = vpop.eup %9706  ;;  %v4074_v0 = vadd.f32 1.0, %v9705_v20  ;;  %v4130_v22 = vpop.permute.xlu0 %4129 }
 0xe89   : > { %v12379_v55 = vmul.f32 %v9707_v40, %v4116_v8  ;;  %4194 = vperm.xlu1 %9555, %v4171_v53  }
 0xe8a   : > { %9714 = vrcp.f32 %v4074_v0 }
 0xe8b   : > { %v9709_v12 = vpop.eup %9708  ;;  %v4170_v10 = vand.u32 2147483647, %v12379_v55 }
 0xe8c   : > { %v4073_v48 = vadd.f32 1.0, %v9709_v12  ;;  %v4144_v8 = vpop.permute.xlu0 %4143  ;;  %v4092_v12 = vsel %vm13508_vm13, %v12348_v63, 0.0 }
 0xe8d   : > { %4191 = vperm.xlu0 %9554, %v4170_v10  }
 0xe8e   : > { %v9711_v19 = vpop.eup %9710  ;;  %9716 = vrcp.f32 %v4073_v48 }
 0xe8f   : > { %v12382_v2 = vmul.f32 %v9711_v19, %v4137_v3 }
 0xe90   : > { %v9713_v47 = vpop.eup %9712 }
 0xe91   : > { %v4173_v50 = vand.u32 2147483647, %v12382_v2  ;;  %v12385_v1 = vmul.f32 %v9713_v47, %v4130_v22 }
 0xe93   : > { %v4172_v7 = vand.u32 2147483647, %v12385_v1  ;;  %4200 = vperm.xlu1 %9555, %v4173_v50  }
 0xe94   : > { %v9715_v18 = vpop.eup %9714 }
 0xe95   : > { %v12388_v43 = vmul.f32 %v9715_v18, %v4151_v57  ;;  %4197 = vperm.xlu0 %9554, %v4172_v7  }
 0xe97   : > { %v4175_v20 = vand.u32 2147483647, %v12388_v43 }
 0xe98   : > { %v9717_v53 = vpop.eup %9716 }
 0xe99   : > { %v12391_v40 = vmul.f32 %v9717_v53, %v4144_v8  ;;  %4206 = vperm.xlu1 %9555, %v4175_v20  }
 0xe9b   : > { %v4174_v0 = vand.u32 2147483647, %v12391_v40 }
 0xe9d   : > { %4203 = vperm.xlu0 %9554, %v4174_v0  }
 0xebd   : > { %4093 = vadd.xlane.f32.xlu1 %v4092_v12 }
 0xf04   : > { %v4186_v10 = vpop.permute.xlu0 %4185  ;;  %v4189_v48 = vpop.permute.xlu1 %4188 }
 0xf05   : > { %v4215_v19 = vrot.slane %v4189_v48, %v11891_v23  ;;  %v4211_v22 = vrot.slane %v4186_v10, %v11891_v23 }
 0xf07   : > { %v4240_v7 = vsel %vm1921_vm14, %v4215_v19, %v4211_v22 }
 0xf08   : > { %v4195_v47 = vpop.permute.xlu1 %4194 }
 0xf09   : > { %v4223_v63 = vrot.slane %v4195_v47, %v11891_v23 }
 0xf0c   : > { %v4192_v3 = vpop.permute.xlu0 %4191 }
 0xf0d   : > { %v4219_v50 = vrot.slane %v4192_v3, %v11891_v23 }
 0xf0f   : > { %v4241_v18 = vsel %vm1923_vm15, %v4219_v50, %v4240_v7 }
 0xf10   : > { %v4242_v53 = vsel %vm1925_vm1, %v4223_v63, %v4241_v18 }
 0xf12   : > { %v4201_v8 = vpop.permute.xlu1 %4200 }
 0xf13   : > { %v4231_v10 = vrot.slane %v4201_v8, %v11891_v23 }
 0xf14   : > { %v4198_v57 = vpop.permute.xlu0 %4197 }
 0xf15   : > { %v4227_v20 = vrot.slane %v4198_v57, %v11891_v23 }
 0xf17   : > { %v4243_v0 = vsel %vm1927_vm2, %v4227_v20, %v4242_v53 }
 0xf18   : > { %v4207_v12 = vpop.permute.xlu1 %4206  ;;  %v4244_v19 = vsel %vm1929_vm4, %v4231_v10, %v4243_v0 }
 0xf19   : > { %v4239_v15 = vrot.slane %v4207_v12, %v11891_v23 }
 0xf1c   : > { %v4204_v48 = vpop.permute.xlu0 %4203 }
 0xf1d   : > { %v4235_v3 = vrot.slane %v4204_v48, %v11891_v23 }
 0xf1f   : > { %v4245_v22 = vsel %vm13510_vm5, %v4235_v3, %v4244_v19 }
 0xf20   : > { %v4246_v50 = vsel %vm13509_vm6, %v4239_v15, %v4245_v22 }
 0xf21   : > { %v4248_v47 = vsel %vm13508_vm13, %v4246_v50, 0.0 }
 0xf22   : > { %4249 = vadd.xlane.f32.xlu0 %v4248_v47 }
 0xf4a   : > { %v4094_v10 = vpop.xlane.xlu1 %4093 }
 0xf4b   : > { %v4317_v48 = vrot.slane %v4094_v10, %v11792_v25  ;;  %v4313_v19 = vrot.slane %v4094_v10, %v11687_v14  ;;  %v4325_v47 = vrot.slane %v4094_v10, %v11802_v30  ;;  %v4333_v9 = vrot.slane %v4094_v10, %v11812_v34 }
 0xfaf   : > { %v4250_v57 = vpop.xlane.xlu0 %4249 }
 0xfb0   : > { %v4251_v7 = vmax.f32 %v4250_v57, 1e-12 }
 0xfb2   : > { %v4260_v18 = vrot.slane %v4251_v7, %v11792_v25  ;;  %v4256_v8 = vrot.slane %v4251_v7, %v11687_v14  ;;  %v4268_v20 = vrot.slane %v4251_v7, %v11802_v30  ;;  %v4264_v63 = vrot.slane %v4251_v7, %v11797_v28 }
 0xfb3   : > { %v4276_v53 = vrot.slane %v4251_v7, %v11812_v34  ;;  %v4272_v0 = vrot.slane %v4251_v7, %v11807_v32  ;;  %v4284_v15 = vrot.slane %v4251_v7, %v11822_v38  ;;  %v4280_v12 = vrot.slane %v4251_v7, %v11817_v36 }
 0xfb4   : > { %9718 = vrcp.f32 %v4260_v18  ;;  %v4321_v7 = vrot.slane %v4094_v10, %v11797_v28 }
 0xfb5   : > { %9720 = vrcp.f32 %v4256_v8 }
 0xfb6   : > { %9722 = vrcp.f32 %v4268_v20 }
 0xfb7   : > { %9724 = vrcp.f32 %v4264_v63 }
 0xfb8   : > { %9726 = vrcp.f32 %v4276_v53 }
 0xfb9   : > { %9728 = vrcp.f32 %v4272_v0 }
 0xfba   : > { %9730 = vrcp.f32 %v4284_v15 }
 0xfbb   : > { %9732 = vrcp.f32 %v4280_v12 }
 0xfbe   : > { %v9719_v3 = vpop.eup %9718 }
 0xfbf   : > { %v9721_v22 = vpop.eup %9720  ;;  %v4296_v50 = vmul.f32 %v9719_v3, %v12372_v42 }
 0xfc0   : > { %v9723_v57 = vpop.eup %9722  ;;  %v4294_v18 = vmul.f32 %v9721_v22, %v12370_v54 }
 0xfc1   : > { %v9725_v8 = vpop.eup %9724  ;;  %v4351_v20 = vmul.f32 %v4317_v48, %v4296_v50  ;;  %v4300_v63 = vmul.f32 %v9723_v57, %v12376_v17  ;;  %v4341_v57 = vrot.slane %v4094_v10, %v11822_v38 }
 0xfc2   : > { %v9727_v53 = vpop.eup %9726  ;;  %v4350_v0 = vmul.f32 %v4313_v19, %v4294_v18  ;;  %v4298_v15 = vmul.f32 %v9725_v8, %v12379_v55  ;;  %v4329_v19 = vrot.slane %v4094_v10, %v11807_v32  ;;  %v4337_v8 = vrot.slane %v4094_v10, %v11817_v36 }
 0xfc3   : > { %v9729_v12 = vpop.eup %9728  ;;  %v12429_v11 = vadd.f32 %v4351_v20, %v11941_v16  ;;  %v4353_v42 = vmul.f32 %v4325_v47, %v4300_v63  ;;  %v4304_v3 = vmul.f32 %v9727_v53, %v12382_v2 }
 0xfc4   : > { %v9731_v54 = vpop.eup %9730  ;;  %v12434_v22 = vadd.f32 %v4350_v0, %v11931_v49  ;;  %v4352_v48 = vmul.f32 %v4321_v7, %v4298_v15  ;;  %v4302_v17 = vmul.f32 %v9729_v12, %v12385_v1 }
 0xfc5   : > { %v9733_v50 = vpop.eup %9732  ;;  %4378 = vperm.xlu1 %9555, %v12429_v11   ;;  %v12441_v55 = vadd.f32 %v4353_v42, %v11951_v41  ;;  %v4355_v2 = vmul.f32 %v4333_v9, %v4304_v3  ;;  %v4308_v47 = vmul.f32 %v9731_v54, %v12388_v43 }
 0xfc6   : > { %4375 = vperm.xlu0 %9554, %v12434_v22   ;;  %v12446_v18 = vadd.f32 %v4352_v48, %v11947_v33  ;;  %v4354_v7 = vmul.f32 %v4329_v19, %v4302_v17  ;;  %v4306_v1 = vmul.f32 %v9733_v50, %v12391_v40 }
 0xfc7   : > { %v12453_v20 = vadd.f32 %v4355_v2, %v11969_v26  ;;  %v4357_v9 = vmul.f32 %v4341_v57, %v4308_v47 }
 0xfc8   : > { %v12456_v43 = vadd.f32 %v4354_v7, %v11966_v29  ;;  %v4356_v63 = vmul.f32 %v4337_v8, %v4306_v1 }
 0xfc9   : > { %4384 = vperm.xlu1 %9555, %v12441_v55   ;;  %v12461_v40 = vadd.f32 %v4357_v9, %v11991_v52 }
 0xfca   : > { %4381 = vperm.xlu0 %9554, %v12446_v18   ;;  %v12464_v10 = vadd.f32 %v4356_v63, %v11986_v62 }
 0xfcd   : > { %4390 = vperm.xlu1 %9555, %v12453_v20  }
 0xfce   : > { %4387 = vperm.xlu0 %9554, %v12456_v43  }
 0xfd1   : > { %4396 = vperm.xlu1 %9555, %v12461_v40  }
 0xfd2   : > { %4393 = vperm.xlu0 %9554, %v12464_v10  }
0x1044   : > { %v4379_v53 = vpop.permute.xlu1 %4378 }
0x1045   : > { %v4376_v0 = vpop.permute.xlu0 %4375  ;;  %v4405_v15 = vrot.slane %v4379_v53, %v11891_v23 }
0x1046   : > { %v4401_v12 = vrot.slane %v4376_v0, %v11891_v23 }
0x1048   : > { %v4385_v42 = vpop.permute.xlu1 %4384  ;;  %v4430_v48 = vsel %vm1921_vm14, %v4405_v15, %v4401_v12 }
0x1049   : > { %v4382_v3 = vpop.permute.xlu0 %4381  ;;  %v4413_v17 = vrot.slane %v4385_v42, %v11891_v23 }
0x104a   : > { %v4409_v54 = vrot.slane %v4382_v3, %v11891_v23 }
0x104c   : > { %v4431_v19 = vsel %vm1923_vm15, %v4409_v54, %v4430_v48  ;;  %v4391_v50 = vpop.permute.xlu1 %4390 }
0x104d   : > { %v4388_v2 = vpop.permute.xlu0 %4387  ;;  %v4421_v57 = vrot.slane %v4391_v50, %v11891_v23  ;;  %v4432_v7 = vsel %vm1925_vm1, %v4413_v17, %v4431_v19 }
0x104e   : > { %v4417_v47 = vrot.slane %v4388_v2, %v11891_v23 }
0x1050   : > { %v4433_v1 = vsel %vm1927_vm2, %v4417_v47, %v4432_v7  ;;  %v4397_v8 = vpop.permute.xlu1 %4396 }
0x1051   : > { %v4429_v9 = vrot.slane %v4397_v8, %v11891_v23  ;;  %v4394_v63 = vpop.permute.xlu0 %4393  ;;  %v4434_v0 = vsel %vm1929_vm4, %v4421_v57, %v4433_v1 }
0x1052   : > { %v4425_v53 = vrot.slane %v4394_v63, %v11891_v23 }
0x1054   : > { %v4435_v15 = vsel %vm13510_vm5, %v4425_v53, %v4434_v0 }
0x1055   : > { %v4436_v12 = vsel %vm13509_vm6, %v4429_v9, %v4435_v15 }
0x1056   : > { %v4438_v42 = vsel %vm13508_vm13, %v4436_v12, 0.0 }
0x1057   : > { %4439 = vadd.xlane.f32.xlu0 %v4438_v42 }
0x10e4   : > { %v4440_v3 = vpop.xlane.xlu0 %4439 }
0x10e5   : > { %v4445_v54 = vrot.slane %v4440_v3, %v11687_v14  ;;  %v4449_v48 = vrot.slane %v4440_v3, %v11792_v25  ;;  %v4453_v17 = vrot.slane %v4440_v3, %v11797_v28  ;;  %v4457_v19 = vrot.slane %v4440_v3, %v11802_v30 }
0x10e6   : > { %v4461_v50 = vrot.slane %v4440_v3, %v11807_v32  ;;  %v4465_v47 = vrot.slane %v4440_v3, %v11812_v34  ;;  %v4469_v63 = vrot.slane %v4440_v3, %v11817_v36 }
0x10e7   : > { %9734 = vrcp.f32 %v4445_v54 }
0x10e8   : > { %9736 = vrcp.f32 %v4449_v48 }
0x10e9   : > { %9738 = vrcp.f32 %v4453_v17 }
0x10ea   : > { %9740 = vrcp.f32 %v4457_v19 }
0x10eb   : > { %9742 = vrcp.f32 %v4461_v50 }
0x10ec   : > { %9744 = vrcp.f32 %v4465_v47 }
0x10ed   : > { %9746 = vrcp.f32 %v4469_v63 }
0x10f1   : > { %v9735_v2 = vpop.eup %9734 }
0x10f2   : > { %v9737_v57 = vpop.eup %9736  ;;  %v12491_v7 = vmul.f32 %v9735_v2, %v12434_v22 }
0x10f3   : > { %v9739_v1 = vpop.eup %9738  ;;  %v12494_v8 = vmul.f32 %v9737_v57, %v12429_v11  ;;  %v4473_v11 = vrot.slane %v4440_v3, %v11822_v38 }
0x10f4   : > { %13643 = vst [vmem:[#allocation76_spill] sm:$0xff] %v12491_v7  ;;  %v12498_v9 = vmul.f32 %v12491_v7, %v12051_v6  ;;  %v12507_v22 = vmul.f32 %v9739_v1, %v12446_v18  ;;  %v9741_v15 = vpop.eup %9740  ;;  %v4501_v7 = vld [vmem:[#allocation34 + $0x18] sm:$0xff] }
0x10f5   : > { %13644 = vst [vmem:[#allocation77_spill] sm:$0xff] %v12494_v8  ;;  %v12504_v0 = vmul.f32 %v12494_v8, %v12053_v56  ;;  %v12516_v54 = vmul.f32 %v9741_v15, %v12441_v55  ;;  %v9743_v48 = vpop.eup %9742  ;;  %9748 = vrcp.f32 %v4473_v11 }
0x10f6   : > { %v4524_v53 = vand.u32 2147483647, %v12498_v9  ;;  %13645 = vst [vmem:[#allocation78_spill] sm:$0xff] %v12507_v22  ;;  %v12513_v42 = vmul.f32 %v12507_v22, %v12060_v13  ;;  %v12524_v3 = vmul.f32 %v9743_v48, %v12456_v43  ;;  %v9745_v19 = vpop.eup %9744 }
0x10f7   : > { %v4525_v12 = vand.u32 2147483647, %v12504_v0  ;;  %13647 = vst [vmem:[#allocation80_spill] sm:$0xff] %v12516_v54  ;;  %v12521_v17 = vmul.f32 %v12516_v54, %v12065_v46  ;;  %v12532_v2 = vmul.f32 %v9745_v19, %v12453_v20  ;;  %v9747_v47 = vpop.eup %9746 }
0x10f8   : > { %4541 = vperm.xlu1 %9555, %v4524_v53   ;;  %13646 = vst [vmem:[#allocation79_spill] sm:$0xff] %v12513_v42  ;;  %v4526_v18 = vand.u32 2147483647, %v12513_v42  ;;  %13649 = vst [vmem:[#allocation82_spill] sm:$0xff] %v12524_v3  ;;  %v12529_v55 = vmul.f32 %v12524_v3, %v12068_v4  ;;  %v12540_v43 = vmul.f32 %v9747_v47, %v12464_v10 }
0x10f9   : > { %13648 = vst [vmem:[#allocation81_spill] sm:$0xff] %v12521_v17  ;;  %v4527_v50 = vand.u32 2147483647, %v12521_v17  ;;  %13651 = vst [vmem:[#allocation84_spill] sm:$0xff] %v12532_v2  ;;  %v12537_v1 = vmul.f32 %v12532_v2, %v12071_v44 }
0x10fa   : > { %13650 = vst [vmem:[#allocation83_spill] sm:$0xff] %v12529_v55  ;;  %v4528_v57 = vand.u32 2147483647, %v12529_v55  ;;  %13653 = vst [vmem:[#allocation86_spill] sm:$0xff] %v12540_v43  ;;  %v12545_v15 = vmul.f32 %v12540_v43, %v12090_v59 }
0x10fb   : > { %13652 = vst [vmem:[#allocation85_spill] sm:$0xff] %v12537_v1  ;;  %v4529_v53 = vand.u32 2147483647, %v12537_v1 }
0x10fc   : > { %4544 = vperm.xlu1 %9555, %v4525_v12   ;;  %13654 = vst [vmem:[#allocation87_spill] sm:$0xff] %v12545_v15  ;;  %v4530_v11 = vand.u32 2147483647, %v12545_v15 }
0x10ff   : > { %v9749_v63 = vpop.eup %9748 }
0x1100   : > { %4547 = vperm.xlu1 %9555, %v4526_v18   ;;  %v12548_v20 = vmul.f32 %v9749_v63, %v12461_v40 }
0x1102   : > { %13655 = vst [vmem:[#allocation88_spill] sm:$0xff] %v12548_v20  ;;  %v12553_v12 = vmul.f32 %v12548_v20, %v12097_v51 }
0x1104   : > { %4550 = vperm.xlu1 %9555, %v4527_v50   ;;  %13656 = vst [vmem:[#allocation89_spill] sm:$0xff] %v12553_v12  ;;  %v4531_v10 = vand.u32 2147483647, %v12553_v12 }
0x1108   : > { %4553 = vperm.xlu1 %9555, %v4528_v57  }
0x110c   : > { %4556 = vperm.xlu1 %9555, %v4529_v53  }
0x1110   : > { %4559 = vperm.xlu1 %9555, %v4530_v11  }
0x1114   : > { %4562 = vperm.xlu1 %9555, %v4531_v10  }
0x1177   : > { %v4542_v48 = vpop.permute.xlu1 %4541 }
0x1178   : > { %v4567_v53 = vrot.slane %v4542_v48, %v11891_v23 }
0x117b   : > { %v4545_v18 = vpop.permute.xlu1 %4544 }
0x117c   : > { %v4571_v40 = vrot.slane %v4545_v18, %v11891_v23 }
0x117e   : > { %v4596_v54 = vsel %vm1921_vm14, %v4571_v40, %v4567_v53 }
0x117f   : > { %v4548_v19 = vpop.permute.xlu1 %4547 }
0x1180   : > { %v4575_v63 = vrot.slane %v4548_v19, %v11891_v23 }
0x1182   : > { %v4597_v22 = vsel %vm1923_vm15, %v4575_v63, %v4596_v54 }
0x1183   : > { %v4551_v50 = vpop.permute.xlu1 %4550 }
0x1184   : > { %v4579_v2 = vrot.slane %v4551_v50, %v11891_v23 }
0x1186   : > { %v4598_v43 = vsel %vm1925_vm1, %v4579_v2, %v4597_v22 }
0x1187   : > { %v4554_v47 = vpop.permute.xlu1 %4553 }
0x1188   : > { %v4583_v20 = vrot.slane %v4554_v47, %v11891_v23 }
0x118a   : > { %v4599_v18 = vsel %vm1927_vm2, %v4583_v20, %v4598_v43 }
0x118b   : > { %v4557_v57 = vpop.permute.xlu1 %4556 }
0x118c   : > { %v4587_v10 = vrot.slane %v4557_v57, %v11891_v23 }
0x118e   : > { %v4600_v48 = vsel %vm1929_vm4, %v4587_v10, %v4599_v18 }
0x118f   : > { %v4560_v11 = vpop.permute.xlu1 %4559 }
0x1190   : > { %v4591_v8 = vrot.slane %v4560_v11, %v11891_v23 }
0x1192   : > { %v4601_v47 = vsel %vm13510_vm5, %v4591_v8, %v4600_v48 }
0x1193   : > { %v4563_v19 = vpop.permute.xlu1 %4562 }
0x1194   : > { %v4595_v50 = vrot.slane %v4563_v19, %v11891_v23 }
0x1196   : > { %v4602_v3 = vsel %vm13509_vm6, %v4595_v50, %v4601_v47 }
0x1197   : > { %v4604_v40 = vsel %vm13508_vm13, %v4602_v3, 0.0 }
0x1198   : > { %4605 = vadd.xlane.f32.xlu0 %v4604_v40 }
0x1225   : > { %v4606_v57 = vpop.xlane.xlu0 %4605 }
0x1226   : > { %v4607_v54 = vmax.f32 %v4606_v57, 1e-12 }
0x1228   : > { %v4616_v63 = vrot.slane %v4607_v54, %v11792_v25  ;;  %v4612_v22 = vrot.slane %v4607_v54, %v11687_v14  ;;  %v4640_v2 = vrot.slane %v4607_v54, %v11822_v38  ;;  %v4620_v43 = vrot.slane %v4607_v54, %v11797_v28 }
0x1229   : > { %v4624_v8 = vrot.slane %v4607_v54, %v11802_v30  ;;  %v4628_v3 = vrot.slane %v4607_v54, %v11807_v32  ;;  %v4632_v10 = vrot.slane %v4607_v54, %v11812_v34  ;;  %v4636_v47 = vrot.slane %v4607_v54, %v11817_v36 }
0x122a   : > { %9750 = vrcp.f32 %v4616_v63 }
0x122b   : > { %9752 = vrcp.f32 %v4612_v22 }
0x122c   : > { %9754 = vrcp.f32 %v4640_v2 }
0x122d   : > { %9756 = vrcp.f32 %v4620_v43 }
0x122e   : > { %9758 = vrcp.f32 %v4624_v8 }
0x122f   : > { %9760 = vrcp.f32 %v4628_v3 }
0x1230   : > { %9762 = vrcp.f32 %v4632_v10  ;;  %v13491_v10 = vmov 0.0|0.0  }
0x1231   : > { %9764 = vrcp.f32 %v4636_v47  ;;  %9192 = vmatprep.subr.bf16.mxu1 %v13491_v10  ;;  %9198 = vmatprep.subr.bf16.mxu0 %v13491_v10 }
0x1234   : > { %v9751_v20 = vpop.eup %9750 }
0x1235   : > { %v9753_v53 = vpop.eup %9752  ;;  %v4652_v11 = vmul.f32 %v9751_v20, %v12504_v0  ;;  %v4502_v20 = vld [vmem:[#allocation35] sm:$0xff] }
0x1236   : > { %v9755_v18 = vpop.eup %9754  ;;  %v4650_v19 = vmul.f32 %v9753_v53, %v12498_v9  ;;  %v4503_v53 = vld [vmem:[#allocation35 + $0x8] sm:$0xff] }
0x1237   : > { %v9757_v48 = vpop.eup %9756  ;;  %4677 = vperm.xlu0 %9554, %v4652_v11   ;;  %v4664_v50 = vmul.f32 %v9755_v18, %v12553_v12  ;;  %v4504_v11 = vld [vmem:[#allocation35 + $0x10] sm:$0xff]  ;;  %v9193_v18 = vpack.c.bf16 %v4503_v53, %v4502_v20 }
0x1238   : > { %4674 = vperm.xlu1 %9555, %v4650_v19   ;;  %v4654_v40 = vmul.f32 %v9757_v48, %v12513_v42  ;;  %v9759_v57 = vpop.eup %9758  ;;  %v4505_v19 = vld [vmem:[#allocation35 + $0x18] sm:$0xff] }
0x1239   : > { %v4656_v63 = vmul.f32 %v9759_v57, %v12521_v17  ;;  %v9761_v22 = vpop.eup %9760  ;;  %9194 = vmatpush3.bf16.msra.mxu1 %v9193_v18  ;;  %v9196_v48 = vpack.c.bf16 %v4505_v19, %v4504_v11  ;;  %v4498_v19 = vld [vmem:[#allocation34] sm:$0xff] }
0x123a   : > { %v4658_v2 = vmul.f32 %v9761_v22, %v12529_v55  ;;  %v9763_v43 = vpop.eup %9762  ;;  %9195 = vmatprep.subr.bf16.mxu1 %v13491_v10  ;;  %v5197_v55 = vld [vmem:[#allocation14 + $0xa8] sm:$0xff] }
0x123b   : > { %4695 = vperm.xlu0 %9554, %v4664_v50   ;;  %v4660_v8 = vmul.f32 %v9763_v43, %v12537_v1  ;;  %v9765_v3 = vpop.eup %9764 }
0x123c   : > { %4680 = vperm.xlu1 %9555, %v4654_v40   ;;  %v4662_v54 = vmul.f32 %v9765_v3, %v12545_v15 }
0x123d   : > { %9197 = vmatpush3.bf16.msra.mxu1 %v9196_v48  ;;  %v4499_v48 = vld [vmem:[#allocation34 + $0x8] sm:$0xff] }
0x123e   : > { %9204 = vmatprep.subr.bf16.mxu1 %v13491_v10 }
0x1240   : > { %4683 = vperm.xlu1 %9555, %v4656_v63  }
0x1244   : > { %4686 = vperm.xlu1 %9555, %v4658_v2  }
0x1248   : > { %4689 = vperm.xlu1 %9555, %v4660_v8  }
0x124c   : > { %4692 = vperm.xlu1 %9555, %v4662_v54  }
0x12b6   : > { %v4678_v57 = vpop.permute.xlu0 %4677 }
0x12b7   : > { %v4675_v50 = vpop.permute.xlu1 %4674  ;;  %v4704_v22 = vrot.slane %v4678_v57, %v11891_v23 }
0x12b8   : > { %v4700_v2 = vrot.slane %v4675_v50, %v11891_v23 }
0x12ba   : > { %v4729_v20 = vsel %vm1921_vm14, %v4704_v22, %v4700_v2  ;;  %v4696_v11 = vpop.permute.xlu0 %4695  ;;  %v9199_v22 = vpack.c.bf16 %v4499_v48, %v4498_v19  ;;  %v4510_v19 = vld [vmem:[#allocation38 + $0x18] sm:$0xff] }
0x12bb   : > { %v4681_v47 = vpop.permute.xlu1 %4680 }
0x12bc   : > { %v4708_v43 = vrot.slane %v4681_v47, %v11891_v23 }
0x12be   : > { %v4730_v18 = vsel %vm1923_vm15, %v4708_v43, %v4729_v20  ;;  %v4507_v20 = vld [vmem:[#allocation38] sm:$0xff] }
0x12bf   : > { %v4684_v40 = vpop.permute.xlu1 %4683 }
0x12c0   : > { %v4712_v8 = vrot.slane %v4684_v40, %v11891_v23  ;;  %v4728_v40 = vrot.slane %v4696_v11, %v11891_v23 }
0x12c2   : > { %v4731_v57 = vsel %vm1925_vm1, %v4712_v8, %v4730_v18  ;;  %v4509_v18 = vld [vmem:[#allocation38 + $0x10] sm:$0xff] }
0x12c3   : > { %v4687_v63 = vpop.permute.xlu1 %4686 }
0x12c4   : > { %v4716_v54 = vrot.slane %v4687_v63, %v11891_v23 }
0x12c6   : > { %v4732_v50 = vsel %vm1927_vm2, %v4716_v54, %v4731_v57  ;;  %v13657_v54 = vmov 0.0|0.0  }
0x12c7   : > { %v4690_v3 = vpop.permute.xlu1 %4689 }
0x12c8   : > { %v4720_v53 = vrot.slane %v4690_v3, %v11891_v23  ;;  %v4500_v3 = vld [vmem:[#allocation34 + $0x10] sm:$0xff] }
0x12c9   : > { %v9202_v8 = vpack.c.bf16 %v4501_v7, %v4500_v3  ;;  %v9208_v7 = vpack.c.bf16 %v4510_v19, %v4509_v18  ;;  %v4514_v3 = vld [vmem:[#allocation38 + $0x38] sm:$0xff] }
0x12ca   : > { %v4733_v63 = vsel %vm1929_vm4, %v4720_v53, %v4732_v50  ;;  %v4508_v53 = vld [vmem:[#allocation38 + $0x8] sm:$0xff]  ;;  %v6188_v19 = vld [vmem:[#allocation22 + $0x4] sm:$0xf] }
0x12cb   : > { %v4693_v10 = vpop.permute.xlu1 %4692  ;;  %v9205_v11 = vpack.c.bf16 %v4508_v53, %v4507_v20 }
0x12cc   : > { %v4724_v47 = vrot.slane %v4693_v10, %v11891_v23  ;;  %v9911_v10 = vld [vmem:[%s11624_s14] sm:$0xff] }
0x12ce   : > { %v4734_v2 = vsel %vm13510_vm5, %v4724_v47, %v4733_v63  ;;  %v4512_v63 = vld [vmem:[#allocation38 + $0x28] sm:$0xff] }
0x12cf   : > { %v4735_v43 = vsel %vm13509_vm6, %v4728_v40, %v4734_v2  ;;  %v4511_v40 = vld [vmem:[#allocation38 + $0x20] sm:$0xff]  ;;  %v4513_v2 = vld [vmem:[#allocation38 + $0x30] sm:$0xff] }
0x12d0   : > { %8969 = vmatmul.mubr.msk.f32.vlgmr.msra.gmra.mrb[22].mxu0 %vm13508_vm13, %v4735_v43  ;;  %v9214_v43 = vpack.c.bf16 %v4514_v3, %v4513_v2  ;;  %v5193_v2 = vld [vmem:[#allocation14 + $0x88] sm:$0xff] }
0x12d1   : > { %9200 = vmatpush3.bf16.msra.mxu0 %v9199_v22  ;;  %8990 = vmatprep.mubr.msk.f32.mxu0 %vm10772_vm11, %v13641_v58  ;;  %v9211_v22 = vpack.c.bf16 %v4512_v63, %v4511_v40  ;;  %v5188_v40 = vld [vmem:[#allocation11 + $0x58] sm:$0xff] }
0x12d2   : > { %9201 = vmatprep.subr.bf16.mxu0 %v13657_v54 }
0x12d5   : > { %9203 = vmatpush3.bf16.msra.mxu0 %v9202_v8  ;;  %v8580_v8 = vld [vmem:[#allocation37] ss:$0 sm:$0xff] }
0x12d8   : > { %8991 = vmatmul.mubr.msk.f32.vlgmr.msra.gmra.mrb[24].mxu0 %vm1354_vm0, %v9911_v10 }
0x13a3   : > { %v4804_v48 = vpop.f32.mrb[22].mxu0 }
0x13a4   : > { %v8970_v57 = vpop.f32.mrb[23].mxu0  ;;  %8980 = vmatmul.mubr.msk.f32.vlgmr.msra.gmra.mrb[30].mxu1 %vm1354_vm0, %v4804_v48 }
0x13a5   : > { %9206 = vmatpush3.bf16.msra.mxu1 %v9205_v11  ;;  %9009 = vmatprep.mubr.msk.f32.mxu1 %vm10772_vm11, %v13641_v58  ;;  %v5185_v57 = vld [vmem:[#allocation11 + $0x40] sm:$0xff] }
0x13a6   : > { %9207 = vmatprep.subr.bf16.mxu1 %v13657_v54 }
0x13a9   : > { %9209 = vmatpush3.bf16.msra.mxu1 %v9208_v7  ;;  %v5186_v7 = vld [vmem:[#allocation11 + $0x48] sm:$0xff] }
0x13aa   : > { %9210 = vmatprep.subr.bf16.mxu1 %v13657_v54 }
0x13ab   : > { %v4949_v50 = vpop.f32.mrb[24].mxu0 }
0x13ac   : > { %v8992_v47 = vpop.f32.mrb[25].mxu0 }
0x13ad   : > { %9212 = vmatpush3.bf16.msra.mxu1 %v9211_v22  ;;  %v9216_v47 = vpack.c.bf16 %v5186_v7, %v5185_v57  ;;  %v5192_v22 = vld [vmem:[#allocation14 + $0x80] sm:$0xff] }
0x13ae   : > { %9213 = vmatprep.subr.bf16.mxu1 %v13657_v54  ;;  %v9224_v3 = vpack.c.bf16 %v5193_v2, %v5192_v22 }
0x13af   : > { %9217 = vmatprep.subr.bf16.mxu0 %v9216_v47 }
0x13b0   : > { %9219 = vmatpush3.bf16.msra.mxu0 %v9216_v47 }
0x13b1   : > { %9215 = vmatpush3.bf16.msra.mxu1 %v9214_v43  ;;  %v8581_v43 = vld [vmem:[#allocation40] ss:$0 sm:$0xff] }
0x13b2   : > { %9060 = vmatprep.subr.mxu1 %v13641_v58 }
0x1477   : > { %v4877_v10 = vpop.f32.mrb[30].mxu1 }
0x1478   : > { %v4950_v20 = vadd.f32 %v4949_v50, %v4877_v10  ;;  %v8981_v53 = vpop.f32.mrb[31].mxu1  ;;  %v5187_v50 = vld [vmem:[#allocation11 + $0x50] sm:$0xff] }
0x1479   : > { %v9220_v63 = vpack.c.bf16 %v5188_v40, %v5187_v50 }
0x147a   : > { %v4959_v11 = vadd.f32 %v8580_v8, %v4950_v20 }
0x147b   : > { %9221 = vmatprep.subr.bf16.mxu0 %v9220_v63 }
0x147c   : > { %vm4960_vm7 = vcmp.gt.f32.partialorder %v4959_v11, 0.0  ;;  %v4961_v18 = vmul.f32 0.01, %v4959_v11  ;;  %9223 = vmatpush3.bf16.msra.mxu0 %v9220_v63 }
0x147d   : > { %9225 = vmatprep.subr.bf16.mxu0 %v9224_v3 }
0x147e   : > { %v4962_v48 = vsel %vm4960_vm7, %v4959_v11, %v4961_v18 }
0x147f   : > { %9010 = vmatmul.mubr.msk.f32.vlgmr.msra.gmra.mrb[32].mxu1 %vm13658_vm9, %v4962_v48 }
0x1480   : > { %9061 = vmatpush3.msk.msra.mxu1 %vm13659_vm3, %v6188_v19  ;;  %9062 = vmatprep.mubr.msk.f32.mxu1 %vm10772_vm11, %v13641_v58 }
0x1481   : > { %9065 = vmatprep.subr.mxu1 %v13641_v58 }
0x1483   : > { %9063 = vmatmul.mubr.msk.f32.vlgmr.msra.gmra.mrb[34].mxu1 %vm13505_vm10, %v12293_v24  ;;  %v5195_v24 = vld [vmem:[#allocation14 + $0x98] sm:$0xff]  ;;  %vm13668_vm10 = vmmov %vm13658_vm9 }
0x1484   : > { %9067 = vmatprep.mubr.msk.f32.mxu1 %vm10772_vm11, %v13641_v58 }
0x1552   : > { %v5038_v8 = vpop.f32.mrb[32].mxu1 }
0x1553   : > { %v5039_v10 = vadd.f32 %v8581_v43, %v5038_v8  ;;  %v9011_v20 = vpop.f32.mrb[33].mxu1 }
0x1555   : > { %vm5042_vm12 = vcmp.gt.f32.partialorder %v5039_v10, 0.0  ;;  %v5043_v53 = vmul.f32 0.01, %v5039_v10 }
0x1556   : > { %v12629_v11 = vpop.f32.mrb[34].mxu1 }
0x1557   : > { %v12631_v18 = vsel %vm5042_vm12, %v5039_v10, %v5043_v53  ;;  %v9064_v19 = vpop.f32.mrb[35].mxu1 }
0x1558   : > { %v5213_v48 = vrot.slane %v12631_v18, %v11681_v5  ;;  %v5206_v57 = vcombine.high %v12631_v18, %v12631_v18  ;;  %v5194_v19 = vld [vmem:[#allocation14 + $0x90] sm:$0xff] }
0x1559   : > { %v9228_v12 = vpack.c.bf16 %v5195_v24, %v5194_v19 }
0x155a   : > { %v5221_v7 = vcombine.high %v5213_v48, %v5213_v48  ;;  %v5229_v50 = vrot.slane %v5213_v48, %v11681_v5  ;;  %v5220_v47 = vrot.slane %v5206_v57, %v11681_v5 }
0x155c   : > { %v5258_v40 = vrot.slane %v5229_v50, %v11687_v14  ;;  %v5243_v63 = vrot.slane %v5221_v7, %v11681_v5  ;;  %v5251_v22 = vcombine.high %v5229_v50, %v5229_v50  ;;  %v5236_v2 = vrot.slane %v5220_v47, %v11681_v5 }
0x155d   : > { %v5222_v43 = vcombine.high %v5220_v47, %v5220_v47 }
0x155e   : > { %v5295_v8 = vsub.f32 %v5258_v40, %v12631_v18  ;;  %v5262_v10 = vrot.slane %v5243_v63, %v11687_v14  ;;  %v5266_v20 = vrot.slane %v5251_v22, %v11687_v14  ;;  %v5253_v53 = vcombine.high %v5243_v63, %v5243_v63 }
0x155f   : > { %v5274_v48 = vrot.slane %v5236_v2, %v11687_v14  ;;  %v5250_v57 = vrot.slane %v5222_v43, %v11681_v5  ;;  %v5252_v61 = vcombine.high %v5236_v2, %v5236_v2 }
0x1560   : > { %v12647_v15 = vmul.f32 %v5295_v8, %v5295_v8  ;;  %v5296_v7 = vsub.f32 %v5262_v10, %v12631_v18  ;;  %v5297_v50 = vsub.f32 %v5266_v20, %v12631_v18  ;;  %v5270_v47 = vrot.slane %v5253_v53, %v11687_v14  ;;  %v5196_v20 = vld [vmem:[#allocation14 + $0xa0] sm:$0xff] }
0x1561   : > { %v5278_v40 = vrot.slane %v5250_v57, %v11687_v14  ;;  %v5254_v43 = vcombine.high %v5250_v57, %v5250_v57  ;;  %v5299_v8 = vsub.f32 %v5274_v48, %v12631_v18  ;;  %v5282_v10 = vrot.slane %v5252_v61, %v11687_v14 }
0x1562   : > { %13660 = vst [vmem:[#allocation90_spill] sm:$0xff] %v12647_v15  ;;  %9020 = vmatprep.mubr.msk.f32.mxu0 %vm1354_vm0, %v12647_v15  ;;  %v12655_v63 = vmul.f32 %v5296_v7, %v5296_v7  ;;  %v12657_v22 = vmul.f32 %v5297_v50, %v5297_v50  ;;  %v5298_v2 = vsub.f32 %v5270_v47, %v12631_v18  ;;  %v5199_v47 = vld [vmem:[#allocation14 + $0xb8] sm:$0xff] }
0x1563   : > { %v5300_v53 = vsub.f32 %v5278_v40, %v12631_v18  ;;  %v5286_v19 = vrot.slane %v5254_v43, %v11687_v14  ;;  %v9232_v57 = vpack.c.bf16 %v5197_v55, %v5196_v20  ;;  %v12670_v48 = vmul.f32 %v5299_v8, %v5299_v8 }
0x1564   : > { %13661 = vst [vmem:[#allocation91_spill] sm:$0xff] %v12655_v63  ;;  %13662 = vst [vmem:[#allocation92_spill] sm:$0xff] %v12657_v22  ;;  %9021 = vmatmul.mubr.msk.f32.vlgmr.msra.gmra.mrb[26].mxu0 %vm1354_vm0, %v12655_v63  ;;  %v12666_v24 = vmul.f32 %v5298_v2, %v5298_v2  ;;  %v5301_v61 = vsub.f32 %v5282_v10, %v12631_v18  ;;  %v8583_v2 = vld [vmem:[#allocation13 + $0x2] ss:$0 sm:$0xff] }
0x1565   : > { %9023 = vmatprep.mubr.msk.f32.mxu0 %vm1354_vm0, %v12657_v22  ;;  %9227 = vmatpush3.bf16.msra.mxu0 %v9224_v3  ;;  %13664 = vst [vmem:[#allocation94_spill] sm:$0xff] %v12670_v48  ;;  %v12677_v3 = vmul.f32 %v5300_v53, %v5300_v53  ;;  %v5302_v7 = vsub.f32 %v5286_v19, %v12631_v18 }
0x1566   : > { %13663 = vst [vmem:[#allocation93_spill] sm:$0xff] %v12666_v24  ;;  %9229 = vmatprep.subr.bf16.mxu0 %v9228_v12  ;;  %v12680_v50 = vmul.f32 %v5301_v61, %v5301_v61 }
0x1567   : > { %13665 = vst [vmem:[#allocation95_spill] sm:$0xff] %v12677_v3  ;;  %v12686_v55 = vmul.f32 %v5302_v7, %v5302_v7 }
0x1568   : > { %9024 = vmatmul.mubr.msk.f32.gmra.mrb[28].mxu0 %vm1354_vm0, %v12666_v24  ;;  %13666 = vst [vmem:[#allocation96_spill] sm:$0xff] %v12680_v50 }
0x1569   : > { %9026 = vmatprep.mubr.msk.f32.mxu0 %vm1354_vm0, %v12670_v48  ;;  %9231 = vmatpush3.bf16.msra.mxu0 %v9228_v12  ;;  %13667 = vst [vmem:[#allocation97_spill] sm:$0xff] %v12686_v55  ;;  %v5198_v12 = vld [vmem:[#allocation14 + $0xb0] sm:$0xff] }
0x156a   : > { %9233 = vmatprep.subr.bf16.mxu0 %v9232_v57  ;;  %v9236_v40 = vpack.c.bf16 %v5199_v47, %v5198_v12 }
0x156c   : > { %9027 = vmatmul.mubr.msk.f32.gmra.mrb[30].mxu0 %vm1354_vm0, %v12677_v3 }
0x156d   : > { %9029 = vmatprep.mubr.msk.f32.mxu0 %vm1354_vm0, %v12680_v50  ;;  %9235 = vmatpush3.bf16.msra.mxu0 %v9232_v57 }
0x156e   : > { %9237 = vmatprep.subr.bf16.mxu0 %v9236_v40 }
0x1570   : > { %9030 = vmatmul.mubr.msk.f32.gmra.mrb[32].mxu0 %vm1354_vm0, %v12686_v55 }
0x1571   : > { %9239 = vmatpush3.bf16.msra.mxu0 %v9236_v40 }
0x1572   : > { %9098 = vmatprep.subr.mxu0 %v13641_v58 }
0x1637   : > { %v9022_v43 = vpop.f32.mrb[26].mxu0 }
0x1638   : > { %v5445_v8 = vadd.f32 %v9022_v43, %v8583_v2  ;;  %v5439_v10 = vpop.f32.mrb[27].mxu0 }
0x1639   : > { %v5440_v20 = vadd.f32 %v8583_v2, %v5439_v10 }
0x163a   : > { %v5487_v53 = vmul.f32 0.01, %v5445_v8  ;;  %vm5479_vm8 = vcmp.gt.f32.partialorder %v5445_v8, 0.0 }
0x163b   : > { %vm5478_vm7 = vcmp.gt.f32.partialorder %v5440_v20, 0.0  ;;  %v5486_v19 = vmul.f32 0.01, %v5440_v20  ;;  %v9025_v57 = vpop.f32.mrb[28].mxu0 }
0x163c   : > { %v5455_v61 = vadd.f32 %v9025_v57, %v8583_v2  ;;  %v5449_v7 = vpop.f32.mrb[29].mxu0  ;;  %v5495_v63 = vsel %vm5479_vm8, %v5445_v8, %v5487_v53 }
0x163d   : > { %v5450_v55 = vadd.f32 %v8583_v2, %v5449_v7  ;;  %v5494_v3 = vsel %vm5478_vm7, %v5440_v20, %v5486_v19  ;;  %vm13669_vm7 = vmmov %vm13658_vm9 }
0x163e   : > { %v5489_v12 = vmul.f32 0.01, %v5455_v61  ;;  %9048 = vmatprep.mubr.msk.f32.mxu0 %vm13658_vm9, %v5494_v3  ;;  %vm5481_vm3 = vcmp.gt.f32.partialorder %v5455_v61, 0.0  ;;  %vm13670_vm13 = vmmov %vm13669_vm7 }
0x163f   : > { %vm5480_vm12 = vcmp.gt.f32.partialorder %v5450_v55, 0.0  ;;  %v5488_v47 = vmul.f32 0.01, %v5450_v55  ;;  %v9028_v40 = vpop.f32.mrb[30].mxu0  ;;  %9049 = vmatmul.mubr.msk.f32.vlgmr.msra.gmra.mrb[34].mxu0 %vm13668_vm10, %v5495_v63  ;;  %vm13671_vm10 = vmmov %vm13669_vm7 }
0x1640   : > { %v5465_v43 = vadd.f32 %v9028_v40, %v8583_v2  ;;  %9099 = vmatpush3.msra.mxu0 %v12631_v18  ;;  %v5459_v10 = vpop.f32.mrb[31].mxu0  ;;  %v5497_v8 = vsel %vm5481_vm3, %v5455_v61, %v5489_v12  ;;  %vm13672_vm5 = vmmov %vm13669_vm7 }
0x1641   : > { %v5460_v50 = vadd.f32 %v8583_v2, %v5459_v10  ;;  %v5496_v48 = vsel %vm5480_vm12, %v5450_v55, %v5488_v47  ;;  %9240 = vmatprep.subr.bf16.mxu0 %v13657_v54  ;;  %vm13673_vm3 = vmmov %vm13672_vm5 }
0x1642   : > { %v5491_v57 = vmul.f32 0.01, %v5465_v43  ;;  %9051 = vmatprep.mubr.msk.f32.mxu0 %vm13669_vm7, %v5496_v48  ;;  %vm5483_vm8 = vcmp.gt.f32.partialorder %v5465_v43, 0.0  ;;  %vm13674_vm7 = vmmov %vm13673_vm3 }
0x1643   : > { %vm5482_vm9 = vcmp.gt.f32.partialorder %v5460_v50, 0.0  ;;  %v5490_v3 = vmul.f32 0.01, %v5460_v50  ;;  %v9031_v20 = vpop.f32.mrb[32].mxu0  ;;  %9052 = vmatmul.mubr.msk.f32.gmra.mrb[36].mxu0 %vm13670_vm13, %v5497_v8 }
0x1644   : > { %v5475_v53 = vadd.f32 %v9031_v20, %v8583_v2  ;;  %v5469_v63 = vpop.f32.mrb[33].mxu0  ;;  %v5499_v55 = vsel %vm5483_vm8, %v5465_v43, %v5491_v57  ;;  %v8601_v57 = vld [vmem:[#allocation17 + $0x2] ss:$0 sm:$0xff] }
0x1645   : > { %v5470_v19 = vadd.f32 %v8583_v2, %v5469_v63  ;;  %v5498_v7 = vsel %vm5482_vm9, %v5460_v50, %v5490_v3  ;;  %v8592_v2 = vld [vmem:[#allocation16 + $0x2] ss:$0 sm:$0xff] }
0x1646   : > { %v5493_v40 = vmul.f32 0.01, %v5475_v53  ;;  %9054 = vmatprep.mubr.msk.f32.mxu0 %vm13671_vm10, %v5498_v7  ;;  %vm5485_vm12 = vcmp.gt.f32.partialorder %v5475_v53, 0.0 }
0x1647   : > { %vm5484_vm6 = vcmp.gt.f32.partialorder %v5470_v19, 0.0  ;;  %v5492_v47 = vmul.f32 0.01, %v5470_v19  ;;  %9055 = vmatmul.mubr.msk.f32.gmra.mrb[38].mxu0 %vm13672_vm5, %v5499_v55 }
0x1648   : > { %v5501_v61 = vsel %vm5485_vm12, %v5475_v53, %v5493_v40 }
0x1649   : > { %v5500_v48 = vsel %vm5484_vm6, %v5470_v19, %v5492_v47 }
0x164a   : > { %9057 = vmatprep.mubr.msk.f32.mxu0 %vm13673_vm3, %v5500_v48 }
0x164b   : > { %9058 = vmatmul.mubr.msk.f32.gmra.mrb[40].mxu0 %vm13674_vm7, %v5501_v61  ;;  %vm13675_vm7 = vcmask 1046534  }
0x164c   : > { %9100 = vmatprep.mubr.msk.f32.mxu0 %vm10772_vm11, %v13641_v58 }
0x1712   : > { %v9050_v50 = vpop.f32.mrb[34].mxu0 }
0x1713   : > { %v5604_v12 = vadd.f32 %v9050_v50, %v8592_v2  ;;  %v5598_v10 = vpop.f32.mrb[35].mxu0 }
0x1714   : > { %v5599_v8 = vadd.f32 %v8592_v2, %v5598_v10 }
0x1715   : > { %vm5638_vm13 = vcmp.gt.f32.partialorder %v5604_v12, 0.0  ;;  %v5646_v43 = vmul.f32 0.01, %v5604_v12 }
0x1716   : > { %vm5637_vm8 = vcmp.gt.f32.partialorder %v5599_v8, 0.0  ;;  %v5645_v3 = vmul.f32 0.01, %v5599_v8  ;;  %v9053_v20 = vpop.f32.mrb[36].mxu0 }
0x1717   : > { %v5614_v63 = vadd.f32 %v9053_v20, %v8592_v2  ;;  %v5608_v19 = vpop.f32.mrb[37].mxu0  ;;  %v5654_v7 = vsel %vm5638_vm13, %v5604_v12, %v5646_v43  ;;  %vm13676_vm13 = vcmask 1047559  }
0x1718   : > { %v5609_v53 = vadd.f32 %v8592_v2, %v5608_v19  ;;  %v5668_v40 = vmul.f32 %v8601_v57, %v5654_v7  ;;  %v5653_v55 = vsel %vm5637_vm8, %v5599_v8, %v5645_v3  ;;  %vm13677_vm8 = vcmask 64512  }
0x1719   : > { %vm5640_vm5 = vcmp.gt.f32.partialorder %v5614_v63, 0.0  ;;  %v5648_v47 = vmul.f32 0.01, %v5614_v63  ;;  %v5667_v48 = vmul.f32 %v8601_v57, %v5653_v55 }
0x171a   : > { %vm5639_vm6 = vcmp.gt.f32.partialorder %v5609_v53, 0.0  ;;  %v5647_v61 = vmul.f32 0.01, %v5609_v53  ;;  %v9056_v50 = vpop.f32.mrb[38].mxu0  ;;  %v5678_v10 = vsel %vm1354_vm0, %v5668_v40, 0.0 }
0x171b   : > { %v5624_v24 = vadd.f32 %v9056_v50, %v8592_v2  ;;  %5679 = vadd.xlane.f32.xlu0 %v5678_v10  ;;  %v5618_v22 = vpop.f32.mrb[39].mxu0  ;;  %v5675_v15 = vsel %vm1354_vm0, %v5667_v48, 0.0  ;;  %v5656_v1 = vsel %vm5640_vm5, %v5614_v63, %v5648_v47  ;;  %vm13678_vm5 = vmmov %vm13675_vm7 }
0x171c   : > { %v5619_v20 = vadd.f32 %v8592_v2, %v5618_v22  ;;  %5676 = vadd.xlane.f32.xlu1 %v5675_v15  ;;  %v5655_v12 = vsel %vm5639_vm6, %v5609_v53, %v5647_v61  ;;  %v5670_v43 = vmul.f32 %v8601_v57, %v5656_v1  ;;  %vm13679_vm6 = vmmov %vm13676_vm13 }
0x171d   : > { %vm5642_vm9 = vcmp.gt.f32.partialorder %v5624_v24, 0.0  ;;  %v5650_v8 = vmul.f32 0.01, %v5624_v24  ;;  %v5669_v3 = vmul.f32 %v8601_v57, %v5655_v12 }
0x171e   : > { %vm5641_vm10 = vcmp.gt.f32.partialorder %v5619_v20, 0.0  ;;  %v5649_v19 = vmul.f32 0.01, %v5619_v20  ;;  %v9059_v7 = vpop.f32.mrb[40].mxu0  ;;  %v5684_v55 = vsel %vm1354_vm0, %v5670_v43, 0.0 }
0x171f   : > { %v5634_v17 = vadd.f32 %v9059_v7, %v8592_v2  ;;  %v5628_v40 = vpop.f32.mrb[41].mxu0  ;;  %v5681_v50 = vsel %vm1354_vm0, %v5669_v3, 0.0  ;;  %v5658_v10 = vsel %vm5642_vm9, %v5624_v24, %v5650_v8  ;;  %v8602_v8 = vld [vmem:[#allocation19 + $0x2] ss:$0 sm:$0xff]  ;;  %vm13680_vm9 = vmmov %vm13677_vm8 }
0x1720   : > { %v5629_v42 = vadd.f32 %v8592_v2, %v5628_v40  ;;  %5682 = vadd.xlane.f32.xlu0 %v5681_v50  ;;  %5685 = vadd.xlane.f32.xlu1 %v5684_v55  ;;  %v5657_v22 = vsel %vm5641_vm10, %v5619_v20, %v5649_v19  ;;  %v5672_v15 = vmul.f32 %v8601_v57, %v5658_v10  ;;  %vm13681_vm10 = vmmov %vm13678_vm5 }
0x1721   : > { %vm5644_vm12 = vcmp.gt.f32.partialorder %v5634_v17, 0.0  ;;  %v5652_v1 = vmul.f32 0.01, %v5634_v17  ;;  %v5671_v63 = vmul.f32 %v8601_v57, %v5657_v22 }
0x1722   : > { %vm5643_vm3 = vcmp.gt.f32.partialorder %v5629_v42, 0.0  ;;  %v5651_v53 = vmul.f32 0.01, %v5629_v42  ;;  %v5690_v47 = vsel %vm1354_vm0, %v5672_v15, 0.0 }
0x1723   : > { %v5687_v48 = vsel %vm1354_vm0, %v5671_v63, 0.0  ;;  %v5660_v61 = vsel %vm5644_vm12, %v5634_v17, %v5652_v1  ;;  %vm13682_vm12 = vmmov %vm13679_vm6 }
0x1724   : > { %5688 = vadd.xlane.f32.xlu0 %v5687_v48  ;;  %5691 = vadd.xlane.f32.xlu1 %v5690_v47  ;;  %v5659_v12 = vsel %vm5643_vm3, %v5629_v42, %v5651_v53  ;;  %v5674_v43 = vmul.f32 %v8601_v57, %v5660_v61  ;;  %vm13683_vm3 = vmmov %vm13677_vm8 }
0x1725   : > { %v5673_v24 = vmul.f32 %v8601_v57, %v5659_v12 }
0x1726   : > { %v5696_v2 = vsel %vm1354_vm0, %v5674_v43, 0.0 }
0x1727   : > { %v5693_v20 = vsel %vm1354_vm0, %v5673_v24, 0.0 }
0x1728   : > { %5694 = vadd.xlane.f32.xlu0 %v5693_v20  ;;  %5697 = vadd.xlane.f32.xlu1 %v5696_v2 }
0x173e   : > { %5705 = vperm.xlu0 %9554, %v8602_v8  }
0x17a8   : > { %v5680_v3 = vpop.xlane.xlu0 %5679 }
0x17a9   : > { %v5677_v7 = vpop.xlane.xlu1 %5676 }
0x17ad   : > { %v5683_v19 = vpop.xlane.xlu0 %5682  ;;  %v5686_v40 = vpop.xlane.xlu1 %5685 }
0x17b1   : > { %v5689_v55 = vpop.xlane.xlu0 %5688  ;;  %v5692_v17 = vpop.xlane.xlu1 %5691 }
0x17b5   : > { %v5695_v50 = vpop.xlane.xlu0 %5694  ;;  %v5698_v43 = vpop.xlane.xlu1 %5697 }
0x17bd   : > { %v5706_v10 = vpop.permute.xlu0 %5705 }
0x17be   : > { %v5708_v22 = vadd.f32 %v5706_v10, %v5677_v7  ;;  %v5709_v42 = vadd.f32 %v5706_v10, %v5680_v3  ;;  %v5710_v15 = vadd.f32 %v5706_v10, %v5683_v19  ;;  %v5711_v57 = vadd.f32 %v5706_v10, %v5686_v40 }
0x17bf   : > { %v5712_v1 = vadd.f32 %v5706_v10, %v5689_v55  ;;  %v5714_v63 = vadd.f32 %v5706_v10, %v5695_v50  ;;  %v5713_v53 = vadd.f32 %v5706_v10, %v5692_v17  ;;  %v5715_v2 = vadd.f32 %v5706_v10, %v5698_v43 }
0x17c0   : > { %v8605_v47 = vmul.f32 -1.442695, %v5710_v15  ;;  %v8604_v48 = vmul.f32 -1.442695, %v5709_v42  ;;  %v8603_v12 = vmul.f32 -1.442695, %v5708_v22  ;;  %v5765_v43 = vmul.f32 %v12230_v31, %v12053_v56 }
0x17c1   : > { %v8607_v61 = vmul.f32 -1.442695, %v5712_v1  ;;  %v8609_v24 = vmul.f32 -1.442695, %v5714_v63  ;;  %v8606_v20 = vmul.f32 -1.442695, %v5711_v57 }
0x17c2   : > { %9766 = vpow2.f32 %v8605_v47  ;;  %v8608_v8 = vmul.f32 -1.442695, %v5713_v53  ;;  %v8610_v3 = vmul.f32 -1.442695, %v5715_v2  ;;  %v5768_v2 = vmul.f32 %v12244_v35, %v12068_v4 }
0x17c3   : > { %9768 = vpow2.f32 %v8604_v48  ;;  %v5766_v48 = vmul.f32 %v12235_v27, %v12060_v13 }
0x17c4   : > { %9770 = vpow2.f32 %v8607_v61 }
0x17c5   : > { %9772 = vpow2.f32 %v8603_v12 }
0x17c6   : > { %9774 = vpow2.f32 %v8609_v24 }
0x17c7   : > { %9776 = vpow2.f32 %v8606_v20 }
0x17c8   : > { %9778 = vpow2.f32 %v8608_v8 }
0x17c9   : > { %9780 = vpow2.f32 %v8610_v3  ;;  %v5764_v3 = vmul.f32 %v12225_v45, %v12051_v6  ;;  %v5767_v45 = vmul.f32 %v12240_v21, %v12065_v46 }
0x17cc   : > { %v9767_v19 = vpop.eup %9766 }
0x17cd   : > { %v9769_v7 = vpop.eup %9768  ;;  %v5742_v55 = vadd.f32 1.0, %v9767_v19 }
0x17ce   : > { %v9771_v40 = vpop.eup %9770  ;;  %v5741_v50 = vadd.f32 1.0, %v9769_v7 }
0x17cf   : > { %v9773_v17 = vpop.eup %9772  ;;  %9782 = vrcp.f32 %v5742_v55  ;;  %v5744_v22 = vadd.f32 1.0, %v9771_v40 }
0x17d0   : > { %v9775_v42 = vpop.eup %9774  ;;  %9784 = vrcp.f32 %v5741_v50  ;;  %v5740_v10 = vadd.f32 1.0, %v9773_v17  ;;  %v5770_v17 = vmul.f32 %v12252_v39, %v12090_v59 }
0x17d1   : > { %v9777_v15 = vpop.eup %9776  ;;  %9786 = vrcp.f32 %v5744_v22  ;;  %v5746_v57 = vadd.f32 1.0, %v9775_v42 }
0x17d2   : > { %v9779_v1 = vpop.eup %9778  ;;  %9788 = vrcp.f32 %v5740_v10  ;;  %v5743_v63 = vadd.f32 1.0, %v9777_v15 }
0x17d3   : > { %9790 = vrcp.f32 %v5746_v57  ;;  %v5745_v53 = vadd.f32 1.0, %v9779_v1  ;;  %v9781_v47 = vpop.eup %9780  ;;  %v5769_v1 = vmul.f32 %v12248_v37, %v12071_v44 }
0x17d4   : > { %9792 = vrcp.f32 %v5743_v63  ;;  %v5747_v61 = vadd.f32 1.0, %v9781_v47  ;;  %v5771_v47 = vmul.f32 %v12258_v60, %v12097_v51 }
0x17d5   : > { %9794 = vrcp.f32 %v5745_v53 }
0x17d6   : > { %9796 = vrcp.f32 %v5747_v61 }
0x17d9   : > { %v9783_v12 = vpop.eup %9782 }
0x17da   : > { %v9785_v24 = vpop.eup %9784  ;;  %v12717_v20 = vmul.f32 %v9783_v12, %v5766_v48 }
0x17db   : > { %v9787_v8 = vpop.eup %9786  ;;  %v12721_v19 = vmul.f32 %v9785_v24, %v5765_v43 }
0x17dc   : > { %v9789_v7 = vpop.eup %9788  ;;  %v5857_v27 = vand.u32 2147483647, %v12717_v20  ;;  %v12724_v55 = vmul.f32 %v9787_v8, %v5768_v2 }
0x17dd   : > { %v9791_v40 = vpop.eup %9790  ;;  %v5856_v31 = vand.u32 2147483647, %v12721_v19  ;;  %v12727_v50 = vmul.f32 %v9789_v7, %v5764_v3 }
0x17de   : > { %v9793_v35 = vpop.eup %9792  ;;  %5878 = vperm.xlu0 %9554, %v5857_v27   ;;  %v5859_v22 = vand.u32 2147483647, %v12724_v55  ;;  %v12734_v42 = vmul.f32 %v9791_v40, %v5770_v17 }
0x17df   : > { %5875 = vperm.xlu1 %9555, %v5856_v31   ;;  %v5855_v10 = vand.u32 2147483647, %v12727_v50  ;;  %v12737_v15 = vmul.f32 %v9793_v35, %v5767_v45  ;;  %v9795_v57 = vpop.eup %9794 }
0x17e0   : > { %v5861_v39 = vand.u32 2147483647, %v12734_v42  ;;  %v12743_v21 = vmul.f32 %v9795_v57, %v5769_v1  ;;  %v9797_v53 = vpop.eup %9796 }
0x17e1   : > { %v5858_v63 = vand.u32 2147483647, %v12737_v15  ;;  %v12748_v12 = vmul.f32 %v9797_v53, %v5771_v47 }
0x17e2   : > { %5884 = vperm.xlu0 %9554, %v5859_v22   ;;  %v5860_v61 = vand.u32 2147483647, %v12743_v21 }
0x17e3   : > { %5872 = vperm.xlu1 %9555, %v5855_v10   ;;  %v5862_v37 = vand.u32 2147483647, %v12748_v12 }
0x17e6   : > { %5890 = vperm.xlu0 %9554, %v5861_v39  }
0x17e7   : > { %5881 = vperm.xlu1 %9555, %v5858_v63  }
0x17ea   : > { %5781 = vperm.xlu0 %9554, %v5764_v3  }
0x17eb   : > { %5887 = vperm.xlu1 %9555, %v5860_v61  }
0x17ee   : > { %5787 = vperm.xlu0 %9554, %v5766_v48  }
0x17ef   : > { %5893 = vperm.xlu1 %9555, %v5862_v37  }
0x17f2   : > { %5793 = vperm.xlu0 %9554, %v5768_v2  }
0x17f3   : > { %5784 = vperm.xlu1 %9555, %v5765_v43  }
0x17f6   : > { %5799 = vperm.xlu0 %9554, %v5770_v17  }
0x17f7   : > { %5790 = vperm.xlu1 %9555, %v5767_v45  }
0x17fb   : > { %5796 = vperm.xlu1 %9555, %v5769_v1  }
0x17ff   : > { %5802 = vperm.xlu1 %9555, %v5771_v47  }
0x185d   : > { %v5879_v24 = vpop.permute.xlu0 %5878 }
0x185e   : > { %v5876_v8 = vpop.permute.xlu1 %5875  ;;  %v5906_v48 = vrot.slane %v5879_v24, %v11891_v23 }
0x185f   : > { %v5902_v27 = vrot.slane %v5876_v8, %v11891_v23 }
0x1861   : > { %v5885_v60 = vpop.permute.xlu0 %5884 }
0x1862   : > { %v5873_v7 = vpop.permute.xlu1 %5872  ;;  %v5914_v22 = vrot.slane %v5885_v60, %v11891_v23 }
0x1863   : > { %v5898_v40 = vrot.slane %v5873_v7, %v11891_v23 }
0x1865   : > { %v5927_v3 = vsel %vm1921_vm14, %v5902_v27, %v5898_v40  ;;  %v5891_v31 = vpop.permute.xlu0 %5890 }
0x1866   : > { %v5882_v35 = vpop.permute.xlu1 %5881  ;;  %v5928_v2 = vsel %vm1923_vm15, %v5906_v48, %v5927_v3  ;;  %v5922_v63 = vrot.slane %v5891_v31, %v11891_v23 }
0x1867   : > { %v5910_v43 = vrot.slane %v5882_v35, %v11891_v23 }
0x1869   : > { %v5929_v17 = vsel %vm1925_vm1, %v5910_v43, %v5928_v2  ;;  %v5782_v45 = vpop.permute.xlu0 %5781 }
0x186a   : > { %v5888_v10 = vpop.permute.xlu1 %5887  ;;  %v5930_v1 = vsel %vm1927_vm2, %v5914_v22, %v5929_v17  ;;  %v5807_v7 = vrot.slane %v5782_v45, %v11891_v23 }
0x186b   : > { %v5918_v57 = vrot.slane %v5888_v10, %v11891_v23 }
0x186d   : > { %v5931_v39 = vsel %vm1929_vm4, %v5918_v57, %v5930_v1  ;;  %v5788_v47 = vpop.permute.xlu0 %5787 }
0x186e   : > { %v5894_v53 = vpop.permute.xlu1 %5893  ;;  %v5932_v37 = vsel %vm13675_vm7, %v5922_v63, %v5931_v39  ;;  %v5815_v31 = vrot.slane %v5788_v47, %v11891_v23  ;;  %vm13684_vm7 = vcmask 1043456  }
0x186f   : > { %v5926_v61 = vrot.slane %v5894_v53, %v11891_v23 }
0x1871   : > { %v5933_v24 = vsel %vm13676_vm13, %v5926_v61, %v5932_v37  ;;  %v5794_v40 = vpop.permute.xlu0 %5793  ;;  %vm13685_vm13 = vmmov %vm13678_vm5 }
0x1872   : > { %v5785_v8 = vpop.permute.xlu1 %5784  ;;  %v5935_v60 = vsel %vm13677_vm8, %v5933_v24, 0.0  ;;  %v5823_v17 = vrot.slane %v5794_v40, %v11891_v23  ;;  %vm13686_vm8 = vmmov %vm13679_vm6 }
0x1873   : > { %v5811_v27 = vrot.slane %v5785_v8, %v11891_v23  ;;  %5936 = vadd.xlane.f32.xlu0 %v5935_v60 }
0x1875   : > { %v5836_v3 = vsel %vm1921_vm14, %v5811_v27, %v5807_v7  ;;  %v5800_v10 = vpop.permute.xlu0 %5799 }
0x1876   : > { %v5791_v48 = vpop.permute.xlu1 %5790  ;;  %v5837_v43 = vsel %vm1923_vm15, %v5815_v31, %v5836_v3  ;;  %v5831_v39 = vrot.slane %v5800_v10, %v11891_v23 }
0x1877   : > { %v5819_v35 = vrot.slane %v5791_v48, %v11891_v23 }
0x1879   : > { %v5838_v2 = vsel %vm1925_vm1, %v5819_v35, %v5837_v43 }
0x187a   : > { %v5797_v22 = vpop.permute.xlu1 %5796  ;;  %v5839_v57 = vsel %vm1927_vm2, %v5823_v17, %v5838_v2 }
0x187b   : > { %v5827_v45 = vrot.slane %v5797_v22, %v11891_v23 }
0x187d   : > { %v5840_v1 = vsel %vm1929_vm4, %v5827_v45, %v5839_v57 }
0x187e   : > { %v5803_v63 = vpop.permute.xlu1 %5802  ;;  %v5841_v47 = vsel %vm13678_vm5, %v5831_v39, %v5840_v1  ;;  %vm13687_vm5 = vmmov %vm13683_vm3 }
0x187f   : > { %v5835_v53 = vrot.slane %v5803_v63, %v11891_v23 }
0x1881   : > { %v5842_v61 = vsel %vm13679_vm6, %v5835_v53, %v5841_v47  ;;  %vm13688_vm6 = vcmask 31744  }
0x1882   : > { %v5844_v37 = vsel %vm13680_vm9, %v5842_v61, 0.0  ;;  %vm13689_vm9 = vmmov %vm13684_vm7 }
0x1883   : > { %5845 = vadd.xlane.f32.xlu1 %v5844_v37 }
0x1900   : > { %v5937_v24 = vpop.xlane.xlu0 %5936 }
0x1901   : > { %v5938_v8 = vmax.f32 %v5937_v24, 1e-12 }
0x1903   : > { %v5947_v60 = vrot.slane %v5938_v8, %v11792_v25  ;;  %v5943_v7 = vrot.slane %v5938_v8, %v11687_v14  ;;  %v5955_v27 = vrot.slane %v5938_v8, %v11802_v30  ;;  %v5951_v40 = vrot.slane %v5938_v8, %v11797_v28 }
0x1904   : > { %v5963_v3 = vrot.slane %v5938_v8, %v11812_v34  ;;  %v5959_v31 = vrot.slane %v5938_v8, %v11807_v32  ;;  %v5971_v48 = vrot.slane %v5938_v8, %v11822_v38  ;;  %v5967_v35 = vrot.slane %v5938_v8, %v11817_v36 }
0x1905   : > { %9798 = vrcp.f32 %v5947_v60 }
0x1906   : > { %9800 = vrcp.f32 %v5943_v7 }
0x1907   : > { %9802 = vrcp.f32 %v5955_v27 }
0x1908   : > { %9804 = vrcp.f32 %v5951_v40 }
0x1909   : > { %9806 = vrcp.f32 %v5963_v3 }
0x190a   : > { %9808 = vrcp.f32 %v5959_v31 }
0x190b   : > { %9810 = vrcp.f32 %v5971_v48 }
0x190c   : > { %9812 = vrcp.f32 %v5967_v35 }
0x190f   : > { %v9799_v43 = vpop.eup %9798 }
0x1910   : > { %v9801_v2 = vpop.eup %9800  ;;  %v5846_v17 = vpop.xlane.xlu1 %5845  ;;  %v5983_v22 = vmul.f32 %v9799_v43, %v12721_v19 }
0x1911   : > { %v9803_v10 = vpop.eup %9802  ;;  %v6004_v45 = vrot.slane %v5846_v17, %v11792_v25  ;;  %v5981_v57 = vmul.f32 %v9801_v2, %v12727_v50  ;;  %v6000_v1 = vrot.slane %v5846_v17, %v11687_v14  ;;  %v6012_v39 = vrot.slane %v5846_v17, %v11802_v30 }
0x1912   : > { %v9805_v63 = vpop.eup %9804  ;;  %v5987_v53 = vmul.f32 %v9803_v10, %v12737_v15  ;;  %v6008_v47 = vrot.slane %v5846_v17, %v11797_v28  ;;  %v6020_v50 = vrot.slane %v5846_v17, %v11812_v34  ;;  %v6016_v27 = vrot.slane %v5846_v17, %v11807_v32 }
0x1913   : > { %v9807_v61 = vpop.eup %9806  ;;  %v6038_v37 = vmul.f32 %v6004_v45, %v5983_v22  ;;  %v6037_v24 = vmul.f32 %v6000_v1, %v5981_v57  ;;  %v5985_v8 = vmul.f32 %v9805_v63, %v12717_v20  ;;  %v6028_v43 = vrot.slane %v5846_v17, %v11822_v38 }
0x1914   : > { %v9809_v19 = vpop.eup %9808  ;;  %v6040_v60 = vmul.f32 %v6012_v39, %v5987_v53  ;;  %v5991_v7 = vmul.f32 %v9807_v61, %v12743_v21  ;;  %v6024_v2 = vrot.slane %v5846_v17, %v11817_v36 }
0x1915   : > { %v9811_v40 = vpop.eup %9810  ;;  %v12803_v3 = vadd.f32 %v6038_v37, %v11941_v16  ;;  %v6045_v15 = vadd.f32 %v6037_v24, %v11931_v49  ;;  %v6039_v31 = vmul.f32 %v6008_v47, %v5985_v8  ;;  %v5989_v48 = vmul.f32 %v9809_v19, %v12724_v55 }
0x1916   : > { %v9813_v35 = vpop.eup %9812  ;;  %v12809_v20 = vadd.f32 %v6040_v60, %v11951_v41  ;;  %v6042_v21 = vmul.f32 %v6020_v50, %v5991_v7  ;;  %v5995_v45 = vmul.f32 %v9811_v40, %v12748_v12 }
0x1917   : > { %6065 = vperm.xlu1 %9555, %v12803_v3   ;;  %6062 = vperm.xlu0 %9554, %v6045_v15   ;;  %v6047_v22 = vadd.f32 %v6039_v31, %v11947_v33  ;;  %v6041_v10 = vmul.f32 %v6016_v27, %v5989_v48  ;;  %v5993_v57 = vmul.f32 %v9813_v35, %v12734_v42 }
0x1918   : > { %v12818_v55 = vadd.f32 %v6042_v21, %v11969_v26  ;;  %v6044_v39 = vmul.f32 %v6028_v43, %v5995_v45 }
0x1919   : > { %v12821_v1 = vadd.f32 %v6041_v10, %v11966_v29  ;;  %v6043_v63 = vmul.f32 %v6024_v2, %v5993_v57 }
0x191a   : > { %v12826_v17 = vadd.f32 %v6044_v39, %v11991_v52 }
0x191b   : > { %6071 = vperm.xlu1 %9555, %v12809_v20   ;;  %6068 = vperm.xlu0 %9554, %v6047_v22   ;;  %v12829_v42 = vadd.f32 %v6043_v63, %v11986_v62 }
0x191f   : > { %6077 = vperm.xlu1 %9555, %v12818_v55   ;;  %6074 = vperm.xlu0 %9554, %v12821_v1  }
0x1923   : > { %6083 = vperm.xlu1 %9555, %v12826_v17   ;;  %6080 = vperm.xlu0 %9554, %v12829_v42  }
0x1996   : > { %v6066_v12 = vpop.permute.xlu1 %6065  ;;  %v6063_v53 = vpop.permute.xlu0 %6062 }
0x1997   : > { %v6092_v47 = vrot.slane %v6066_v12, %v11891_v23  ;;  %v6088_v61 = vrot.slane %v6063_v53, %v11891_v23 }
0x1999   : > { %v6117_v19 = vsel %vm1921_vm14, %v6092_v47, %v6088_v61 }
0x199a   : > { %v6072_v37 = vpop.permute.xlu1 %6071  ;;  %v6069_v24 = vpop.permute.xlu0 %6068 }
0x199b   : > { %v6096_v8 = vrot.slane %v6069_v24, %v11891_v23  ;;  %v6100_v60 = vrot.slane %v6072_v37, %v11891_v23 }
0x199d   : > { %v6118_v7 = vsel %vm1923_vm15, %v6096_v8, %v6117_v19 }
0x199e   : > { %v6078_v50 = vpop.permute.xlu1 %6077  ;;  %v6075_v27 = vpop.permute.xlu0 %6074  ;;  %v6119_v48 = vsel %vm1925_vm1, %v6100_v60, %v6118_v7 }
0x199f   : > { %v6104_v40 = vrot.slane %v6075_v27, %v11891_v23  ;;  %v6108_v31 = vrot.slane %v6078_v50, %v11891_v23 }
0x19a1   : > { %v6120_v35 = vsel %vm1927_vm2, %v6104_v40, %v6119_v48 }
0x19a2   : > { %v6084_v21 = vpop.permute.xlu1 %6083  ;;  %v6081_v43 = vpop.permute.xlu0 %6080  ;;  %v6121_v45 = vsel %vm1929_vm4, %v6108_v31, %v6120_v35 }
0x19a3   : > { %v6116_v2 = vrot.slane %v6084_v21, %v11891_v23  ;;  %v6112_v10 = vrot.slane %v6081_v43, %v11891_v23 }
0x19a5   : > { %v6122_v57 = vsel %vm13681_vm10, %v6112_v10, %v6121_v45  ;;  %vm13690_vm10 = vmmov %vm13684_vm7 }
0x19a6   : > { %v6123_v39 = vsel %vm13682_vm12, %v6116_v2, %v6122_v57 }
0x19a7   : > { %v6125_v63 = vsel %vm13683_vm3, %v6123_v39, 0.0  ;;  %v6186_v39 = vld [vmem:[#allocation20 + $0x4] sm:$0xf]  ;;  %vm13691_vm3 = vmmov %vm13688_vm6 }
0x19a8   : > { %6126 = vadd.xlane.f32.xlu0 %v6125_v63  ;;  %9066 = vmatpush3.msk.msra.mxu1 %vm13684_vm7, %v6186_v39  ;;  %vm13692_vm7 = vmmov %vm13691_vm3 }
0x1a35   : > { %v6127_v12 = vpop.xlane.xlu0 %6126 }
0x1a36   : > { %v6132_v53 = vrot.slane %v6127_v12, %v11687_v14  ;;  %v6136_v47 = vrot.slane %v6127_v12, %v11792_v25  ;;  %v6140_v61 = vrot.slane %v6127_v12, %v11797_v28  ;;  %v6144_v37 = vrot.slane %v6127_v12, %v11802_v30 }
0x1a37   : > { %v6148_v8 = vrot.slane %v6127_v12, %v11807_v32  ;;  %v6152_v7 = vrot.slane %v6127_v12, %v11812_v34  ;;  %v6156_v40 = vrot.slane %v6127_v12, %v11817_v36  ;;  %v6160_v35 = vrot.slane %v6127_v12, %v11822_v38 }
0x1a38   : > { %9814 = vrcp.f32 %v6132_v53 }
0x1a39   : > { %9816 = vrcp.f32 %v6136_v47 }
0x1a3a   : > { %9818 = vrcp.f32 %v6140_v61 }
0x1a3b   : > { %9820 = vrcp.f32 %v6144_v37 }
0x1a3c   : > { %9822 = vrcp.f32 %v6148_v8 }
0x1a3d   : > { %9824 = vrcp.f32 %v6152_v7 }
0x1a3e   : > { %9826 = vrcp.f32 %v6156_v40 }
0x1a3f   : > { %9828 = vrcp.f32 %v6160_v35 }
0x1a42   : > { %v9815_v24 = vpop.eup %9814 }
0x1a43   : > { %v6170_v19 = vmul.f32 %v9815_v24, %v6045_v15  ;;  %v9817_v60 = vpop.eup %9816 }
0x1a44   : > { %v6172_v50 = vmul.f32 %v9817_v60, %v12803_v3  ;;  %v9819_v27 = vpop.eup %9818 }
0x1a45   : > { %6275 = vperm.xlu1 %9555, %v6170_v19   ;;  %v6174_v31 = vmul.f32 %v9819_v27, %v6047_v22  ;;  %v9821_v48 = vpop.eup %9820 }
0x1a46   : > { %v6176_v15 = vmul.f32 %v9821_v48, %v12809_v20  ;;  %v9823_v21 = vpop.eup %9822 }
0x1a47   : > { %v6178_v43 = vmul.f32 %v9823_v21, %v12821_v1  ;;  %v9825_v2 = vpop.eup %9824  ;;  %v6423_v21 = vld [vmem:[#allocation25 + $0x4] sm:$0xf] }
0x1a48   : > { %v6180_v3 = vmul.f32 %v9825_v2, %v12818_v55  ;;  %v9827_v10 = vpop.eup %9826  ;;  %9070 = vmatprep.subr.msk.mxu1 %vm13689_vm9, %v6423_v21  ;;  %v8615_v2 = vld [vmem:[#allocation23 + $0x1] ss:$0 sm:$0xff]  ;;  %vm13697_vm9 = vmmov %vm13691_vm3 }
0x1a49   : > { %6278 = vperm.xlu1 %9555, %v6172_v50   ;;  %v6182_v22 = vmul.f32 %v9827_v10, %v12829_v42  ;;  %v9829_v45 = vpop.eup %9828 }
0x1a4a   : > { %v6184_v57 = vmul.f32 %v9829_v45, %v12826_v17 }
0x1a4d   : > { %6281 = vperm.xlu1 %9555, %v6174_v31  }
0x1a51   : > { %6284 = vperm.xlu1 %9555, %v6176_v15  }
0x1a55   : > { %6287 = vperm.xlu1 %9555, %v6178_v43   ;;  %v6427_v43 = vld [vmem:[#allocation28 + $0x8] sm:$0xff] }
0x1a59   : > { %6290 = vperm.xlu1 %9555, %v6180_v3  }
0x1a5d   : > { %6293 = vperm.xlu1 %9555, %v6182_v22  }
0x1a61   : > { %6296 = vperm.xlu1 %9555, %v6184_v57  }
0x1ac4   : > { %v6276_v20 = vpop.permute.xlu1 %6275 }
0x1ac5   : > { %v6301_v42 = vrot.slane %v6276_v20, %v11891_v23 }
0x1ac8   : > { %v6279_v63 = vpop.permute.xlu1 %6278 }
0x1ac9   : > { %v6305_v55 = vrot.slane %v6279_v63, %v11891_v23 }
0x1acb   : > { %v6330_v8 = vsel %vm1921_vm14, %v6305_v55, %v6301_v42 }
0x1acc   : > { %v6282_v12 = vpop.permute.xlu1 %6281 }
0x1acd   : > { %v6309_v61 = vrot.slane %v6282_v12, %v11891_v23 }
0x1acf   : > { %v6331_v60 = vsel %vm1923_vm15, %v6309_v61, %v6330_v8 }
0x1ad0   : > { %v6285_v1 = vpop.permute.xlu1 %6284 }
0x1ad1   : > { %v6313_v37 = vrot.slane %v6285_v1, %v11891_v23 }
0x1ad3   : > { %v6332_v50 = vsel %vm1925_vm1, %v6313_v37, %v6331_v60 }
0x1ad4   : > { %v6288_v53 = vpop.permute.xlu1 %6287 }
0x1ad5   : > { %v6317_v17 = vrot.slane %v6288_v53, %v11891_v23 }
0x1ad7   : > { %v6333_v27 = vsel %vm1927_vm2, %v6317_v17, %v6332_v50 }
0x1ad8   : > { %v6291_v47 = vpop.permute.xlu1 %6290 }
0x1ad9   : > { %v6321_v19 = vrot.slane %v6291_v47, %v11891_v23 }
0x1adb   : > { %v6334_v31 = vsel %vm1929_vm4, %v6321_v19, %v6333_v27 }
0x1adc   : > { %v6294_v24 = vpop.permute.xlu1 %6293 }
0x1add   : > { %v6325_v7 = vrot.slane %v6294_v24, %v11891_v23 }
0x1adf   : > { %v6335_v35 = vsel %vm13685_vm13, %v6325_v7, %v6334_v31  ;;  %vm13693_vm13 = vmmov %vm13691_vm3 }
0x1ae0   : > { %v6297_v40 = vpop.permute.xlu1 %6296 }
0x1ae1   : > { %v6329_v48 = vrot.slane %v6297_v40, %v11891_v23 }
0x1ae3   : > { %v6336_v15 = vsel %vm13686_vm8, %v6329_v48, %v6335_v35  ;;  %vm13694_vm8 = vmmov %vm13691_vm3 }
0x1ae4   : > { %8651 = vst.msk [vmem:[%s12286_s26 + $0x8] sm:$0xff] %vm13687_vm5, %v6336_v15  ;;  %9068 = vmatmul.mubr.msk.f32.vlgmr.msra.gmra.mrb[36].mxu1 %vm13688_vm6, %v6336_v15  ;;  %vm13695_vm5 = vmmov %vm13691_vm3 }
0x1ae5   : > { %9071 = vmatpush3.msk.msra.mxu1 %vm13690_vm10, %v6423_v21  ;;  %vm13696_vm6 = vmmov %vm13691_vm3 }
0x1ae6   : > { %9084 = vmatprep.subr.mxu1 %v6427_v43  ;;  %vm13698_vm10 = vmmov %vm13691_vm3 }
0x1bb7   : > { %v6408_v3 = vpop.f32.mrb[36].mxu1 }
0x1bb8   : > { %v6409_v10 = vadd.f32 %v6408_v3, %v12629_v11  ;;  %v9069_v22 = vpop.f32.mrb[37].mxu1 }
0x1bba   : > { %v6418_v45 = vadd.f32 %v8615_v2, %v6409_v10 }
0x1bbc   : > { %vm6419_vm12 = vcmp.gt.f32.partialorder %v6418_v45, 0.0  ;;  %v6420_v57 = vmul.f32 0.01, %v6418_v45 }
0x1bbe   : > { %v12885_v39 = vsel %vm6419_vm12, %v6418_v45, %v6420_v57 }
0x1bbf   : > { %v6442_v20 = vrot.slane %v12885_v39, %v11681_v5  ;;  %v6435_v63 = vcombine.high %v12885_v39, %v12885_v39 }
0x1bc1   : > { %v6450_v12 = vcombine.high %v6442_v20, %v6442_v20  ;;  %v6458_v1 = vrot.slane %v6442_v20, %v11681_v5  ;;  %v6449_v53 = vrot.slane %v6435_v63, %v11681_v5 }
0x1bc3   : > { %v6487_v47 = vrot.slane %v6458_v1, %v11687_v14  ;;  %v6472_v11 = vrot.slane %v6450_v12, %v11681_v5  ;;  %v6480_v55 = vcombine.high %v6458_v1, %v6458_v1  ;;  %v6465_v61 = vrot.slane %v6449_v53, %v11681_v5 }
0x1bc4   : > { %v6451_v42 = vcombine.high %v6449_v53, %v6449_v53  ;;  %v8616_v53 = vld [vmem:[#allocation26 + $0x1] ss:$0 sm:$0xff] }
0x1bc5   : > { %v6524_v37 = vsub.f32 %v6487_v47, %v12885_v39  ;;  %v6491_v17 = vrot.slane %v6472_v11, %v11687_v14  ;;  %v6495_v24 = vrot.slane %v6480_v55, %v11687_v14  ;;  %v6482_v8 = vcombine.high %v6472_v11, %v6472_v11 }
0x1bc6   : > { %v6503_v19 = vrot.slane %v6465_v61, %v11687_v14  ;;  %v6479_v60 = vrot.slane %v6451_v42, %v11681_v5  ;;  %v6481_v7 = vcombine.high %v6465_v61, %v6465_v61  ;;  %v7378_v42 = vld [vmem:[#allocation34 + $0x20] sm:$0xff] }
0x1bc7   : > { %v6532_v50 = vmul.f32 %v6524_v37, %v6524_v37  ;;  %v6525_v27 = vsub.f32 %v6491_v17, %v12885_v39  ;;  %v6526_v40 = vsub.f32 %v6495_v24, %v12885_v39  ;;  %v6499_v31 = vrot.slane %v6482_v8, %v11687_v14  ;;  %v7379_v37 = vld [vmem:[#allocation34 + $0x28] sm:$0xff] }
0x1bc8   : > { %v6507_v48 = vrot.slane %v6479_v60, %v11687_v14  ;;  %v6483_v2 = vcombine.high %v6479_v60, %v6479_v60  ;;  %v6528_v3 = vsub.f32 %v6503_v19, %v12885_v39  ;;  %v6511_v5 = vrot.slane %v6481_v7, %v11687_v14 }
0x1bc9   : > { %9072 = vmatprep.mubr.msk.f32.mxu1 %vm13691_vm3, %v6532_v50  ;;  %v6533_v35 = vmul.f32 %v6525_v27, %v6525_v27  ;;  %v6534_v15 = vmul.f32 %v6526_v40, %v6526_v40  ;;  %v6527_v21 = vsub.f32 %v6499_v31, %v12885_v39  ;;  %v9247_v7 = vpack.c.bf16 %v7379_v37, %v7378_v42  ;;  %v7380_v40 = vld [vmem:[#allocation34 + $0x30] sm:$0xff]  ;;  %v7381_v31 = vld [vmem:[#allocation34 + $0x38] sm:$0xff] }
0x1bca   : > { %v6529_v22 = vsub.f32 %v6507_v48, %v12885_v39  ;;  %v6515_v45 = vrot.slane %v6483_v2, %v11687_v14  ;;  %v6536_v57 = vmul.f32 %v6528_v3, %v6528_v3  ;;  %v6530_v20 = vsub.f32 %v6511_v5, %v12885_v39 }
0x1bcb   : > { %9073 = vmatmul.mubr.msk.f32.vlgmr.msra.gmra.mrb[38].mxu1 %vm13692_vm7, %v6533_v35  ;;  %v6535_v10 = vmul.f32 %v6527_v21, %v6527_v21  ;;  %vm13699_vm7 = vcmask 64512   ;;  %v9250_v5 = vpack.c.bf16 %v7381_v31, %v7380_v40 }
0x1bcc   : > { %9075 = vmatprep.mubr.msk.f32.mxu1 %vm13693_vm13, %v6534_v15  ;;  %9085 = vmatpush3.msra.mxu1 %v6427_v43  ;;  %v6537_v63 = vmul.f32 %v6529_v22, %v6529_v22  ;;  %v6531_v12 = vsub.f32 %v6515_v45, %v12885_v39  ;;  %v6538_v1 = vmul.f32 %v6530_v20, %v6530_v20 }
0x1bcd   : > { %9246 = vmatprep.subr.bf16.mxu1 %v13657_v54 }
0x1bce   : > { %v6539_v43 = vmul.f32 %v6531_v12, %v6531_v12 }
0x1bcf   : > { %9076 = vmatmul.mubr.msk.f32.gmra.mrb[40].mxu1 %vm13694_vm8, %v6535_v10 }
0x1bd0   : > { %9078 = vmatprep.mubr.msk.f32.mxu1 %vm13695_vm5, %v6536_v57  ;;  %vm13700_vm5 = vmmov %vm13699_vm7 }
0x1bd3   : > { %9079 = vmatmul.mubr.msk.f32.gmra.mrb[42].mxu1 %vm13696_vm6, %v6537_v63  ;;  %vm13701_vm6 = vmmov %vm13700_vm5 }
0x1bd4   : > { %9081 = vmatprep.mubr.msk.f32.mxu1 %vm13697_vm9, %v6538_v1 }
0x1bd7   : > { %9082 = vmatmul.mubr.msk.f32.gmra.mrb[44].mxu1 %vm13698_vm10, %v6539_v43 }
0x1c9e   : > { %v9074_v47 = vpop.f32.mrb[38].mxu1 }
0x1c9f   : > { %v6645_v11 = vadd.f32 %v9074_v47, %v8616_v53  ;;  %v6639_v55 = vpop.f32.mrb[39].mxu1 }
0x1ca0   : > { %v6640_v61 = vadd.f32 %v8616_v53, %v6639_v55 }
0x1ca1   : > { %v6687_v17 = vmul.f32 0.01, %v6645_v11  ;;  %vm6679_vm12 = vcmp.gt.f32.partialorder %v6645_v11, 0.0 }
0x1ca2   : > { %vm6678_vm3 = vcmp.gt.f32.partialorder %v6640_v61, 0.0  ;;  %v6686_v24 = vmul.f32 0.01, %v6640_v61  ;;  %v9077_v8 = vpop.f32.mrb[40].mxu1 }
0x1ca3   : > { %v6655_v19 = vadd.f32 %v9077_v8, %v8616_v53  ;;  %v6649_v60 = vpop.f32.mrb[41].mxu1  ;;  %v6695_v48 = vsel %vm6679_vm12, %v6645_v11, %v6687_v17  ;;  %vm13702_vm12 = vmmov %vm13700_vm5 }
0x1ca4   : > { %v6650_v50 = vadd.f32 %v8616_v53, %v6649_v60  ;;  %v6694_v27 = vsel %vm6678_vm3, %v6640_v61, %v6686_v24  ;;  %vm13703_vm3 = vmmov %vm13700_vm5 }
0x1ca5   : > { %v6689_v35 = vmul.f32 0.01, %v6655_v19  ;;  %9086 = vmatprep.mubr.msk.f32.mxu1 %vm13699_vm7, %v6694_v27  ;;  %vm6681_vm13 = vcmp.gt.f32.partialorder %v6655_v19, 0.0 }
0x1ca6   : > { %vm6680_vm8 = vcmp.gt.f32.partialorder %v6650_v50, 0.0  ;;  %v6688_v15 = vmul.f32 0.01, %v6650_v50  ;;  %v9080_v21 = vpop.f32.mrb[42].mxu1  ;;  %9087 = vmatmul.mubr.msk.f32.vlgmr.msra.gmra.mrb[46].mxu1 %vm13700_vm5, %v6695_v48  ;;  %vm13704_vm5 = vmmov %vm13703_vm3 }
0x1ca7   : > { %v6665_v2 = vadd.f32 %v9080_v21, %v8616_v53  ;;  %v6659_v3 = vpop.f32.mrb[43].mxu1  ;;  %9248 = vmatpush3.bf16.msra.mxu1 %v9247_v7  ;;  %v6697_v57 = vsel %vm6681_vm13, %v6655_v19, %v6689_v35  ;;  %vm13705_vm13 = vmmov %vm13703_vm3  ;;  %v8635_v7 = vld [vmem:[#allocation31 + $0x1] ss:$0 sm:$0xff] }
0x1ca8   : > { %v6660_v10 = vadd.f32 %v8616_v53, %v6659_v3  ;;  %v6696_v22 = vsel %vm6680_vm8, %v6650_v50, %v6688_v15  ;;  %9249 = vmatprep.subr.bf16.mxu1 %v13657_v54 }
0x1ca9   : > { %v6691_v45 = vmul.f32 0.01, %v6665_v2  ;;  %9089 = vmatprep.mubr.msk.f32.mxu1 %vm13701_vm6, %v6696_v22  ;;  %vm6683_vm9 = vcmp.gt.f32.partialorder %v6665_v2, 0.0  ;;  %vm13706_vm6 = vmmov %vm13703_vm3 }
0x1caa   : > { %vm6682_vm10 = vcmp.gt.f32.partialorder %v6660_v10, 0.0  ;;  %v6690_v20 = vmul.f32 0.01, %v6660_v10  ;;  %v9083_v63 = vpop.f32.mrb[44].mxu1  ;;  %9090 = vmatmul.mubr.msk.f32.gmra.mrb[48].mxu1 %vm13702_vm12, %v6697_v57 }
0x1cab   : > { %v6675_v12 = vadd.f32 %v9083_v63, %v8616_v53  ;;  %v6669_v1 = vpop.f32.mrb[45].mxu1  ;;  %9251 = vmatpush3.bf16.msra.mxu1 %v9250_v5  ;;  %v6699_v55 = vsel %vm6683_vm9, %v6665_v2, %v6691_v45 }
0x1cac   : > { %v6670_v43 = vadd.f32 %v8616_v53, %v6669_v1  ;;  %v6698_v47 = vsel %vm6682_vm10, %v6660_v10, %v6690_v20  ;;  %v8626_v53 = vld [vmem:[#allocation29 + $0x1] ss:$0 sm:$0xff] }
0x1cad   : > { %v6693_v11 = vmul.f32 0.01, %v6675_v12  ;;  %9092 = vmatprep.mubr.msk.f32.mxu1 %vm13703_vm3, %v6698_v47  ;;  %vm6685_vm7 = vcmp.gt.f32.partialorder %v6675_v12, 0.0 }
0x1cae   : > { %vm6684_vm8 = vcmp.gt.f32.partialorder %v6670_v43, 0.0  ;;  %v6692_v61 = vmul.f32 0.01, %v6670_v43  ;;  %9093 = vmatmul.mubr.msk.f32.gmra.mrb[50].mxu1 %vm13704_vm5, %v6699_v55 }
0x1caf   : > { %v6701_v37 = vsel %vm6685_vm7, %v6675_v12, %v6693_v11  ;;  %vm13707_vm7 = vcmask 31744  }
0x1cb0   : > { %v6700_v42 = vsel %vm6684_vm8, %v6670_v43, %v6692_v61  ;;  %vm13708_vm8 = vmmov %vm13707_vm7 }
0x1cb1   : > { %9095 = vmatprep.mubr.msk.f32.mxu1 %vm13705_vm13, %v6700_v42  ;;  %vm13709_vm13 = vmmov %vm13707_vm7 }
0x1cb2   : > { %9096 = vmatmul.mubr.msk.f32.gmra.mrb[52].mxu1 %vm13706_vm6, %v6701_v37 }
0x1cb3   : > { %9122 = vmatprep.mubr.msk.f32.mxu1 %vm10772_vm11, %v13641_v58 }
0x1cb6   : > { %9123 = vmatmul.mubr.msk.f32.vlgmr.msra.gmra.mrb[54].mxu1 %vm1354_vm0, %v12631_v18 }
0x1d79   : > { %v9088_v17 = vpop.f32.mrb[46].mxu1 }
0x1d7a   : > { %v6804_v24 = vadd.f32 %v9088_v17, %v8626_v53  ;;  %v6798_v8 = vpop.f32.mrb[47].mxu1 }
0x1d7b   : > { %v6799_v19 = vadd.f32 %v8626_v53, %v6798_v8 }
0x1d7c   : > { %vm6838_vm9 = vcmp.gt.f32.partialorder %v6804_v24, 0.0  ;;  %v6846_v60 = vmul.f32 0.01, %v6804_v24 }
0x1d7d   : > { %vm6837_vm10 = vcmp.gt.f32.partialorder %v6799_v19, 0.0  ;;  %v6845_v50 = vmul.f32 0.01, %v6799_v19  ;;  %v9091_v27 = vpop.f32.mrb[48].mxu1 }
0x1d7e   : > { %v6814_v40 = vadd.f32 %v9091_v27, %v8626_v53  ;;  %v6808_v31 = vpop.f32.mrb[49].mxu1  ;;  %v6854_v48 = vsel %vm6838_vm9, %v6804_v24, %v6846_v60  ;;  %vm13710_vm9 = vmmov %vm13707_vm7 }
0x1d7f   : > { %v6809_v35 = vadd.f32 %v8626_v53, %v6808_v31  ;;  %v6868_v15 = vmul.f32 %v8635_v7, %v6854_v48  ;;  %v6853_v21 = vsel %vm6837_vm10, %v6799_v19, %v6845_v50 }
0x1d80   : > { %vm6840_vm12 = vcmp.gt.f32.partialorder %v6814_v40, 0.0  ;;  %v6848_v2 = vmul.f32 0.01, %v6814_v40  ;;  %v6867_v3 = vmul.f32 %v8635_v7, %v6853_v21 }
0x1d81   : > { %vm6839_vm3 = vcmp.gt.f32.partialorder %v6809_v35, 0.0  ;;  %v6847_v5 = vmul.f32 0.01, %v6809_v35  ;;  %v9094_v10 = vpop.f32.mrb[50].mxu1  ;;  %v6878_v22 = vsel %vm13707_vm7, %v6868_v15, 0.0 }
0x1d82   : > { %v6824_v45 = vadd.f32 %v9094_v10, %v8626_v53  ;;  %6879 = vadd.xlane.f32.xlu1 %v6878_v22  ;;  %v6818_v57 = vpop.f32.mrb[51].mxu1  ;;  %v6875_v20 = vsel %vm13708_vm8, %v6867_v3, 0.0  ;;  %v6856_v63 = vsel %vm6840_vm12, %v6814_v40, %v6848_v2  ;;  %vm13711_vm12 = vmmov %vm13707_vm7 }
0x1d83   : > { %v6819_v12 = vadd.f32 %v8626_v53, %v6818_v57  ;;  %6876 = vadd.xlane.f32.xlu0 %v6875_v20  ;;  %v6870_v1 = vmul.f32 %v8635_v7, %v6856_v63  ;;  %v6855_v43 = vsel %vm6839_vm3, %v6809_v35, %v6847_v5  ;;  %vm13712_vm8 = vmmov %vm13707_vm7 }
0x1d84   : > { %vm6842_vm5 = vcmp.gt.f32.partialorder %v6824_v45, 0.0  ;;  %v6850_v47 = vmul.f32 0.01, %v6824_v45  ;;  %v6869_v42 = vmul.f32 %v8635_v7, %v6855_v43 }
0x1d85   : > { %v9097_v11 = vpop.f32.mrb[52].mxu1  ;;  %v6884_v55 = vsel %vm13709_vm13, %v6870_v1, 0.0  ;;  %v6849_v37 = vmul.f32 0.01, %v6819_v12  ;;  %vm6841_vm6 = vcmp.gt.f32.partialorder %v6819_v12, 0.0  ;;  %vm13720_vm13 = vcmask 1046534  }
0x1d86   : > { %v6828_v61 = vpop.f32.mrb[53].mxu1  ;;  %v6834_v17 = vadd.f32 %v9097_v11, %v8626_v53  ;;  %v6858_v24 = vsel %vm6842_vm5, %v6824_v45, %v6850_v47  ;;  %v6881_v60 = vsel %vm13710_vm9, %v6869_v42, 0.0  ;;  %vm13713_vm5 = vmmov %vm13707_vm7  ;;  %v8636_v45 = vld [vmem:[#allocation32 + $0x1] ss:$0 sm:$0xff]  ;;  %vm13722_vm9 = vcmask 64512  }
0x1d87   : > { %6885 = vadd.xlane.f32.xlu0 %v6884_v55  ;;  %v6872_v50 = vmul.f32 %v8635_v7, %v6858_v24  ;;  %v6829_v40 = vadd.f32 %v8626_v53, %v6828_v61  ;;  %v6857_v31 = vsel %vm6841_vm6, %v6819_v12, %v6849_v37  ;;  %vm13721_vm6 = vcmask 1047559  }
0x1d88   : > { %v6852_v27 = vmul.f32 0.01, %v6834_v17  ;;  %vm6844_vm10 = vcmp.gt.f32.partialorder %v6834_v17, 0.0  ;;  %v6871_v35 = vmul.f32 %v8635_v7, %v6857_v31 }
0x1d89   : > { %v12937_v8 = vpop.f32.mrb[54].mxu1  ;;  %v6890_v48 = vsel %vm13711_vm12, %v6872_v50, 0.0  ;;  %v6851_v15 = vmul.f32 0.01, %v6829_v40  ;;  %vm6843_vm3 = vcmp.gt.f32.partialorder %v6829_v40, 0.0  ;;  %vm13724_vm12 = vmmov %vm13721_vm6 }
0x1d8a   : > { %v9124_v19 = vpop.f32.mrb[55].mxu1  ;;  %v6860_v21 = vsel %vm6844_vm10, %v6834_v17, %v6852_v27  ;;  %v6887_v2 = vsel %vm13707_vm7, %v6871_v35, 0.0  ;;  %vm13723_vm10 = vmmov %vm13720_vm13 }
0x1d8b   : > { %6882 = vadd.xlane.f32.xlu0 %v6881_v60  ;;  %v6874_v3 = vmul.f32 %v8635_v7, %v6860_v21  ;;  %v6859_v5 = vsel %vm6843_vm3, %v6829_v40, %v6851_v15  ;;  %vm13725_vm3 = vmmov %vm13722_vm9 }
0x1d8c   : > { %v6873_v22 = vmul.f32 %v8635_v7, %v6859_v5  ;;  %vm13726_vm7 = vmmov %vm13723_vm10 }
0x1d8d   : > { %v6896_v10 = vsel %vm13712_vm8, %v6874_v3, 0.0  ;;  %vm13727_vm8 = vmmov %vm13721_vm6 }
0x1d8e   : > { %v6893_v53 = vsel %vm13713_vm5, %v6873_v22, 0.0  ;;  %vm13728_vm5 = vmmov %vm13725_vm3 }
0x1d8f   : > { %6891 = vadd.xlane.f32.xlu0 %v6890_v48 }
0x1d93   : > { %6888 = vadd.xlane.f32.xlu0 %v6887_v2 }
0x1d97   : > { %6897 = vadd.xlane.f32.xlu0 %v6896_v10 }
0x1d9b   : > { %6894 = vadd.xlane.f32.xlu0 %v6893_v53 }
0x1db1   : > { %6905 = vperm.xlu0 %9554, %v8636_v45  }
0x1e0f   : > { %v6880_v11 = vpop.xlane.xlu1 %6879 }
0x1e10   : > { %v6877_v57 = vpop.xlane.xlu0 %6876 }
0x1e14   : > { %v6886_v20 = vpop.xlane.xlu0 %6885 }
0x1e18   : > { %v6883_v63 = vpop.xlane.xlu0 %6882 }
0x1e1c   : > { %v6892_v12 = vpop.xlane.xlu0 %6891 }
0x1e20   : > { %v6889_v1 = vpop.xlane.xlu0 %6888 }
0x1e24   : > { %v6898_v43 = vpop.xlane.xlu0 %6897 }
0x1e28   : > { %v6895_v47 = vpop.xlane.xlu0 %6894 }
0x1e30   : > { %v6906_v55 = vpop.permute.xlu0 %6905 }
0x1e31   : > { %v6908_v61 = vadd.f32 %v6906_v55, %v6877_v57  ;;  %v6909_v42 = vadd.f32 %v6906_v55, %v6880_v11  ;;  %v6910_v37 = vadd.f32 %v6906_v55, %v6883_v63  ;;  %v6911_v17 = vadd.f32 %v6906_v55, %v6886_v20 }
0x1e32   : > { %v6912_v7 = vadd.f32 %v6906_v55, %v6889_v1  ;;  %v6913_v24 = vadd.f32 %v6906_v55, %v6892_v12  ;;  %v6914_v19 = vadd.f32 %v6906_v55, %v6895_v47  ;;  %v6915_v40 = vadd.f32 %v6906_v55, %v6898_v43 }
0x1e33   : > { %v8637_v60 = vmul.f32 -1.442695, %v6908_v61  ;;  %v8638_v50 = vmul.f32 -1.442695, %v6909_v42  ;;  %v8639_v27 = vmul.f32 -1.442695, %v6910_v37 }
0x1e34   : > { %v8640_v31 = vmul.f32 -1.442695, %v6911_v17  ;;  %v8641_v48 = vmul.f32 -1.442695, %v6912_v7  ;;  %v8642_v35 = vmul.f32 -1.442695, %v6913_v24 }
0x1e35   : > { %9830 = vpow2.f32 %v8637_v60  ;;  %v8643_v15 = vmul.f32 -1.442695, %v6914_v19  ;;  %v8644_v21 = vmul.f32 -1.442695, %v6915_v40 }
0x1e36   : > { %9832 = vpow2.f32 %v8638_v50 }
0x1e37   : > { %9834 = vpow2.f32 %v8639_v27  ;;  %v13714_v27 = vld [vmem:[#allocation79_spill] sm:$0xff] }
0x1e38   : > { %9836 = vpow2.f32 %v8640_v31  ;;  %v13715_v31 = vld [vmem:[#allocation81_spill] sm:$0xff] }
0x1e39   : > { %9838 = vpow2.f32 %v8641_v48 }
0x1e3a   : > { %9840 = vpow2.f32 %v8642_v35 }
0x1e3b   : > { %9842 = vpow2.f32 %v8643_v15 }
0x1e3c   : > { %9844 = vpow2.f32 %v8644_v21  ;;  %v13716_v21 = vld [vmem:[#allocation85_spill] sm:$0xff] }
0x1e3f   : > { %v9831_v2 = vpop.eup %9830 }
0x1e40   : > { %v9833_v3 = vpop.eup %9832  ;;  %v6940_v5 = vadd.f32 1.0, %v9831_v2 }
0x1e41   : > { %v9835_v10 = vpop.eup %9834  ;;  %v6941_v22 = vadd.f32 1.0, %v9833_v3 }
0x1e42   : > { %v9837_v53 = vpop.eup %9836  ;;  %9846 = vrcp.f32 %v6940_v5  ;;  %v6942_v45 = vadd.f32 1.0, %v9835_v10  ;;  %v13717_v10 = vld [vmem:[#allocation83_spill] sm:$0xff] }
0x1e43   : > { %v9839_v57 = vpop.eup %9838  ;;  %9848 = vrcp.f32 %v6941_v22  ;;  %v6943_v20 = vadd.f32 1.0, %v9837_v53 }
0x1e44   : > { %v9841_v63 = vpop.eup %9840  ;;  %9850 = vrcp.f32 %v6942_v45  ;;  %v6944_v12 = vadd.f32 1.0, %v9839_v57  ;;  %v13718_v57 = vld [vmem:[#allocation89_spill] sm:$0xff] }
0x1e45   : > { %v9843_v1 = vpop.eup %9842  ;;  %9852 = vrcp.f32 %v6943_v20  ;;  %v6945_v43 = vadd.f32 1.0, %v9841_v63 }
0x1e46   : > { %v9845_v47 = vpop.eup %9844  ;;  %9854 = vrcp.f32 %v6944_v12  ;;  %v6946_v11 = vadd.f32 1.0, %v9843_v1  ;;  %v13719_v12 = vld [vmem:[#allocation87_spill] sm:$0xff] }
0x1e47   : > { %9856 = vrcp.f32 %v6945_v43  ;;  %v6947_v55 = vadd.f32 1.0, %v9845_v47 }
0x1e49   : > { %9858 = vrcp.f32 %v6947_v55 }
0x1e4a   : > { %9860 = vrcp.f32 %v6946_v11 }
0x1e4c   : > { %v9847_v61 = vpop.eup %9846 }
0x1e4d   : > { %v9849_v42 = vpop.eup %9848  ;;  %v12945_v37 = vmul.f32 %v9847_v61, %v12498_v9 }
0x1e4e   : > { %v9851_v17 = vpop.eup %9850  ;;  %v12948_v7 = vmul.f32 %v9849_v42, %v12504_v0 }
0x1e4f   : > { %v9853_v24 = vpop.eup %9852  ;;  %v7047_v19 = vand.u32 2147483647, %v12945_v37  ;;  %v12953_v40 = vmul.f32 %v9851_v17, %v13714_v27 }
0x1e50   : > { %v9855_v60 = vpop.eup %9854  ;;  %v7048_v50 = vand.u32 2147483647, %v12948_v7  ;;  %v12956_v48 = vmul.f32 %v9853_v24, %v13715_v31 }
0x1e51   : > { %v9857_v35 = vpop.eup %9856  ;;  %7064 = vperm.xlu1 %9555, %v7047_v19   ;;  %v7049_v5 = vand.u32 2147483647, %v12953_v40  ;;  %v12964_v22 = vmul.f32 %v9855_v60, %v13717_v10 }
0x1e52   : > { %7067 = vperm.xlu0 %9554, %v7048_v50   ;;  %v7050_v15 = vand.u32 2147483647, %v12956_v48  ;;  %v12960_v2 = vmul.f32 %v9857_v35, %v13716_v21 }
0x1e53   : > { %v9859_v3 = vpop.eup %9858  ;;  %v7051_v63 = vand.u32 2147483647, %v12964_v22 }
0x1e54   : > { %v9861_v53 = vpop.eup %9860  ;;  %v7052_v45 = vand.u32 2147483647, %v12960_v2  ;;  %v12968_v20 = vmul.f32 %v9859_v3, %v13718_v57 }
0x1e55   : > { %7073 = vperm.xlu1 %9555, %v7050_v15   ;;  %v12972_v1 = vmul.f32 %v9861_v53, %v13719_v12 }
0x1e56   : > { %7070 = vperm.xlu0 %9554, %v7049_v5   ;;  %v7054_v43 = vand.u32 2147483647, %v12968_v20 }
0x1e57   : > { %v7053_v47 = vand.u32 2147483647, %v12972_v1 }
0x1e59   : > { %7079 = vperm.xlu1 %9555, %v7052_v45  }
0x1e5a   : > { %7076 = vperm.xlu0 %9554, %v7051_v63  }
0x1e5d   : > { %7085 = vperm.xlu1 %9555, %v7054_v43  }
0x1e5e   : > { %7082 = vperm.xlu0 %9554, %v7053_v47  }
0x1e61   : > { %6976 = vperm.xlu1 %9555, %v12504_v0  }
0x1e62   : > { %6973 = vperm.xlu0 %9554, %v12498_v9  }
0x1e65   : > { %6982 = vperm.xlu1 %9555, %v13715_v31  }
0x1e66   : > { %6979 = vperm.xlu0 %9554, %v13714_v27  }
0x1e69   : > { %6988 = vperm.xlu1 %9555, %v13716_v21  }
0x1e6a   : > { %6985 = vperm.xlu0 %9554, %v13717_v10  }
0x1e6d   : > { %6994 = vperm.xlu1 %9555, %v13718_v57  }
0x1e6e   : > { %6991 = vperm.xlu0 %9554, %v13719_v12  }
0x1ed0   : > { %v7065_v11 = vpop.permute.xlu1 %7064 }
0x1ed1   : > { %v7068_v55 = vpop.permute.xlu0 %7067  ;;  %v7090_v0 = vrot.slane %v7065_v11, %v11891_v23 }
0x1ed2   : > { %v7094_v61 = vrot.slane %v7068_v55, %v11891_v23 }
0x1ed4   : > { %v7074_v42 = vpop.permute.xlu1 %7073  ;;  %v7119_v24 = vsel %vm1921_vm14, %v7094_v61, %v7090_v0 }
0x1ed5   : > { %v7071_v9 = vpop.permute.xlu0 %7070  ;;  %v7102_v19 = vrot.slane %v7074_v42, %v11891_v23 }
0x1ed6   : > { %v7098_v17 = vrot.slane %v7071_v9, %v11891_v23 }
0x1ed8   : > { %v7120_v60 = vsel %vm1923_vm15, %v7098_v17, %v7119_v24  ;;  %v7080_v50 = vpop.permute.xlu1 %7079 }
0x1ed9   : > { %v7077_v27 = vpop.permute.xlu0 %7076  ;;  %v7121_v35 = vsel %vm1925_vm1, %v7102_v19, %v7120_v60  ;;  %v7110_v15 = vrot.slane %v7080_v50, %v11891_v23 }
0x1eda   : > { %v7106_v31 = vrot.slane %v7077_v27, %v11891_v23 }
0x1edc   : > { %v7122_v21 = vsel %vm1927_vm2, %v7106_v31, %v7121_v35  ;;  %v7086_v3 = vpop.permute.xlu1 %7085 }
0x1edd   : > { %v7083_v5 = vpop.permute.xlu0 %7082  ;;  %v7118_v10 = vrot.slane %v7086_v3, %v11891_v23  ;;  %v7123_v45 = vsel %vm1929_vm4, %v7110_v15, %v7122_v21 }
0x1ede   : > { %v7114_v53 = vrot.slane %v7083_v5, %v11891_v23 }
0x1ee0   : > { %v6977_v57 = vpop.permute.xlu1 %6976  ;;  %v7124_v63 = vsel %vm13720_vm13, %v7114_v53, %v7123_v45  ;;  %vm13729_vm13 = vmmov %vm13726_vm7 }
0x1ee1   : > { %v6974_v12 = vpop.permute.xlu0 %6973  ;;  %v7125_v43 = vsel %vm13721_vm6, %v7118_v10, %v7124_v63  ;;  %v7003_v55 = vrot.slane %v6977_v57, %v11891_v23 }
0x1ee2   : > { %v7127_v47 = vsel %vm13722_vm9, %v7125_v43, 0.0  ;;  %v6999_v11 = vrot.slane %v6974_v12, %v11891_v23  ;;  %vm13730_vm9 = vmmov %vm13725_vm3 }
0x1ee3   : > { %7128 = vadd.xlane.f32.xlu0 %v7127_v47 }
0x1ee4   : > { %v6983_v61 = vpop.permute.xlu1 %6982  ;;  %v7028_v9 = vsel %vm1921_vm14, %v7003_v55, %v6999_v11 }
0x1ee5   : > { %v6980_v0 = vpop.permute.xlu0 %6979  ;;  %v7011_v17 = vrot.slane %v6983_v61, %v11891_v23 }
0x1ee6   : > { %v7007_v42 = vrot.slane %v6980_v0, %v11891_v23 }
0x1ee8   : > { %v7029_v24 = vsel %vm1923_vm15, %v7007_v42, %v7028_v9  ;;  %v6989_v19 = vpop.permute.xlu1 %6988 }
0x1ee9   : > { %v6986_v60 = vpop.permute.xlu0 %6985  ;;  %v7030_v27 = vsel %vm1925_vm1, %v7011_v17, %v7029_v24  ;;  %v7019_v31 = vrot.slane %v6989_v19, %v11891_v23 }
0x1eea   : > { %v7015_v50 = vrot.slane %v6986_v60, %v11891_v23 }
0x1eec   : > { %v7031_v35 = vsel %vm1927_vm2, %v7015_v50, %v7030_v27  ;;  %v6995_v15 = vpop.permute.xlu1 %6994 }
0x1eed   : > { %v6992_v21 = vpop.permute.xlu0 %6991  ;;  %v7027_v3 = vrot.slane %v6995_v15, %v11891_v23  ;;  %v7032_v10 = vsel %vm1929_vm4, %v7019_v31, %v7031_v35 }
0x1eee   : > { %v7023_v5 = vrot.slane %v6992_v21, %v11891_v23 }
0x1ef0   : > { %v7033_v53 = vsel %vm13723_vm10, %v7023_v5, %v7032_v10  ;;  %vm13753_vm10 = vmmov %vm13726_vm7 }
0x1ef1   : > { %v7034_v45 = vsel %vm13724_vm12, %v7027_v3, %v7033_v53  ;;  %vm13754_vm12 = vmmov %vm13721_vm6 }
0x1ef2   : > { %v7036_v57 = vsel %vm13725_vm3, %v7034_v45, 0.0 }
0x1ef3   : > { %7037 = vadd.xlane.f32.xlu1 %v7036_v57 }
0x1f70   : > { %v7129_v63 = vpop.xlane.xlu0 %7128 }
0x1f71   : > { %v7130_v12 = vmax.f32 %v7129_v63, 1e-12 }
0x1f73   : > { %v7139_v43 = vrot.slane %v7130_v12, %v11792_v25  ;;  %v7135_v47 = vrot.slane %v7130_v12, %v11687_v14  ;;  %v7147_v11 = vrot.slane %v7130_v12, %v11802_v30  ;;  %v7143_v55 = vrot.slane %v7130_v12, %v11797_v28 }
0x1f74   : > { %v7155_v61 = vrot.slane %v7130_v12, %v11812_v34  ;;  %v7151_v0 = vrot.slane %v7130_v12, %v11807_v32  ;;  %v7163_v42 = vrot.slane %v7130_v12, %v11822_v38  ;;  %v7159_v9 = vrot.slane %v7130_v12, %v11817_v36 }
0x1f75   : > { %9862 = vrcp.f32 %v7139_v43 }
0x1f76   : > { %9864 = vrcp.f32 %v7135_v47 }
0x1f77   : > { %9866 = vrcp.f32 %v7147_v11 }
0x1f78   : > { %9868 = vrcp.f32 %v7143_v55 }
0x1f79   : > { %9870 = vrcp.f32 %v7155_v61 }
0x1f7a   : > { %9872 = vrcp.f32 %v7151_v0 }
0x1f7b   : > { %9874 = vrcp.f32 %v7163_v42 }
0x1f7c   : > { %9876 = vrcp.f32 %v7159_v9 }
0x1f7f   : > { %v9863_v17 = vpop.eup %9862 }
0x1f80   : > { %v9865_v24 = vpop.eup %9864  ;;  %v7038_v19 = vpop.xlane.xlu1 %7037  ;;  %v7175_v60 = vmul.f32 %v9863_v17, %v12948_v7 }
0x1f81   : > { %v9867_v50 = vpop.eup %9866  ;;  %v7196_v27 = vrot.slane %v7038_v19, %v11792_v25  ;;  %v7173_v31 = vmul.f32 %v9865_v24, %v12945_v37  ;;  %v7192_v35 = vrot.slane %v7038_v19, %v11687_v14  ;;  %v7204_v15 = vrot.slane %v7038_v19, %v11802_v30 }
0x1f82   : > { %v9869_v21 = vpop.eup %9868  ;;  %v7179_v3 = vmul.f32 %v9867_v50, %v12956_v48  ;;  %v7200_v5 = vrot.slane %v7038_v19, %v11797_v28  ;;  %v7212_v37 = vrot.slane %v7038_v19, %v11812_v34  ;;  %v7208_v43 = vrot.slane %v7038_v19, %v11807_v32 }
0x1f83   : > { %v9871_v10 = vpop.eup %9870  ;;  %v7230_v53 = vmul.f32 %v7196_v27, %v7175_v60  ;;  %v7229_v45 = vmul.f32 %v7192_v35, %v7173_v31  ;;  %v7177_v57 = vmul.f32 %v9869_v21, %v12953_v40  ;;  %v7220_v42 = vrot.slane %v7038_v19, %v11822_v38 }
0x1f84   : > { %v9873_v7 = vpop.eup %9872  ;;  %v7232_v63 = vmul.f32 %v7204_v15, %v7179_v3  ;;  %v7183_v12 = vmul.f32 %v9871_v10, %v12960_v2 }
0x1f85   : > { %v9875_v47 = vpop.eup %9874  ;;  %v13036_v11 = vadd.f32 %v7230_v53, %v11941_v16  ;;  %v13039_v48 = vadd.f32 %v7229_v45, %v11931_v49  ;;  %v7231_v55 = vmul.f32 %v7200_v5, %v7177_v57  ;;  %v7181_v61 = vmul.f32 %v9873_v7, %v12964_v22 }
0x1f86   : > { %v9877_v0 = vpop.eup %9876  ;;  %v13045_v40 = vadd.f32 %v7232_v63, %v11951_v41  ;;  %v7234_v2 = vmul.f32 %v7212_v37, %v7183_v12  ;;  %v7216_v16 = vrot.slane %v7038_v19, %v11817_v36  ;;  %v7187_v17 = vmul.f32 %v9875_v47, %v12968_v20 }
0x1f87   : > { %7257 = vperm.xlu1 %9555, %v13036_v11   ;;  %7254 = vperm.xlu0 %9554, %v13039_v48   ;;  %v13050_v9 = vadd.f32 %v7231_v55, %v11947_v33  ;;  %v7233_v49 = vmul.f32 %v7208_v43, %v7181_v61  ;;  %v7185_v22 = vmul.f32 %v9877_v0, %v12972_v1 }
0x1f88   : > { %v13057_v41 = vadd.f32 %v7234_v2, %v11969_v26  ;;  %v7236_v60 = vmul.f32 %v7220_v42, %v7187_v17 }
0x1f89   : > { %v13060_v24 = vadd.f32 %v7233_v49, %v11966_v29  ;;  %v7235_v19 = vmul.f32 %v7216_v16, %v7185_v22 }
0x1f8a   : > { %v13065_v33 = vadd.f32 %v7236_v60, %v11991_v52 }
0x1f8b   : > { %7263 = vperm.xlu1 %9555, %v13045_v40   ;;  %7260 = vperm.xlu0 %9554, %v13050_v9   ;;  %v13068_v20 = vadd.f32 %v7235_v19, %v11986_v62 }
0x1f8f   : > { %7269 = vperm.xlu1 %9555, %v13057_v41   ;;  %7266 = vperm.xlu0 %9554, %v13060_v24  }
0x1f93   : > { %7275 = vperm.xlu1 %9555, %v13065_v33   ;;  %7272 = vperm.xlu0 %9554, %v13068_v20  }
0x2006   : > { %v7258_v26 = vpop.permute.xlu1 %7257  ;;  %v7255_v1 = vpop.permute.xlu0 %7254 }
0x2007   : > { %v7284_v29 = vrot.slane %v7258_v26, %v11891_v23  ;;  %v7280_v50 = vrot.slane %v7255_v1, %v11891_v23 }
0x2009   : > { %v7309_v52 = vsel %vm1921_vm14, %v7284_v29, %v7280_v50 }
0x200a   : > { %v7264_v27 = vpop.permute.xlu1 %7263  ;;  %v7261_v31 = vpop.permute.xlu0 %7260 }
0x200b   : > { %v7288_v35 = vrot.slane %v7261_v31, %v11891_v23  ;;  %v7292_v15 = vrot.slane %v7264_v27, %v11891_v23 }
0x200d   : > { %v7310_v62 = vsel %vm1923_vm15, %v7288_v35, %v7309_v52 }
0x200e   : > { %v7270_v21 = vpop.permute.xlu1 %7269  ;;  %v7267_v3 = vpop.permute.xlu0 %7266  ;;  %v7311_v53 = vsel %vm1925_vm1, %v7292_v15, %v7310_v62 }
0x200f   : > { %v7296_v5 = vrot.slane %v7267_v3, %v11891_v23  ;;  %v7300_v10 = vrot.slane %v7270_v21, %v11891_v23 }
0x2011   : > { %v7312_v45 = vsel %vm1927_vm2, %v7296_v5, %v7311_v53 }
0x2012   : > { %v7276_v57 = vpop.permute.xlu1 %7275  ;;  %v7273_v7 = vpop.permute.xlu0 %7272  ;;  %v7313_v37 = vsel %vm1929_vm4, %v7300_v10, %v7312_v45 }
0x2013   : > { %v7308_v63 = vrot.slane %v7276_v57, %v11891_v23  ;;  %v7304_v12 = vrot.slane %v7273_v7, %v11891_v23 }
0x2015   : > { %v7314_v43 = vsel %vm13726_vm7, %v7304_v12, %v7313_v37 }
0x2016   : > { %v7315_v47 = vsel %vm13727_vm8, %v7308_v63, %v7314_v43  ;;  %vm5096_vm8 = vcmask 130112  }
0x2017   : > { %v7317_v55 = vsel %vm13728_vm5, %v7315_v47, 0.0  ;;  %vm13760_vm5 = vmmov %vm13721_vm6 }
0x2018   : > { %7318 = vadd.xlane.f32.xlu0 %v7317_v55 }
0x20a5   : > { %v7319_v61 = vpop.xlane.xlu0 %7318 }
0x20a6   : > { %v7324_v0 = vrot.slane %v7319_v61, %v11687_v14  ;;  %v7328_v2 = vrot.slane %v7319_v61, %v11792_v25  ;;  %v7332_v42 = vrot.slane %v7319_v61, %v11797_v28  ;;  %v7336_v16 = vrot.slane %v7319_v61, %v11802_v30 }
0x20a7   : > { %v7340_v49 = vrot.slane %v7319_v61, %v11807_v32  ;;  %v7344_v22 = vrot.slane %v7319_v61, %v11812_v34  ;;  %v7348_v50 = vrot.slane %v7319_v61, %v11817_v36 }
0x20a8   : > { %9878 = vrcp.f32 %v7324_v0 }
0x20a9   : > { %9880 = vrcp.f32 %v7328_v2 }
0x20aa   : > { %9882 = vrcp.f32 %v7332_v42 }
0x20ab   : > { %9884 = vrcp.f32 %v7336_v16 }
0x20ac   : > { %9886 = vrcp.f32 %v7340_v49 }
0x20ad   : > { %9888 = vrcp.f32 %v7344_v22 }
0x20ae   : > { %9890 = vrcp.f32 %v7348_v50 }
0x20b2   : > { %v9879_v17 = vpop.eup %9878 }
0x20b3   : > { %v9881_v60 = vpop.eup %9880  ;;  %v13095_v19 = vmul.f32 %v9879_v17, %v13039_v48 }
0x20b4   : > { %v9883_v26 = vpop.eup %9882  ;;  %v13098_v1 = vmul.f32 %v9881_v60, %v13036_v11  ;;  %v7352_v11 = vrot.slane %v7319_v61, %v11822_v38 }
0x20b5   : > { %v13102_v29 = vmul.f32 %v13095_v19, %v12051_v6  ;;  %v13111_v48 = vmul.f32 %v9883_v26, %v13050_v9  ;;  %v9885_v35 = vpop.eup %9884 }
0x20b6   : > { %v13108_v31 = vmul.f32 %v13098_v1, %v12053_v56  ;;  %v13120_v15 = vmul.f32 %v9885_v35, %v13045_v40  ;;  %v9887_v62 = vpop.eup %9886  ;;  %9892 = vrcp.f32 %v7352_v11 }
0x20b7   : > { %v7408_v27 = vand.u32 2147483647, %v13102_v29  ;;  %v13117_v52 = vmul.f32 %v13111_v48, %v12060_v13  ;;  %v13128_v21 = vmul.f32 %v9887_v62, %v13060_v24  ;;  %v9889_v3 = vpop.eup %9888 }
0x20b8   : > { %v7409_v6 = vand.u32 2147483647, %v13108_v31  ;;  %v13125_v9 = vmul.f32 %v13120_v15, %v12065_v46  ;;  %v13136_v5 = vmul.f32 %v9889_v3, %v13057_v41  ;;  %v9891_v10 = vpop.eup %9890 }
0x20b9   : > { %7425 = vperm.xlu1 %9555, %v7408_v27   ;;  %v7410_v56 = vand.u32 2147483647, %v13117_v52  ;;  %v13133_v40 = vmul.f32 %v13128_v21, %v12068_v4  ;;  %v13144_v24 = vmul.f32 %v9891_v10, %v13068_v20 }
0x20ba   : > { %v7411_v13 = vand.u32 2147483647, %v13125_v9  ;;  %v13141_v46 = vmul.f32 %v13136_v5, %v12071_v44 }
0x20bb   : > { %v7412_v53 = vand.u32 2147483647, %v13133_v40  ;;  %v13149_v4 = vmul.f32 %v13144_v24, %v12090_v59 }
0x20bc   : > { %v7413_v57 = vand.u32 2147483647, %v13141_v46 }
0x20bd   : > { %7428 = vperm.xlu1 %9555, %v7409_v6   ;;  %v7414_v7 = vand.u32 2147483647, %v13149_v4 }
0x20c0   : > { %v9893_v45 = vpop.eup %9892 }
0x20c1   : > { %7431 = vperm.xlu1 %9555, %v7410_v56   ;;  %v13152_v41 = vmul.f32 %v9893_v45, %v13065_v33 }
0x20c3   : > { %v13157_v44 = vmul.f32 %v13152_v41, %v12097_v51 }
0x20c5   : > { %7434 = vperm.xlu1 %9555, %v7411_v13   ;;  %v7415_v20 = vand.u32 2147483647, %v13157_v44 }
0x20c9   : > { %7437 = vperm.xlu1 %9555, %v7412_v53  }
0x20cd   : > { %7440 = vperm.xlu1 %9555, %v7413_v57  }
0x20d1   : > { %7443 = vperm.xlu1 %9555, %v7414_v7  }
0x20d5   : > { %7446 = vperm.xlu1 %9555, %v7415_v20  }
0x2138   : > { %v7426_v63 = vpop.permute.xlu1 %7425 }
0x2139   : > { %v7451_v61 = vrot.slane %v7426_v63, %v11891_v23 }
0x213c   : > { %v7429_v12 = vpop.permute.xlu1 %7428 }
0x213d   : > { %v7455_v33 = vrot.slane %v7429_v12, %v11891_v23 }
0x213f   : > { %v7480_v42 = vsel %vm1921_vm14, %v7455_v33, %v7451_v61  ;;  %v13732_v33 = vld [vmem:[#allocation68_spill] sm:$0xff]  ;;  %v13734_v61 = vld [vmem:[#allocation70_spill] sm:$0xff] }
0x2140   : > { %v7432_v37 = vpop.permute.xlu1 %7431 }
0x2141   : > { %v7459_v55 = vrot.slane %v7432_v37, %v11891_v23 }
0x2143   : > { %v7481_v49 = vsel %vm1923_vm15, %v7459_v55, %v7480_v42  ;;  %v13733_v55 = vld [vmem:[#allocation69_spill] sm:$0xff]  ;;  %v13737_v42 = vld [vmem:[#allocation71_spill] sm:$0xff] }
0x2144   : > { %v7435_v43 = vpop.permute.xlu1 %7434 }
0x2145   : > { %v7463_v0 = vrot.slane %v7435_v43, %v11891_v23 }
0x2147   : > { %v7482_v22 = vsel %vm1925_vm1, %v7463_v0, %v7481_v49  ;;  %v13735_v0 = vld [vmem:[#allocation72_spill] sm:$0xff]  ;;  %v13738_v49 = vld [vmem:[#allocation73_spill] sm:$0xff] }
0x2148   : > { %v7438_v59 = vpop.permute.xlu1 %7437 }
0x2149   : > { %v7467_v51 = vrot.slane %v7438_v59, %v11891_v23 }
0x214b   : > { %v7483_v60 = vsel %vm1927_vm2, %v7467_v51, %v7482_v22  ;;  %v13736_v51 = vld [vmem:[#allocation67_spill] sm:$0xff] }
0x214c   : > { %v7441_v47 = vpop.permute.xlu1 %7440  ;;  %v13739_v22 = vld [vmem:[#allocation75_spill] sm:$0xff] }
0x214d   : > { %v7471_v16 = vrot.slane %v7441_v47, %v11891_v23 }
0x214f   : > { %v7484_v50 = vsel %vm1929_vm4, %v7471_v16, %v7483_v60  ;;  %v2394_v16 = vsel %vm1354_vm0, %v13737_v42, 0.0  ;;  %v13740_v60 = vld [vmem:[#allocation90_spill] sm:$0xff] }
0x2150   : > { %v7444_v2 = vpop.permute.xlu1 %7443  ;;  %v7384_v42 = vld [vmem:[#allocation35 + $0x28] sm:$0xff] }
0x2151   : > { %v7475_v17 = vrot.slane %v7444_v2, %v11891_v23  ;;  %v2382_v2 = vsel %vm1354_vm0, %v13736_v51, 0.0  ;;  %v13755_v51 = vld [vmem:[#allocation80_spill] sm:$0xff] }
0x2153   : > { %v7485_v35 = vsel %vm13729_vm13, %v7475_v17, %v7484_v50  ;;  %v2400_v17 = vsel %vm1354_vm0, %v13738_v49, 0.0  ;;  %v13741_v50 = vld [vmem:[#allocation92_spill] sm:$0xff]  ;;  %vm13761_vm13 = vmmov %vm13726_vm7 }
0x2154   : > { %v7447_v26 = vpop.permute.xlu1 %7446 }
0x2155   : > { %v7479_v27 = vrot.slane %v7447_v26, %v11891_v23  ;;  %v5311_v26 = vsel %vm1354_vm0, %v13740_v60, 0.0 }
0x2157   : > { %v7486_v11 = vsel %vm13721_vm6, %v7479_v27, %v7485_v35  ;;  %v5317_v27 = vsel %vm1354_vm0, %v13741_v50, 0.0  ;;  %v13742_v35 = vld [vmem:[#allocation93_spill] sm:$0xff]  ;;  %vm13762_vm6 = vmmov %vm13760_vm5 }
0x2158   : > { %v7488_v6 = vsel %vm13730_vm9, %v7486_v11, 0.0  ;;  %v5320_v11 = vsel %vm1354_vm0, %v13742_v35, 0.0  ;;  %vm5171_vm9 = vcmask 195712  }
0x2159   : > { %7489 = vadd.xlane.f32.xlu0 %v7488_v6  ;;  %v13743_v6 = vld [vmem:[#allocation94_spill] sm:$0xff] }
0x21e6   : > { %v7490_v62 = vpop.xlane.xlu0 %7489 }
0x21e7   : > { %v7491_v56 = vmax.f32 %v7490_v62, 1e-12  ;;  %v5323_v62 = vsel %vm1354_vm0, %v13743_v6, 0.0 }
0x21e9   : > { %v7500_v3 = vrot.slane %v7491_v56, %v11792_v25  ;;  %v7496_v13 = vrot.slane %v7491_v56, %v11687_v14  ;;  %v7504_v10 = vrot.slane %v7491_v56, %v11797_v28  ;;  %v7508_v53 = vrot.slane %v7491_v56, %v11802_v30 }
0x21ea   : > { %v7512_v45 = vrot.slane %v7491_v56, %v11807_v32  ;;  %v7516_v63 = vrot.slane %v7491_v56, %v11812_v34  ;;  %v7520_v28 = vrot.slane %v7491_v56, %v11817_v36  ;;  %v7524_v32 = vrot.slane %v7491_v56, %v11822_v38  ;;  %v13731_v38 = vld [vmem:[#allocation66_spill] sm:$0xff] }
0x21eb   : > { %9894 = vrcp.f32 %v7500_v3  ;;  %v13745_v3 = vld [vmem:[#allocation91_spill] sm:$0xff] }
0x21ec   : > { %9896 = vrcp.f32 %v7496_v13  ;;  %v5314_v13 = vsel %vm1354_vm0, %v13745_v3, 0.0 }
0x21ed   : > { %9898 = vrcp.f32 %v7504_v10  ;;  %v13746_v10 = vld [vmem:[#allocation95_spill] sm:$0xff] }
0x21ee   : > { %9900 = vrcp.f32 %v7508_v53  ;;  %v5326_v53 = vsel %vm1354_vm0, %v13746_v10, 0.0 }
0x21ef   : > { %9902 = vrcp.f32 %v7512_v45 }
0x21f0   : > { %9904 = vrcp.f32 %v7516_v63 }
0x21f1   : > { %9906 = vrcp.f32 %v7520_v28 }
0x21f2   : > { %9908 = vrcp.f32 %v7524_v32 }
0x21f5   : > { %v9895_v57 = vpop.eup %9894 }
0x21f6   : > { %v9897_v7 = vpop.eup %9896  ;;  %v7536_v20 = vmul.f32 %v9895_v57, %v13108_v31  ;;  %v13747_v57 = vld [vmem:[#allocation97_spill] sm:$0xff] }
0x21f7   : > { %v7534_v25 = vmul.f32 %v9897_v7, %v13102_v29  ;;  %v9899_v14 = vpop.eup %9898  ;;  %v5332_v7 = vsel %vm1354_vm0, %v13747_v57, 0.0 }
0x21f8   : > { %7561 = vperm.xlu0 %9554, %v7536_v20   ;;  %v7538_v30 = vmul.f32 %v9899_v14, %v13117_v52  ;;  %v9901_v12 = vpop.eup %9900 }
0x21f9   : > { %7558 = vperm.xlu1 %9555, %v7534_v25   ;;  %v7540_v31 = vmul.f32 %v9901_v12, %v13125_v9  ;;  %v9903_v37 = vpop.eup %9902  ;;  %v2379_v9 = vsel %vm1354_vm0, %v13731_v38, 0.0  ;;  %v13748_v25 = vld [vmem:[#allocation76_spill] sm:$0xff] }
0x21fa   : > { %v7542_v34 = vmul.f32 %v9903_v37, %v13133_v40  ;;  %v9905_v29 = vpop.eup %9904  ;;  %v2385_v40 = vsel %vm1354_vm0, %v13732_v33, 0.0 }
0x21fb   : > { %v7544_v43 = vmul.f32 %v9905_v29, %v13141_v46  ;;  %v9907_v59 = vpop.eup %9906  ;;  %v2388_v46 = vsel %vm1354_vm0, %v13733_v55, 0.0 }
0x21fc   : > { %v7546_v36 = vmul.f32 %v9907_v59, %v13149_v4  ;;  %v9909_v52 = vpop.eup %9908  ;;  %v2391_v4 = vsel %vm1354_vm0, %v13734_v61, 0.0 }
0x21fd   : > { %7564 = vperm.xlu1 %9555, %v7538_v30   ;;  %v7548_v47 = vmul.f32 %v9909_v52, %v13157_v44  ;;  %v2397_v44 = vsel %vm1354_vm0, %v13735_v0, 0.0  ;;  %v13749_v30 = vld [vmem:[#allocation82_spill] sm:$0xff] }
0x2201   : > { %7567 = vperm.xlu1 %9555, %v7540_v31  }
0x2205   : > { %7570 = vperm.xlu1 %9555, %v7542_v34   ;;  %v13750_v34 = vld [vmem:[#allocation86_spill] sm:$0xff] }
0x2209   : > { %7573 = vperm.xlu1 %9555, %v7544_v43   ;;  %v13751_v43 = vld [vmem:[#allocation77_spill] sm:$0xff] }
0x220d   : > { %7576 = vperm.xlu1 %9555, %v7546_v36  }
0x2211   : > { %7579 = vperm.xlu1 %9555, %v7548_v47  }
0x2217   : > { %2380 = vadd.xlane.f32.xlu0 %v2379_v9 }
0x221b   : > { %2386 = vadd.xlane.f32.xlu0 %v2385_v40  ;;  %v13752_v40 = vld [vmem:[#allocation78_spill] sm:$0xff] }
0x221f   : > { %2389 = vadd.xlane.f32.xlu0 %v2388_v46 }
0x2223   : > { %2392 = vadd.xlane.f32.xlu0 %v2391_v4 }
0x2227   : > { %2398 = vadd.xlane.f32.xlu0 %v2397_v44 }
0x2235   : > { %2383 = vadd.xlane.f32.xlu1 %v2382_v2  ;;  %v13757_v2 = vld [vmem:[#allocation88_spill] sm:$0xff] }
0x2239   : > { %2395 = vadd.xlane.f32.xlu1 %v2394_v16  ;;  %v7385_v16 = vld [vmem:[#allocation35 + $0x30] sm:$0xff] }
0x223d   : > { %2401 = vadd.xlane.f32.xlu1 %v2400_v17  ;;  %5174 = vrot.lane.b32.xlu0 %v12631_v18, %s10774_s27  ;;  %v13744_v18 = vld [vmem:[#allocation96_spill] sm:$0xff] }
0x223e   : > { %v5329_v56 = vsel %vm1354_vm0, %v13744_v18, 0.0  ;;  %v7386_v17 = vld [vmem:[#allocation35 + $0x38] sm:$0xff] }
0x224e   : > { %5179 = vrot.lane.b32.xlu1 %v13739_v22, %s10775_s8 }
0x225c   : > { %5312 = vadd.xlane.f32.xlu0 %v5311_v26  ;;  %v13759_v26 = vld [vmem:[#allocation65_spill] sm:$0xff] }
0x2260   : > { %5318 = vadd.xlane.f32.xlu0 %v5317_v27 }
0x2264   : > { %5321 = vadd.xlane.f32.xlu0 %v5320_v11 }
0x2268   : > { %5324 = vadd.xlane.f32.xlu0 %v5323_v62 }
0x226c   : > { %5330 = vadd.xlane.f32.xlu0 %v5329_v56 }
0x2272   : > { %5315 = vadd.xlane.f32.xlu1 %v5314_v13 }
0x2276   : > { %5327 = vadd.xlane.f32.xlu1 %v5326_v53 }
0x2277   : > { %v7562_v28 = vpop.permute.xlu0 %7561 }
0x2278   : > { %v7559_v45 = vpop.permute.xlu1 %7558  ;;  %v7588_v32 = vrot.slane %v7562_v28, %v11891_v23 }
0x2279   : > { %v7584_v31 = vrot.slane %v7559_v45, %v11891_v23 }
0x227a   : > { %5333 = vadd.xlane.f32.xlu1 %v5332_v7 }
0x227b   : > { %v7613_v52 = vsel %vm1921_vm14, %v7588_v32, %v7584_v31 }
0x227c   : > { %v7565_v20 = vpop.permute.xlu1 %7564 }
0x227d   : > { %v7592_v37 = vrot.slane %v7565_v20, %v11891_v23 }
0x227f   : > { %v7614_v38 = vsel %vm1923_vm15, %v7592_v37, %v7613_v52 }
0x2280   : > { %v7568_v63 = vpop.permute.xlu1 %7567 }
0x2281   : > { %v7596_v29 = vrot.slane %v7568_v63, %v11891_v23 }
0x2282   : > { %5107 = vperm.xlu0 %9554, %v13748_v25  }
0x2283   : > { %v7615_v33 = vsel %vm1925_vm1, %v7596_v29, %v7614_v38 }
0x2284   : > { %v7571_v14 = vpop.permute.xlu1 %7570 }
0x2285   : > { %v7600_v59 = vrot.slane %v7571_v14, %v11891_v23 }
0x2286   : > { %5119 = vperm.xlu0 %9554, %v13749_v30  }
0x2287   : > { %v7616_v55 = vsel %vm1927_vm2, %v7600_v59, %v7615_v33 }
0x2288   : > { %v7574_v12 = vpop.permute.xlu1 %7573 }
0x2289   : > { %v7604_v47 = vrot.slane %v7574_v12, %v11891_v23 }
0x228a   : > { %5125 = vperm.xlu0 %9554, %v13750_v34  }
0x228b   : > { %5110 = vperm.xlu1 %9555, %v13751_v43   ;;  %v7617_v61 = vsel %vm1929_vm4, %v7604_v47, %v7616_v55 }
0x228c   : > { %v7577_v36 = vpop.permute.xlu1 %7576 }
0x228d   : > { %v7608_v9 = vrot.slane %v7577_v36, %v11891_v23 }
0x228e   : > { %7990 = vperm.xlu0 %9554, %v13095_v19   ;;  %v13756_v19 = vld [vmem:[#allocation84_spill] sm:$0xff] }
0x228f   : > { %5113 = vperm.xlu1 %9555, %v13752_v40   ;;  %v7618_v0 = vsel %vm13753_vm10, %v7608_v9, %v7617_v61  ;;  %vm13763_vm10 = vmmov %vm13726_vm7 }
0x2290   : > { %v7580_v46 = vpop.permute.xlu1 %7579 }
0x2291   : > { %v7612_v4 = vrot.slane %v7580_v46, %v11891_v23 }
0x2292   : > { %8002 = vperm.xlu0 %9554, %v13128_v21  }
0x2293   : > { %v7619_v44 = vsel %vm13754_vm12, %v7612_v4, %v7618_v0  ;;  %5116 = vperm.xlu1 %9555, %v13755_v51   ;;  %vm5177_vm12 = vcmask 457920  }
0x2294   : > { %9101 = vmatmul.mubr.msk.f32.vlgmr.msra.gmra.mrb[42].mxu0 %vm13725_vm3, %v7619_v44  ;;  %vm13764_vm3 = vmmov %vm13760_vm5 }
0x2295   : > { %9111 = vmatprep.mubr.msk.f32.mxu0 %vm10772_vm11, %v13641_v58 }
0x2296   : > { %8008 = vperm.xlu0 %9554, %v13144_v24   ;;  %v7383_v24 = vld [vmem:[#allocation35 + $0x20] sm:$0xff] }
0x2297   : > { %5122 = vperm.xlu1 %9555, %v13756_v19   ;;  %v9241_v49 = vpack.c.bf16 %v7384_v42, %v7383_v24 }
0x2299   : > { %9242 = vmatpush3.bf16.msra.mxu0 %v9241_v49 }
0x229a   : > { %9243 = vmatprep.subr.bf16.mxu0 %v13657_v54 }
0x229b   : > { %5128 = vperm.xlu1 %9555, %v13757_v2  }
0x229f   : > { %7993 = vperm.xlu1 %9555, %v13098_v1   ;;  %v9244_v1 = vpack.c.bf16 %v7386_v17, %v7385_v16 }
0x22a1   : > { %9245 = vmatpush3.bf16.msra.mxu0 %v9244_v1 }
0x22a2   : > { %9252 = vmatprep.subr.bf16.mxu0 %v13657_v54 }
0x22a3   : > { %7996 = vperm.xlu1 %9555, %v13111_v48   ;;  %v13758_v48 = vld [vmem:[#allocation74_spill] sm:$0xff] }
0x22a4   : > { %v2381_v23 = vpop.xlane.xlu0 %2380 }
0x22a7   : > { %7999 = vperm.xlu1 %9555, %v13120_v15   ;;  %v5055_v15 = vadd.s32 4294967288, %v13758_v48 }
0x22a8   : > { %v2387_v21 = vpop.xlane.xlu0 %2386 }
0x22a9   : > { %v2405_v60 = vsub.f32 0.0, %v2387_v21 }
0x22ab   : > { %8005 = vperm.xlu1 %9555, %v13136_v5  }
0x22ac   : > { %v2390_v22 = vpop.xlane.xlu0 %2389 }
0x22ad   : > { %v2406_v50 = vsub.f32 0.0, %v2390_v22 }
0x22af   : > { %8011 = vperm.xlu1 %9555, %v13152_v41   ;;  %v2403_v41 = vsub.f32 0.0, %v2381_v23 }
0x22b0   : > { %v2393_v5 = vpop.xlane.xlu0 %2392 }
0x22b1   : > { %v2407_v27 = vsub.f32 0.0, %v2393_v5  ;;  %v5130_v5 = vadd.s32 4294967280, %v13758_v48 }
0x22b3   : > { %8059 = vrot.lane.b32.xlu1 %v12885_v39, %s10775_s8  ;;  %v5058_v39 = vsub.s32 %v5055_v15, %v13759_v26 }
0x22b4   : > { %v2399_v6 = vpop.xlane.xlu0 %2398 }
0x22b5   : > { %v5059_v11 = vrot.slane %v2403_v41, %v5058_v39  ;;  %v5067_v18 = vrot.slane %v2405_v60, %v5058_v39  ;;  %v2409_v56 = vsub.f32 0.0, %v2399_v6  ;;  %v5071_v3 = vrot.slane %v2406_v50, %v5058_v39 }
0x22b6   : > { %v5075_v10 = vrot.slane %v2407_v27, %v5058_v39 }
0x22b7   : > { %v5083_v7 = vrot.slane %v2409_v56, %v5058_v39 }
0x22b8   : > { %v13277_v34 = vpop.permute.xlu0 %5174 }
0x22c2   : > { %v2384_v35 = vpop.xlane.xlu1 %2383 }
0x22c3   : > { %v2404_v62 = vsub.f32 0.0, %v2384_v35 }
0x22c5   : > { %v5063_v13 = vrot.slane %v2404_v62, %v5058_v39 }
0x22c6   : > { %v2396_v53 = vpop.xlane.xlu1 %2395 }
0x22c7   : > { %v5088_v45 = vsel %vm1921_vm14, %v5063_v13, %v5059_v11  ;;  %v2408_v57 = vsub.f32 0.0, %v2396_v53  ;;  %v5133_v11 = vsub.s32 %v5130_v5, %v13759_v26 }
0x22c8   : > { %v5089_v20 = vsel %vm1923_vm15, %v5067_v18, %v5088_v45 }
0x22c9   : > { %v5090_v63 = vsel %vm1925_vm1, %v5071_v3, %v5089_v20  ;;  %v5079_v25 = vrot.slane %v2408_v57, %v5058_v39 }
0x22ca   : > { %v5091_v14 = vsel %vm1927_vm2, %v5075_v10, %v5090_v63  ;;  %v2402_v28 = vpop.xlane.xlu1 %2401 }
0x22cb   : > { %v5092_v30 = vsel %vm1929_vm4, %v5079_v25, %v5091_v14  ;;  %v2410_v12 = vsub.f32 0.0, %v2402_v28 }
0x22cc   : > { %v5093_v32 = vsel %vm13726_vm7, %v5083_v7, %v5092_v30  ;;  %vm5182_vm7 = vcmask 490944  }
0x22cd   : > { %v5087_v31 = vrot.slane %v2410_v12, %v5058_v39 }
0x22ce   : > { %v5180_v36 = vpop.permute.xlu1 %5179 }
0x22cf   : > { %v5094_v37 = vsel %vm13760_vm5, %v5087_v31, %v5093_v32  ;;  %vm13766_vm5 = vmmov %vm13764_vm3 }
0x22d0   : > { %5097 = vst.msk [vmem:[%s12286_s26] sm:$0xff] %vm5096_vm8, %v5094_v37 }
0x22e9   : > { %v5313_v29 = vpop.xlane.xlu0 %5312 }
0x22ea   : > { %v5335_v47 = vsub.f32 0.0, %v5313_v29 }
0x22ec   : > { %v7943_v46 = vrot.slane %v5335_v47, %v5058_v39 }
0x22ed   : > { %v5319_v43 = vpop.xlane.xlu0 %5318 }
0x22ee   : > { %v5337_v38 = vsub.f32 0.0, %v5319_v43 }
0x22f0   : > { %v7951_v0 = vrot.slane %v5337_v38, %v5058_v39 }
0x22f1   : > { %v5322_v59 = vpop.xlane.xlu0 %5321 }
0x22f2   : > { %v5338_v33 = vsub.f32 0.0, %v5322_v59 }
0x22f4   : > { %v7955_v51 = vrot.slane %v5338_v33, %v5058_v39 }
0x22f5   : > { %v5325_v52 = vpop.xlane.xlu0 %5324 }
0x22f6   : > { %v5339_v55 = vsub.f32 0.0, %v5325_v52 }
0x22f8   : > { %v7959_v23 = vrot.slane %v5339_v55, %v5058_v39 }
0x22f9   : > { %v5331_v61 = vpop.xlane.xlu0 %5330 }
0x22fa   : > { %v5341_v21 = vsub.f32 0.0, %v5331_v61 }
0x22fc   : > { %v7967_v15 = vrot.slane %v5341_v21, %v5058_v39  ;;  %v7391_v21 = vld [vmem:[#allocation38 + $0x48] sm:$0xff] }
0x22ff   : > { %v5316_v9 = vpop.xlane.xlu1 %5315 }
0x2300   : > { %v5336_v40 = vsub.f32 0.0, %v5316_v9 }
0x2301   : > { %v5108_v27 = vpop.permute.xlu0 %5107 }
0x2302   : > { %v7947_v4 = vrot.slane %v5336_v40, %v5058_v39  ;;  %v5134_v56 = vrot.slane %v5108_v27, %v5133_v11  ;;  %v8648_v27 = vld [vmem:[#allocation37 + $0x1] ss:$0 sm:$0xff] }
0x2303   : > { %v5328_v44 = vpop.xlane.xlu1 %5327 }
0x2304   : > { %v7972_v19 = vsel %vm1921_vm14, %v7947_v4, %v7943_v46  ;;  %v5340_v2 = vsub.f32 0.0, %v5328_v44 }
0x2305   : > { %v7973_v24 = vsel %vm1923_vm15, %v7951_v0, %v7972_v19  ;;  %v5120_v3 = vpop.permute.xlu0 %5119 }
0x2306   : > { %v7974_v42 = vsel %vm1925_vm1, %v7955_v51, %v7973_v24  ;;  %v7963_v16 = vrot.slane %v5340_v2, %v5058_v39  ;;  %v5150_v45 = vrot.slane %v5120_v3, %v5133_v11 }
0x2307   : > { %v7975_v49 = vsel %vm1927_vm2, %v7959_v23, %v7974_v42  ;;  %v5334_v17 = vpop.xlane.xlu1 %5333  ;;  %v7390_v23 = vld [vmem:[#allocation38 + $0x40] sm:$0xff]  ;;  %v7392_v42 = vld [vmem:[#allocation38 + $0x50] sm:$0xff] }
0x2308   : > { %v7976_v1 = vsel %vm1929_vm4, %v7963_v16, %v7975_v49  ;;  %v5342_v22 = vsub.f32 0.0, %v5334_v17  ;;  %v9253_v24 = vpack.c.bf16 %v7391_v21, %v7390_v23  ;;  %v7393_v16 = vld [vmem:[#allocation38 + $0x58] sm:$0xff] }
0x2309   : > { %v7977_v60 = vsel %vm13761_vm13, %v7967_v15, %v7976_v1  ;;  %v5126_v7 = vpop.permute.xlu0 %5125  ;;  %v9256_v1 = vpack.c.bf16 %v7393_v16, %v7392_v42  ;;  %v7395_v15 = vld [vmem:[#allocation38 + $0x68] sm:$0xff] }
0x230a   : > { %v7971_v41 = vrot.slane %v5342_v22, %v5058_v39  ;;  %v5158_v25 = vrot.slane %v5126_v7, %v5133_v11  ;;  %v7394_v22 = vld [vmem:[#allocation38 + $0x60] sm:$0xff] }
0x230b   : > { %v5111_v50 = vpop.permute.xlu1 %5110  ;;  %v9259_v5 = vpack.c.bf16 %v7395_v15, %v7394_v22 }
0x230c   : > { %v7978_v35 = vsel %vm13762_vm6, %v7971_v41, %v7977_v60  ;;  %v5138_v62 = vrot.slane %v5111_v50, %v5133_v11  ;;  %v7396_v41 = vld [vmem:[#allocation38 + $0x70] sm:$0xff]  ;;  %v7397_v60 = vld [vmem:[#allocation38 + $0x78] sm:$0xff] }
0x230d   : > { %8652 = vst.msk [vmem:[%s12286_s26 + $0x8] sm:$0xff] %vm5096_vm8, %v7978_v35  ;;  %v7991_v31 = vpop.permute.xlu0 %7990  ;;  %vm13765_vm8 = vmmov %vm13763_vm10  ;;  %v9262_v50 = vpack.c.bf16 %v7397_v60, %v7396_v41 }
0x230e   : > { %v5163_v10 = vsel %vm1921_vm14, %v5138_v62, %v5134_v56  ;;  %v8016_v59 = vrot.slane %v7991_v31, %v5133_v11  ;;  %v8649_v56 = vld [vmem:[#allocation40 + $0x1] ss:$0 sm:$0xff] }
0x230f   : > { %v5114_v6 = vpop.permute.xlu1 %5113 }
0x2310   : > { %v5142_v18 = vrot.slane %v5114_v6, %v5133_v11 }
0x2311   : > { %v8003_v52 = vpop.permute.xlu0 %8002 }
0x2312   : > { %v5164_v39 = vsel %vm1923_vm15, %v5142_v18, %v5163_v10  ;;  %v8032_v55 = vrot.slane %v8003_v52, %v5133_v11 }
0x2313   : > { %v5117_v13 = vpop.permute.xlu1 %5116 }
0x2314   : > { %v5146_v48 = vrot.slane %v5117_v13, %v5133_v11 }
0x2315   : > { %v8009_v61 = vpop.permute.xlu0 %8008 }
0x2316   : > { %v5165_v53 = vsel %vm1925_vm1, %v5146_v48, %v5164_v39  ;;  %v8040_v0 = vrot.slane %v8009_v61, %v5133_v11 }
0x2317   : > { %v5123_v57 = vpop.permute.xlu1 %5122  ;;  %v5166_v20 = vsel %vm1927_vm2, %v5150_v45, %v5165_v53 }
0x2318   : > { %v5154_v26 = vrot.slane %v5123_v57, %v5133_v11 }
0x231a   : > { %v5167_v63 = vsel %vm1929_vm4, %v5154_v26, %v5166_v20 }
0x231b   : > { %v5129_v14 = vpop.permute.xlu1 %5128  ;;  %v5168_v30 = vsel %vm13763_vm10, %v5158_v25, %v5167_v63 }
0x231c   : > { %v5162_v28 = vrot.slane %v5129_v14, %v5133_v11 }
0x231e   : > { %v5169_v12 = vsel %vm13764_vm3, %v5162_v28, %v5168_v30 }
0x231f   : > { %5172 = vst.msk [vmem:[%s12286_s26] sm:$0xff] %vm5171_vm9, %v5169_v12  ;;  %v7994_v32 = vpop.permute.xlu1 %7993 }
0x2320   : > { %5178 = vst.msk [vmem:[%s12286_s26] sm:$0xff] %vm5177_vm12, %v13277_v34  ;;  %v8020_v29 = vrot.slane %v7994_v32, %v5133_v11 }
0x2321   : > { %5183 = vst.msk [vmem:[%s12286_s26] sm:$0xff] %vm5182_vm7, %v5180_v36 }
0x2322   : > { %v8045_v38 = vsel %vm1921_vm14, %v8020_v29, %v8016_v59  ;;  %vm13767_vm14 = vcmask 523264  }
0x2323   : > { %v7997_v37 = vpop.permute.xlu1 %7996 }
0x2324   : > { %v8024_v43 = vrot.slane %v7997_v37, %v5133_v11 }
0x2326   : > { %v8046_v33 = vsel %vm1923_vm15, %v8024_v43, %v8045_v38 }
0x2327   : > { %v8000_v47 = vpop.permute.xlu1 %7999 }
0x2328   : > { %v8028_v9 = vrot.slane %v8000_v47, %v5133_v11 }
0x232a   : > { %v8047_v40 = vsel %vm1925_vm1, %v8028_v9, %v8046_v33 }
0x232b   : > { %v8006_v46 = vpop.permute.xlu1 %8005  ;;  %v8048_v36 = vsel %vm1927_vm2, %v8032_v55, %v8047_v40 }
0x232c   : > { %v8036_v34 = vrot.slane %v8006_v46, %v5133_v11 }
0x232e   : > { %v8049_v4 = vsel %vm1929_vm4, %v8036_v34, %v8048_v36 }
0x232f   : > { %v8012_v44 = vpop.permute.xlu1 %8011  ;;  %v8050_v19 = vsel %vm13765_vm8, %v8040_v0, %v8049_v4 }
0x2330   : > { %v8044_v51 = vrot.slane %v8012_v44, %v5133_v11 }
0x2332   : > { %v8051_v2 = vsel %vm13766_vm5, %v8044_v51, %v8050_v19 }
0x2333   : > { %8653 = vst.msk [vmem:[%s12286_s26 + $0x8] sm:$0xff] %vm5171_vm9, %v8051_v2  ;;  %v8060_v39 = vpop.permute.xlu1 %8059 }
0x2367   : > { %v7688_v49 = vpop.f32.mrb[42].mxu0 }
0x2368   : > { %v9102_v17 = vpop.f32.mrb[43].mxu0  ;;  %9112 = vmatmul.mubr.msk.f32.vlgmr.msra.gmra.mrb[44].mxu0 %vm1354_vm0, %v7688_v49 }
0x2369   : > { %9254 = vmatpush3.bf16.msra.mxu0 %v9253_v24  ;;  %9141 = vmatprep.mubr.msk.f32.mxu0 %vm10772_vm11, %v13641_v58 }
0x236a   : > { %9255 = vmatprep.subr.bf16.mxu0 %v13657_v54 }
0x236d   : > { %9257 = vmatpush3.bf16.msra.mxu0 %v9256_v1 }
0x236e   : > { %9258 = vmatprep.subr.bf16.mxu0 %v13657_v54 }
0x2371   : > { %9260 = vmatpush3.bf16.msra.mxu0 %v9259_v5 }
0x2372   : > { %9261 = vmatprep.subr.bf16.mxu0 %v13657_v54 }
0x2375   : > { %9263 = vmatpush3.bf16.msra.mxu0 %v9262_v50 }
0x243b   : > { %v7761_v35 = vpop.f32.mrb[44].mxu0 }
0x243c   : > { %v7834_v58 = vadd.f32 %v12937_v8, %v7761_v35  ;;  %v9113_v11 = vpop.f32.mrb[45].mxu0 }
0x243e   : > { %v7843_v6 = vadd.f32 %v8648_v27, %v7834_v58 }
0x2440   : > { %vm7844_vm0 = vcmp.gt.f32.partialorder %v7843_v6, 0.0  ;;  %v7845_v62 = vmul.f32 0.01, %v7843_v6 }
0x2442   : > { %v7846_v18 = vsel %vm7844_vm0, %v7843_v6, %v7845_v62 }
0x2443   : > { %9142 = vmatmul.mubr.msk.f32.vlgmr.msra.gmra.mrb[46].mxu0 %vm13767_vm14, %v7846_v18 }
0x2516   : > { %v7922_v3 = vpop.f32.mrb[46].mxu0 }
0x2517   : > { %v7923_v54 = vadd.f32 %v8649_v56, %v7922_v3  ;;  %v9143_v13 = vpop.f32.mrb[47].mxu0 }
0x2519   : > { %vm7926_vm15 = vcmp.gt.f32.partialorder %v7923_v54, 0.0  ;;  %v7927_v10 = vmul.f32 0.01, %v7923_v54 }
0x251b   : > { %v7928_v48 = vsel %vm7926_vm15, %v7923_v54, %v7927_v10 }
0x251c   : > { %8055 = vrot.lane.b32.xlu0 %v7928_v48, %s10774_s27 }
0x258e   : > { %v8056_v8 = vpop.permute.xlu0 %8055 }
0x258f   : > { %8654 = vst.msk [vmem:[%s12286_s26 + $0x8] sm:$0xff] %vm5177_vm12, %v8056_v8 }
0x2590   : > { %8655 = vst.msk [vmem:[%s12286_s26 + $0x8] sm:$0xff] %vm5182_vm7, %v8060_v39 }
0x2591   : > { %10635 = shalt.err (!%p10632_p1)
}
0x2592   : > { %s10636_s14 = scalar_lea.hbm %s13327_s22, 256  ;;  %s10640_s16 = scalar_lea.hbm %s13769_s23, 512 }
0x2593   : > { %p10637_p12 = scmp.ne.s32.totalorder %s13327_s22, %s10636_s14  ;;  %p10641_p11 = scmp.lt.u32.totalorder %s13327_s22, %s13769_s23 }
0x2594   : > { %p10642_p10 = scmp.lt.u32.totalorder %s10640_s16, %s10636_s14  ;;  %p10644_p9 = scmp.lt.u32.totalorder %s10636_s14, %s13327_s22 }
0x2595   : > { %p10638_p4 = pnand %p10637_p12, %p13770_p0 }
0x2596   : > { %p10643_p7 = por %p10642_p10, %p10641_p11 }
0x2597   : > { %p10639_p2 = pneg %p10638_p4 }
0x2598   : > { %p10645_p3 = por %p10644_p9, %p10643_p7 }
0x259a   : > { %p10646_p5 = pnand %p10645_p3, %p10639_p2 }
0x259c   : > { %10649 = shalt.err (!%p10646_p5)
}
0x259d   : > { %s10777_s26 = smov 128   ;;  %s10778_s27 = smov 8  }
0x259e   : > { %9362 = dma.vmem_to_hbm [thread:$0]  (%p13770_p0), %s13329_s13, 256, %s13327_s22, %s8064_s7, %s10777_s26, %s10777_s26, %s10778_s27  }
0x259f PF: > { %s13771_s8 = sld [smem:[#allocation56_spill]]  ;;  %s13772_s11 = sld [smem:[#allocation64_spill]] }
0x25a0   : > { %s13773_s28 = sld [smem:[#allocation57_spill]] }
0x25a5   : > { %s8092_s10 = sand.u32 1, %s13771_s8   ;;  %p13774_p6 = scmp.ne.s32.totalorder %s13772_s11, 0 }
0x25a6   : > { %p13775_p8 = scmp.ge.s32.totalorder %s13773_s28, 2  ;;  %s8093_s17 = scalar_lea.sflag [#allocation4], %s8092_s10 }
0x25a8   : > { %p9442_p13 = pnand %p13775_p8, %p13774_p6 }
0x25aa   : > { %10719 = dma.done.wait (!%p9442_p13), %s8093_s17, 256  }
0x25ab   : > { %10721 = vsyncadd (!%p9442_p13), %s8093_s17, 4294967040  ;;  %s13776_s30 = sld [smem:[#allocation60_spill]]  ;;  %s13777_s15 = sld [smem:[#allocation61_spill]] }
0x25ac   : > { %s13778_s29 = smov %s10728_s2  ;;  %s13779_s2 = smov %s10732_s6 }
0x25b1   : > { %p54_p1 = scmp.ge.s32.totalorder %s13776_s30, 4   ;;  %s13780_s6 = smov %s13777_s15 }
0x25b3   :  { %56 = sbr.rel (!%p54_p1) target bundleno = 46 (0x2e), region = 320 }
0x25ba   :  { %8098 = vsyncpa [#allocation3], 1 }
0x25bb   :  { %8100 = vsyncpa [#allocation3 + $0x1], 1 }
0x25bc   :  { %8101 = vsyncpa [#allocation6], 1 }
0x25bd   :  { %8103 = vsyncpa [#allocation6 + $0x1], 1 }
0x25be   :  { %8104 = vsyncpa [#allocation9], 1 }
0x25bf   :  { %8106 = vsyncpa [#allocation9 + $0x1], 1 }
0x25c0   :  { %8107 = vsyncpa [#allocation12], 1 }
0x25c1   :  { %8108 = vsyncpa [#allocation15], 1 }
0x25c2   :  { %8109 = vsyncpa [#allocation18], 1 }
0x25c3   :  { %8110 = vsyncpa [#allocation21], 1 }
0x25c4   :  { %8111 = vsyncpa [#allocation24], 1 }
0x25c5   :  { %8112 = vsyncpa [#allocation27], 1 }
0x25c6   :  { %8113 = vsyncpa [#allocation30], 1 }
0x25c7   :  { %8114 = vsyncpa [#allocation33], 1 }
0x25c8   :  { %8115 = vsyncpa [#allocation36], 1 }
0x25c9   :  { %8116 = vsyncpa [#allocation39], 1 }
0x25ca   :  { %8117 = vsyncpa [#allocation4], 1 }
0x25cb   :  { %8119 = vsyncpa [#allocation4 + $0x1], 1 }

</bundles_post_ra>
